<compile_context>
chip_gen: v7x
topology: tpu7x:2x2x1
jax: 0.10.0
libtpu: 0.0.40
codegen_flags: <defaults>
</compile_context>

<pallas_src>
import jax
import jax.numpy as jnp
from jax.experimental import pallas as pl
from jax.experimental.pallas import tpu as pltpu

LRELU_SLOPE = 0.2
KSIZE, STRIDE, PAD = 4, 2, 1
BN_EPS = 1e-5
CP = 128                                # padded output-channel count (lane width)
SHIFTS = ((0, 0), (0, 1), (1, 0), (1, 1))


# ---------------------------------------------------------------------------
# Fused 5-layer kernel (one program per batch element)
# ---------------------------------------------------------------------------
def _make_kernel(outs):
    """outs = per-layer output spatial sizes, e.g. [16, 8, 4, 2, 1]."""
    OH1, OH2, OH3, OH4, OH5 = outs
    assert OH5 == 1

    def kernel(xq_ref, v1_ref, vb_ref, bias_ref, out_ref, q2, q3, q4, q5):
        f32 = jnp.float32

        # Padding ring of every quad scratch must be zero.
        for q in (q2, q3, q4, q5):
            q[...] = jnp.zeros_like(q)

        def psel(width, parity):
            # (width//2, width) 0/1 matrix selecting every other output column.
            half = width // 2
            r = jax.lax.broadcasted_iota(jnp.int32, (half, width), 0)
            c = jax.lax.broadcasted_iota(jnp.int32, (half, width), 1)
            return (c == 2 * r + parity).astype(f32)

        def lrelu(v):
            return jnp.where(v > 0, v, LRELU_SLOPE * v)

        def scatter_row(q_ref, row, oh, width, sel_e, sel_o):
            # Write output row `oh` (shape (width, CP)) into the next layer's
            # quad scratch = space-to-depth(2) of the pad-1 activation.
            hp = (oh + 1) // 2
            i = (oh + 1) % 2
            half = width // 2
            even = jnp.dot(sel_e, row, preferred_element_type=f32)  # ow = 0,2,..
            odd = jnp.dot(sel_o, row, preferred_element_type=f32)   # ow = 1,3,..
            q_ref[hp, 0:half, (i * 2 + 1) * CP:(i * 2 + 2) * CP] = even
            q_ref[hp, 1:half + 1, (i * 2) * CP:(i * 2 + 1) * CP] = odd

        # ---- layer 1: full-slab matmuls over the input quad ----------------
        ow = OH1
        acc = jnp.zeros((ow * ow, CP), f32)
        for s, (dh, dw) in enumerate(SHIFTS):
            lhs = xq_ref[0, dh:dh + ow, dw:dw + ow, :]
            lhs = lhs.reshape(ow * ow, lhs.shape[-1]).astype(jnp.bfloat16)
            acc = acc + jnp.dot(lhs, v1_ref[s], preferred_element_type=f32)
        y = lrelu(acc + bias_ref[0:1, :])
        sel_e, sel_o = psel(ow, 0), psel(ow, 1)
        for oh in range(ow):
            scatter_row(q2, y[oh * ow:(oh + 1) * ow, :], oh, ow, sel_e, sel_o)

        # ---- layer 2: full-slab matmuls over q2 -----------------------------
        ow = OH2
        acc = jnp.zeros((ow * ow, CP), f32)
        for s, (dh, dw) in enumerate(SHIFTS):
            lhs = q2[dh:dh + ow, dw:dw + ow, :]
            lhs = lhs.reshape(ow * ow, 4 * CP).astype(jnp.bfloat16)
            acc = acc + jnp.dot(lhs, vb_ref[0, s], preferred_element_type=f32)
        y = lrelu(acc + bias_ref[1:2, :])
        sel_e, sel_o = psel(ow, 0), psel(ow, 1)
        for oh in range(ow):
            scatter_row(q3, y[oh * ow:(oh + 1) * ow, :], oh, ow, sel_e, sel_o)

        # ---- layers 3 & 4: per-output-row matmuls (spatial width < 8) -------
        for li, (q_in, q_out, ow) in enumerate(((q3, q4, OH3), (q4, q5, OH4))):
            sel_e, sel_o = psel(ow, 0), psel(ow, 1)
            for oh in range(ow):
                acc = jnp.zeros((ow, CP), f32)
                for s, (dh, dw) in enumerate(SHIFTS):
                    lhs = q_in[oh + dh, dw:dw + ow, :].astype(jnp.bfloat16)
                    acc = acc + jnp.dot(lhs, vb_ref[li + 1, s],
                                        preferred_element_type=f32)
                row = lrelu(acc + bias_ref[li + 2:li + 3, :])
                scatter_row(q_out, row, oh, ow, sel_e, sel_o)

        # ---- layer 5: 1x1 spatial output, no BN, sigmoid --------------------
        acc = jnp.zeros((1, CP), f32)
        for s, (dh, dw) in enumerate(SHIFTS):
            lhs = q5[dh, dw:dw + 1, :].astype(jnp.bfloat16)
            acc = acc + jnp.dot(lhs, vb_ref[3, s], preferred_element_type=f32)
        z = acc + bias_ref[4:5, :]
        sig = pl.reciprocal(1.0 + jnp.exp(-z), approx=True)
        out_ref[0, :, :] = jnp.broadcast_to(sig, (out_ref.shape[1], CP))

    return kernel


# ---------------------------------------------------------------------------
# Trace-time preprocessing: BN folding, quad weight layout, space-to-depth
# ---------------------------------------------------------------------------
def _fold_bn(p, last):
    w, b = p["w"], p["b"]                       # w: (4, 4, cin, cout)
    if last:
        return w, b
    scale = p["gamma"] * jax.lax.rsqrt(p["rv"] + BN_EPS)
    bias = p["beta"] + (b - p["rm"]) * scale
    return w * scale, bias                      # BN scale folded into weights


def _quad_weights(w, cin_pad):
    """(4,4,cin,cout) conv weights -> (4_shifts, 4*cin_pad, CP) matmul weights
    for the 2x2 conv over the space-to-depth layout, Cout zero-padded to CP."""
    cin, cout = w.shape[2], w.shape[3]
    v = jnp.zeros((4, 4 * cin_pad, CP), jnp.float32)
    for dh in range(2):
        for dw in range(2):
            for i in range(2):
                for j in range(2):
                    blk = w[2 * dh + i, 2 * dw + j]          # (cin, cout)
                    v = v.at[dh * 2 + dw,
                             (i * 2 + j) * cin_pad:(i * 2 + j) * cin_pad + cin,
                             :cout].set(blk)
    return v


def _space_to_depth_pad1(x):
    """NHWC -> zero-pad 1 -> 2x2 space-to-depth: (N, H/2+1, W/2+1, 4*C)."""
    xp = jnp.pad(x, ((0, 0), (PAD, PAD), (PAD, PAD), (0, 0)))
    n, hp, wp, c = xp.shape
    xq = xp.reshape(n, hp // 2, 2, wp // 2, 2, c).transpose(0, 1, 3, 2, 4, 5)
    return xq.reshape(n, hp // 2, wp // 2, 4 * c)


def _pad_bias(b):
    return jnp.zeros((CP,), jnp.float32).at[:b.shape[0]].set(b)


# ---------------------------------------------------------------------------
# Forward pass
# ---------------------------------------------------------------------------
def discriminator_forward(x_nchw, params):
    x = jnp.transpose(x_nchw, (0, 2, 3, 1)).astype(jnp.float32)   # -> NHWC
    n, h, w, cin = x.shape
    assert h == w == 32, "kernel is specialized to 32x32 inputs (final 1x1 map)"
    outs = [h // (2 ** (l + 1)) for l in range(5)]                # [16,8,4,2,1]

    # Fold BN + conv bias, rearrange to quad layout, pad Cout to 128 lanes,
    # store matmul weights in bf16 (MXU operands).
    w1, b1 = _fold_bn(params[0], last=False)
    v1 = _quad_weights(w1, cin_pad=cin).astype(jnp.bfloat16)      # (4, 4*cin, 128)
    vbig, biases = [], [_pad_bias(b1)]
    for li in range(1, 5):
        wl, bl = _fold_bn(params[li], last=(li == 4))
        vbig.append(_quad_weights(wl, cin_pad=CP))
        biases.append(_pad_bias(bl))
    vbig = jnp.stack(vbig).astype(jnp.bfloat16)                   # (4, 4, 512, 128)
    biases = jnp.stack(biases)                                    # (5, 128) f32

    xq = _space_to_depth_pad1(x)                                  # (N, 17, 17, 4*cin)
    qc = 4 * CP

    out = pl.pallas_call(
        _make_kernel(outs),
        out_shape=jax.ShapeDtypeStruct((n, 8, CP), jnp.float32),
        grid_spec=pltpu.PrefetchScalarGridSpec(
            num_scalar_prefetch=0,
            grid=(n,),                                            # one image / program
            in_specs=[
                pl.BlockSpec((1,) + xq.shape[1:], lambda b: (b, 0, 0, 0)),
                pl.BlockSpec(v1.shape, lambda b: (0, 0, 0)),
                pl.BlockSpec(vbig.shape, lambda b: (0, 0, 0, 0)),
                pl.BlockSpec(biases.shape, lambda b: (0, 0)),
            ],
            out_specs=pl.BlockSpec((1, 8, CP), lambda b: (b, 0, 0)),
            scratch_shapes=[                                      # VMEM-resident acts
                pltpu.VMEM((outs[1] + 1, outs[1] + 1, qc), jnp.float32),
                pltpu.VMEM((outs[2] + 1, outs[2] + 1, qc), jnp.float32),
                pltpu.VMEM((outs[3] + 1, outs[3] + 1, qc), jnp.float32),
                pltpu.VMEM((outs[4] + 1, outs[4] + 1, qc), jnp.float32),
            ],
        ),
        compiler_params=pltpu.CompilerParams(
            dimension_semantics=("parallel",),                    # v7x: 2 TCs
        ),
    )(xq, v1, vbig, biases)
    # real out_channels = 1 (padded to 128 lanes inside the kernel)
    return out[:, 0, :1]


# ---------------------------------------------------------------------------
# Parameter init + pure-JAX f32 reference (correctness sanity check)
# ---------------------------------------------------------------------------
def init_params(key, in_channels=4, out_channels=1, num_filters=16):
    chans = [in_channels, num_filters, num_filters * 2, num_filters * 4,
             num_filters * 8, out_channels]
    params = []
    for li in range(5):
        cin, cout = chans[li], chans[li + 1]
        key, kw, kb, kg, kbe, krm, krv = jax.random.split(key, 7)
        fan_in = cin * KSIZE * KSIZE
        w = jax.random.normal(kw, (KSIZE, KSIZE, cin, cout),
                              jnp.float32) / jnp.sqrt(fan_in)
        b = 0.01 * jax.random.normal(kb, (cout,), jnp.float32)
        if li < 4:
            params.append(dict(
                w=w, b=b,
                gamma=1.0 + 0.1 * jax.random.normal(kg, (cout,), jnp.float32),
                beta=0.1 * jax.random.normal(kbe, (cout,), jnp.float32),
                rm=0.1 * jax.random.normal(krm, (cout,), jnp.float32),
                rv=1.0 + 0.1 * jax.random.uniform(krv, (cout,), jnp.float32)))
        else:
            params.append(dict(w=w, b=b))
    return params


def reference_forward(x_nchw, params):
    x = jnp.transpose(x_nchw, (0, 2, 3, 1)).astype(jnp.float32)
    for li, p in enumerate(params):
        y = jax.lax.conv_general_dilated(
            x, p["w"], window_strides=(STRIDE, STRIDE),
            padding=[(PAD, PAD), (PAD, PAD)],
            dimension_numbers=("NHWC", "HWIO", "NHWC")) + p["b"]
        if li < 4:
            scale = p["gamma"] * jax.lax.rsqrt(p["rv"] + BN_EPS)
            y = (y - p["rm"]) * scale + p["beta"]
            x = jnp.where(y > 0, y, LRELU_SLOPE * y)
        else:
            y = jax.nn.sigmoid(y)
    return y.reshape(y.shape[0], -1).reshape(-1, 1)


if __name__ == "__main__":
    key = jax.random.PRNGKey(0)
    k_x, k_p = jax.random.split(key)

    # batch=2, N_CLASSES=4 channels, 32x32 spatial (the minimum spatial size
    # that survives five stride-2 convs down to a 1x1 map).
    x = jax.random.normal(k_x, (2, 4, 32, 32), dtype=jnp.float32)
    params = init_params(k_p, in_channels=4, out_channels=1, num_filters=16)

    out = jax.block_until_ready(jax.jit(discriminator_forward)(x, params))
    ref = jax.block_until_ready(jax.jit(reference_forward)(x, params))

    assert out.shape == (2, 1), out.shape
    # bf16 MXU operands + approx reciprocal vs. the f32 reference
    assert jnp.allclose(out, ref, atol=3e-2, rtol=0.0), (out, ref)
    print("KERNEL_OK")
</pallas_src>

<mosaic_0001>
module attributes {stable_mosaic.version = 11 : i64} {
  func.func @kernel(%arg0: i32, %arg1: memref<1x17x17x16xf32, #tpu.memory_space<vmem>>, %arg2: memref<4x16x128xbf16, #tpu.memory_space<vmem>>, %arg3: memref<4x4x512x128xbf16, #tpu.memory_space<vmem>>, %arg4: memref<5x128xf32, #tpu.memory_space<vmem>>, %arg5: memref<1x8x128xf32, #tpu.memory_space<vmem>>, %arg6: memref<9x9x512xf32, #tpu.memory_space<vmem>>, %arg7: memref<5x5x512xf32, #tpu.memory_space<vmem>>, %arg8: memref<3x3x512xf32, #tpu.memory_space<vmem>>, %arg9: memref<2x2x512xf32, #tpu.memory_space<vmem>>) attributes {dimension_semantics = [#tpu.dimension_semantics<parallel>], iteration_bounds = array<i64: 2>, scalar_prefetch = 0 : i64, scratch_operands = 4 : i64, tpu.core_type = #tpu.core_type<tc>, window_params = [{transform_indices = @transform_0, window_bounds = array<i64: 1, 17, 17, 16>}, {pipeline_mode = #tpu.pipeline_mode<synchronous>, transform_indices = @transform_1, window_bounds = array<i64: 4, 16, 128>}, {pipeline_mode = #tpu.pipeline_mode<synchronous>, transform_indices = @transform_2, window_bounds = array<i64: 4, 4, 512, 128>}, {pipeline_mode = #tpu.pipeline_mode<synchronous>, transform_indices = @transform_3, window_bounds = array<i64: 5, 128>}, {transform_indices = @transform_4, window_bounds = array<i64: 1, 8, 128>}]} {
    %cst = arith.constant 0.000000e+00 : f32
    %0 = vector.broadcast %cst : f32 to vector<9x9x512xf32>
    %c0 = arith.constant 0 : index
    %c0_0 = arith.constant 0 : index
    %c0_1 = arith.constant 0 : index
    %1 = vector.load %arg6[%c0, %c0_0, %c0_1] : memref<9x9x512xf32, #tpu.memory_space<vmem>>, vector<9x9x512xf32>
    tpu.vector_store %arg6[%c0, %c0_0, %c0_1], %0 {strides = array<i32>} : memref<9x9x512xf32, #tpu.memory_space<vmem>>, vector<9x9x512xf32>,
    %cst_2 = arith.constant 0.000000e+00 : f32
    %2 = vector.broadcast %cst_2 : f32 to vector<5x5x512xf32>
    %c0_3 = arith.constant 0 : index
    %c0_4 = arith.constant 0 : index
    %c0_5 = arith.constant 0 : index
    %3 = vector.load %arg7[%c0_3, %c0_4, %c0_5] : memref<5x5x512xf32, #tpu.memory_space<vmem>>, vector<5x5x512xf32>
    tpu.vector_store %arg7[%c0_3, %c0_4, %c0_5], %2 {strides = array<i32>} : memref<5x5x512xf32, #tpu.memory_space<vmem>>, vector<5x5x512xf32>,
    %cst_6 = arith.constant 0.000000e+00 : f32
    %4 = vector.broadcast %cst_6 : f32 to vector<3x3x512xf32>
    %c0_7 = arith.constant 0 : index
    %c0_8 = arith.constant 0 : index
    %c0_9 = arith.constant 0 : index
    %5 = vector.load %arg8[%c0_7, %c0_8, %c0_9] : memref<3x3x512xf32, #tpu.memory_space<vmem>>, vector<3x3x512xf32>
    tpu.vector_store %arg8[%c0_7, %c0_8, %c0_9], %4 {strides = array<i32>} : memref<3x3x512xf32, #tpu.memory_space<vmem>>, vector<3x3x512xf32>,
    %cst_10 = arith.constant 0.000000e+00 : f32
    %6 = vector.broadcast %cst_10 : f32 to vector<2x2x512xf32>
    %c0_11 = arith.constant 0 : index
    %c0_12 = arith.constant 0 : index
    %c0_13 = arith.constant 0 : index
    %7 = vector.load %arg9[%c0_11, %c0_12, %c0_13] : memref<2x2x512xf32, #tpu.memory_space<vmem>>, vector<2x2x512xf32>
    tpu.vector_store %arg9[%c0_11, %c0_12, %c0_13], %6 {strides = array<i32>} : memref<2x2x512xf32, #tpu.memory_space<vmem>>, vector<2x2x512xf32>,
    %cst_14 = arith.constant 0.000000e+00 : f32
    %8 = vector.broadcast %cst_14 : f32 to vector<256x128xf32>
    %c0_15 = arith.constant 0 : index
    %c0_16 = arith.constant 0 : index
    %c0_17 = arith.constant 0 : index
    %c0_18 = arith.constant 0 : index
    %9 = vector.load %arg1[%c0_15, %c0_16, %c0_17, %c0_18] : memref<1x17x17x16xf32, #tpu.memory_space<vmem>>, vector<1x16x16x16xf32>
    %10 = vector.shape_cast %9 : vector<1x16x16x16xf32> to vector<16x16x16xf32>
    %11 = vector.shape_cast %10 : vector<16x16x16xf32> to vector<256x16xf32>
    %12 = arith.truncf %11 : vector<256x16xf32> to vector<256x16xbf16>
    %c0_19 = arith.constant 0 : index
    %c0_20 = arith.constant 0 : index
    %c0_21 = arith.constant 0 : index
    %13 = vector.load %arg2[%c0_19, %c0_20, %c0_21] : memref<4x16x128xbf16, #tpu.memory_space<vmem>>, vector<1x16x128xbf16>
    %14 = vector.shape_cast %13 : vector<1x16x128xbf16> to vector<16x128xbf16>
    %cst_22 = arith.constant dense<0.000000e+00> : vector<256x128xf32>
    %15 = tpu.matmul %12, %14, %cst_22 {dimension_numbers = #tpu.dot_dimension_numbers<[1], [0], [0], [1], [0, 0, 1, 1], [], []>} : vector<256x16xbf16>, vector<16x128xbf16>, vector<256x128xf32> -> vector<256x128xf32>
    %16 = arith.addf %8, %15 : vector<256x128xf32>
    %c0_23 = arith.constant 0 : index
    %c0_24 = arith.constant 0 : index
    %c1 = arith.constant 1 : index
    %c0_25 = arith.constant 0 : index
    %17 = vector.load %arg1[%c0_23, %c0_24, %c1, %c0_25] : memref<1x17x17x16xf32, #tpu.memory_space<vmem>>, vector<1x16x16x16xf32>
    %18 = vector.shape_cast %17 : vector<1x16x16x16xf32> to vector<16x16x16xf32>
    %19 = vector.shape_cast %18 : vector<16x16x16xf32> to vector<256x16xf32>
    %20 = arith.truncf %19 : vector<256x16xf32> to vector<256x16xbf16>
    %c1_26 = arith.constant 1 : index
    %c0_27 = arith.constant 0 : index
    %c0_28 = arith.constant 0 : index
    %21 = vector.load %arg2[%c1_26, %c0_27, %c0_28] : memref<4x16x128xbf16, #tpu.memory_space<vmem>>, vector<1x16x128xbf16>
    %22 = vector.shape_cast %21 : vector<1x16x128xbf16> to vector<16x128xbf16>
    %cst_29 = arith.constant dense<0.000000e+00> : vector<256x128xf32>
    %23 = tpu.matmul %20, %22, %cst_29 {dimension_numbers = #tpu.dot_dimension_numbers<[1], [0], [0], [1], [0, 0, 1, 1], [], []>} : vector<256x16xbf16>, vector<16x128xbf16>, vector<256x128xf32> -> vector<256x128xf32>
    %24 = arith.addf %16, %23 : vector<256x128xf32>
    %c0_30 = arith.constant 0 : index
    %c1_31 = arith.constant 1 : index
    %c0_32 = arith.constant 0 : index
    %c0_33 = arith.constant 0 : index
    %25 = vector.load %arg1[%c0_30, %c1_31, %c0_32, %c0_33] : memref<1x17x17x16xf32, #tpu.memory_space<vmem>>, vector<1x16x16x16xf32>
    %26 = vector.shape_cast %25 : vector<1x16x16x16xf32> to vector<16x16x16xf32>
    %27 = vector.shape_cast %26 : vector<16x16x16xf32> to vector<256x16xf32>
    %28 = arith.truncf %27 : vector<256x16xf32> to vector<256x16xbf16>
    %c2 = arith.constant 2 : index
    %c0_34 = arith.constant 0 : index
    %c0_35 = arith.constant 0 : index
    %29 = vector.load %arg2[%c2, %c0_34, %c0_35] : memref<4x16x128xbf16, #tpu.memory_space<vmem>>, vector<1x16x128xbf16>
    %30 = vector.shape_cast %29 : vector<1x16x128xbf16> to vector<16x128xbf16>
    %cst_36 = arith.constant dense<0.000000e+00> : vector<256x128xf32>
    %31 = tpu.matmul %28, %30, %cst_36 {dimension_numbers = #tpu.dot_dimension_numbers<[1], [0], [0], [1], [0, 0, 1, 1], [], []>} : vector<256x16xbf16>, vector<16x128xbf16>, vector<256x128xf32> -> vector<256x128xf32>
    %32 = arith.addf %24, %31 : vector<256x128xf32>
    %c0_37 = arith.constant 0 : index
    %c1_38 = arith.constant 1 : index
    %c1_39 = arith.constant 1 : index
    %c0_40 = arith.constant 0 : index
    %33 = vector.load %arg1[%c0_37, %c1_38, %c1_39, %c0_40] : memref<1x17x17x16xf32, #tpu.memory_space<vmem>>, vector<1x16x16x16xf32>
    %34 = vector.shape_cast %33 : vector<1x16x16x16xf32> to vector<16x16x16xf32>
    %35 = vector.shape_cast %34 : vector<16x16x16xf32> to vector<256x16xf32>
    %36 = arith.truncf %35 : vector<256x16xf32> to vector<256x16xbf16>
    %c3 = arith.constant 3 : index
    %c0_41 = arith.constant 0 : index
    %c0_42 = arith.constant 0 : index
    %37 = vector.load %arg2[%c3, %c0_41, %c0_42] : memref<4x16x128xbf16, #tpu.memory_space<vmem>>, vector<1x16x128xbf16>
    %38 = vector.shape_cast %37 : vector<1x16x128xbf16> to vector<16x128xbf16>
    %cst_43 = arith.constant dense<0.000000e+00> : vector<256x128xf32>
    %39 = tpu.matmul %36, %38, %cst_43 {dimension_numbers = #tpu.dot_dimension_numbers<[1], [0], [0], [1], [0, 0, 1, 1], [], []>} : vector<256x16xbf16>, vector<16x128xbf16>, vector<256x128xf32> -> vector<256x128xf32>
    %40 = arith.addf %32, %39 : vector<256x128xf32>
    %c0_44 = arith.constant 0 : index
    %c0_45 = arith.constant 0 : index
    %41 = vector.load %arg4[%c0_44, %c0_45] : memref<5x128xf32, #tpu.memory_space<vmem>>, vector<1x128xf32>
    %42 = vector.broadcast %41 : vector<1x128xf32> to vector<256x128xf32>
    %43 = arith.addf %40, %42 : vector<256x128xf32>
    %cst_46 = arith.constant 0.000000e+00 : f32
    %44 = vector.broadcast %cst_46 : f32 to vector<256x128xf32>
    %45 = arith.cmpf ogt, %43, %44 : vector<256x128xf32>
    %cst_47 = arith.constant 2.000000e-01 : f32
    %46 = vector.broadcast %cst_47 : f32 to vector<256x128xf32>
    %47 = arith.mulf %46, %43 : vector<256x128xf32>
    %48 = arith.select %45, %43, %47 : vector<256x128xi1>, vector<256x128xf32>
    %49 = tpu.iota {dimensions = array<i32: 0>} : vector<8x16xi32>
    %50 = tpu.iota {dimensions = array<i32: 1>} : vector<8x16xi32>
    %c2_i32 = arith.constant 2 : i32
    %51 = vector.broadcast %c2_i32 : i32 to vector<8x16xi32>
    %52 = arith.muli %51, %49 : vector<8x16xi32>
    %c0_i32 = arith.constant 0 : i32
    %53 = vector.broadcast %c0_i32 : i32 to vector<8x16xi32>
    %54 = arith.addi %52, %53 : vector<8x16xi32>
    %55 = arith.cmpi eq, %50, %54 : vector<8x16xi32>
    %56 = arith.extui %55 : vector<8x16xi1> to vector<8x16xi32>
    %57 = arith.sitofp %56 : vector<8x16xi32> to vector<8x16xf32>
    %58 = tpu.iota {dimensions = array<i32: 0>} : vector<8x16xi32>
    %59 = tpu.iota {dimensions = array<i32: 1>} : vector<8x16xi32>
    %c2_i32_48 = arith.constant 2 : i32
    %60 = vector.broadcast %c2_i32_48 : i32 to vector<8x16xi32>
    %61 = arith.muli %60, %58 : vector<8x16xi32>
    %c1_i32 = arith.constant 1 : i32
    %62 = vector.broadcast %c1_i32 : i32 to vector<8x16xi32>
    %63 = arith.addi %61, %62 : vector<8x16xi32>
    %64 = arith.cmpi eq, %59, %63 : vector<8x16xi32>
    %65 = arith.extui %64 : vector<8x16xi1> to vector<8x16xi32>
    %66 = arith.sitofp %65 : vector<8x16xi32> to vector<8x16xf32>
    %67 = vector.extract_strided_slice %48 {offsets = [0, 0], sizes = [16, 128], strides = [1, 1]} : vector<256x128xf32> to vector<16x128xf32>
    %cst_49 = arith.constant dense<0.000000e+00> : vector<8x128xf32>
    %68 = tpu.matmul %57, %67, %cst_49 {dimension_numbers = #tpu.dot_dimension_numbers<[1], [0], [0], [1], [0, 0, 1, 1], [], []>} : vector<8x16xf32>, vector<16x128xf32>, vector<8x128xf32> -> vector<8x128xf32>
    %cst_50 = arith.constant dense<0.000000e+00> : vector<8x128xf32>
    %69 = tpu.matmul %66, %67, %cst_50 {dimension_numbers = #tpu.dot_dimension_numbers<[1], [0], [0], [1], [0, 0, 1, 1], [], []>} : vector<8x16xf32>, vector<16x128xf32>, vector<8x128xf32> -> vector<8x128xf32>
    %c0_51 = arith.constant 0 : index
    %c0_52 = arith.constant 0 : index
    %c384 = arith.constant 384 : index
    %70 = vector.load %arg6[%c0_51, %c0_52, %c384] : memref<9x9x512xf32, #tpu.memory_space<vmem>>, vector<1x8x128xf32>
    %71 = vector.shape_cast %70 : vector<1x8x128xf32> to vector<8x128xf32>
    %72 = vector.shape_cast %68 : vector<8x128xf32> to vector<1x8x128xf32>
    tpu.vector_store %arg6[%c0_51, %c0_52, %c384], %72 {strides = array<i32>} : memref<9x9x512xf32, #tpu.memory_space<vmem>>, vector<1x8x128xf32>,
    %c0_53 = arith.constant 0 : index
    %c1_54 = arith.constant 1 : index
    %c256 = arith.constant 256 : index
    %73 = vector.load %arg6[%c0_53, %c1_54, %c256] : memref<9x9x512xf32, #tpu.memory_space<vmem>>, vector<1x8x128xf32>
    %74 = vector.shape_cast %73 : vector<1x8x128xf32> to vector<8x128xf32>
    %75 = vector.shape_cast %69 : vector<8x128xf32> to vector<1x8x128xf32>
    tpu.vector_store %arg6[%c0_53, %c1_54, %c256], %75 {strides = array<i32>} : memref<9x9x512xf32, #tpu.memory_space<vmem>>, vector<1x8x128xf32>,
    %76 = vector.extract_strided_slice %48 {offsets = [16, 0], sizes = [16, 128], strides = [1, 1]} : vector<256x128xf32> to vector<16x128xf32>
    %cst_55 = arith.constant dense<0.000000e+00> : vector<8x128xf32>
    %77 = tpu.matmul %57, %76, %cst_55 {dimension_numbers = #tpu.dot_dimension_numbers<[1], [0], [0], [1], [0, 0, 1, 1], [], []>} : vector<8x16xf32>, vector<16x128xf32>, vector<8x128xf32> -> vector<8x128xf32>
    %cst_56 = arith.constant dense<0.000000e+00> : vector<8x128xf32>
    %78 = tpu.matmul %66, %76, %cst_56 {dimension_numbers = #tpu.dot_dimension_numbers<[1], [0], [0], [1], [0, 0, 1, 1], [], []>} : vector<8x16xf32>, vector<16x128xf32>, vector<8x128xf32> -> vector<8x128xf32>
    %c1_57 = arith.constant 1 : index
    %c0_58 = arith.constant 0 : index
    %c128 = arith.constant 128 : index
    %79 = vector.load %arg6[%c1_57, %c0_58, %c128] : memref<9x9x512xf32, #tpu.memory_space<vmem>>, vector<1x8x128xf32>
    %80 = vector.shape_cast %79 : vector<1x8x128xf32> to vector<8x128xf32>
    %81 = vector.shape_cast %77 : vector<8x128xf32> to vector<1x8x128xf32>
    tpu.vector_store %arg6[%c1_57, %c0_58, %c128], %81 {strides = array<i32>} : memref<9x9x512xf32, #tpu.memory_space<vmem>>, vector<1x8x128xf32>,
    %c1_59 = arith.constant 1 : index
    %c1_60 = arith.constant 1 : index
    %c0_61 = arith.constant 0 : index
    %82 = vector.load %arg6[%c1_59, %c1_60, %c0_61] : memref<9x9x512xf32, #tpu.memory_space<vmem>>, vector<1x8x128xf32>
    %83 = vector.shape_cast %82 : vector<1x8x128xf32> to vector<8x128xf32>
    %84 = vector.shape_cast %78 : vector<8x128xf32> to vector<1x8x128xf32>
    tpu.vector_store %arg6[%c1_59, %c1_60, %c0_61], %84 {strides = array<i32>} : memref<9x9x512xf32, #tpu.memory_space<vmem>>, vector<1x8x128xf32>,
    %85 = vector.extract_strided_slice %48 {offsets = [32, 0], sizes = [16, 128], strides = [1, 1]} : vector<256x128xf32> to vector<16x128xf32>
    %cst_62 = arith.constant dense<0.000000e+00> : vector<8x128xf32>
    %86 = tpu.matmul %57, %85, %cst_62 {dimension_numbers = #tpu.dot_dimension_numbers<[1], [0], [0], [1], [0, 0, 1, 1], [], []>} : vector<8x16xf32>, vector<16x128xf32>, vector<8x128xf32> -> vector<8x128xf32>
    %cst_63 = arith.constant dense<0.000000e+00> : vector<8x128xf32>
    %87 = tpu.matmul %66, %85, %cst_63 {dimension_numbers = #tpu.dot_dimension_numbers<[1], [0], [0], [1], [0, 0, 1, 1], [], []>} : vector<8x16xf32>, vector<16x128xf32>, vector<8x128xf32> -> vector<8x128xf32>
    %c1_64 = arith.constant 1 : index
    %c0_65 = arith.constant 0 : index
    %c384_66 = arith.constant 384 : index
    %88 = vector.load %arg6[%c1_64, %c0_65, %c384_66] : memref<9x9x512xf32, #tpu.memory_space<vmem>>, vector<1x8x128xf32>
    %89 = vector.shape_cast %88 : vector<1x8x128xf32> to vector<8x128xf32>
    %90 = vector.shape_cast %86 : vector<8x128xf32> to vector<1x8x128xf32>
    tpu.vector_store %arg6[%c1_64, %c0_65, %c384_66], %90 {strides = array<i32>} : memref<9x9x512xf32, #tpu.memory_space<vmem>>, vector<1x8x128xf32>,
    %c1_67 = arith.constant 1 : index
    %c1_68 = arith.constant 1 : index
    %c256_69 = arith.constant 256 : index
    %91 = vector.load %arg6[%c1_67, %c1_68, %c256_69] : memref<9x9x512xf32, #tpu.memory_space<vmem>>, vector<1x8x128xf32>
    %92 = vector.shape_cast %91 : vector<1x8x128xf32> to vector<8x128xf32>
    %93 = vector.shape_cast %87 : vector<8x128xf32> to vector<1x8x128xf32>
    tpu.vector_store %arg6[%c1_67, %c1_68, %c256_69], %93 {strides = array<i32>} : memref<9x9x512xf32, #tpu.memory_space<vmem>>, vector<1x8x128xf32>,
    %94 = vector.extract_strided_slice %48 {offsets = [48, 0], sizes = [16, 128], strides = [1, 1]} : vector<256x128xf32> to vector<16x128xf32>
    %cst_70 = arith.constant dense<0.000000e+00> : vector<8x128xf32>
    %95 = tpu.matmul %57, %94, %cst_70 {dimension_numbers = #tpu.dot_dimension_numbers<[1], [0], [0], [1], [0, 0, 1, 1], [], []>} : vector<8x16xf32>, vector<16x128xf32>, vector<8x128xf32> -> vector<8x128xf32>
    %cst_71 = arith.constant dense<0.000000e+00> : vector<8x128xf32>
    %96 = tpu.matmul %66, %94, %cst_71 {dimension_numbers = #tpu.dot_dimension_numbers<[1], [0], [0], [1], [0, 0, 1, 1], [], []>} : vector<8x16xf32>, vector<16x128xf32>, vector<8x128xf32> -> vector<8x128xf32>
    %c2_72 = arith.constant 2 : index
    %c0_73 = arith.constant 0 : index
    %c128_74 = arith.constant 128 : index
    %97 = vector.load %arg6[%c2_72, %c0_73, %c128_74] : memref<9x9x512xf32, #tpu.memory_space<vmem>>, vector<1x8x128xf32>
    %98 = vector.shape_cast %97 : vector<1x8x128xf32> to vector<8x128xf32>
    %99 = vector.shape_cast %95 : vector<8x128xf32> to vector<1x8x128xf32>
    tpu.vector_store %arg6[%c2_72, %c0_73, %c128_74], %99 {strides = array<i32>} : memref<9x9x512xf32, #tpu.memory_space<vmem>>, vector<1x8x128xf32>,
    %c2_75 = arith.constant 2 : index
    %c1_76 = arith.constant 1 : index
    %c0_77 = arith.constant 0 : index
    %100 = vector.load %arg6[%c2_75, %c1_76, %c0_77] : memref<9x9x512xf32, #tpu.memory_space<vmem>>, vector<1x8x128xf32>
    %101 = vector.shape_cast %100 : vector<1x8x128xf32> to vector<8x128xf32>
    %102 = vector.shape_cast %96 : vector<8x128xf32> to vector<1x8x128xf32>
    tpu.vector_store %arg6[%c2_75, %c1_76, %c0_77], %102 {strides = array<i32>} : memref<9x9x512xf32, #tpu.memory_space<vmem>>, vector<1x8x128xf32>,
    %103 = vector.extract_strided_slice %48 {offsets = [64, 0], sizes = [16, 128], strides = [1, 1]} : vector<256x128xf32> to vector<16x128xf32>
    %cst_78 = arith.constant dense<0.000000e+00> : vector<8x128xf32>
    %104 = tpu.matmul %57, %103, %cst_78 {dimension_numbers = #tpu.dot_dimension_numbers<[1], [0], [0], [1], [0, 0, 1, 1], [], []>} : vector<8x16xf32>, vector<16x128xf32>, vector<8x128xf32> -> vector<8x128xf32>
    %cst_79 = arith.constant dense<0.000000e+00> : vector<8x128xf32>
    %105 = tpu.matmul %66, %103, %cst_79 {dimension_numbers = #tpu.dot_dimension_numbers<[1], [0], [0], [1], [0, 0, 1, 1], [], []>} : vector<8x16xf32>, vector<16x128xf32>, vector<8x128xf32> -> vector<8x128xf32>
    %c2_80 = arith.constant 2 : index
    %c0_81 = arith.constant 0 : index
    %c384_82 = arith.constant 384 : index
    %106 = vector.load %arg6[%c2_80, %c0_81, %c384_82] : memref<9x9x512xf32, #tpu.memory_space<vmem>>, vector<1x8x128xf32>
    %107 = vector.shape_cast %106 : vector<1x8x128xf32> to vector<8x128xf32>
    %108 = vector.shape_cast %104 : vector<8x128xf32> to vector<1x8x128xf32>
    tpu.vector_store %arg6[%c2_80, %c0_81, %c384_82], %108 {strides = array<i32>} : memref<9x9x512xf32, #tpu.memory_space<vmem>>, vector<1x8x128xf32>,
    %c2_83 = arith.constant 2 : index
    %c1_84 = arith.constant 1 : index
    %c256_85 = arith.constant 256 : index
    %109 = vector.load %arg6[%c2_83, %c1_84, %c256_85] : memref<9x9x512xf32, #tpu.memory_space<vmem>>, vector<1x8x128xf32>
    %110 = vector.shape_cast %109 : vector<1x8x128xf32> to vector<8x128xf32>
    %111 = vector.shape_cast %105 : vector<8x128xf32> to vector<1x8x128xf32>
    tpu.vector_store %arg6[%c2_83, %c1_84, %c256_85], %111 {strides = array<i32>} : memref<9x9x512xf32, #tpu.memory_space<vmem>>, vector<1x8x128xf32>,
    %112 = vector.extract_strided_slice %48 {offsets = [80, 0], sizes = [16, 128], strides = [1, 1]} : vector<256x128xf32> to vector<16x128xf32>
    %cst_86 = arith.constant dense<0.000000e+00> : vector<8x128xf32>
    %113 = tpu.matmul %57, %112, %cst_86 {dimension_numbers = #tpu.dot_dimension_numbers<[1], [0], [0], [1], [0, 0, 1, 1], [], []>} : vector<8x16xf32>, vector<16x128xf32>, vector<8x128xf32> -> vector<8x128xf32>
    %cst_87 = arith.constant dense<0.000000e+00> : vector<8x128xf32>
    %114 = tpu.matmul %66, %112, %cst_87 {dimension_numbers = #tpu.dot_dimension_numbers<[1], [0], [0], [1], [0, 0, 1, 1], [], []>} : vector<8x16xf32>, vector<16x128xf32>, vector<8x128xf32> -> vector<8x128xf32>
    %c3_88 = arith.constant 3 : index
    %c0_89 = arith.constant 0 : index
    %c128_90 = arith.constant 128 : index
    %115 = vector.load %arg6[%c3_88, %c0_89, %c128_90] : memref<9x9x512xf32, #tpu.memory_space<vmem>>, vector<1x8x128xf32>
    %116 = vector.shape_cast %115 : vector<1x8x128xf32> to vector<8x128xf32>
    %117 = vector.shape_cast %113 : vector<8x128xf32> to vector<1x8x128xf32>
    tpu.vector_store %arg6[%c3_88, %c0_89, %c128_90], %117 {strides = array<i32>} : memref<9x9x512xf32, #tpu.memory_space<vmem>>, vector<1x8x128xf32>,
    %c3_91 = arith.constant 3 : index
    %c1_92 = arith.constant 1 : index
    %c0_93 = arith.constant 0 : index
    %118 = vector.load %arg6[%c3_91, %c1_92, %c0_93] : memref<9x9x512xf32, #tpu.memory_space<vmem>>, vector<1x8x128xf32>
    %119 = vector.shape_cast %118 : vector<1x8x128xf32> to vector<8x128xf32>
    %120 = vector.shape_cast %114 : vector<8x128xf32> to vector<1x8x128xf32>
    tpu.vector_store %arg6[%c3_91, %c1_92, %c0_93], %120 {strides = array<i32>} : memref<9x9x512xf32, #tpu.memory_space<vmem>>, vector<1x8x128xf32>,
    %121 = vector.extract_strided_slice %48 {offsets = [96, 0], sizes = [16, 128], strides = [1, 1]} : vector<256x128xf32> to vector<16x128xf32>
    %cst_94 = arith.constant dense<0.000000e+00> : vector<8x128xf32>
    %122 = tpu.matmul %57, %121, %cst_94 {dimension_numbers = #tpu.dot_dimension_numbers<[1], [0], [0], [1], [0, 0, 1, 1], [], []>} : vector<8x16xf32>, vector<16x128xf32>, vector<8x128xf32> -> vector<8x128xf32>
    %cst_95 = arith.constant dense<0.000000e+00> : vector<8x128xf32>
    %123 = tpu.matmul %66, %121, %cst_95 {dimension_numbers = #tpu.dot_dimension_numbers<[1], [0], [0], [1], [0, 0, 1, 1], [], []>} : vector<8x16xf32>, vector<16x128xf32>, vector<8x128xf32> -> vector<8x128xf32>
    %c3_96 = arith.constant 3 : index
    %c0_97 = arith.constant 0 : index
    %c384_98 = arith.constant 384 : index
    %124 = vector.load %arg6[%c3_96, %c0_97, %c384_98] : memref<9x9x512xf32, #tpu.memory_space<vmem>>, vector<1x8x128xf32>
    %125 = vector.shape_cast %124 : vector<1x8x128xf32> to vector<8x128xf32>
    %126 = vector.shape_cast %122 : vector<8x128xf32> to vector<1x8x128xf32>
    tpu.vector_store %arg6[%c3_96, %c0_97, %c384_98], %126 {strides = array<i32>} : memref<9x9x512xf32, #tpu.memory_space<vmem>>, vector<1x8x128xf32>,
    %c3_99 = arith.constant 3 : index
    %c1_100 = arith.constant 1 : index
    %c256_101 = arith.constant 256 : index
    %127 = vector.load %arg6[%c3_99, %c1_100, %c256_101] : memref<9x9x512xf32, #tpu.memory_space<vmem>>, vector<1x8x128xf32>
    %128 = vector.shape_cast %127 : vector<1x8x128xf32> to vector<8x128xf32>
    %129 = vector.shape_cast %123 : vector<8x128xf32> to vector<1x8x128xf32>
    tpu.vector_store %arg6[%c3_99, %c1_100, %c256_101], %129 {strides = array<i32>} : memref<9x9x512xf32, #tpu.memory_space<vmem>>, vector<1x8x128xf32>,
    %130 = vector.extract_strided_slice %48 {offsets = [112, 0], sizes = [16, 128], strides = [1, 1]} : vector<256x128xf32> to vector<16x128xf32>
    %cst_102 = arith.constant dense<0.000000e+00> : vector<8x128xf32>
    %131 = tpu.matmul %57, %130, %cst_102 {dimension_numbers = #tpu.dot_dimension_numbers<[1], [0], [0], [1], [0, 0, 1, 1], [], []>} : vector<8x16xf32>, vector<16x128xf32>, vector<8x128xf32> -> vector<8x128xf32>
    %cst_103 = arith.constant dense<0.000000e+00> : vector<8x128xf32>
    %132 = tpu.matmul %66, %130, %cst_103 {dimension_numbers = #tpu.dot_dimension_numbers<[1], [0], [0], [1], [0, 0, 1, 1], [], []>} : vector<8x16xf32>, vector<16x128xf32>, vector<8x128xf32> -> vector<8x128xf32>
    %c4 = arith.constant 4 : index
    %c0_104 = arith.constant 0 : index
    %c128_105 = arith.constant 128 : index
    %133 = vector.load %arg6[%c4, %c0_104, %c128_105] : memref<9x9x512xf32, #tpu.memory_space<vmem>>, vector<1x8x128xf32>
    %134 = vector.shape_cast %133 : vector<1x8x128xf32> to vector<8x128xf32>
    %135 = vector.shape_cast %131 : vector<8x128xf32> to vector<1x8x128xf32>
    tpu.vector_store %arg6[%c4, %c0_104, %c128_105], %135 {strides = array<i32>} : memref<9x9x512xf32, #tpu.memory_space<vmem>>, vector<1x8x128xf32>,
    %c4_106 = arith.constant 4 : index
    %c1_107 = arith.constant 1 : index
    %c0_108 = arith.constant 0 : index
    %136 = vector.load %arg6[%c4_106, %c1_107, %c0_108] : memref<9x9x512xf32, #tpu.memory_space<vmem>>, vector<1x8x128xf32>
    %137 = vector.shape_cast %136 : vector<1x8x128xf32> to vector<8x128xf32>
    %138 = vector.shape_cast %132 : vector<8x128xf32> to vector<1x8x128xf32>
    tpu.vector_store %arg6[%c4_106, %c1_107, %c0_108], %138 {strides = array<i32>} : memref<9x9x512xf32, #tpu.memory_space<vmem>>, vector<1x8x128xf32>,
    %139 = vector.extract_strided_slice %48 {offsets = [128, 0], sizes = [16, 128], strides = [1, 1]} : vector<256x128xf32> to vector<16x128xf32>
    %cst_109 = arith.constant dense<0.000000e+00> : vector<8x128xf32>
    %140 = tpu.matmul %57, %139, %cst_109 {dimension_numbers = #tpu.dot_dimension_numbers<[1], [0], [0], [1], [0, 0, 1, 1], [], []>} : vector<8x16xf32>, vector<16x128xf32>, vector<8x128xf32> -> vector<8x128xf32>
    %cst_110 = arith.constant dense<0.000000e+00> : vector<8x128xf32>
    %141 = tpu.matmul %66, %139, %cst_110 {dimension_numbers = #tpu.dot_dimension_numbers<[1], [0], [0], [1], [0, 0, 1, 1], [], []>} : vector<8x16xf32>, vector<16x128xf32>, vector<8x128xf32> -> vector<8x128xf32>
    %c4_111 = arith.constant 4 : index
    %c0_112 = arith.constant 0 : index
    %c384_113 = arith.constant 384 : index
    %142 = vector.load %arg6[%c4_111, %c0_112, %c384_113] : memref<9x9x512xf32, #tpu.memory_space<vmem>>, vector<1x8x128xf32>
    %143 = vector.shape_cast %142 : vector<1x8x128xf32> to vector<8x128xf32>
    %144 = vector.shape_cast %140 : vector<8x128xf32> to vector<1x8x128xf32>
    tpu.vector_store %arg6[%c4_111, %c0_112, %c384_113], %144 {strides = array<i32>} : memref<9x9x512xf32, #tpu.memory_space<vmem>>, vector<1x8x128xf32>,
    %c4_114 = arith.constant 4 : index
    %c1_115 = arith.constant 1 : index
    %c256_116 = arith.constant 256 : index
    %145 = vector.load %arg6[%c4_114, %c1_115, %c256_116] : memref<9x9x512xf32, #tpu.memory_space<vmem>>, vector<1x8x128xf32>
    %146 = vector.shape_cast %145 : vector<1x8x128xf32> to vector<8x128xf32>
    %147 = vector.shape_cast %141 : vector<8x128xf32> to vector<1x8x128xf32>
    tpu.vector_store %arg6[%c4_114, %c1_115, %c256_116], %147 {strides = array<i32>} : memref<9x9x512xf32, #tpu.memory_space<vmem>>, vector<1x8x128xf32>,
    %148 = vector.extract_strided_slice %48 {offsets = [144, 0], sizes = [16, 128], strides = [1, 1]} : vector<256x128xf32> to vector<16x128xf32>
    %cst_117 = arith.constant dense<0.000000e+00> : vector<8x128xf32>
    %149 = tpu.matmul %57, %148, %cst_117 {dimension_numbers = #tpu.dot_dimension_numbers<[1], [0], [0], [1], [0, 0, 1, 1], [], []>} : vector<8x16xf32>, vector<16x128xf32>, vector<8x128xf32> -> vector<8x128xf32>
    %cst_118 = arith.constant dense<0.000000e+00> : vector<8x128xf32>
    %150 = tpu.matmul %66, %148, %cst_118 {dimension_numbers = #tpu.dot_dimension_numbers<[1], [0], [0], [1], [0, 0, 1, 1], [], []>} : vector<8x16xf32>, vector<16x128xf32>, vector<8x128xf32> -> vector<8x128xf32>
    %c5 = arith.constant 5 : index
    %c0_119 = arith.constant 0 : index
    %c128_120 = arith.constant 128 : index
    %151 = vector.load %arg6[%c5, %c0_119, %c128_120] : memref<9x9x512xf32, #tpu.memory_space<vmem>>, vector<1x8x128xf32>
    %152 = vector.shape_cast %151 : vector<1x8x128xf32> to vector<8x128xf32>
    %153 = vector.shape_cast %149 : vector<8x128xf32> to vector<1x8x128xf32>
    tpu.vector_store %arg6[%c5, %c0_119, %c128_120], %153 {strides = array<i32>} : memref<9x9x512xf32, #tpu.memory_space<vmem>>, vector<1x8x128xf32>,
    %c5_121 = arith.constant 5 : index
    %c1_122 = arith.constant 1 : index
    %c0_123 = arith.constant 0 : index
    %154 = vector.load %arg6[%c5_121, %c1_122, %c0_123] : memref<9x9x512xf32, #tpu.memory_space<vmem>>, vector<1x8x128xf32>
    %155 = vector.shape_cast %154 : vector<1x8x128xf32> to vector<8x128xf32>
    %156 = vector.shape_cast %150 : vector<8x128xf32> to vector<1x8x128xf32>
    tpu.vector_store %arg6[%c5_121, %c1_122, %c0_123], %156 {strides = array<i32>} : memref<9x9x512xf32, #tpu.memory_space<vmem>>, vector<1x8x128xf32>,
    %157 = vector.extract_strided_slice %48 {offsets = [160, 0], sizes = [16, 128], strides = [1, 1]} : vector<256x128xf32> to vector<16x128xf32>
    %cst_124 = arith.constant dense<0.000000e+00> : vector<8x128xf32>
    %158 = tpu.matmul %57, %157, %cst_124 {dimension_numbers = #tpu.dot_dimension_numbers<[1], [0], [0], [1], [0, 0, 1, 1], [], []>} : vector<8x16xf32>, vector<16x128xf32>, vector<8x128xf32> -> vector<8x128xf32>
    %cst_125 = arith.constant dense<0.000000e+00> : vector<8x128xf32>
    %159 = tpu.matmul %66, %157, %cst_125 {dimension_numbers = #tpu.dot_dimension_numbers<[1], [0], [0], [1], [0, 0, 1, 1], [], []>} : vector<8x16xf32>, vector<16x128xf32>, vector<8x128xf32> -> vector<8x128xf32>
    %c5_126 = arith.constant 5 : index
    %c0_127 = arith.constant 0 : index
    %c384_128 = arith.constant 384 : index
    %160 = vector.load %arg6[%c5_126, %c0_127, %c384_128] : memref<9x9x512xf32, #tpu.memory_space<vmem>>, vector<1x8x128xf32>
    %161 = vector.shape_cast %160 : vector<1x8x128xf32> to vector<8x128xf32>
    %162 = vector.shape_cast %158 : vector<8x128xf32> to vector<1x8x128xf32>
    tpu.vector_store %arg6[%c5_126, %c0_127, %c384_128], %162 {strides = array<i32>} : memref<9x9x512xf32, #tpu.memory_space<vmem>>, vector<1x8x128xf32>,
    %c5_129 = arith.constant 5 : index
    %c1_130 = arith.constant 1 : index
    %c256_131 = arith.constant 256 : index
    %163 = vector.load %arg6[%c5_129, %c1_130, %c256_131] : memref<9x9x512xf32, #tpu.memory_space<vmem>>, vector<1x8x128xf32>
    %164 = vector.shape_cast %163 : vector<1x8x128xf32> to vector<8x128xf32>
    %165 = vector.shape_cast %159 : vector<8x128xf32> to vector<1x8x128xf32>
    tpu.vector_store %arg6[%c5_129, %c1_130, %c256_131], %165 {strides = array<i32>} : memref<9x9x512xf32, #tpu.memory_space<vmem>>, vector<1x8x128xf32>,
    %166 = vector.extract_strided_slice %48 {offsets = [176, 0], sizes = [16, 128], strides = [1, 1]} : vector<256x128xf32> to vector<16x128xf32>
    %cst_132 = arith.constant dense<0.000000e+00> : vector<8x128xf32>
    %167 = tpu.matmul %57, %166, %cst_132 {dimension_numbers = #tpu.dot_dimension_numbers<[1], [0], [0], [1], [0, 0, 1, 1], [], []>} : vector<8x16xf32>, vector<16x128xf32>, vector<8x128xf32> -> vector<8x128xf32>
    %cst_133 = arith.constant dense<0.000000e+00> : vector<8x128xf32>
    %168 = tpu.matmul %66, %166, %cst_133 {dimension_numbers = #tpu.dot_dimension_numbers<[1], [0], [0], [1], [0, 0, 1, 1], [], []>} : vector<8x16xf32>, vector<16x128xf32>, vector<8x128xf32> -> vector<8x128xf32>
    %c6 = arith.constant 6 : index
    %c0_134 = arith.constant 0 : index
    %c128_135 = arith.constant 128 : index
    %169 = vector.load %arg6[%c6, %c0_134, %c128_135] : memref<9x9x512xf32, #tpu.memory_space<vmem>>, vector<1x8x128xf32>
    %170 = vector.shape_cast %169 : vector<1x8x128xf32> to vector<8x128xf32>
    %171 = vector.shape_cast %167 : vector<8x128xf32> to vector<1x8x128xf32>
    tpu.vector_store %arg6[%c6, %c0_134, %c128_135], %171 {strides = array<i32>} : memref<9x9x512xf32, #tpu.memory_space<vmem>>, vector<1x8x128xf32>,
    %c6_136 = arith.constant 6 : index
    %c1_137 = arith.constant 1 : index
    %c0_138 = arith.constant 0 : index
    %172 = vector.load %arg6[%c6_136, %c1_137, %c0_138] : memref<9x9x512xf32, #tpu.memory_space<vmem>>, vector<1x8x128xf32>
    %173 = vector.shape_cast %172 : vector<1x8x128xf32> to vector<8x128xf32>
    %174 = vector.shape_cast %168 : vector<8x128xf32> to vector<1x8x128xf32>
    tpu.vector_store %arg6[%c6_136, %c1_137, %c0_138], %174 {strides = array<i32>} : memref<9x9x512xf32, #tpu.memory_space<vmem>>, vector<1x8x128xf32>,
    %175 = vector.extract_strided_slice %48 {offsets = [192, 0], sizes = [16, 128], strides = [1, 1]} : vector<256x128xf32> to vector<16x128xf32>
    %cst_139 = arith.constant dense<0.000000e+00> : vector<8x128xf32>
    %176 = tpu.matmul %57, %175, %cst_139 {dimension_numbers = #tpu.dot_dimension_numbers<[1], [0], [0], [1], [0, 0, 1, 1], [], []>} : vector<8x16xf32>, vector<16x128xf32>, vector<8x128xf32> -> vector<8x128xf32>
    %cst_140 = arith.constant dense<0.000000e+00> : vector<8x128xf32>
    %177 = tpu.matmul %66, %175, %cst_140 {dimension_numbers = #tpu.dot_dimension_numbers<[1], [0], [0], [1], [0, 0, 1, 1], [], []>} : vector<8x16xf32>, vector<16x128xf32>, vector<8x128xf32> -> vector<8x128xf32>
    %c6_141 = arith.constant 6 : index
    %c0_142 = arith.constant 0 : index
    %c384_143 = arith.constant 384 : index
    %178 = vector.load %arg6[%c6_141, %c0_142, %c384_143] : memref<9x9x512xf32, #tpu.memory_space<vmem>>, vector<1x8x128xf32>
    %179 = vector.shape_cast %178 : vector<1x8x128xf32> to vector<8x128xf32>
    %180 = vector.shape_cast %176 : vector<8x128xf32> to vector<1x8x128xf32>
    tpu.vector_store %arg6[%c6_141, %c0_142, %c384_143], %180 {strides = array<i32>} : memref<9x9x512xf32, #tpu.memory_space<vmem>>, vector<1x8x128xf32>,
    %c6_144 = arith.constant 6 : index
    %c1_145 = arith.constant 1 : index
    %c256_146 = arith.constant 256 : index
    %181 = vector.load %arg6[%c6_144, %c1_145, %c256_146] : memref<9x9x512xf32, #tpu.memory_space<vmem>>, vector<1x8x128xf32>
    %182 = vector.shape_cast %181 : vector<1x8x128xf32> to vector<8x128xf32>
    %183 = vector.shape_cast %177 : vector<8x128xf32> to vector<1x8x128xf32>
    tpu.vector_store %arg6[%c6_144, %c1_145, %c256_146], %183 {strides = array<i32>} : memref<9x9x512xf32, #tpu.memory_space<vmem>>, vector<1x8x128xf32>,
    %184 = vector.extract_strided_slice %48 {offsets = [208, 0], sizes = [16, 128], strides = [1, 1]} : vector<256x128xf32> to vector<16x128xf32>
    %cst_147 = arith.constant dense<0.000000e+00> : vector<8x128xf32>
    %185 = tpu.matmul %57, %184, %cst_147 {dimension_numbers = #tpu.dot_dimension_numbers<[1], [0], [0], [1], [0, 0, 1, 1], [], []>} : vector<8x16xf32>, vector<16x128xf32>, vector<8x128xf32> -> vector<8x128xf32>
    %cst_148 = arith.constant dense<0.000000e+00> : vector<8x128xf32>
    %186 = tpu.matmul %66, %184, %cst_148 {dimension_numbers = #tpu.dot_dimension_numbers<[1], [0], [0], [1], [0, 0, 1, 1], [], []>} : vector<8x16xf32>, vector<16x128xf32>, vector<8x128xf32> -> vector<8x128xf32>
    %c7 = arith.constant 7 : index
    %c0_149 = arith.constant 0 : index
    %c128_150 = arith.constant 128 : index
    %187 = vector.load %arg6[%c7, %c0_149, %c128_150] : memref<9x9x512xf32, #tpu.memory_space<vmem>>, vector<1x8x128xf32>
    %188 = vector.shape_cast %187 : vector<1x8x128xf32> to vector<8x128xf32>
    %189 = vector.shape_cast %185 : vector<8x128xf32> to vector<1x8x128xf32>
    tpu.vector_store %arg6[%c7, %c0_149, %c128_150], %189 {strides = array<i32>} : memref<9x9x512xf32, #tpu.memory_space<vmem>>, vector<1x8x128xf32>,
    %c7_151 = arith.constant 7 : index
    %c1_152 = arith.constant 1 : index
    %c0_153 = arith.constant 0 : index
    %190 = vector.load %arg6[%c7_151, %c1_152, %c0_153] : memref<9x9x512xf32, #tpu.memory_space<vmem>>, vector<1x8x128xf32>
    %191 = vector.shape_cast %190 : vector<1x8x128xf32> to vector<8x128xf32>
    %192 = vector.shape_cast %186 : vector<8x128xf32> to vector<1x8x128xf32>
    tpu.vector_store %arg6[%c7_151, %c1_152, %c0_153], %192 {strides = array<i32>} : memref<9x9x512xf32, #tpu.memory_space<vmem>>, vector<1x8x128xf32>,
    %193 = vector.extract_strided_slice %48 {offsets = [224, 0], sizes = [16, 128], strides = [1, 1]} : vector<256x128xf32> to vector<16x128xf32>
    %cst_154 = arith.constant dense<0.000000e+00> : vector<8x128xf32>
    %194 = tpu.matmul %57, %193, %cst_154 {dimension_numbers = #tpu.dot_dimension_numbers<[1], [0], [0], [1], [0, 0, 1, 1], [], []>} : vector<8x16xf32>, vector<16x128xf32>, vector<8x128xf32> -> vector<8x128xf32>
    %cst_155 = arith.constant dense<0.000000e+00> : vector<8x128xf32>
    %195 = tpu.matmul %66, %193, %cst_155 {dimension_numbers = #tpu.dot_dimension_numbers<[1], [0], [0], [1], [0, 0, 1, 1], [], []>} : vector<8x16xf32>, vector<16x128xf32>, vector<8x128xf32> -> vector<8x128xf32>
    %c7_156 = arith.constant 7 : index
    %c0_157 = arith.constant 0 : index
    %c384_158 = arith.constant 384 : index
    %196 = vector.load %arg6[%c7_156, %c0_157, %c384_158] : memref<9x9x512xf32, #tpu.memory_space<vmem>>, vector<1x8x128xf32>
    %197 = vector.shape_cast %196 : vector<1x8x128xf32> to vector<8x128xf32>
    %198 = vector.shape_cast %194 : vector<8x128xf32> to vector<1x8x128xf32>
    tpu.vector_store %arg6[%c7_156, %c0_157, %c384_158], %198 {strides = array<i32>} : memref<9x9x512xf32, #tpu.memory_space<vmem>>, vector<1x8x128xf32>,
    %c7_159 = arith.constant 7 : index
    %c1_160 = arith.constant 1 : index
    %c256_161 = arith.constant 256 : index
    %199 = vector.load %arg6[%c7_159, %c1_160, %c256_161] : memref<9x9x512xf32, #tpu.memory_space<vmem>>, vector<1x8x128xf32>
    %200 = vector.shape_cast %199 : vector<1x8x128xf32> to vector<8x128xf32>
    %201 = vector.shape_cast %195 : vector<8x128xf32> to vector<1x8x128xf32>
    tpu.vector_store %arg6[%c7_159, %c1_160, %c256_161], %201 {strides = array<i32>} : memref<9x9x512xf32, #tpu.memory_space<vmem>>, vector<1x8x128xf32>,
    %202 = vector.extract_strided_slice %48 {offsets = [240, 0], sizes = [16, 128], strides = [1, 1]} : vector<256x128xf32> to vector<16x128xf32>
    %cst_162 = arith.constant dense<0.000000e+00> : vector<8x128xf32>
    %203 = tpu.matmul %57, %202, %cst_162 {dimension_numbers = #tpu.dot_dimension_numbers<[1], [0], [0], [1], [0, 0, 1, 1], [], []>} : vector<8x16xf32>, vector<16x128xf32>, vector<8x128xf32> -> vector<8x128xf32>
    %cst_163 = arith.constant dense<0.000000e+00> : vector<8x128xf32>
    %204 = tpu.matmul %66, %202, %cst_163 {dimension_numbers = #tpu.dot_dimension_numbers<[1], [0], [0], [1], [0, 0, 1, 1], [], []>} : vector<8x16xf32>, vector<16x128xf32>, vector<8x128xf32> -> vector<8x128xf32>
    %c8 = arith.constant 8 : index
    %c0_164 = arith.constant 0 : index
    %c128_165 = arith.constant 128 : index
    %205 = vector.load %arg6[%c8, %c0_164, %c128_165] : memref<9x9x512xf32, #tpu.memory_space<vmem>>, vector<1x8x128xf32>
    %206 = vector.shape_cast %205 : vector<1x8x128xf32> to vector<8x128xf32>
    %207 = vector.shape_cast %203 : vector<8x128xf32> to vector<1x8x128xf32>
    tpu.vector_store %arg6[%c8, %c0_164, %c128_165], %207 {strides = array<i32>} : memref<9x9x512xf32, #tpu.memory_space<vmem>>, vector<1x8x128xf32>,
    %c8_166 = arith.constant 8 : index
    %c1_167 = arith.constant 1 : index
    %c0_168 = arith.constant 0 : index
    %208 = vector.load %arg6[%c8_166, %c1_167, %c0_168] : memref<9x9x512xf32, #tpu.memory_space<vmem>>, vector<1x8x128xf32>
    %209 = vector.shape_cast %208 : vector<1x8x128xf32> to vector<8x128xf32>
    %210 = vector.shape_cast %204 : vector<8x128xf32> to vector<1x8x128xf32>
    tpu.vector_store %arg6[%c8_166, %c1_167, %c0_168], %210 {strides = array<i32>} : memref<9x9x512xf32, #tpu.memory_space<vmem>>, vector<1x8x128xf32>,
    %cst_169 = arith.constant 0.000000e+00 : f32
    %211 = vector.broadcast %cst_169 : f32 to vector<64x128xf32>
    %c0_170 = arith.constant 0 : index
    %c0_171 = arith.constant 0 : index
    %c0_172 = arith.constant 0 : index
    %212 = vector.load %arg6[%c0_170, %c0_171, %c0_172] : memref<9x9x512xf32, #tpu.memory_space<vmem>>, vector<8x8x512xf32>
    %213 = vector.shape_cast %212 : vector<8x8x512xf32> to vector<64x512xf32>
    %214 = arith.truncf %213 : vector<64x512xf32> to vector<64x512xbf16>
    %c0_173 = arith.constant 0 : index
    %c0_174 = arith.constant 0 : index
    %c0_175 = arith.constant 0 : index
    %c0_176 = arith.constant 0 : index
    %215 = vector.load %arg3[%c0_173, %c0_174, %c0_175, %c0_176] : memref<4x4x512x128xbf16, #tpu.memory_space<vmem>>, vector<1x1x512x128xbf16>
    %216 = vector.shape_cast %215 : vector<1x1x512x128xbf16> to vector<512x128xbf16>
    %cst_177 = arith.constant dense<0.000000e+00> : vector<64x128xf32>
    %217 = tpu.matmul %214, %216, %cst_177 {dimension_numbers = #tpu.dot_dimension_numbers<[1], [0], [0], [1], [0, 0, 1, 1], [], []>} : vector<64x512xbf16>, vector<512x128xbf16>, vector<64x128xf32> -> vector<64x128xf32>
    %218 = arith.addf %211, %217 : vector<64x128xf32>
    %c0_178 = arith.constant 0 : index
    %c1_179 = arith.constant 1 : index
    %c0_180 = arith.constant 0 : index
    %219 = vector.load %arg6[%c0_178, %c1_179, %c0_180] : memref<9x9x512xf32, #tpu.memory_space<vmem>>, vector<8x8x512xf32>
    %220 = vector.shape_cast %219 : vector<8x8x512xf32> to vector<64x512xf32>
    %221 = arith.truncf %220 : vector<64x512xf32> to vector<64x512xbf16>
    %c0_181 = arith.constant 0 : index
    %c1_182 = arith.constant 1 : index
    %c0_183 = arith.constant 0 : index
    %c0_184 = arith.constant 0 : index
    %222 = vector.load %arg3[%c0_181, %c1_182, %c0_183, %c0_184] : memref<4x4x512x128xbf16, #tpu.memory_space<vmem>>, vector<1x1x512x128xbf16>
    %223 = vector.shape_cast %222 : vector<1x1x512x128xbf16> to vector<512x128xbf16>
    %cst_185 = arith.constant dense<0.000000e+00> : vector<64x128xf32>
    %224 = tpu.matmul %221, %223, %cst_185 {dimension_numbers = #tpu.dot_dimension_numbers<[1], [0], [0], [1], [0, 0, 1, 1], [], []>} : vector<64x512xbf16>, vector<512x128xbf16>, vector<64x128xf32> -> vector<64x128xf32>
    %225 = arith.addf %218, %224 : vector<64x128xf32>
    %c1_186 = arith.constant 1 : index
    %c0_187 = arith.constant 0 : index
    %c0_188 = arith.constant 0 : index
    %226 = vector.load %arg6[%c1_186, %c0_187, %c0_188] : memref<9x9x512xf32, #tpu.memory_space<vmem>>, vector<8x8x512xf32>
    %227 = vector.shape_cast %226 : vector<8x8x512xf32> to vector<64x512xf32>
    %228 = arith.truncf %227 : vector<64x512xf32> to vector<64x512xbf16>
    %c0_189 = arith.constant 0 : index
    %c2_190 = arith.constant 2 : index
    %c0_191 = arith.constant 0 : index
    %c0_192 = arith.constant 0 : index
    %229 = vector.load %arg3[%c0_189, %c2_190, %c0_191, %c0_192] : memref<4x4x512x128xbf16, #tpu.memory_space<vmem>>, vector<1x1x512x128xbf16>
    %230 = vector.shape_cast %229 : vector<1x1x512x128xbf16> to vector<512x128xbf16>
    %cst_193 = arith.constant dense<0.000000e+00> : vector<64x128xf32>
    %231 = tpu.matmul %228, %230, %cst_193 {dimension_numbers = #tpu.dot_dimension_numbers<[1], [0], [0], [1], [0, 0, 1, 1], [], []>} : vector<64x512xbf16>, vector<512x128xbf16>, vector<64x128xf32> -> vector<64x128xf32>
    %232 = arith.addf %225, %231 : vector<64x128xf32>
    %c1_194 = arith.constant 1 : index
    %c1_195 = arith.constant 1 : index
    %c0_196 = arith.constant 0 : index
    %233 = vector.load %arg6[%c1_194, %c1_195, %c0_196] : memref<9x9x512xf32, #tpu.memory_space<vmem>>, vector<8x8x512xf32>
    %234 = vector.shape_cast %233 : vector<8x8x512xf32> to vector<64x512xf32>
    %235 = arith.truncf %234 : vector<64x512xf32> to vector<64x512xbf16>
    %c0_197 = arith.constant 0 : index
    %c3_198 = arith.constant 3 : index
    %c0_199 = arith.constant 0 : index
    %c0_200 = arith.constant 0 : index
    %236 = vector.load %arg3[%c0_197, %c3_198, %c0_199, %c0_200] : memref<4x4x512x128xbf16, #tpu.memory_space<vmem>>, vector<1x1x512x128xbf16>
    %237 = vector.shape_cast %236 : vector<1x1x512x128xbf16> to vector<512x128xbf16>
    %cst_201 = arith.constant dense<0.000000e+00> : vector<64x128xf32>
    %238 = tpu.matmul %235, %237, %cst_201 {dimension_numbers = #tpu.dot_dimension_numbers<[1], [0], [0], [1], [0, 0, 1, 1], [], []>} : vector<64x512xbf16>, vector<512x128xbf16>, vector<64x128xf32> -> vector<64x128xf32>
    %239 = arith.addf %232, %238 : vector<64x128xf32>
    %c1_202 = arith.constant 1 : index
    %c0_203 = arith.constant 0 : index
    %240 = vector.load %arg4[%c1_202, %c0_203] : memref<5x128xf32, #tpu.memory_space<vmem>>, vector<1x128xf32>
    %241 = vector.broadcast %240 : vector<1x128xf32> to vector<64x128xf32>
    %242 = arith.addf %239, %241 : vector<64x128xf32>
    %cst_204 = arith.constant 0.000000e+00 : f32
    %243 = vector.broadcast %cst_204 : f32 to vector<64x128xf32>
    %244 = arith.cmpf ogt, %242, %243 : vector<64x128xf32>
    %cst_205 = arith.constant 2.000000e-01 : f32
    %245 = vector.broadcast %cst_205 : f32 to vector<64x128xf32>
    %246 = arith.mulf %245, %242 : vector<64x128xf32>
    %247 = arith.select %244, %242, %246 : vector<64x128xi1>, vector<64x128xf32>
    %248 = tpu.iota {dimensions = array<i32: 0>} : vector<4x8xi32>
    %249 = tpu.iota {dimensions = array<i32: 1>} : vector<4x8xi32>
    %c2_i32_206 = arith.constant 2 : i32
    %250 = vector.broadcast %c2_i32_206 : i32 to vector<4x8xi32>
    %251 = arith.muli %250, %248 : vector<4x8xi32>
    %c0_i32_207 = arith.constant 0 : i32
    %252 = vector.broadcast %c0_i32_207 : i32 to vector<4x8xi32>
    %253 = arith.addi %251, %252 : vector<4x8xi32>
    %254 = arith.cmpi eq, %249, %253 : vector<4x8xi32>
    %255 = arith.extui %254 : vector<4x8xi1> to vector<4x8xi32>
    %256 = arith.sitofp %255 : vector<4x8xi32> to vector<4x8xf32>
    %257 = tpu.iota {dimensions = array<i32: 0>} : vector<4x8xi32>
    %258 = tpu.iota {dimensions = array<i32: 1>} : vector<4x8xi32>
    %c2_i32_208 = arith.constant 2 : i32
    %259 = vector.broadcast %c2_i32_208 : i32 to vector<4x8xi32>
    %260 = arith.muli %259, %257 : vector<4x8xi32>
    %c1_i32_209 = arith.constant 1 : i32
    %261 = vector.broadcast %c1_i32_209 : i32 to vector<4x8xi32>
    %262 = arith.addi %260, %261 : vector<4x8xi32>
    %263 = arith.cmpi eq, %258, %262 : vector<4x8xi32>
    %264 = arith.extui %263 : vector<4x8xi1> to vector<4x8xi32>
    %265 = arith.sitofp %264 : vector<4x8xi32> to vector<4x8xf32>
    %266 = vector.extract_strided_slice %247 {offsets = [0, 0], sizes = [8, 128], strides = [1, 1]} : vector<64x128xf32> to vector<8x128xf32>
    %cst_210 = arith.constant dense<0.000000e+00> : vector<4x128xf32>
    %267 = tpu.matmul %256, %266, %cst_210 {dimension_numbers = #tpu.dot_dimension_numbers<[1], [0], [0], [1], [0, 0, 1, 1], [], []>} : vector<4x8xf32>, vector<8x128xf32>, vector<4x128xf32> -> vector<4x128xf32>
    %cst_211 = arith.constant dense<0.000000e+00> : vector<4x128xf32>
    %268 = tpu.matmul %265, %266, %cst_211 {dimension_numbers = #tpu.dot_dimension_numbers<[1], [0], [0], [1], [0, 0, 1, 1], [], []>} : vector<4x8xf32>, vector<8x128xf32>, vector<4x128xf32> -> vector<4x128xf32>
    %c0_212 = arith.constant 0 : index
    %c0_213 = arith.constant 0 : index
    %c384_214 = arith.constant 384 : index
    %269 = vector.load %arg7[%c0_212, %c0_213, %c384_214] : memref<5x5x512xf32, #tpu.memory_space<vmem>>, vector<1x4x128xf32>
    %270 = vector.shape_cast %269 : vector<1x4x128xf32> to vector<4x128xf32>
    %271 = vector.shape_cast %267 : vector<4x128xf32> to vector<1x4x128xf32>
    tpu.vector_store %arg7[%c0_212, %c0_213, %c384_214], %271 {strides = array<i32>} : memref<5x5x512xf32, #tpu.memory_space<vmem>>, vector<1x4x128xf32>,
    %c0_215 = arith.constant 0 : index
    %c1_216 = arith.constant 1 : index
    %c256_217 = arith.constant 256 : index
    %272 = vector.load %arg7[%c0_215, %c1_216, %c256_217] : memref<5x5x512xf32, #tpu.memory_space<vmem>>, vector<1x4x128xf32>
    %273 = vector.shape_cast %272 : vector<1x4x128xf32> to vector<4x128xf32>
    %274 = vector.shape_cast %268 : vector<4x128xf32> to vector<1x4x128xf32>
    tpu.vector_store %arg7[%c0_215, %c1_216, %c256_217], %274 {strides = array<i32>} : memref<5x5x512xf32, #tpu.memory_space<vmem>>, vector<1x4x128xf32>,
    %275 = vector.extract_strided_slice %247 {offsets = [8, 0], sizes = [8, 128], strides = [1, 1]} : vector<64x128xf32> to vector<8x128xf32>
    %cst_218 = arith.constant dense<0.000000e+00> : vector<4x128xf32>
    %276 = tpu.matmul %256, %275, %cst_218 {dimension_numbers = #tpu.dot_dimension_numbers<[1], [0], [0], [1], [0, 0, 1, 1], [], []>} : vector<4x8xf32>, vector<8x128xf32>, vector<4x128xf32> -> vector<4x128xf32>
    %cst_219 = arith.constant dense<0.000000e+00> : vector<4x128xf32>
    %277 = tpu.matmul %265, %275, %cst_219 {dimension_numbers = #tpu.dot_dimension_numbers<[1], [0], [0], [1], [0, 0, 1, 1], [], []>} : vector<4x8xf32>, vector<8x128xf32>, vector<4x128xf32> -> vector<4x128xf32>
    %c1_220 = arith.constant 1 : index
    %c0_221 = arith.constant 0 : index
    %c128_222 = arith.constant 128 : index
    %278 = vector.load %arg7[%c1_220, %c0_221, %c128_222] : memref<5x5x512xf32, #tpu.memory_space<vmem>>, vector<1x4x128xf32>
    %279 = vector.shape_cast %278 : vector<1x4x128xf32> to vector<4x128xf32>
    %280 = vector.shape_cast %276 : vector<4x128xf32> to vector<1x4x128xf32>
    tpu.vector_store %arg7[%c1_220, %c0_221, %c128_222], %280 {strides = array<i32>} : memref<5x5x512xf32, #tpu.memory_space<vmem>>, vector<1x4x128xf32>,
    %c1_223 = arith.constant 1 : index
    %c1_224 = arith.constant 1 : index
    %c0_225 = arith.constant 0 : index
    %281 = vector.load %arg7[%c1_223, %c1_224, %c0_225] : memref<5x5x512xf32, #tpu.memory_space<vmem>>, vector<1x4x128xf32>
    %282 = vector.shape_cast %281 : vector<1x4x128xf32> to vector<4x128xf32>
    %283 = vector.shape_cast %277 : vector<4x128xf32> to vector<1x4x128xf32>
    tpu.vector_store %arg7[%c1_223, %c1_224, %c0_225], %283 {strides = array<i32>} : memref<5x5x512xf32, #tpu.memory_space<vmem>>, vector<1x4x128xf32>,
    %284 = vector.extract_strided_slice %247 {offsets = [16, 0], sizes = [8, 128], strides = [1, 1]} : vector<64x128xf32> to vector<8x128xf32>
    %cst_226 = arith.constant dense<0.000000e+00> : vector<4x128xf32>
    %285 = tpu.matmul %256, %284, %cst_226 {dimension_numbers = #tpu.dot_dimension_numbers<[1], [0], [0], [1], [0, 0, 1, 1], [], []>} : vector<4x8xf32>, vector<8x128xf32>, vector<4x128xf32> -> vector<4x128xf32>
    %cst_227 = arith.constant dense<0.000000e+00> : vector<4x128xf32>
    %286 = tpu.matmul %265, %284, %cst_227 {dimension_numbers = #tpu.dot_dimension_numbers<[1], [0], [0], [1], [0, 0, 1, 1], [], []>} : vector<4x8xf32>, vector<8x128xf32>, vector<4x128xf32> -> vector<4x128xf32>
    %c1_228 = arith.constant 1 : index
    %c0_229 = arith.constant 0 : index
    %c384_230 = arith.constant 384 : index
    %287 = vector.load %arg7[%c1_228, %c0_229, %c384_230] : memref<5x5x512xf32, #tpu.memory_space<vmem>>, vector<1x4x128xf32>
    %288 = vector.shape_cast %287 : vector<1x4x128xf32> to vector<4x128xf32>
    %289 = vector.shape_cast %285 : vector<4x128xf32> to vector<1x4x128xf32>
    tpu.vector_store %arg7[%c1_228, %c0_229, %c384_230], %289 {strides = array<i32>} : memref<5x5x512xf32, #tpu.memory_space<vmem>>, vector<1x4x128xf32>,
    %c1_231 = arith.constant 1 : index
    %c1_232 = arith.constant 1 : index
    %c256_233 = arith.constant 256 : index
    %290 = vector.load %arg7[%c1_231, %c1_232, %c256_233] : memref<5x5x512xf32, #tpu.memory_space<vmem>>, vector<1x4x128xf32>
    %291 = vector.shape_cast %290 : vector<1x4x128xf32> to vector<4x128xf32>
    %292 = vector.shape_cast %286 : vector<4x128xf32> to vector<1x4x128xf32>
    tpu.vector_store %arg7[%c1_231, %c1_232, %c256_233], %292 {strides = array<i32>} : memref<5x5x512xf32, #tpu.memory_space<vmem>>, vector<1x4x128xf32>,
    %293 = vector.extract_strided_slice %247 {offsets = [24, 0], sizes = [8, 128], strides = [1, 1]} : vector<64x128xf32> to vector<8x128xf32>
    %cst_234 = arith.constant dense<0.000000e+00> : vector<4x128xf32>
    %294 = tpu.matmul %256, %293, %cst_234 {dimension_numbers = #tpu.dot_dimension_numbers<[1], [0], [0], [1], [0, 0, 1, 1], [], []>} : vector<4x8xf32>, vector<8x128xf32>, vector<4x128xf32> -> vector<4x128xf32>
    %cst_235 = arith.constant dense<0.000000e+00> : vector<4x128xf32>
    %295 = tpu.matmul %265, %293, %cst_235 {dimension_numbers = #tpu.dot_dimension_numbers<[1], [0], [0], [1], [0, 0, 1, 1], [], []>} : vector<4x8xf32>, vector<8x128xf32>, vector<4x128xf32> -> vector<4x128xf32>
    %c2_236 = arith.constant 2 : index
    %c0_237 = arith.constant 0 : index
    %c128_238 = arith.constant 128 : index
    %296 = vector.load %arg7[%c2_236, %c0_237, %c128_238] : memref<5x5x512xf32, #tpu.memory_space<vmem>>, vector<1x4x128xf32>
    %297 = vector.shape_cast %296 : vector<1x4x128xf32> to vector<4x128xf32>
    %298 = vector.shape_cast %294 : vector<4x128xf32> to vector<1x4x128xf32>
    tpu.vector_store %arg7[%c2_236, %c0_237, %c128_238], %298 {strides = array<i32>} : memref<5x5x512xf32, #tpu.memory_space<vmem>>, vector<1x4x128xf32>,
    %c2_239 = arith.constant 2 : index
    %c1_240 = arith.constant 1 : index
    %c0_241 = arith.constant 0 : index
    %299 = vector.load %arg7[%c2_239, %c1_240, %c0_241] : memref<5x5x512xf32, #tpu.memory_space<vmem>>, vector<1x4x128xf32>
    %300 = vector.shape_cast %299 : vector<1x4x128xf32> to vector<4x128xf32>
    %301 = vector.shape_cast %295 : vector<4x128xf32> to vector<1x4x128xf32>
    tpu.vector_store %arg7[%c2_239, %c1_240, %c0_241], %301 {strides = array<i32>} : memref<5x5x512xf32, #tpu.memory_space<vmem>>, vector<1x4x128xf32>,
    %302 = vector.extract_strided_slice %247 {offsets = [32, 0], sizes = [8, 128], strides = [1, 1]} : vector<64x128xf32> to vector<8x128xf32>
    %cst_242 = arith.constant dense<0.000000e+00> : vector<4x128xf32>
    %303 = tpu.matmul %256, %302, %cst_242 {dimension_numbers = #tpu.dot_dimension_numbers<[1], [0], [0], [1], [0, 0, 1, 1], [], []>} : vector<4x8xf32>, vector<8x128xf32>, vector<4x128xf32> -> vector<4x128xf32>
    %cst_243 = arith.constant dense<0.000000e+00> : vector<4x128xf32>
    %304 = tpu.matmul %265, %302, %cst_243 {dimension_numbers = #tpu.dot_dimension_numbers<[1], [0], [0], [1], [0, 0, 1, 1], [], []>} : vector<4x8xf32>, vector<8x128xf32>, vector<4x128xf32> -> vector<4x128xf32>
    %c2_244 = arith.constant 2 : index
    %c0_245 = arith.constant 0 : index
    %c384_246 = arith.constant 384 : index
    %305 = vector.load %arg7[%c2_244, %c0_245, %c384_246] : memref<5x5x512xf32, #tpu.memory_space<vmem>>, vector<1x4x128xf32>
    %306 = vector.shape_cast %305 : vector<1x4x128xf32> to vector<4x128xf32>
    %307 = vector.shape_cast %303 : vector<4x128xf32> to vector<1x4x128xf32>
    tpu.vector_store %arg7[%c2_244, %c0_245, %c384_246], %307 {strides = array<i32>} : memref<5x5x512xf32, #tpu.memory_space<vmem>>, vector<1x4x128xf32>,
    %c2_247 = arith.constant 2 : index
    %c1_248 = arith.constant 1 : index
    %c256_249 = arith.constant 256 : index
    %308 = vector.load %arg7[%c2_247, %c1_248, %c256_249] : memref<5x5x512xf32, #tpu.memory_space<vmem>>, vector<1x4x128xf32>
    %309 = vector.shape_cast %308 : vector<1x4x128xf32> to vector<4x128xf32>
    %310 = vector.shape_cast %304 : vector<4x128xf32> to vector<1x4x128xf32>
    tpu.vector_store %arg7[%c2_247, %c1_248, %c256_249], %310 {strides = array<i32>} : memref<5x5x512xf32, #tpu.memory_space<vmem>>, vector<1x4x128xf32>,
    %311 = vector.extract_strided_slice %247 {offsets = [40, 0], sizes = [8, 128], strides = [1, 1]} : vector<64x128xf32> to vector<8x128xf32>
    %cst_250 = arith.constant dense<0.000000e+00> : vector<4x128xf32>
    %312 = tpu.matmul %256, %311, %cst_250 {dimension_numbers = #tpu.dot_dimension_numbers<[1], [0], [0], [1], [0, 0, 1, 1], [], []>} : vector<4x8xf32>, vector<8x128xf32>, vector<4x128xf32> -> vector<4x128xf32>
    %cst_251 = arith.constant dense<0.000000e+00> : vector<4x128xf32>
    %313 = tpu.matmul %265, %311, %cst_251 {dimension_numbers = #tpu.dot_dimension_numbers<[1], [0], [0], [1], [0, 0, 1, 1], [], []>} : vector<4x8xf32>, vector<8x128xf32>, vector<4x128xf32> -> vector<4x128xf32>
    %c3_252 = arith.constant 3 : index
    %c0_253 = arith.constant 0 : index
    %c128_254 = arith.constant 128 : index
    %314 = vector.load %arg7[%c3_252, %c0_253, %c128_254] : memref<5x5x512xf32, #tpu.memory_space<vmem>>, vector<1x4x128xf32>
    %315 = vector.shape_cast %314 : vector<1x4x128xf32> to vector<4x128xf32>
    %316 = vector.shape_cast %312 : vector<4x128xf32> to vector<1x4x128xf32>
    tpu.vector_store %arg7[%c3_252, %c0_253, %c128_254], %316 {strides = array<i32>} : memref<5x5x512xf32, #tpu.memory_space<vmem>>, vector<1x4x128xf32>,
    %c3_255 = arith.constant 3 : index
    %c1_256 = arith.constant 1 : index
    %c0_257 = arith.constant 0 : index
    %317 = vector.load %arg7[%c3_255, %c1_256, %c0_257] : memref<5x5x512xf32, #tpu.memory_space<vmem>>, vector<1x4x128xf32>
    %318 = vector.shape_cast %317 : vector<1x4x128xf32> to vector<4x128xf32>
    %319 = vector.shape_cast %313 : vector<4x128xf32> to vector<1x4x128xf32>
    tpu.vector_store %arg7[%c3_255, %c1_256, %c0_257], %319 {strides = array<i32>} : memref<5x5x512xf32, #tpu.memory_space<vmem>>, vector<1x4x128xf32>,
    %320 = vector.extract_strided_slice %247 {offsets = [48, 0], sizes = [8, 128], strides = [1, 1]} : vector<64x128xf32> to vector<8x128xf32>
    %cst_258 = arith.constant dense<0.000000e+00> : vector<4x128xf32>
    %321 = tpu.matmul %256, %320, %cst_258 {dimension_numbers = #tpu.dot_dimension_numbers<[1], [0], [0], [1], [0, 0, 1, 1], [], []>} : vector<4x8xf32>, vector<8x128xf32>, vector<4x128xf32> -> vector<4x128xf32>
    %cst_259 = arith.constant dense<0.000000e+00> : vector<4x128xf32>
    %322 = tpu.matmul %265, %320, %cst_259 {dimension_numbers = #tpu.dot_dimension_numbers<[1], [0], [0], [1], [0, 0, 1, 1], [], []>} : vector<4x8xf32>, vector<8x128xf32>, vector<4x128xf32> -> vector<4x128xf32>
    %c3_260 = arith.constant 3 : index
    %c0_261 = arith.constant 0 : index
    %c384_262 = arith.constant 384 : index
    %323 = vector.load %arg7[%c3_260, %c0_261, %c384_262] : memref<5x5x512xf32, #tpu.memory_space<vmem>>, vector<1x4x128xf32>
    %324 = vector.shape_cast %323 : vector<1x4x128xf32> to vector<4x128xf32>
    %325 = vector.shape_cast %321 : vector<4x128xf32> to vector<1x4x128xf32>
    tpu.vector_store %arg7[%c3_260, %c0_261, %c384_262], %325 {strides = array<i32>} : memref<5x5x512xf32, #tpu.memory_space<vmem>>, vector<1x4x128xf32>,
    %c3_263 = arith.constant 3 : index
    %c1_264 = arith.constant 1 : index
    %c256_265 = arith.constant 256 : index
    %326 = vector.load %arg7[%c3_263, %c1_264, %c256_265] : memref<5x5x512xf32, #tpu.memory_space<vmem>>, vector<1x4x128xf32>
    %327 = vector.shape_cast %326 : vector<1x4x128xf32> to vector<4x128xf32>
    %328 = vector.shape_cast %322 : vector<4x128xf32> to vector<1x4x128xf32>
    tpu.vector_store %arg7[%c3_263, %c1_264, %c256_265], %328 {strides = array<i32>} : memref<5x5x512xf32, #tpu.memory_space<vmem>>, vector<1x4x128xf32>,
    %329 = vector.extract_strided_slice %247 {offsets = [56, 0], sizes = [8, 128], strides = [1, 1]} : vector<64x128xf32> to vector<8x128xf32>
    %cst_266 = arith.constant dense<0.000000e+00> : vector<4x128xf32>
    %330 = tpu.matmul %256, %329, %cst_266 {dimension_numbers = #tpu.dot_dimension_numbers<[1], [0], [0], [1], [0, 0, 1, 1], [], []>} : vector<4x8xf32>, vector<8x128xf32>, vector<4x128xf32> -> vector<4x128xf32>
    %cst_267 = arith.constant dense<0.000000e+00> : vector<4x128xf32>
    %331 = tpu.matmul %265, %329, %cst_267 {dimension_numbers = #tpu.dot_dimension_numbers<[1], [0], [0], [1], [0, 0, 1, 1], [], []>} : vector<4x8xf32>, vector<8x128xf32>, vector<4x128xf32> -> vector<4x128xf32>
    %c4_268 = arith.constant 4 : index
    %c0_269 = arith.constant 0 : index
    %c128_270 = arith.constant 128 : index
    %332 = vector.load %arg7[%c4_268, %c0_269, %c128_270] : memref<5x5x512xf32, #tpu.memory_space<vmem>>, vector<1x4x128xf32>
    %333 = vector.shape_cast %332 : vector<1x4x128xf32> to vector<4x128xf32>
    %334 = vector.shape_cast %330 : vector<4x128xf32> to vector<1x4x128xf32>
    tpu.vector_store %arg7[%c4_268, %c0_269, %c128_270], %334 {strides = array<i32>} : memref<5x5x512xf32, #tpu.memory_space<vmem>>, vector<1x4x128xf32>,
    %c4_271 = arith.constant 4 : index
    %c1_272 = arith.constant 1 : index
    %c0_273 = arith.constant 0 : index
    %335 = vector.load %arg7[%c4_271, %c1_272, %c0_273] : memref<5x5x512xf32, #tpu.memory_space<vmem>>, vector<1x4x128xf32>
    %336 = vector.shape_cast %335 : vector<1x4x128xf32> to vector<4x128xf32>
    %337 = vector.shape_cast %331 : vector<4x128xf32> to vector<1x4x128xf32>
    tpu.vector_store %arg7[%c4_271, %c1_272, %c0_273], %337 {strides = array<i32>} : memref<5x5x512xf32, #tpu.memory_space<vmem>>, vector<1x4x128xf32>,
    %338 = tpu.iota {dimensions = array<i32: 0>} : vector<2x4xi32>
    %339 = tpu.iota {dimensions = array<i32: 1>} : vector<2x4xi32>
    %c2_i32_274 = arith.constant 2 : i32
    %340 = vector.broadcast %c2_i32_274 : i32 to vector<2x4xi32>
    %341 = arith.muli %340, %338 : vector<2x4xi32>
    %c0_i32_275 = arith.constant 0 : i32
    %342 = vector.broadcast %c0_i32_275 : i32 to vector<2x4xi32>
    %343 = arith.addi %341, %342 : vector<2x4xi32>
    %344 = arith.cmpi eq, %339, %343 : vector<2x4xi32>
    %345 = arith.extui %344 : vector<2x4xi1> to vector<2x4xi32>
    %346 = arith.sitofp %345 : vector<2x4xi32> to vector<2x4xf32>
    %347 = tpu.iota {dimensions = array<i32: 0>} : vector<2x4xi32>
    %348 = tpu.iota {dimensions = array<i32: 1>} : vector<2x4xi32>
    %c2_i32_276 = arith.constant 2 : i32
    %349 = vector.broadcast %c2_i32_276 : i32 to vector<2x4xi32>
    %350 = arith.muli %349, %347 : vector<2x4xi32>
    %c1_i32_277 = arith.constant 1 : i32
    %351 = vector.broadcast %c1_i32_277 : i32 to vector<2x4xi32>
    %352 = arith.addi %350, %351 : vector<2x4xi32>
    %353 = arith.cmpi eq, %348, %352 : vector<2x4xi32>
    %354 = arith.extui %353 : vector<2x4xi1> to vector<2x4xi32>
    %355 = arith.sitofp %354 : vector<2x4xi32> to vector<2x4xf32>
    %cst_278 = arith.constant 0.000000e+00 : f32
    %356 = vector.broadcast %cst_278 : f32 to vector<4x128xf32>
    %c0_279 = arith.constant 0 : index
    %c0_280 = arith.constant 0 : index
    %c0_281 = arith.constant 0 : index
    %357 = vector.load %arg7[%c0_279, %c0_280, %c0_281] : memref<5x5x512xf32, #tpu.memory_space<vmem>>, vector<1x4x512xf32>
    %358 = vector.shape_cast %357 : vector<1x4x512xf32> to vector<4x512xf32>
    %359 = arith.truncf %358 : vector<4x512xf32> to vector<4x512xbf16>
    %c1_282 = arith.constant 1 : index
    %c0_283 = arith.constant 0 : index
    %c0_284 = arith.constant 0 : index
    %c0_285 = arith.constant 0 : index
    %360 = vector.load %arg3[%c1_282, %c0_283, %c0_284, %c0_285] : memref<4x4x512x128xbf16, #tpu.memory_space<vmem>>, vector<1x1x512x128xbf16>
    %361 = vector.shape_cast %360 : vector<1x1x512x128xbf16> to vector<512x128xbf16>
    %cst_286 = arith.constant dense<0.000000e+00> : vector<4x128xf32>
    %362 = tpu.matmul %359, %361, %cst_286 {dimension_numbers = #tpu.dot_dimension_numbers<[1], [0], [0], [1], [0, 0, 1, 1], [], []>} : vector<4x512xbf16>, vector<512x128xbf16>, vector<4x128xf32> -> vector<4x128xf32>
    %363 = arith.addf %356, %362 : vector<4x128xf32>
    %c0_287 = arith.constant 0 : index
    %c1_288 = arith.constant 1 : index
    %c0_289 = arith.constant 0 : index
    %364 = vector.load %arg7[%c0_287, %c1_288, %c0_289] : memref<5x5x512xf32, #tpu.memory_space<vmem>>, vector<1x4x512xf32>
    %365 = vector.shape_cast %364 : vector<1x4x512xf32> to vector<4x512xf32>
    %366 = arith.truncf %365 : vector<4x512xf32> to vector<4x512xbf16>
    %c1_290 = arith.constant 1 : index
    %c1_291 = arith.constant 1 : index
    %c0_292 = arith.constant 0 : index
    %c0_293 = arith.constant 0 : index
    %367 = vector.load %arg3[%c1_290, %c1_291, %c0_292, %c0_293] : memref<4x4x512x128xbf16, #tpu.memory_space<vmem>>, vector<1x1x512x128xbf16>
    %368 = vector.shape_cast %367 : vector<1x1x512x128xbf16> to vector<512x128xbf16>
    %cst_294 = arith.constant dense<0.000000e+00> : vector<4x128xf32>
    %369 = tpu.matmul %366, %368, %cst_294 {dimension_numbers = #tpu.dot_dimension_numbers<[1], [0], [0], [1], [0, 0, 1, 1], [], []>} : vector<4x512xbf16>, vector<512x128xbf16>, vector<4x128xf32> -> vector<4x128xf32>
    %370 = arith.addf %363, %369 : vector<4x128xf32>
    %c1_295 = arith.constant 1 : index
    %c0_296 = arith.constant 0 : index
    %c0_297 = arith.constant 0 : index
    %371 = vector.load %arg7[%c1_295, %c0_296, %c0_297] : memref<5x5x512xf32, #tpu.memory_space<vmem>>, vector<1x4x512xf32>
    %372 = vector.shape_cast %371 : vector<1x4x512xf32> to vector<4x512xf32>
    %373 = arith.truncf %372 : vector<4x512xf32> to vector<4x512xbf16>
    %c1_298 = arith.constant 1 : index
    %c2_299 = arith.constant 2 : index
    %c0_300 = arith.constant 0 : index
    %c0_301 = arith.constant 0 : index
    %374 = vector.load %arg3[%c1_298, %c2_299, %c0_300, %c0_301] : memref<4x4x512x128xbf16, #tpu.memory_space<vmem>>, vector<1x1x512x128xbf16>
    %375 = vector.shape_cast %374 : vector<1x1x512x128xbf16> to vector<512x128xbf16>
    %cst_302 = arith.constant dense<0.000000e+00> : vector<4x128xf32>
    %376 = tpu.matmul %373, %375, %cst_302 {dimension_numbers = #tpu.dot_dimension_numbers<[1], [0], [0], [1], [0, 0, 1, 1], [], []>} : vector<4x512xbf16>, vector<512x128xbf16>, vector<4x128xf32> -> vector<4x128xf32>
    %377 = arith.addf %370, %376 : vector<4x128xf32>
    %c1_303 = arith.constant 1 : index
    %c1_304 = arith.constant 1 : index
    %c0_305 = arith.constant 0 : index
    %378 = vector.load %arg7[%c1_303, %c1_304, %c0_305] : memref<5x5x512xf32, #tpu.memory_space<vmem>>, vector<1x4x512xf32>
    %379 = vector.shape_cast %378 : vector<1x4x512xf32> to vector<4x512xf32>
    %380 = arith.truncf %379 : vector<4x512xf32> to vector<4x512xbf16>
    %c1_306 = arith.constant 1 : index
    %c3_307 = arith.constant 3 : index
    %c0_308 = arith.constant 0 : index
    %c0_309 = arith.constant 0 : index
    %381 = vector.load %arg3[%c1_306, %c3_307, %c0_308, %c0_309] : memref<4x4x512x128xbf16, #tpu.memory_space<vmem>>, vector<1x1x512x128xbf16>
    %382 = vector.shape_cast %381 : vector<1x1x512x128xbf16> to vector<512x128xbf16>
    %cst_310 = arith.constant dense<0.000000e+00> : vector<4x128xf32>
    %383 = tpu.matmul %380, %382, %cst_310 {dimension_numbers = #tpu.dot_dimension_numbers<[1], [0], [0], [1], [0, 0, 1, 1], [], []>} : vector<4x512xbf16>, vector<512x128xbf16>, vector<4x128xf32> -> vector<4x128xf32>
    %384 = arith.addf %377, %383 : vector<4x128xf32>
    %c2_311 = arith.constant 2 : index
    %c0_312 = arith.constant 0 : index
    %385 = vector.load %arg4[%c2_311, %c0_312] : memref<5x128xf32, #tpu.memory_space<vmem>>, vector<1x128xf32>
    %386 = vector.broadcast %385 : vector<1x128xf32> to vector<4x128xf32>
    %387 = arith.addf %384, %386 : vector<4x128xf32>
    %cst_313 = arith.constant 0.000000e+00 : f32
    %388 = vector.broadcast %cst_313 : f32 to vector<4x128xf32>
    %389 = arith.cmpf ogt, %387, %388 : vector<4x128xf32>
    %cst_314 = arith.constant 2.000000e-01 : f32
    %390 = vector.broadcast %cst_314 : f32 to vector<4x128xf32>
    %391 = arith.mulf %390, %387 : vector<4x128xf32>
    %392 = arith.select %389, %387, %391 : vector<4x128xi1>, vector<4x128xf32>
    %cst_315 = arith.constant dense<0.000000e+00> : vector<2x128xf32>
    %393 = tpu.matmul %346, %392, %cst_315 {dimension_numbers = #tpu.dot_dimension_numbers<[1], [0], [0], [1], [0, 0, 1, 1], [], []>} : vector<2x4xf32>, vector<4x128xf32>, vector<2x128xf32> -> vector<2x128xf32>
    %cst_316 = arith.constant dense<0.000000e+00> : vector<2x128xf32>
    %394 = tpu.matmul %355, %392, %cst_316 {dimension_numbers = #tpu.dot_dimension_numbers<[1], [0], [0], [1], [0, 0, 1, 1], [], []>} : vector<2x4xf32>, vector<4x128xf32>, vector<2x128xf32> -> vector<2x128xf32>
    %c0_317 = arith.constant 0 : index
    %c0_318 = arith.constant 0 : index
    %c384_319 = arith.constant 384 : index
    %395 = vector.load %arg8[%c0_317, %c0_318, %c384_319] : memref<3x3x512xf32, #tpu.memory_space<vmem>>, vector<1x2x128xf32>
    %396 = vector.shape_cast %395 : vector<1x2x128xf32> to vector<2x128xf32>
    %397 = vector.shape_cast %393 : vector<2x128xf32> to vector<1x2x128xf32>
    tpu.vector_store %arg8[%c0_317, %c0_318, %c384_319], %397 {strides = array<i32>} : memref<3x3x512xf32, #tpu.memory_space<vmem>>, vector<1x2x128xf32>,
    %c0_320 = arith.constant 0 : index
    %c1_321 = arith.constant 1 : index
    %c256_322 = arith.constant 256 : index
    %398 = vector.load %arg8[%c0_320, %c1_321, %c256_322] : memref<3x3x512xf32, #tpu.memory_space<vmem>>, vector<1x2x128xf32>
    %399 = vector.shape_cast %398 : vector<1x2x128xf32> to vector<2x128xf32>
    %400 = vector.shape_cast %394 : vector<2x128xf32> to vector<1x2x128xf32>
    tpu.vector_store %arg8[%c0_320, %c1_321, %c256_322], %400 {strides = array<i32>} : memref<3x3x512xf32, #tpu.memory_space<vmem>>, vector<1x2x128xf32>,
    %cst_323 = arith.constant 0.000000e+00 : f32
    %401 = vector.broadcast %cst_323 : f32 to vector<4x128xf32>
    %c1_324 = arith.constant 1 : index
    %c0_325 = arith.constant 0 : index
    %c0_326 = arith.constant 0 : index
    %402 = vector.load %arg7[%c1_324, %c0_325, %c0_326] : memref<5x5x512xf32, #tpu.memory_space<vmem>>, vector<1x4x512xf32>
    %403 = vector.shape_cast %402 : vector<1x4x512xf32> to vector<4x512xf32>
    %404 = arith.truncf %403 : vector<4x512xf32> to vector<4x512xbf16>
    %c1_327 = arith.constant 1 : index
    %c0_328 = arith.constant 0 : index
    %c0_329 = arith.constant 0 : index
    %c0_330 = arith.constant 0 : index
    %405 = vector.load %arg3[%c1_327, %c0_328, %c0_329, %c0_330] : memref<4x4x512x128xbf16, #tpu.memory_space<vmem>>, vector<1x1x512x128xbf16>
    %406 = vector.shape_cast %405 : vector<1x1x512x128xbf16> to vector<512x128xbf16>
    %cst_331 = arith.constant dense<0.000000e+00> : vector<4x128xf32>
    %407 = tpu.matmul %404, %406, %cst_331 {dimension_numbers = #tpu.dot_dimension_numbers<[1], [0], [0], [1], [0, 0, 1, 1], [], []>} : vector<4x512xbf16>, vector<512x128xbf16>, vector<4x128xf32> -> vector<4x128xf32>
    %408 = arith.addf %401, %407 : vector<4x128xf32>
    %c1_332 = arith.constant 1 : index
    %c1_333 = arith.constant 1 : index
    %c0_334 = arith.constant 0 : index
    %409 = vector.load %arg7[%c1_332, %c1_333, %c0_334] : memref<5x5x512xf32, #tpu.memory_space<vmem>>, vector<1x4x512xf32>
    %410 = vector.shape_cast %409 : vector<1x4x512xf32> to vector<4x512xf32>
    %411 = arith.truncf %410 : vector<4x512xf32> to vector<4x512xbf16>
    %c1_335 = arith.constant 1 : index
    %c1_336 = arith.constant 1 : index
    %c0_337 = arith.constant 0 : index
    %c0_338 = arith.constant 0 : index
    %412 = vector.load %arg3[%c1_335, %c1_336, %c0_337, %c0_338] : memref<4x4x512x128xbf16, #tpu.memory_space<vmem>>, vector<1x1x512x128xbf16>
    %413 = vector.shape_cast %412 : vector<1x1x512x128xbf16> to vector<512x128xbf16>
    %cst_339 = arith.constant dense<0.000000e+00> : vector<4x128xf32>
    %414 = tpu.matmul %411, %413, %cst_339 {dimension_numbers = #tpu.dot_dimension_numbers<[1], [0], [0], [1], [0, 0, 1, 1], [], []>} : vector<4x512xbf16>, vector<512x128xbf16>, vector<4x128xf32> -> vector<4x128xf32>
    %415 = arith.addf %408, %414 : vector<4x128xf32>
    %c2_340 = arith.constant 2 : index
    %c0_341 = arith.constant 0 : index
    %c0_342 = arith.constant 0 : index
    %416 = vector.load %arg7[%c2_340, %c0_341, %c0_342] : memref<5x5x512xf32, #tpu.memory_space<vmem>>, vector<1x4x512xf32>
    %417 = vector.shape_cast %416 : vector<1x4x512xf32> to vector<4x512xf32>
    %418 = arith.truncf %417 : vector<4x512xf32> to vector<4x512xbf16>
    %c1_343 = arith.constant 1 : index
    %c2_344 = arith.constant 2 : index
    %c0_345 = arith.constant 0 : index
    %c0_346 = arith.constant 0 : index
    %419 = vector.load %arg3[%c1_343, %c2_344, %c0_345, %c0_346] : memref<4x4x512x128xbf16, #tpu.memory_space<vmem>>, vector<1x1x512x128xbf16>
    %420 = vector.shape_cast %419 : vector<1x1x512x128xbf16> to vector<512x128xbf16>
    %cst_347 = arith.constant dense<0.000000e+00> : vector<4x128xf32>
    %421 = tpu.matmul %418, %420, %cst_347 {dimension_numbers = #tpu.dot_dimension_numbers<[1], [0], [0], [1], [0, 0, 1, 1], [], []>} : vector<4x512xbf16>, vector<512x128xbf16>, vector<4x128xf32> -> vector<4x128xf32>
    %422 = arith.addf %415, %421 : vector<4x128xf32>
    %c2_348 = arith.constant 2 : index
    %c1_349 = arith.constant 1 : index
    %c0_350 = arith.constant 0 : index
    %423 = vector.load %arg7[%c2_348, %c1_349, %c0_350] : memref<5x5x512xf32, #tpu.memory_space<vmem>>, vector<1x4x512xf32>
    %424 = vector.shape_cast %423 : vector<1x4x512xf32> to vector<4x512xf32>
    %425 = arith.truncf %424 : vector<4x512xf32> to vector<4x512xbf16>
    %c1_351 = arith.constant 1 : index
    %c3_352 = arith.constant 3 : index
    %c0_353 = arith.constant 0 : index
    %c0_354 = arith.constant 0 : index
    %426 = vector.load %arg3[%c1_351, %c3_352, %c0_353, %c0_354] : memref<4x4x512x128xbf16, #tpu.memory_space<vmem>>, vector<1x1x512x128xbf16>
    %427 = vector.shape_cast %426 : vector<1x1x512x128xbf16> to vector<512x128xbf16>
    %cst_355 = arith.constant dense<0.000000e+00> : vector<4x128xf32>
    %428 = tpu.matmul %425, %427, %cst_355 {dimension_numbers = #tpu.dot_dimension_numbers<[1], [0], [0], [1], [0, 0, 1, 1], [], []>} : vector<4x512xbf16>, vector<512x128xbf16>, vector<4x128xf32> -> vector<4x128xf32>
    %429 = arith.addf %422, %428 : vector<4x128xf32>
    %c2_356 = arith.constant 2 : index
    %c0_357 = arith.constant 0 : index
    %430 = vector.load %arg4[%c2_356, %c0_357] : memref<5x128xf32, #tpu.memory_space<vmem>>, vector<1x128xf32>
    %431 = vector.broadcast %430 : vector<1x128xf32> to vector<4x128xf32>
    %432 = arith.addf %429, %431 : vector<4x128xf32>
    %cst_358 = arith.constant 0.000000e+00 : f32
    %433 = vector.broadcast %cst_358 : f32 to vector<4x128xf32>
    %434 = arith.cmpf ogt, %432, %433 : vector<4x128xf32>
    %cst_359 = arith.constant 2.000000e-01 : f32
    %435 = vector.broadcast %cst_359 : f32 to vector<4x128xf32>
    %436 = arith.mulf %435, %432 : vector<4x128xf32>
    %437 = arith.select %434, %432, %436 : vector<4x128xi1>, vector<4x128xf32>
    %cst_360 = arith.constant dense<0.000000e+00> : vector<2x128xf32>
    %438 = tpu.matmul %346, %437, %cst_360 {dimension_numbers = #tpu.dot_dimension_numbers<[1], [0], [0], [1], [0, 0, 1, 1], [], []>} : vector<2x4xf32>, vector<4x128xf32>, vector<2x128xf32> -> vector<2x128xf32>
    %cst_361 = arith.constant dense<0.000000e+00> : vector<2x128xf32>
    %439 = tpu.matmul %355, %437, %cst_361 {dimension_numbers = #tpu.dot_dimension_numbers<[1], [0], [0], [1], [0, 0, 1, 1], [], []>} : vector<2x4xf32>, vector<4x128xf32>, vector<2x128xf32> -> vector<2x128xf32>
    %c1_362 = arith.constant 1 : index
    %c0_363 = arith.constant 0 : index
    %c128_364 = arith.constant 128 : index
    %440 = vector.load %arg8[%c1_362, %c0_363, %c128_364] : memref<3x3x512xf32, #tpu.memory_space<vmem>>, vector<1x2x128xf32>
    %441 = vector.shape_cast %440 : vector<1x2x128xf32> to vector<2x128xf32>
    %442 = vector.shape_cast %438 : vector<2x128xf32> to vector<1x2x128xf32>
    tpu.vector_store %arg8[%c1_362, %c0_363, %c128_364], %442 {strides = array<i32>} : memref<3x3x512xf32, #tpu.memory_space<vmem>>, vector<1x2x128xf32>,
    %c1_365 = arith.constant 1 : index
    %c1_366 = arith.constant 1 : index
    %c0_367 = arith.constant 0 : index
    %443 = vector.load %arg8[%c1_365, %c1_366, %c0_367] : memref<3x3x512xf32, #tpu.memory_space<vmem>>, vector<1x2x128xf32>
    %444 = vector.shape_cast %443 : vector<1x2x128xf32> to vector<2x128xf32>
    %445 = vector.shape_cast %439 : vector<2x128xf32> to vector<1x2x128xf32>
    tpu.vector_store %arg8[%c1_365, %c1_366, %c0_367], %445 {strides = array<i32>} : memref<3x3x512xf32, #tpu.memory_space<vmem>>, vector<1x2x128xf32>,
    %cst_368 = arith.constant 0.000000e+00 : f32
    %446 = vector.broadcast %cst_368 : f32 to vector<4x128xf32>
    %c2_369 = arith.constant 2 : index
    %c0_370 = arith.constant 0 : index
    %c0_371 = arith.constant 0 : index
    %447 = vector.load %arg7[%c2_369, %c0_370, %c0_371] : memref<5x5x512xf32, #tpu.memory_space<vmem>>, vector<1x4x512xf32>
    %448 = vector.shape_cast %447 : vector<1x4x512xf32> to vector<4x512xf32>
    %449 = arith.truncf %448 : vector<4x512xf32> to vector<4x512xbf16>
    %c1_372 = arith.constant 1 : index
    %c0_373 = arith.constant 0 : index
    %c0_374 = arith.constant 0 : index
    %c0_375 = arith.constant 0 : index
    %450 = vector.load %arg3[%c1_372, %c0_373, %c0_374, %c0_375] : memref<4x4x512x128xbf16, #tpu.memory_space<vmem>>, vector<1x1x512x128xbf16>
    %451 = vector.shape_cast %450 : vector<1x1x512x128xbf16> to vector<512x128xbf16>
    %cst_376 = arith.constant dense<0.000000e+00> : vector<4x128xf32>
    %452 = tpu.matmul %449, %451, %cst_376 {dimension_numbers = #tpu.dot_dimension_numbers<[1], [0], [0], [1], [0, 0, 1, 1], [], []>} : vector<4x512xbf16>, vector<512x128xbf16>, vector<4x128xf32> -> vector<4x128xf32>
    %453 = arith.addf %446, %452 : vector<4x128xf32>
    %c2_377 = arith.constant 2 : index
    %c1_378 = arith.constant 1 : index
    %c0_379 = arith.constant 0 : index
    %454 = vector.load %arg7[%c2_377, %c1_378, %c0_379] : memref<5x5x512xf32, #tpu.memory_space<vmem>>, vector<1x4x512xf32>
    %455 = vector.shape_cast %454 : vector<1x4x512xf32> to vector<4x512xf32>
    %456 = arith.truncf %455 : vector<4x512xf32> to vector<4x512xbf16>
    %c1_380 = arith.constant 1 : index
    %c1_381 = arith.constant 1 : index
    %c0_382 = arith.constant 0 : index
    %c0_383 = arith.constant 0 : index
    %457 = vector.load %arg3[%c1_380, %c1_381, %c0_382, %c0_383] : memref<4x4x512x128xbf16, #tpu.memory_space<vmem>>, vector<1x1x512x128xbf16>
    %458 = vector.shape_cast %457 : vector<1x1x512x128xbf16> to vector<512x128xbf16>
    %cst_384 = arith.constant dense<0.000000e+00> : vector<4x128xf32>
    %459 = tpu.matmul %456, %458, %cst_384 {dimension_numbers = #tpu.dot_dimension_numbers<[1], [0], [0], [1], [0, 0, 1, 1], [], []>} : vector<4x512xbf16>, vector<512x128xbf16>, vector<4x128xf32> -> vector<4x128xf32>
    %460 = arith.addf %453, %459 : vector<4x128xf32>
    %c3_385 = arith.constant 3 : index
    %c0_386 = arith.constant 0 : index
    %c0_387 = arith.constant 0 : index
    %461 = vector.load %arg7[%c3_385, %c0_386, %c0_387] : memref<5x5x512xf32, #tpu.memory_space<vmem>>, vector<1x4x512xf32>
    %462 = vector.shape_cast %461 : vector<1x4x512xf32> to vector<4x512xf32>
    %463 = arith.truncf %462 : vector<4x512xf32> to vector<4x512xbf16>
    %c1_388 = arith.constant 1 : index
    %c2_389 = arith.constant 2 : index
    %c0_390 = arith.constant 0 : index
    %c0_391 = arith.constant 0 : index
    %464 = vector.load %arg3[%c1_388, %c2_389, %c0_390, %c0_391] : memref<4x4x512x128xbf16, #tpu.memory_space<vmem>>, vector<1x1x512x128xbf16>
    %465 = vector.shape_cast %464 : vector<1x1x512x128xbf16> to vector<512x128xbf16>
    %cst_392 = arith.constant dense<0.000000e+00> : vector<4x128xf32>
    %466 = tpu.matmul %463, %465, %cst_392 {dimension_numbers = #tpu.dot_dimension_numbers<[1], [0], [0], [1], [0, 0, 1, 1], [], []>} : vector<4x512xbf16>, vector<512x128xbf16>, vector<4x128xf32> -> vector<4x128xf32>
    %467 = arith.addf %460, %466 : vector<4x128xf32>
    %c3_393 = arith.constant 3 : index
    %c1_394 = arith.constant 1 : index
    %c0_395 = arith.constant 0 : index
    %468 = vector.load %arg7[%c3_393, %c1_394, %c0_395] : memref<5x5x512xf32, #tpu.memory_space<vmem>>, vector<1x4x512xf32>
    %469 = vector.shape_cast %468 : vector<1x4x512xf32> to vector<4x512xf32>
    %470 = arith.truncf %469 : vector<4x512xf32> to vector<4x512xbf16>
    %c1_396 = arith.constant 1 : index
    %c3_397 = arith.constant 3 : index
    %c0_398 = arith.constant 0 : index
    %c0_399 = arith.constant 0 : index
    %471 = vector.load %arg3[%c1_396, %c3_397, %c0_398, %c0_399] : memref<4x4x512x128xbf16, #tpu.memory_space<vmem>>, vector<1x1x512x128xbf16>
    %472 = vector.shape_cast %471 : vector<1x1x512x128xbf16> to vector<512x128xbf16>
    %cst_400 = arith.constant dense<0.000000e+00> : vector<4x128xf32>
    %473 = tpu.matmul %470, %472, %cst_400 {dimension_numbers = #tpu.dot_dimension_numbers<[1], [0], [0], [1], [0, 0, 1, 1], [], []>} : vector<4x512xbf16>, vector<512x128xbf16>, vector<4x128xf32> -> vector<4x128xf32>
    %474 = arith.addf %467, %473 : vector<4x128xf32>
    %c2_401 = arith.constant 2 : index
    %c0_402 = arith.constant 0 : index
    %475 = vector.load %arg4[%c2_401, %c0_402] : memref<5x128xf32, #tpu.memory_space<vmem>>, vector<1x128xf32>
    %476 = vector.broadcast %475 : vector<1x128xf32> to vector<4x128xf32>
    %477 = arith.addf %474, %476 : vector<4x128xf32>
    %cst_403 = arith.constant 0.000000e+00 : f32
    %478 = vector.broadcast %cst_403 : f32 to vector<4x128xf32>
    %479 = arith.cmpf ogt, %477, %478 : vector<4x128xf32>
    %cst_404 = arith.constant 2.000000e-01 : f32
    %480 = vector.broadcast %cst_404 : f32 to vector<4x128xf32>
    %481 = arith.mulf %480, %477 : vector<4x128xf32>
    %482 = arith.select %479, %477, %481 : vector<4x128xi1>, vector<4x128xf32>
    %cst_405 = arith.constant dense<0.000000e+00> : vector<2x128xf32>
    %483 = tpu.matmul %346, %482, %cst_405 {dimension_numbers = #tpu.dot_dimension_numbers<[1], [0], [0], [1], [0, 0, 1, 1], [], []>} : vector<2x4xf32>, vector<4x128xf32>, vector<2x128xf32> -> vector<2x128xf32>
    %cst_406 = arith.constant dense<0.000000e+00> : vector<2x128xf32>
    %484 = tpu.matmul %355, %482, %cst_406 {dimension_numbers = #tpu.dot_dimension_numbers<[1], [0], [0], [1], [0, 0, 1, 1], [], []>} : vector<2x4xf32>, vector<4x128xf32>, vector<2x128xf32> -> vector<2x128xf32>
    %c1_407 = arith.constant 1 : index
    %c0_408 = arith.constant 0 : index
    %c384_409 = arith.constant 384 : index
    %485 = vector.load %arg8[%c1_407, %c0_408, %c384_409] : memref<3x3x512xf32, #tpu.memory_space<vmem>>, vector<1x2x128xf32>
    %486 = vector.shape_cast %485 : vector<1x2x128xf32> to vector<2x128xf32>
    %487 = vector.shape_cast %483 : vector<2x128xf32> to vector<1x2x128xf32>
    tpu.vector_store %arg8[%c1_407, %c0_408, %c384_409], %487 {strides = array<i32>} : memref<3x3x512xf32, #tpu.memory_space<vmem>>, vector<1x2x128xf32>,
    %c1_410 = arith.constant 1 : index
    %c1_411 = arith.constant 1 : index
    %c256_412 = arith.constant 256 : index
    %488 = vector.load %arg8[%c1_410, %c1_411, %c256_412] : memref<3x3x512xf32, #tpu.memory_space<vmem>>, vector<1x2x128xf32>
    %489 = vector.shape_cast %488 : vector<1x2x128xf32> to vector<2x128xf32>
    %490 = vector.shape_cast %484 : vector<2x128xf32> to vector<1x2x128xf32>
    tpu.vector_store %arg8[%c1_410, %c1_411, %c256_412], %490 {strides = array<i32>} : memref<3x3x512xf32, #tpu.memory_space<vmem>>, vector<1x2x128xf32>,
    %cst_413 = arith.constant 0.000000e+00 : f32
    %491 = vector.broadcast %cst_413 : f32 to vector<4x128xf32>
    %c3_414 = arith.constant 3 : index
    %c0_415 = arith.constant 0 : index
    %c0_416 = arith.constant 0 : index
    %492 = vector.load %arg7[%c3_414, %c0_415, %c0_416] : memref<5x5x512xf32, #tpu.memory_space<vmem>>, vector<1x4x512xf32>
    %493 = vector.shape_cast %492 : vector<1x4x512xf32> to vector<4x512xf32>
    %494 = arith.truncf %493 : vector<4x512xf32> to vector<4x512xbf16>
    %c1_417 = arith.constant 1 : index
    %c0_418 = arith.constant 0 : index
    %c0_419 = arith.constant 0 : index
    %c0_420 = arith.constant 0 : index
    %495 = vector.load %arg3[%c1_417, %c0_418, %c0_419, %c0_420] : memref<4x4x512x128xbf16, #tpu.memory_space<vmem>>, vector<1x1x512x128xbf16>
    %496 = vector.shape_cast %495 : vector<1x1x512x128xbf16> to vector<512x128xbf16>
    %cst_421 = arith.constant dense<0.000000e+00> : vector<4x128xf32>
    %497 = tpu.matmul %494, %496, %cst_421 {dimension_numbers = #tpu.dot_dimension_numbers<[1], [0], [0], [1], [0, 0, 1, 1], [], []>} : vector<4x512xbf16>, vector<512x128xbf16>, vector<4x128xf32> -> vector<4x128xf32>
    %498 = arith.addf %491, %497 : vector<4x128xf32>
    %c3_422 = arith.constant 3 : index
    %c1_423 = arith.constant 1 : index
    %c0_424 = arith.constant 0 : index
    %499 = vector.load %arg7[%c3_422, %c1_423, %c0_424] : memref<5x5x512xf32, #tpu.memory_space<vmem>>, vector<1x4x512xf32>
    %500 = vector.shape_cast %499 : vector<1x4x512xf32> to vector<4x512xf32>
    %501 = arith.truncf %500 : vector<4x512xf32> to vector<4x512xbf16>
    %c1_425 = arith.constant 1 : index
    %c1_426 = arith.constant 1 : index
    %c0_427 = arith.constant 0 : index
    %c0_428 = arith.constant 0 : index
    %502 = vector.load %arg3[%c1_425, %c1_426, %c0_427, %c0_428] : memref<4x4x512x128xbf16, #tpu.memory_space<vmem>>, vector<1x1x512x128xbf16>
    %503 = vector.shape_cast %502 : vector<1x1x512x128xbf16> to vector<512x128xbf16>
    %cst_429 = arith.constant dense<0.000000e+00> : vector<4x128xf32>
    %504 = tpu.matmul %501, %503, %cst_429 {dimension_numbers = #tpu.dot_dimension_numbers<[1], [0], [0], [1], [0, 0, 1, 1], [], []>} : vector<4x512xbf16>, vector<512x128xbf16>, vector<4x128xf32> -> vector<4x128xf32>
    %505 = arith.addf %498, %504 : vector<4x128xf32>
    %c4_430 = arith.constant 4 : index
    %c0_431 = arith.constant 0 : index
    %c0_432 = arith.constant 0 : index
    %506 = vector.load %arg7[%c4_430, %c0_431, %c0_432] : memref<5x5x512xf32, #tpu.memory_space<vmem>>, vector<1x4x512xf32>
    %507 = vector.shape_cast %506 : vector<1x4x512xf32> to vector<4x512xf32>
    %508 = arith.truncf %507 : vector<4x512xf32> to vector<4x512xbf16>
    %c1_433 = arith.constant 1 : index
    %c2_434 = arith.constant 2 : index
    %c0_435 = arith.constant 0 : index
    %c0_436 = arith.constant 0 : index
    %509 = vector.load %arg3[%c1_433, %c2_434, %c0_435, %c0_436] : memref<4x4x512x128xbf16, #tpu.memory_space<vmem>>, vector<1x1x512x128xbf16>
    %510 = vector.shape_cast %509 : vector<1x1x512x128xbf16> to vector<512x128xbf16>
    %cst_437 = arith.constant dense<0.000000e+00> : vector<4x128xf32>
    %511 = tpu.matmul %508, %510, %cst_437 {dimension_numbers = #tpu.dot_dimension_numbers<[1], [0], [0], [1], [0, 0, 1, 1], [], []>} : vector<4x512xbf16>, vector<512x128xbf16>, vector<4x128xf32> -> vector<4x128xf32>
    %512 = arith.addf %505, %511 : vector<4x128xf32>
    %c4_438 = arith.constant 4 : index
    %c1_439 = arith.constant 1 : index
    %c0_440 = arith.constant 0 : index
    %513 = vector.load %arg7[%c4_438, %c1_439, %c0_440] : memref<5x5x512xf32, #tpu.memory_space<vmem>>, vector<1x4x512xf32>
    %514 = vector.shape_cast %513 : vector<1x4x512xf32> to vector<4x512xf32>
    %515 = arith.truncf %514 : vector<4x512xf32> to vector<4x512xbf16>
    %c1_441 = arith.constant 1 : index
    %c3_442 = arith.constant 3 : index
    %c0_443 = arith.constant 0 : index
    %c0_444 = arith.constant 0 : index
    %516 = vector.load %arg3[%c1_441, %c3_442, %c0_443, %c0_444] : memref<4x4x512x128xbf16, #tpu.memory_space<vmem>>, vector<1x1x512x128xbf16>
    %517 = vector.shape_cast %516 : vector<1x1x512x128xbf16> to vector<512x128xbf16>
    %cst_445 = arith.constant dense<0.000000e+00> : vector<4x128xf32>
    %518 = tpu.matmul %515, %517, %cst_445 {dimension_numbers = #tpu.dot_dimension_numbers<[1], [0], [0], [1], [0, 0, 1, 1], [], []>} : vector<4x512xbf16>, vector<512x128xbf16>, vector<4x128xf32> -> vector<4x128xf32>
    %519 = arith.addf %512, %518 : vector<4x128xf32>
    %c2_446 = arith.constant 2 : index
    %c0_447 = arith.constant 0 : index
    %520 = vector.load %arg4[%c2_446, %c0_447] : memref<5x128xf32, #tpu.memory_space<vmem>>, vector<1x128xf32>
    %521 = vector.broadcast %520 : vector<1x128xf32> to vector<4x128xf32>
    %522 = arith.addf %519, %521 : vector<4x128xf32>
    %cst_448 = arith.constant 0.000000e+00 : f32
    %523 = vector.broadcast %cst_448 : f32 to vector<4x128xf32>
    %524 = arith.cmpf ogt, %522, %523 : vector<4x128xf32>
    %cst_449 = arith.constant 2.000000e-01 : f32
    %525 = vector.broadcast %cst_449 : f32 to vector<4x128xf32>
    %526 = arith.mulf %525, %522 : vector<4x128xf32>
    %527 = arith.select %524, %522, %526 : vector<4x128xi1>, vector<4x128xf32>
    %cst_450 = arith.constant dense<0.000000e+00> : vector<2x128xf32>
    %528 = tpu.matmul %346, %527, %cst_450 {dimension_numbers = #tpu.dot_dimension_numbers<[1], [0], [0], [1], [0, 0, 1, 1], [], []>} : vector<2x4xf32>, vector<4x128xf32>, vector<2x128xf32> -> vector<2x128xf32>
    %cst_451 = arith.constant dense<0.000000e+00> : vector<2x128xf32>
    %529 = tpu.matmul %355, %527, %cst_451 {dimension_numbers = #tpu.dot_dimension_numbers<[1], [0], [0], [1], [0, 0, 1, 1], [], []>} : vector<2x4xf32>, vector<4x128xf32>, vector<2x128xf32> -> vector<2x128xf32>
    %c2_452 = arith.constant 2 : index
    %c0_453 = arith.constant 0 : index
    %c128_454 = arith.constant 128 : index
    %530 = vector.load %arg8[%c2_452, %c0_453, %c128_454] : memref<3x3x512xf32, #tpu.memory_space<vmem>>, vector<1x2x128xf32>
    %531 = vector.shape_cast %530 : vector<1x2x128xf32> to vector<2x128xf32>
    %532 = vector.shape_cast %528 : vector<2x128xf32> to vector<1x2x128xf32>
    tpu.vector_store %arg8[%c2_452, %c0_453, %c128_454], %532 {strides = array<i32>} : memref<3x3x512xf32, #tpu.memory_space<vmem>>, vector<1x2x128xf32>,
    %c2_455 = arith.constant 2 : index
    %c1_456 = arith.constant 1 : index
    %c0_457 = arith.constant 0 : index
    %533 = vector.load %arg8[%c2_455, %c1_456, %c0_457] : memref<3x3x512xf32, #tpu.memory_space<vmem>>, vector<1x2x128xf32>
    %534 = vector.shape_cast %533 : vector<1x2x128xf32> to vector<2x128xf32>
    %535 = vector.shape_cast %529 : vector<2x128xf32> to vector<1x2x128xf32>
    tpu.vector_store %arg8[%c2_455, %c1_456, %c0_457], %535 {strides = array<i32>} : memref<3x3x512xf32, #tpu.memory_space<vmem>>, vector<1x2x128xf32>,
    %536 = tpu.iota {dimensions = array<i32: 0>} : vector<1x2xi32>
    %537 = tpu.iota {dimensions = array<i32: 1>} : vector<1x2xi32>
    %c2_i32_458 = arith.constant 2 : i32
    %538 = vector.broadcast %c2_i32_458 : i32 to vector<1x2xi32>
    %539 = arith.muli %538, %536 : vector<1x2xi32>
    %c0_i32_459 = arith.constant 0 : i32
    %540 = vector.broadcast %c0_i32_459 : i32 to vector<1x2xi32>
    %541 = arith.addi %539, %540 : vector<1x2xi32>
    %542 = arith.cmpi eq, %537, %541 : vector<1x2xi32>
    %543 = arith.extui %542 : vector<1x2xi1> to vector<1x2xi32>
    %544 = arith.sitofp %543 : vector<1x2xi32> to vector<1x2xf32>
    %545 = tpu.iota {dimensions = array<i32: 0>} : vector<1x2xi32>
    %546 = tpu.iota {dimensions = array<i32: 1>} : vector<1x2xi32>
    %c2_i32_460 = arith.constant 2 : i32
    %547 = vector.broadcast %c2_i32_460 : i32 to vector<1x2xi32>
    %548 = arith.muli %547, %545 : vector<1x2xi32>
    %c1_i32_461 = arith.constant 1 : i32
    %549 = vector.broadcast %c1_i32_461 : i32 to vector<1x2xi32>
    %550 = arith.addi %548, %549 : vector<1x2xi32>
    %551 = arith.cmpi eq, %546, %550 : vector<1x2xi32>
    %552 = arith.extui %551 : vector<1x2xi1> to vector<1x2xi32>
    %553 = arith.sitofp %552 : vector<1x2xi32> to vector<1x2xf32>
    %cst_462 = arith.constant 0.000000e+00 : f32
    %554 = vector.broadcast %cst_462 : f32 to vector<2x128xf32>
    %c0_463 = arith.constant 0 : index
    %c0_464 = arith.constant 0 : index
    %c0_465 = arith.constant 0 : index
    %555 = vector.load %arg8[%c0_463, %c0_464, %c0_465] : memref<3x3x512xf32, #tpu.memory_space<vmem>>, vector<1x2x512xf32>
    %556 = vector.shape_cast %555 : vector<1x2x512xf32> to vector<2x512xf32>
    %557 = arith.truncf %556 : vector<2x512xf32> to vector<2x512xbf16>
    %c2_466 = arith.constant 2 : index
    %c0_467 = arith.constant 0 : index
    %c0_468 = arith.constant 0 : index
    %c0_469 = arith.constant 0 : index
    %558 = vector.load %arg3[%c2_466, %c0_467, %c0_468, %c0_469] : memref<4x4x512x128xbf16, #tpu.memory_space<vmem>>, vector<1x1x512x128xbf16>
    %559 = vector.shape_cast %558 : vector<1x1x512x128xbf16> to vector<512x128xbf16>
    %cst_470 = arith.constant dense<0.000000e+00> : vector<2x128xf32>
    %560 = tpu.matmul %557, %559, %cst_470 {dimension_numbers = #tpu.dot_dimension_numbers<[1], [0], [0], [1], [0, 0, 1, 1], [], []>} : vector<2x512xbf16>, vector<512x128xbf16>, vector<2x128xf32> -> vector<2x128xf32>
    %561 = arith.addf %554, %560 : vector<2x128xf32>
    %c0_471 = arith.constant 0 : index
    %c1_472 = arith.constant 1 : index
    %c0_473 = arith.constant 0 : index
    %562 = vector.load %arg8[%c0_471, %c1_472, %c0_473] : memref<3x3x512xf32, #tpu.memory_space<vmem>>, vector<1x2x512xf32>
    %563 = vector.shape_cast %562 : vector<1x2x512xf32> to vector<2x512xf32>
    %564 = arith.truncf %563 : vector<2x512xf32> to vector<2x512xbf16>
    %c2_474 = arith.constant 2 : index
    %c1_475 = arith.constant 1 : index
    %c0_476 = arith.constant 0 : index
    %c0_477 = arith.constant 0 : index
    %565 = vector.load %arg3[%c2_474, %c1_475, %c0_476, %c0_477] : memref<4x4x512x128xbf16, #tpu.memory_space<vmem>>, vector<1x1x512x128xbf16>
    %566 = vector.shape_cast %565 : vector<1x1x512x128xbf16> to vector<512x128xbf16>
    %cst_478 = arith.constant dense<0.000000e+00> : vector<2x128xf32>
    %567 = tpu.matmul %564, %566, %cst_478 {dimension_numbers = #tpu.dot_dimension_numbers<[1], [0], [0], [1], [0, 0, 1, 1], [], []>} : vector<2x512xbf16>, vector<512x128xbf16>, vector<2x128xf32> -> vector<2x128xf32>
    %568 = arith.addf %561, %567 : vector<2x128xf32>
    %c1_479 = arith.constant 1 : index
    %c0_480 = arith.constant 0 : index
    %c0_481 = arith.constant 0 : index
    %569 = vector.load %arg8[%c1_479, %c0_480, %c0_481] : memref<3x3x512xf32, #tpu.memory_space<vmem>>, vector<1x2x512xf32>
    %570 = vector.shape_cast %569 : vector<1x2x512xf32> to vector<2x512xf32>
    %571 = arith.truncf %570 : vector<2x512xf32> to vector<2x512xbf16>
    %c2_482 = arith.constant 2 : index
    %c2_483 = arith.constant 2 : index
    %c0_484 = arith.constant 0 : index
    %c0_485 = arith.constant 0 : index
    %572 = vector.load %arg3[%c2_482, %c2_483, %c0_484, %c0_485] : memref<4x4x512x128xbf16, #tpu.memory_space<vmem>>, vector<1x1x512x128xbf16>
    %573 = vector.shape_cast %572 : vector<1x1x512x128xbf16> to vector<512x128xbf16>
    %cst_486 = arith.constant dense<0.000000e+00> : vector<2x128xf32>
    %574 = tpu.matmul %571, %573, %cst_486 {dimension_numbers = #tpu.dot_dimension_numbers<[1], [0], [0], [1], [0, 0, 1, 1], [], []>} : vector<2x512xbf16>, vector<512x128xbf16>, vector<2x128xf32> -> vector<2x128xf32>
    %575 = arith.addf %568, %574 : vector<2x128xf32>
    %c1_487 = arith.constant 1 : index
    %c1_488 = arith.constant 1 : index
    %c0_489 = arith.constant 0 : index
    %576 = vector.load %arg8[%c1_487, %c1_488, %c0_489] : memref<3x3x512xf32, #tpu.memory_space<vmem>>, vector<1x2x512xf32>
    %577 = vector.shape_cast %576 : vector<1x2x512xf32> to vector<2x512xf32>
    %578 = arith.truncf %577 : vector<2x512xf32> to vector<2x512xbf16>
    %c2_490 = arith.constant 2 : index
    %c3_491 = arith.constant 3 : index
    %c0_492 = arith.constant 0 : index
    %c0_493 = arith.constant 0 : index
    %579 = vector.load %arg3[%c2_490, %c3_491, %c0_492, %c0_493] : memref<4x4x512x128xbf16, #tpu.memory_space<vmem>>, vector<1x1x512x128xbf16>
    %580 = vector.shape_cast %579 : vector<1x1x512x128xbf16> to vector<512x128xbf16>
    %cst_494 = arith.constant dense<0.000000e+00> : vector<2x128xf32>
    %581 = tpu.matmul %578, %580, %cst_494 {dimension_numbers = #tpu.dot_dimension_numbers<[1], [0], [0], [1], [0, 0, 1, 1], [], []>} : vector<2x512xbf16>, vector<512x128xbf16>, vector<2x128xf32> -> vector<2x128xf32>
    %582 = arith.addf %575, %581 : vector<2x128xf32>
    %c3_495 = arith.constant 3 : index
    %c0_496 = arith.constant 0 : index
    %583 = vector.load %arg4[%c3_495, %c0_496] : memref<5x128xf32, #tpu.memory_space<vmem>>, vector<1x128xf32>
    %584 = vector.broadcast %583 : vector<1x128xf32> to vector<2x128xf32>
    %585 = arith.addf %582, %584 : vector<2x128xf32>
    %cst_497 = arith.constant 0.000000e+00 : f32
    %586 = vector.broadcast %cst_497 : f32 to vector<2x128xf32>
    %587 = arith.cmpf ogt, %585, %586 : vector<2x128xf32>
    %cst_498 = arith.constant 2.000000e-01 : f32
    %588 = vector.broadcast %cst_498 : f32 to vector<2x128xf32>
    %589 = arith.mulf %588, %585 : vector<2x128xf32>
    %590 = arith.select %587, %585, %589 : vector<2x128xi1>, vector<2x128xf32>
    %cst_499 = arith.constant dense<0.000000e+00> : vector<1x128xf32>
    %591 = tpu.matmul %544, %590, %cst_499 {dimension_numbers = #tpu.dot_dimension_numbers<[1], [0], [0], [1], [0, 0, 1, 1], [], []>} : vector<1x2xf32>, vector<2x128xf32>, vector<1x128xf32> -> vector<1x128xf32>
    %cst_500 = arith.constant dense<0.000000e+00> : vector<1x128xf32>
    %592 = tpu.matmul %553, %590, %cst_500 {dimension_numbers = #tpu.dot_dimension_numbers<[1], [0], [0], [1], [0, 0, 1, 1], [], []>} : vector<1x2xf32>, vector<2x128xf32>, vector<1x128xf32> -> vector<1x128xf32>
    %c0_501 = arith.constant 0 : index
    %c0_502 = arith.constant 0 : index
    %c384_503 = arith.constant 384 : index
    %593 = vector.load %arg9[%c0_501, %c0_502, %c384_503] : memref<2x2x512xf32, #tpu.memory_space<vmem>>, vector<1x1x128xf32>
    %594 = vector.shape_cast %593 : vector<1x1x128xf32> to vector<1x128xf32>
    %595 = vector.shape_cast %591 : vector<1x128xf32> to vector<1x1x128xf32>
    tpu.vector_store %arg9[%c0_501, %c0_502, %c384_503], %595 {strides = array<i32>} : memref<2x2x512xf32, #tpu.memory_space<vmem>>, vector<1x1x128xf32>,
    %c0_504 = arith.constant 0 : index
    %c1_505 = arith.constant 1 : index
    %c256_506 = arith.constant 256 : index
    %596 = vector.load %arg9[%c0_504, %c1_505, %c256_506] : memref<2x2x512xf32, #tpu.memory_space<vmem>>, vector<1x1x128xf32>
    %597 = vector.shape_cast %596 : vector<1x1x128xf32> to vector<1x128xf32>
    %598 = vector.shape_cast %592 : vector<1x128xf32> to vector<1x1x128xf32>
    tpu.vector_store %arg9[%c0_504, %c1_505, %c256_506], %598 {strides = array<i32>} : memref<2x2x512xf32, #tpu.memory_space<vmem>>, vector<1x1x128xf32>,
    %cst_507 = arith.constant 0.000000e+00 : f32
    %599 = vector.broadcast %cst_507 : f32 to vector<2x128xf32>
    %c1_508 = arith.constant 1 : index
    %c0_509 = arith.constant 0 : index
    %c0_510 = arith.constant 0 : index
    %600 = vector.load %arg8[%c1_508, %c0_509, %c0_510] : memref<3x3x512xf32, #tpu.memory_space<vmem>>, vector<1x2x512xf32>
    %601 = vector.shape_cast %600 : vector<1x2x512xf32> to vector<2x512xf32>
    %602 = arith.truncf %601 : vector<2x512xf32> to vector<2x512xbf16>
    %c2_511 = arith.constant 2 : index
    %c0_512 = arith.constant 0 : index
    %c0_513 = arith.constant 0 : index
    %c0_514 = arith.constant 0 : index
    %603 = vector.load %arg3[%c2_511, %c0_512, %c0_513, %c0_514] : memref<4x4x512x128xbf16, #tpu.memory_space<vmem>>, vector<1x1x512x128xbf16>
    %604 = vector.shape_cast %603 : vector<1x1x512x128xbf16> to vector<512x128xbf16>
    %cst_515 = arith.constant dense<0.000000e+00> : vector<2x128xf32>
    %605 = tpu.matmul %602, %604, %cst_515 {dimension_numbers = #tpu.dot_dimension_numbers<[1], [0], [0], [1], [0, 0, 1, 1], [], []>} : vector<2x512xbf16>, vector<512x128xbf16>, vector<2x128xf32> -> vector<2x128xf32>
    %606 = arith.addf %599, %605 : vector<2x128xf32>
    %c1_516 = arith.constant 1 : index
    %c1_517 = arith.constant 1 : index
    %c0_518 = arith.constant 0 : index
    %607 = vector.load %arg8[%c1_516, %c1_517, %c0_518] : memref<3x3x512xf32, #tpu.memory_space<vmem>>, vector<1x2x512xf32>
    %608 = vector.shape_cast %607 : vector<1x2x512xf32> to vector<2x512xf32>
    %609 = arith.truncf %608 : vector<2x512xf32> to vector<2x512xbf16>
    %c2_519 = arith.constant 2 : index
    %c1_520 = arith.constant 1 : index
    %c0_521 = arith.constant 0 : index
    %c0_522 = arith.constant 0 : index
    %610 = vector.load %arg3[%c2_519, %c1_520, %c0_521, %c0_522] : memref<4x4x512x128xbf16, #tpu.memory_space<vmem>>, vector<1x1x512x128xbf16>
    %611 = vector.shape_cast %610 : vector<1x1x512x128xbf16> to vector<512x128xbf16>
    %cst_523 = arith.constant dense<0.000000e+00> : vector<2x128xf32>
    %612 = tpu.matmul %609, %611, %cst_523 {dimension_numbers = #tpu.dot_dimension_numbers<[1], [0], [0], [1], [0, 0, 1, 1], [], []>} : vector<2x512xbf16>, vector<512x128xbf16>, vector<2x128xf32> -> vector<2x128xf32>
    %613 = arith.addf %606, %612 : vector<2x128xf32>
    %c2_524 = arith.constant 2 : index
    %c0_525 = arith.constant 0 : index
    %c0_526 = arith.constant 0 : index
    %614 = vector.load %arg8[%c2_524, %c0_525, %c0_526] : memref<3x3x512xf32, #tpu.memory_space<vmem>>, vector<1x2x512xf32>
    %615 = vector.shape_cast %614 : vector<1x2x512xf32> to vector<2x512xf32>
    %616 = arith.truncf %615 : vector<2x512xf32> to vector<2x512xbf16>
    %c2_527 = arith.constant 2 : index
    %c2_528 = arith.constant 2 : index
    %c0_529 = arith.constant 0 : index
    %c0_530 = arith.constant 0 : index
    %617 = vector.load %arg3[%c2_527, %c2_528, %c0_529, %c0_530] : memref<4x4x512x128xbf16, #tpu.memory_space<vmem>>, vector<1x1x512x128xbf16>
    %618 = vector.shape_cast %617 : vector<1x1x512x128xbf16> to vector<512x128xbf16>
    %cst_531 = arith.constant dense<0.000000e+00> : vector<2x128xf32>
    %619 = tpu.matmul %616, %618, %cst_531 {dimension_numbers = #tpu.dot_dimension_numbers<[1], [0], [0], [1], [0, 0, 1, 1], [], []>} : vector<2x512xbf16>, vector<512x128xbf16>, vector<2x128xf32> -> vector<2x128xf32>
    %620 = arith.addf %613, %619 : vector<2x128xf32>
    %c2_532 = arith.constant 2 : index
    %c1_533 = arith.constant 1 : index
    %c0_534 = arith.constant 0 : index
    %621 = vector.load %arg8[%c2_532, %c1_533, %c0_534] : memref<3x3x512xf32, #tpu.memory_space<vmem>>, vector<1x2x512xf32>
    %622 = vector.shape_cast %621 : vector<1x2x512xf32> to vector<2x512xf32>
    %623 = arith.truncf %622 : vector<2x512xf32> to vector<2x512xbf16>
    %c2_535 = arith.constant 2 : index
    %c3_536 = arith.constant 3 : index
    %c0_537 = arith.constant 0 : index
    %c0_538 = arith.constant 0 : index
    %624 = vector.load %arg3[%c2_535, %c3_536, %c0_537, %c0_538] : memref<4x4x512x128xbf16, #tpu.memory_space<vmem>>, vector<1x1x512x128xbf16>
    %625 = vector.shape_cast %624 : vector<1x1x512x128xbf16> to vector<512x128xbf16>
    %cst_539 = arith.constant dense<0.000000e+00> : vector<2x128xf32>
    %626 = tpu.matmul %623, %625, %cst_539 {dimension_numbers = #tpu.dot_dimension_numbers<[1], [0], [0], [1], [0, 0, 1, 1], [], []>} : vector<2x512xbf16>, vector<512x128xbf16>, vector<2x128xf32> -> vector<2x128xf32>
    %627 = arith.addf %620, %626 : vector<2x128xf32>
    %c3_540 = arith.constant 3 : index
    %c0_541 = arith.constant 0 : index
    %628 = vector.load %arg4[%c3_540, %c0_541] : memref<5x128xf32, #tpu.memory_space<vmem>>, vector<1x128xf32>
    %629 = vector.broadcast %628 : vector<1x128xf32> to vector<2x128xf32>
    %630 = arith.addf %627, %629 : vector<2x128xf32>
    %cst_542 = arith.constant 0.000000e+00 : f32
    %631 = vector.broadcast %cst_542 : f32 to vector<2x128xf32>
    %632 = arith.cmpf ogt, %630, %631 : vector<2x128xf32>
    %cst_543 = arith.constant 2.000000e-01 : f32
    %633 = vector.broadcast %cst_543 : f32 to vector<2x128xf32>
    %634 = arith.mulf %633, %630 : vector<2x128xf32>
    %635 = arith.select %632, %630, %634 : vector<2x128xi1>, vector<2x128xf32>
    %cst_544 = arith.constant dense<0.000000e+00> : vector<1x128xf32>
    %636 = tpu.matmul %544, %635, %cst_544 {dimension_numbers = #tpu.dot_dimension_numbers<[1], [0], [0], [1], [0, 0, 1, 1], [], []>} : vector<1x2xf32>, vector<2x128xf32>, vector<1x128xf32> -> vector<1x128xf32>
    %cst_545 = arith.constant dense<0.000000e+00> : vector<1x128xf32>
    %637 = tpu.matmul %553, %635, %cst_545 {dimension_numbers = #tpu.dot_dimension_numbers<[1], [0], [0], [1], [0, 0, 1, 1], [], []>} : vector<1x2xf32>, vector<2x128xf32>, vector<1x128xf32> -> vector<1x128xf32>
    %c1_546 = arith.constant 1 : index
    %c0_547 = arith.constant 0 : index
    %c128_548 = arith.constant 128 : index
    %638 = vector.load %arg9[%c1_546, %c0_547, %c128_548] : memref<2x2x512xf32, #tpu.memory_space<vmem>>, vector<1x1x128xf32>
    %639 = vector.shape_cast %638 : vector<1x1x128xf32> to vector<1x128xf32>
    %640 = vector.shape_cast %636 : vector<1x128xf32> to vector<1x1x128xf32>
    tpu.vector_store %arg9[%c1_546, %c0_547, %c128_548], %640 {strides = array<i32>} : memref<2x2x512xf32, #tpu.memory_space<vmem>>, vector<1x1x128xf32>,
    %c1_549 = arith.constant 1 : index
    %c1_550 = arith.constant 1 : index
    %c0_551 = arith.constant 0 : index
    %641 = vector.load %arg9[%c1_549, %c1_550, %c0_551] : memref<2x2x512xf32, #tpu.memory_space<vmem>>, vector<1x1x128xf32>
    %642 = vector.shape_cast %641 : vector<1x1x128xf32> to vector<1x128xf32>
    %643 = vector.shape_cast %637 : vector<1x128xf32> to vector<1x1x128xf32>
    tpu.vector_store %arg9[%c1_549, %c1_550, %c0_551], %643 {strides = array<i32>} : memref<2x2x512xf32, #tpu.memory_space<vmem>>, vector<1x1x128xf32>,
    %cst_552 = arith.constant 0.000000e+00 : f32
    %644 = vector.broadcast %cst_552 : f32 to vector<1x128xf32>
    %c0_553 = arith.constant 0 : index
    %c0_554 = arith.constant 0 : index
    %c0_555 = arith.constant 0 : index
    %645 = vector.load %arg9[%c0_553, %c0_554, %c0_555] : memref<2x2x512xf32, #tpu.memory_space<vmem>>, vector<1x1x512xf32>
    %646 = vector.shape_cast %645 : vector<1x1x512xf32> to vector<1x512xf32>
    %647 = arith.truncf %646 : vector<1x512xf32> to vector<1x512xbf16>
    %c3_556 = arith.constant 3 : index
    %c0_557 = arith.constant 0 : index
    %c0_558 = arith.constant 0 : index
    %c0_559 = arith.constant 0 : index
    %648 = vector.load %arg3[%c3_556, %c0_557, %c0_558, %c0_559] : memref<4x4x512x128xbf16, #tpu.memory_space<vmem>>, vector<1x1x512x128xbf16>
    %649 = vector.shape_cast %648 : vector<1x1x512x128xbf16> to vector<512x128xbf16>
    %cst_560 = arith.constant dense<0.000000e+00> : vector<1x128xf32>
    %650 = tpu.matmul %647, %649, %cst_560 {dimension_numbers = #tpu.dot_dimension_numbers<[1], [0], [0], [1], [0, 0, 1, 1], [], []>} : vector<1x512xbf16>, vector<512x128xbf16>, vector<1x128xf32> -> vector<1x128xf32>
    %651 = arith.addf %644, %650 : vector<1x128xf32>
    %c0_561 = arith.constant 0 : index
    %c1_562 = arith.constant 1 : index
    %c0_563 = arith.constant 0 : index
    %652 = vector.load %arg9[%c0_561, %c1_562, %c0_563] : memref<2x2x512xf32, #tpu.memory_space<vmem>>, vector<1x1x512xf32>
    %653 = vector.shape_cast %652 : vector<1x1x512xf32> to vector<1x512xf32>
    %654 = arith.truncf %653 : vector<1x512xf32> to vector<1x512xbf16>
    %c3_564 = arith.constant 3 : index
    %c1_565 = arith.constant 1 : index
    %c0_566 = arith.constant 0 : index
    %c0_567 = arith.constant 0 : index
    %655 = vector.load %arg3[%c3_564, %c1_565, %c0_566, %c0_567] : memref<4x4x512x128xbf16, #tpu.memory_space<vmem>>, vector<1x1x512x128xbf16>
    %656 = vector.shape_cast %655 : vector<1x1x512x128xbf16> to vector<512x128xbf16>
    %cst_568 = arith.constant dense<0.000000e+00> : vector<1x128xf32>
    %657 = tpu.matmul %654, %656, %cst_568 {dimension_numbers = #tpu.dot_dimension_numbers<[1], [0], [0], [1], [0, 0, 1, 1], [], []>} : vector<1x512xbf16>, vector<512x128xbf16>, vector<1x128xf32> -> vector<1x128xf32>
    %658 = arith.addf %651, %657 : vector<1x128xf32>
    %c1_569 = arith.constant 1 : index
    %c0_570 = arith.constant 0 : index
    %c0_571 = arith.constant 0 : index
    %659 = vector.load %arg9[%c1_569, %c0_570, %c0_571] : memref<2x2x512xf32, #tpu.memory_space<vmem>>, vector<1x1x512xf32>
    %660 = vector.shape_cast %659 : vector<1x1x512xf32> to vector<1x512xf32>
    %661 = arith.truncf %660 : vector<1x512xf32> to vector<1x512xbf16>
    %c3_572 = arith.constant 3 : index
    %c2_573 = arith.constant 2 : index
    %c0_574 = arith.constant 0 : index
    %c0_575 = arith.constant 0 : index
    %662 = vector.load %arg3[%c3_572, %c2_573, %c0_574, %c0_575] : memref<4x4x512x128xbf16, #tpu.memory_space<vmem>>, vector<1x1x512x128xbf16>
    %663 = vector.shape_cast %662 : vector<1x1x512x128xbf16> to vector<512x128xbf16>
    %cst_576 = arith.constant dense<0.000000e+00> : vector<1x128xf32>
    %664 = tpu.matmul %661, %663, %cst_576 {dimension_numbers = #tpu.dot_dimension_numbers<[1], [0], [0], [1], [0, 0, 1, 1], [], []>} : vector<1x512xbf16>, vector<512x128xbf16>, vector<1x128xf32> -> vector<1x128xf32>
    %665 = arith.addf %658, %664 : vector<1x128xf32>
    %c1_577 = arith.constant 1 : index
    %c1_578 = arith.constant 1 : index
    %c0_579 = arith.constant 0 : index
    %666 = vector.load %arg9[%c1_577, %c1_578, %c0_579] : memref<2x2x512xf32, #tpu.memory_space<vmem>>, vector<1x1x512xf32>
    %667 = vector.shape_cast %666 : vector<1x1x512xf32> to vector<1x512xf32>
    %668 = arith.truncf %667 : vector<1x512xf32> to vector<1x512xbf16>
    %c3_580 = arith.constant 3 : index
    %c3_581 = arith.constant 3 : index
    %c0_582 = arith.constant 0 : index
    %c0_583 = arith.constant 0 : index
    %669 = vector.load %arg3[%c3_580, %c3_581, %c0_582, %c0_583] : memref<4x4x512x128xbf16, #tpu.memory_space<vmem>>, vector<1x1x512x128xbf16>
    %670 = vector.shape_cast %669 : vector<1x1x512x128xbf16> to vector<512x128xbf16>
    %cst_584 = arith.constant dense<0.000000e+00> : vector<1x128xf32>
    %671 = tpu.matmul %668, %670, %cst_584 {dimension_numbers = #tpu.dot_dimension_numbers<[1], [0], [0], [1], [0, 0, 1, 1], [], []>} : vector<1x512xbf16>, vector<512x128xbf16>, vector<1x128xf32> -> vector<1x128xf32>
    %672 = arith.addf %665, %671 : vector<1x128xf32>
    %c4_585 = arith.constant 4 : index
    %c0_586 = arith.constant 0 : index
    %673 = vector.load %arg4[%c4_585, %c0_586] : memref<5x128xf32, #tpu.memory_space<vmem>>, vector<1x128xf32>
    %674 = arith.addf %672, %673 : vector<1x128xf32>
    %cst_587 = arith.constant 0.000000e+00 : f32
    %675 = vector.broadcast %cst_587 : f32 to vector<1x128xf32>
    %676 = arith.subf %675, %674 : vector<1x128xf32>
    %677 = math.exp %676 : vector<1x128xf32>
    %cst_588 = arith.constant 1.000000e+00 : f32
    %678 = vector.broadcast %cst_588 : f32 to vector<1x128xf32>
    %679 = arith.addf %678, %677 : vector<1x128xf32>
    %680 = tpu.reciprocal %679 {approx = true} : vector<1x128xf32> -> vector<1x128xf32>
    %681 = vector.shape_cast %680 : vector<1x128xf32> to vector<1x128xf32>
    %682 = vector.broadcast %681 : vector<1x128xf32> to vector<8x128xf32>
    %c0_589 = arith.constant 0 : index
    %c0_590 = arith.constant 0 : index
    %c0_591 = arith.constant 0 : index
    %683 = vector.load %arg5[%c0_589, %c0_590, %c0_591] : memref<1x8x128xf32, #tpu.memory_space<vmem>>, vector<1x8x128xf32>
    %684 = vector.shape_cast %683 : vector<1x8x128xf32> to vector<8x128xf32>
    %685 = vector.shape_cast %682 : vector<8x128xf32> to vector<1x8x128xf32>
    tpu.vector_store %arg5[%c0_589, %c0_590, %c0_591], %685 {strides = array<i32>} : memref<1x8x128xf32, #tpu.memory_space<vmem>>, vector<1x8x128xf32>,
    return
  }
  func.func @transform_0(%arg0: i32) -> (i32, i32, i32, i32) {
    %c0_i32 = arith.constant 0 : i32
    %c0_i32_0 = arith.constant 0 : i32
    %c0_i32_1 = arith.constant 0 : i32
    %c0_i32_2 = arith.constant 0 : i32
    return %arg0, %c0_i32, %c0_i32_0, %c0_i32_1 : i32, i32, i32, i32
  }
  func.func @transform_1(%arg0: i32) -> (i32, i32, i32) {
    %c0_i32 = arith.constant 0 : i32
    %c0_i32_0 = arith.constant 0 : i32
    %c0_i32_1 = arith.constant 0 : i32
    %c0_i32_2 = arith.constant 0 : i32
    return %c0_i32, %c0_i32_0, %c0_i32_1 : i32, i32, i32
  }
  func.func @transform_2(%arg0: i32) -> (i32, i32, i32, i32) {
    %c0_i32 = arith.constant 0 : i32
    %c0_i32_0 = arith.constant 0 : i32
    %c0_i32_1 = arith.constant 0 : i32
    %c0_i32_2 = arith.constant 0 : i32
    %c0_i32_3 = arith.constant 0 : i32
    return %c0_i32, %c0_i32_0, %c0_i32_1, %c0_i32_2 : i32, i32, i32, i32
  }
  func.func @transform_3(%arg0: i32) -> (i32, i32) {
    %c0_i32 = arith.constant 0 : i32
    %c0_i32_0 = arith.constant 0 : i32
    %c0_i32_1 = arith.constant 0 : i32
    return %c0_i32, %c0_i32_0 : i32, i32
  }
  func.func @transform_4(%arg0: i32) -> (i32, i32, i32) {
    %c0_i32 = arith.constant 0 : i32
    %c0_i32_0 = arith.constant 0 : i32
    %c0_i32_1 = arith.constant 0 : i32
    return %arg0, %c0_i32, %c0_i32_0 : i32, i32, i32
  }
}

</mosaic_0001>

<bundles_post_ra>
// kernel: discriminator_forward.1
= control target key start
LH: loop header
LB: loop body
LE: loop exit
PB: predicated region body
PF: predicated region fallthrough
CT: control target
= control target key end

     0   :  { %s25300_s15 = smov 0   ;;  %s29804_s0 = inlined_call_operand.vmem [shape: f32[2,17,17,16], index: 0, kind: input, shape index: {}]   ;;  %s29805_s1 = inlined_call_operand.vmem [shape: bf16[4,16,128], index: 1, kind: input, shape index: {}]   ;;  %s29806_s2 = inlined_call_operand.vmem [shape: bf16[4,4,512,128], index: 2, kind: input, shape index: {}]   ;;  %s29807_s3 = inlined_call_operand.vmem [shape: f32[5,128], index: 3, kind: input, shape index: {}]   ;;  %s29808_s4 = inlined_call_operand.vmem [shape: f32[2,8,128], index: 4, kind: output, shape index: {}]  }
   0x1 LB: > { %s18496_s16 = sadd.s32 4294967295, %s25270_s15   ;;  %p18500_p0 = scmp.ge.s32.totalorder %s25270_s15, 1  ;;  %s25270_s15 = sphi %s25300_s15, %s14_s15  }
   0x2   : > { %p162_p1 = scmp.lt.s32.totalorder %s25270_s15, 3 }
   0x4   : > { %p163_p2 = pnand %p18500_p0, %p162_p1 }
   0x6   : > { %166 = sbr.rel (%p163_p2) target bundleno = 3975 (0xf87), region = 36 }
   0xd   : > { %v24209_v0 = vld [vmem:[%s29805_s1 + $0x8] sm:$0xff]   ;;  %p187_p3 = scmp.lt.s32.totalorder %s18496_s16, 1  ;;  %v24210_v1 = vld [vmem:[%s29805_s1] sm:$0xff]   ;;  %vm404_vm0 = vcmask 130048   ;;  %v25335_v11 = vld [vmem:[%s29805_s1 + $0x10] sm:$0xff]   ;;  %vm25273_vm1 = vmmov 0  }
   0xe   : > { %23505 = vmatprep.subr.bf16.mxu0 %v24209_v0  ;;  %v24212_v59 = vld [vmem:[%s29805_s1 + $0x18] sm:$0xff]  }
   0xf   : > { %s29898_s16 = smov (!%p187_p3, %s18496_s16), 1  ;;  %23506 = vmatpush3.bf16.msra.mxu0 %v24209_v0 }
  0x10   : > { %s24197_s21 = smul.u32 408, %s29898_s16  ;;  %23539 = vmatprep.subr.bf16.mxu0 %v24210_v1  ;;  %s18502_s5 = sshll.u32 %s29898_s16, 3 }
  0x11   : > { %s195_s8 = scalar_lea.vmem %s29808_s4, %s18502_s5 }
  0x12   : > { %s25320_s24 = scalar_lea.vmem %s29804_s0, %s24197_s21 }
  0x13   : > { %v347_v2 = vld [vmem:[%s25320_s24 + $0x1] sm:$0xff]  ;;  %v348_v3 = vld [vmem:[%s25320_s24 + $0x9] sm:$0xff]  ;;  %v349_v4 = vld [vmem:[%s25320_s24 + $0x19] sm:$0xff] }
  0x14   : > { %v379_v5 = vpack.c.bf16 %v348_v3, %v347_v2  ;;  %v350_v6 = vld [vmem:[%s25320_s24 + $0x21] sm:$0xff]  ;;  %v351_v7 = vld [vmem:[%s25320_s24 + $0x31] sm:$0xff]  ;;  %v352_v8 = vld [vmem:[%s25320_s24 + $0x39] sm:$0xff] }
  0x15   : > { %v25328_v9 = vpack.c.bf16 %v350_v6, %v349_v4  ;;  %v25330_v10 = vpack.c.bf16 %v352_v8, %v351_v7  ;;  %v353_v12 = vld [vmem:[%s25320_s24 + $0x49] sm:$0xff]  ;;  %v354_v13 = vld [vmem:[%s25320_s24 + $0x51] sm:$0xff]  ;;  %v355_v14 = vld [vmem:[%s25320_s24 + $0x61] sm:$0xff] }
  0x16   : > { %23507 = vmatprep.mubr.msk.bf16.mxu0 %vm404_vm0, %v379_v5  ;;  %v356_v15 = vld [vmem:[%s25320_s24 + $0x69] sm:$0xff]  ;;  %v25347_v16 = vpack.c.bf16 %v354_v13, %v353_v12  ;;  %v357_v18 = vld [vmem:[%s25320_s24 + $0x79] sm:$0xff]  ;;  %v358_v19 = vld [vmem:[%s25320_s24 + $0x81] sm:$0xff] }
  0x17   : > { %23508 = vmatmul.mubr.msk.bf16.vlgmr.msra.gmra.mrb[0].mxu0 %vm404_vm0, %v25328_v9  ;;  %v25349_v17 = vpack.c.bf16 %v356_v15, %v355_v14  ;;  %v359_v20 = vld [vmem:[%s25320_s24 + $0x91] sm:$0xff]  ;;  %v360_v21 = vld [vmem:[%s25320_s24 + $0x99] sm:$0xff]  ;;  %v25359_v22 = vpack.c.bf16 %v358_v19, %v357_v18  ;;  %v361_v24 = vld [vmem:[%s25320_s24 + $0xa9] sm:$0xff] }
  0x18   : > { %23511 = vmatprep.mubr.msk.bf16.mxu0 %vm404_vm0, %v25330_v10  ;;  %23540 = vmatpush3.bf16.msra.mxu0 %v24210_v1  ;;  %v25361_v23 = vpack.c.bf16 %v360_v21, %v359_v20  ;;  %v362_v25 = vld [vmem:[%s25320_s24 + $0xb1] sm:$0xff]  ;;  %v363_v26 = vld [vmem:[%s25320_s24 + $0xc1] sm:$0xff]  ;;  %v364_v27 = vld [vmem:[%s25320_s24 + $0xc9] sm:$0xff] }
  0x19   : > { %23573 = vmatprep.subr.bf16.mxu0 %v25335_v11  ;;  %v25371_v28 = vpack.c.bf16 %v362_v25, %v361_v24  ;;  %v25373_v29 = vpack.c.bf16 %v364_v27, %v363_v26  ;;  %v365_v30 = vld [vmem:[%s25320_s24 + $0xd9] sm:$0xff]  ;;  %v366_v31 = vld [vmem:[%s25320_s24 + $0xe1] sm:$0xff]  ;;  %v367_v32 = vld [vmem:[%s25320_s24 + $0xf1] sm:$0xff] }
  0x1a   : > { %v368_v33 = vld [vmem:[%s25320_s24 + $0xf9] sm:$0xff]  ;;  %v25383_v34 = vpack.c.bf16 %v366_v31, %v365_v30  ;;  %v369_v36 = vld [vmem:[%s25320_s24 + $0x109] sm:$0xff]  ;;  %v370_v37 = vld [vmem:[%s25320_s24 + $0x111] sm:$0xff] }
  0x1b   : > { %v25385_v35 = vpack.c.bf16 %v368_v33, %v367_v32  ;;  %v371_v38 = vld [vmem:[%s25320_s24 + $0x121] sm:$0xff]  ;;  %v372_v39 = vld [vmem:[%s25320_s24 + $0x129] sm:$0xff]  ;;  %v25395_v40 = vpack.c.bf16 %v370_v37, %v369_v36  ;;  %v373_v42 = vld [vmem:[%s25320_s24 + $0x139] sm:$0xff] }
  0x1c   : > { %v25397_v41 = vpack.c.bf16 %v372_v39, %v371_v38  ;;  %v374_v43 = vld [vmem:[%s25320_s24 + $0x141] sm:$0xff]  ;;  %v375_v44 = vld [vmem:[%s25320_s24 + $0x151] sm:$0xff]  ;;  %v376_v45 = vld [vmem:[%s25320_s24 + $0x159] sm:$0xff] }
  0x1d   : > { %v25407_v46 = vpack.c.bf16 %v374_v43, %v373_v42  ;;  %v25409_v47 = vpack.c.bf16 %v376_v45, %v375_v44  ;;  %v377_v48 = vld [vmem:[%s25320_s24 + $0x169] sm:$0xff]  ;;  %v378_v49 = vld [vmem:[%s25320_s24 + $0x171] sm:$0xff]  ;;  %v297_v50 = vld [vmem:[%s25320_s24] sm:$0xff] }
  0x1e   : > { %v298_v51 = vld [vmem:[%s25320_s24 + $0x8] sm:$0xff]  ;;  %v25419_v52 = vpack.c.bf16 %v378_v49, %v377_v48  ;;  %v299_v54 = vld [vmem:[%s25320_s24 + $0x18] sm:$0xff]  ;;  %v300_v55 = vld [vmem:[%s25320_s24 + $0x20] sm:$0xff] }
  0x1f   : > { %23512 = vmatmul.mubr.msk.bf16.gmra.mrb[4].mxu0 %vm404_vm0, %v25347_v16  ;;  %v329_v53 = vpack.c.bf16 %v298_v51, %v297_v50  ;;  %v301_v56 = vld [vmem:[%s25320_s24 + $0x30] sm:$0xff]  ;;  %v302_v57 = vld [vmem:[%s25320_s24 + $0x38] sm:$0xff]  ;;  %v330_v58 = vpack.c.bf16 %v300_v55, %v299_v54  ;;  %v303_v61 = vld [vmem:[%s25320_s24 + $0x48] sm:$0xff] }
  0x20   : > { %23515 = vmatprep.mubr.msk.bf16.mxu0 %vm404_vm0, %v25349_v17  ;;  %v331_v60 = vpack.c.bf16 %v302_v57, %v301_v56  ;;  %v304_v62 = vld [vmem:[%s25320_s24 + $0x50] sm:$0xff]  ;;  %v305_v63 = vld [vmem:[%s25320_s24 + $0x60] sm:$0xff]  ;;  %v306_v0 = vld [vmem:[%s25320_s24 + $0x68] sm:$0xff] }
  0x21   : > { %v332_v1 = vpack.c.bf16 %v304_v62, %v303_v61  ;;  %v333_v2 = vpack.c.bf16 %v306_v0, %v305_v63  ;;  %v307_v3 = vld [vmem:[%s25320_s24 + $0x78] sm:$0xff]  ;;  %v308_v4 = vld [vmem:[%s25320_s24 + $0x80] sm:$0xff]  ;;  %v309_v5 = vld [vmem:[%s25320_s24 + $0x90] sm:$0xff] }
  0x22   : > { %v310_v6 = vld [vmem:[%s25320_s24 + $0x98] sm:$0xff]  ;;  %v334_v7 = vpack.c.bf16 %v308_v4, %v307_v3  ;;  %v311_v12 = vld [vmem:[%s25320_s24 + $0xa8] sm:$0xff]  ;;  %v313_v13 = vld [vmem:[%s25320_s24 + $0xc0] sm:$0xff] }
  0x23   : > { %v335_v8 = vpack.c.bf16 %v310_v6, %v309_v5  ;;  %v314_v14 = vld [vmem:[%s25320_s24 + $0xc8] sm:$0xff]  ;;  %v315_v19 = vld [vmem:[%s25320_s24 + $0xd8] sm:$0xff]  ;;  %v316_v20 = vld [vmem:[%s25320_s24 + $0xe0] sm:$0xff] }
  0x24   : > { %v337_v18 = vpack.c.bf16 %v314_v14, %v313_v13  ;;  %v317_v21 = vld [vmem:[%s25320_s24 + $0xf0] sm:$0xff]  ;;  %v318_v24 = vld [vmem:[%s25320_s24 + $0xf8] sm:$0xff]  ;;  %v338_v25 = vpack.c.bf16 %v316_v20, %v315_v19  ;;  %v319_v27 = vld [vmem:[%s25320_s24 + $0x108] sm:$0xff] }
  0x25   : > { %v339_v26 = vpack.c.bf16 %v318_v24, %v317_v21  ;;  %v320_v30 = vld [vmem:[%s25320_s24 + $0x110] sm:$0xff]  ;;  %v321_v31 = vld [vmem:[%s25320_s24 + $0x120] sm:$0xff]  ;;  %v322_v32 = vld [vmem:[%s25320_s24 + $0x128] sm:$0xff] }
  0x26   : > { %v340_v33 = vpack.c.bf16 %v320_v30, %v319_v27  ;;  %v341_v36 = vpack.c.bf16 %v322_v32, %v321_v31  ;;  %v323_v37 = vld [vmem:[%s25320_s24 + $0x138] sm:$0xff]  ;;  %v324_v38 = vld [vmem:[%s25320_s24 + $0x140] sm:$0xff]  ;;  %v325_v39 = vld [vmem:[%s25320_s24 + $0x150] sm:$0xff] }
  0x27   : > { %23516 = vmatmul.mubr.msk.bf16.gmra.mrb[8].mxu0 %vm404_vm0, %v25359_v22  ;;  %v326_v42 = vld [vmem:[%s25320_s24 + $0x158] sm:$0xff]  ;;  %v342_v43 = vpack.c.bf16 %v324_v38, %v323_v37  ;;  %v327_v45 = vld [vmem:[%s25320_s24 + $0x168] sm:$0xff]  ;;  %v328_v48 = vld [vmem:[%s25320_s24 + $0x170] sm:$0xff] }
  0x28   : > { %23519 = vmatprep.mubr.msk.bf16.mxu0 %vm404_vm0, %v25361_v23  ;;  %v343_v44 = vpack.c.bf16 %v326_v42, %v325_v39  ;;  %v344_v49 = vpack.c.bf16 %v328_v48, %v327_v45  ;;  %v18569_v50 = vld [vmem:[%s25320_s24 + $0x180] sm:$0xff]  ;;  %v18570_v51 = vld [vmem:[%s25320_s24 + $0x188] sm:$0xff] }
  0x2f   : > { %23520 = vmatmul.mubr.msk.bf16.gmra.mrb[12].mxu0 %vm404_vm0, %v25371_v28 }
  0x30   : > { %23523 = vmatprep.mubr.msk.bf16.mxu0 %vm404_vm0, %v25373_v29 }
  0x37   : > { %23524 = vmatmul.mubr.msk.bf16.gmra.mrb[16].mxu0 %vm404_vm0, %v25383_v34 }
  0x38   : > { %23527 = vmatprep.mubr.msk.bf16.mxu0 %vm404_vm0, %v25385_v35 }
  0x3f   : > { %23528 = vmatmul.mubr.msk.bf16.gmra.mrb[20].mxu0 %vm404_vm0, %v25395_v40 }
  0x40   : > { %23531 = vmatprep.mubr.msk.bf16.mxu0 %vm404_vm0, %v25397_v41 }
  0x47   : > { %23532 = vmatmul.mubr.msk.bf16.gmra.mrb[24].mxu0 %vm404_vm0, %v25407_v46 }
  0x48   : > { %23535 = vmatprep.mubr.msk.bf16.mxu0 %vm404_vm0, %v25409_v47 }
  0x4f   : > { %23536 = vmatmul.mubr.msk.bf16.gmra.mrb[28].mxu0 %vm404_vm0, %v25419_v52 }
  0x50   : > { %23541 = vmatprep.mubr.msk.bf16.mxu0 %vm404_vm0, %v329_v53  ;;  %v877_v53 = vpack.c.bf16 %v18570_v51, %v18569_v50 }
  0x57   : > { %23542 = vmatmul.mubr.msk.bf16.vlgmr.msra.gmra.mrb[0].mxu0 %vm404_vm0, %v330_v58 }
  0x58   : > { %23545 = vmatprep.mubr.msk.bf16.mxu0 %vm404_vm0, %v331_v60  ;;  %23574 = vmatpush3.bf16.msra.mxu0 %v25335_v11  ;;  %v312_v11 = vld [vmem:[%s25320_s24 + $0xb0] sm:$0xff] }
  0x59   : > { %23607 = vmatprep.subr.bf16.mxu0 %v24212_v59  ;;  %v336_v15 = vpack.c.bf16 %v312_v11, %v311_v12 }
  0x5f   : > { %23546 = vmatmul.mubr.msk.bf16.gmra.mrb[4].mxu0 %vm404_vm0, %v332_v1 }
  0x60   : > { %23549 = vmatprep.mubr.msk.bf16.mxu0 %vm404_vm0, %v333_v2 }
  0x67   : > { %23550 = vmatmul.mubr.msk.bf16.gmra.mrb[8].mxu0 %vm404_vm0, %v334_v7 }
  0x68   : > { %23553 = vmatprep.mubr.msk.bf16.mxu0 %vm404_vm0, %v335_v8 }
  0x6f   : > { %23554 = vmatmul.mubr.msk.bf16.gmra.mrb[12].mxu0 %vm404_vm0, %v336_v15 }
  0x70   : > { %23557 = vmatprep.mubr.msk.bf16.mxu0 %vm404_vm0, %v337_v18 }
  0x77   : > { %23558 = vmatmul.mubr.msk.bf16.gmra.mrb[16].mxu0 %vm404_vm0, %v338_v25 }
  0x78   : > { %23561 = vmatprep.mubr.msk.bf16.mxu0 %vm404_vm0, %v339_v26 }
  0x7f   : > { %23562 = vmatmul.mubr.msk.bf16.gmra.mrb[20].mxu0 %vm404_vm0, %v340_v33 }
  0x80   : > { %23565 = vmatprep.mubr.msk.bf16.mxu0 %vm404_vm0, %v341_v36 }
  0x87   : > { %23566 = vmatmul.mubr.msk.bf16.gmra.mrb[24].mxu0 %vm404_vm0, %v342_v43 }
  0x88   : > { %23569 = vmatprep.mubr.msk.bf16.mxu0 %vm404_vm0, %v343_v44 }
  0x8f   : > { %23570 = vmatmul.mubr.msk.bf16.gmra.mrb[28].mxu0 %vm404_vm0, %v344_v49 }
  0x90   : > { %23575 = vmatprep.mubr.msk.bf16.mxu0 %vm404_vm0, %v330_v58 }
  0x97   : > { %23576 = vmatmul.mubr.msk.bf16.vlgmr.msra.gmra.mrb[0].mxu0 %vm404_vm0, %v331_v60 }
  0x98   : > { %23579 = vmatprep.mubr.msk.bf16.mxu0 %vm404_vm0, %v332_v1  ;;  %23608 = vmatpush3.bf16.msra.mxu0 %v24212_v59 }
  0x9f   : > { %23580 = vmatmul.mubr.msk.bf16.gmra.mrb[4].mxu0 %vm404_vm0, %v333_v2 }
  0xa0   : > { %23583 = vmatprep.mubr.msk.bf16.mxu0 %vm404_vm0, %v334_v7 }
  0xa7   : > { %23584 = vmatmul.mubr.msk.bf16.gmra.mrb[8].mxu0 %vm404_vm0, %v335_v8 }
  0xa8   : > { %23587 = vmatprep.mubr.msk.bf16.mxu0 %vm404_vm0, %v336_v15 }
  0xaf   : > { %23588 = vmatmul.mubr.msk.bf16.gmra.mrb[12].mxu0 %vm404_vm0, %v337_v18 }
  0xb0   : > { %23591 = vmatprep.mubr.msk.bf16.mxu0 %vm404_vm0, %v338_v25 }
  0xb7   : > { %23592 = vmatmul.mubr.msk.bf16.gmra.mrb[16].mxu0 %vm404_vm0, %v339_v26 }
  0xb8   : > { %23595 = vmatprep.mubr.msk.bf16.mxu0 %vm404_vm0, %v340_v33 }
  0xbf   : > { %23596 = vmatmul.mubr.msk.bf16.gmra.mrb[20].mxu0 %vm404_vm0, %v341_v36 }
  0xc0   : > { %23599 = vmatprep.mubr.msk.bf16.mxu0 %vm404_vm0, %v342_v43 }
  0xc7   : > { %23600 = vmatmul.mubr.msk.bf16.gmra.mrb[24].mxu0 %vm404_vm0, %v343_v44 }
  0xc8   : > { %23603 = vmatprep.mubr.msk.bf16.mxu0 %vm404_vm0, %v344_v49 }
  0xcf   : > { %23604 = vmatmul.mubr.msk.bf16.gmra.mrb[28].mxu0 %vm404_vm0, %v877_v53 }
  0xd0   : > { %23609 = vmatprep.mubr.msk.bf16.mxu0 %vm404_vm0, %v25328_v9  ;;  %v18620_v9 = vld [vmem:[%s25320_s24 + $0x181] sm:$0xff] }
  0xd7   : > { %23610 = vmatmul.mubr.msk.bf16.vlgmr.msra.gmra.mrb[0].mxu0 %vm404_vm0, %v25330_v10  ;;  %v18621_v10 = vld [vmem:[%s25320_s24 + $0x189] sm:$0xff] }
  0xd8   : > { %23613 = vmatprep.mubr.msk.bf16.mxu0 %vm404_vm0, %v25347_v16  ;;  %v1175_v16 = vpack.c.bf16 %v18621_v10, %v18620_v9 }
  0xdf   : > { %23614 = vmatmul.mubr.msk.bf16.gmra.mrb[4].mxu0 %vm404_vm0, %v25349_v17  ;;  %v25272_v17 = vmov 0.0|0.0  }
  0xe0   : > { %23617 = vmatprep.mubr.msk.bf16.mxu0 %vm404_vm0, %v25359_v22  ;;  %24005 = vmatprep.subr.bf16.mxu1 %v25272_v17  ;;  %v25274_v22 = vmov 0.0  }
  0xe1   : > { %23645 = vmatprep.mubr.msk.f32.mxu1 %vm25273_vm1, %v25274_v22  ;;  %197 = vst [vmem:[#allocation2] sm:$0xff] %v25274_v22  ;;  %198 = vst [vmem:[#allocation2 + $0x8] sm:$0xff] %v25274_v22 }
  0xe2   : > { %199 = vst [vmem:[#allocation2 + $0x10] sm:$0xff] %v25274_v22  ;;  %201 = vst [vmem:[#allocation2 + $0x20] sm:$0x1] %v25274_v22 }
  0xe3   : > { %202 = vst [vmem:[#allocation2 + $0x28] sm:$0x1] %v25274_v22  ;;  %203 = vst [vmem:[#allocation2 + $0x30] sm:$0x1] %v25274_v22 }
  0xe4   : > { %204 = vst [vmem:[#allocation2 + $0x38] sm:$0x1] %v25274_v22  ;;  %205 = vst [vmem:[#allocation2 + $0x40] sm:$0xff] %v25274_v22 }
  0xe5   : > { %207 = vst [vmem:[#allocation2 + $0x50] sm:$0xff] %v25274_v22  ;;  %209 = vst [vmem:[#allocation2 + $0x60] sm:$0x1] %v25274_v22 }
  0xe6   : > { %210 = vst [vmem:[#allocation2 + $0x68] sm:$0x1] %v25274_v22  ;;  %211 = vst [vmem:[#allocation2 + $0x70] sm:$0x1] %v25274_v22 }
  0xe7   : > { %23618 = vmatmul.mubr.msk.bf16.gmra.mrb[8].mxu0 %vm404_vm0, %v25361_v23  ;;  %212 = vst [vmem:[#allocation2 + $0x78] sm:$0x1] %v25274_v22  ;;  %213 = vst [vmem:[#allocation2 + $0x80] sm:$0xff] %v25274_v22  ;;  %v25614_v23 = vld [vmem:[%s29807_s3] ss:$0 sm:$0xff] }
  0xe8   : > { %23621 = vmatprep.mubr.msk.bf16.mxu0 %vm404_vm0, %v25371_v28  ;;  %215 = vst [vmem:[#allocation2 + $0x90] sm:$0xff] %v25274_v22  ;;  %217 = vst [vmem:[#allocation2 + $0xa0] sm:$0x1] %v25274_v22  ;;  %v1559_v28 = vlaneseq  ;;  %v25646_v44 = vld [vmem:[#allocation2] sm:$0xff] }
  0xe9   : > { %218 = vst [vmem:[#allocation2 + $0xa8] sm:$0x1] %v25274_v22  ;;  %219 = vst [vmem:[#allocation2 + $0xb0] sm:$0x1] %v25274_v22 }
  0xea   : > { %220 = vst [vmem:[#allocation2 + $0xb8] sm:$0x1] %v25274_v22  ;;  %221 = vst [vmem:[#allocation2 + $0xc0] sm:$0xff] %v25274_v22  ;;  %v1562_v55 = vand.u32 127, %v1559_v28 }
  0xeb   : > { %223 = vst [vmem:[#allocation2 + $0xd0] sm:$0xff] %v25274_v22  ;;  %225 = vst [vmem:[#allocation2 + $0xe0] sm:$0x1] %v25274_v22 }
  0xec   : > { %226 = vst [vmem:[#allocation2 + $0xe8] sm:$0x1] %v25274_v22  ;;  %227 = vst [vmem:[#allocation2 + $0xf0] sm:$0x1] %v25274_v22 }
  0xed   : > { %228 = vst [vmem:[#allocation2 + $0xf8] sm:$0x1] %v25274_v22  ;;  %229 = vst [vmem:[#allocation2 + $0x100] sm:$0xff] %v25274_v22 }
  0xee   : > { %231 = vst [vmem:[#allocation2 + $0x110] sm:$0xff] %v25274_v22  ;;  %233 = vst [vmem:[#allocation2 + $0x120] sm:$0x1] %v25274_v22 }
  0xef   : > { %23622 = vmatmul.mubr.msk.bf16.gmra.mrb[12].mxu0 %vm404_vm0, %v25373_v29  ;;  %234 = vst [vmem:[#allocation2 + $0x128] sm:$0x1] %v25274_v22  ;;  %235 = vst [vmem:[#allocation2 + $0x130] sm:$0x1] %v25274_v22 }
  0xf0   : > { %23625 = vmatprep.mubr.msk.bf16.mxu0 %vm404_vm0, %v25383_v34  ;;  %236 = vst [vmem:[#allocation2 + $0x138] sm:$0x1] %v25274_v22  ;;  %237 = vst [vmem:[#allocation2 + $0x140] sm:$0xff] %v25274_v22  ;;  %v25616_v34 = vshrl.u32 %v1559_v28, 7 }
  0xf1   : > { %239 = vst [vmem:[#allocation2 + $0x150] sm:$0xff] %v25274_v22  ;;  %241 = vst [vmem:[#allocation2 + $0x160] sm:$0x1] %v25274_v22 }
  0xf2   : > { %242 = vst [vmem:[#allocation2 + $0x168] sm:$0x1] %v25274_v22  ;;  %243 = vst [vmem:[#allocation2 + $0x170] sm:$0x1] %v25274_v22  ;;  %v1563_v58 = vmul.u32 2, %v25616_v34 }
  0xf3   : > { %244 = vst [vmem:[#allocation2 + $0x178] sm:$0x1] %v25274_v22  ;;  %245 = vst [vmem:[#allocation2 + $0x180] sm:$0xff] %v25274_v22 }
  0xf4   : > { %247 = vst [vmem:[#allocation2 + $0x190] sm:$0xff] %v25274_v22  ;;  %249 = vst [vmem:[#allocation2 + $0x1a0] sm:$0x1] %v25274_v22  ;;  %v1567_v61 = vadd.s32 1, %v1563_v58  ;;  %vm1564_vm6 = vcmp.eq.s32.totalorder %v1562_v55, %v1563_v58 }
  0xf5   : > { %250 = vst [vmem:[#allocation2 + $0x1a8] sm:$0x1] %v25274_v22  ;;  %251 = vst [vmem:[#allocation2 + $0x1b0] sm:$0x1] %v25274_v22  ;;  %v25627_v14 = vsel %vm1564_vm6, 1.0, %v25274_v22 }
  0xf6   : > { %252 = vst [vmem:[#allocation2 + $0x1b8] sm:$0x1] %v25274_v22  ;;  %253 = vst [vmem:[#allocation2 + $0x1c0] sm:$0xff] %v25274_v22  ;;  %vm1568_vm7 = vcmp.eq.s32.totalorder %v1562_v55, %v1567_v61 }
  0xf7   : > { %23626 = vmatmul.mubr.msk.bf16.gmra.mrb[16].mxu0 %vm404_vm0, %v25385_v35  ;;  %255 = vst [vmem:[#allocation2 + $0x1d0] sm:$0xff] %v25274_v22  ;;  %257 = vst [vmem:[#allocation2 + $0x1e0] sm:$0x1] %v25274_v22  ;;  %v25634_v21 = vsel %vm1568_vm7, 1.0, %v25274_v22 }
  0xf8   : > { %23629 = vmatprep.mubr.msk.bf16.mxu0 %vm404_vm0, %v25395_v40  ;;  %258 = vst [vmem:[#allocation2 + $0x1e8] sm:$0x1] %v25274_v22  ;;  %259 = vst [vmem:[#allocation2 + $0x1f0] sm:$0x1] %v25274_v22 }
  0xf9   : > { %260 = vst [vmem:[#allocation2 + $0x1f8] sm:$0x1] %v25274_v22  ;;  %261 = vst [vmem:[#allocation2 + $0x200] sm:$0xff] %v25274_v22 }
  0xfa   : > { %263 = vst [vmem:[#allocation2 + $0x210] sm:$0xff] %v25274_v22  ;;  %264 = vst [vmem:[#allocation2 + $0x218] sm:$0xff] %v25274_v22 }
  0xfb   : > { %265 = vst [vmem:[#allocation2 + $0x220] sm:$0x1] %v25274_v22  ;;  %266 = vst [vmem:[#allocation2 + $0x228] sm:$0x1] %v25274_v22 }
  0xfc   : > { %267 = vst [vmem:[#allocation2 + $0x230] sm:$0x1] %v25274_v22  ;;  %268 = vst [vmem:[#allocation2 + $0x238] sm:$0x1] %v25274_v22 }
  0xfd   : > { %269 = vst [vmem:[#allocation3] sm:$0x1f] %v25274_v22  ;;  %270 = vst [vmem:[#allocation3 + $0x8] sm:$0x1f] %v25274_v22 }
  0xfe   : > { %271 = vst [vmem:[#allocation3 + $0x10] sm:$0x1f] %v25274_v22  ;;  %272 = vst [vmem:[#allocation3 + $0x18] sm:$0x1f] %v25274_v22 }
  0xff   : > { %23630 = vmatmul.mubr.msk.bf16.gmra.mrb[20].mxu0 %vm404_vm0, %v25397_v41  ;;  %273 = vst [vmem:[#allocation3 + $0x20] sm:$0x1f] %v25274_v22  ;;  %274 = vst [vmem:[#allocation3 + $0x28] sm:$0x1f] %v25274_v22 }
 0x100   : > { %23633 = vmatprep.mubr.msk.bf16.mxu0 %vm404_vm0, %v25407_v46  ;;  %275 = vst [vmem:[#allocation3 + $0x30] sm:$0x1f] %v25274_v22  ;;  %276 = vst [vmem:[#allocation3 + $0x38] sm:$0x1f] %v25274_v22 }
 0x101   : > { %277 = vst [vmem:[#allocation3 + $0x40] sm:$0x1f] %v25274_v22  ;;  %278 = vst [vmem:[#allocation3 + $0x48] sm:$0x1f] %v25274_v22 }
 0x102   : > { %279 = vst [vmem:[#allocation3 + $0x50] sm:$0x1f] %v25274_v22  ;;  %280 = vst [vmem:[#allocation3 + $0x58] sm:$0x1f] %v25274_v22 }
 0x103   : > { %281 = vst [vmem:[#allocation3 + $0x60] sm:$0x1f] %v25274_v22  ;;  %282 = vst [vmem:[#allocation3 + $0x68] sm:$0x1f] %v25274_v22 }
 0x104   : > { %283 = vst [vmem:[#allocation3 + $0x70] sm:$0x1f] %v25274_v22  ;;  %284 = vst [vmem:[#allocation3 + $0x78] sm:$0x1f] %v25274_v22 }
 0x105   : > { %285 = vst [vmem:[#allocation3 + $0x80] sm:$0x1f] %v25274_v22  ;;  %286 = vst [vmem:[#allocation3 + $0x88] sm:$0x1f] %v25274_v22 }
 0x106   : > { %287 = vst [vmem:[#allocation3 + $0x90] sm:$0x1f] %v25274_v22  ;;  %288 = vst [vmem:[#allocation3 + $0x98] sm:$0x1f] %v25274_v22 }
 0x107   : > { %23634 = vmatmul.mubr.msk.bf16.gmra.mrb[24].mxu0 %vm404_vm0, %v25409_v47  ;;  %289 = vst [vmem:[#allocation4] sm:$0x77] %v25274_v22  ;;  %290 = vst [vmem:[#allocation4 + $0x8] sm:$0x77] %v25274_v22 }
 0x108   : > { %23637 = vmatprep.mubr.msk.bf16.mxu0 %vm404_vm0, %v25419_v52  ;;  %291 = vst [vmem:[#allocation4 + $0x10] sm:$0x77] %v25274_v22  ;;  %292 = vst [vmem:[#allocation4 + $0x18] sm:$0x77] %v25274_v22 }
 0x109   : > { %293 = vst [vmem:[#allocation4 + $0x20] sm:$0x77] %v25274_v22  ;;  %294 = vst [vmem:[#allocation4 + $0x28] sm:$0x77] %v25274_v22 }
 0x10a   : > { %295 = vst [vmem:[#allocation5] sm:$0xff] %v25274_v22  ;;  %296 = vst [vmem:[#allocation5 + $0x8] sm:$0xff] %v25274_v22 }
 0x10b   : > { %29821 = vst [vmem:[#allocation6_spill] sm:$0xff] %v25616_v34  ;;  %29822 = vst [vmem:[#allocation7_spill] sm:$0xff] %v25627_v14 }
 0x10c   : > { %29823 = vst [vmem:[#allocation8_spill] sm:$0xff] %v25634_v21 }
 0x10f   : > { %23638 = vmatmul.mubr.msk.bf16.gmra.mrb[28].mxu0 %vm404_vm0, %v1175_v16 }
 0x1aa   : > { %v23611_v29 = vpop.f32.mrb[0].mxu0 }
 0x1ab   : > { %v1433_v35 = vadd.f32 %v23611_v29, %v25614_v23  ;;  %v1267_v40 = vpop.f32.mrb[1].mxu0 }
 0x1ac   : > { %v1431_v41 = vadd.f32 %v25614_v23, %v1267_v40  ;;  %v23612_v46 = vpop.f32.mrb[2].mxu0 }
 0x1ad   : > { %v1497_v47 = vmul.f32 0.2, %v1433_v35  ;;  %v1434_v52 = vadd.f32 %v23612_v46, %v25614_v23  ;;  %v1270_v54 = vpop.f32.mrb[3].mxu0  ;;  %vm1465_vm2 = vcmp.gt.f32.partialorder %v1433_v35, 0.0 }
 0x1ae   : > { %v1495_v56 = vmul.f32 0.2, %v1431_v41  ;;  %v1432_v57 = vadd.f32 %v25614_v23, %v1270_v54  ;;  %vm1463_vm4 = vcmp.gt.f32.partialorder %v1431_v41, 0.0 }
 0x1af   : > { %vm1466_vm3 = vcmp.gt.f32.partialorder %v1434_v52, 0.0  ;;  %v1498_v59 = vmul.f32 0.2, %v1434_v52  ;;  %v1529_v62 = vsel %vm1465_vm2, %v1433_v35, %v1497_v47 }
 0x1b0   : > { %v1496_v60 = vmul.f32 0.2, %v1432_v57  ;;  %vm1464_vm5 = vcmp.gt.f32.partialorder %v1432_v57, 0.0  ;;  %v1527_v2 = vsel %vm1463_vm4, %v1431_v41, %v1495_v56 }
 0x1b1   : > { %v1530_v63 = vsel %vm1466_vm3, %v1434_v52, %v1498_v59 }
 0x1b2   : > { %v24012_v0 = vpack.c.bf16 %v1530_v63, %v1529_v62  ;;  %v23615_v1 = vpop.f32.mrb[4].mxu0  ;;  %v1528_v3 = vsel %vm1464_vm5, %v1432_v57, %v1496_v60 }
 0x1b3   : > { %v1437_v4 = vadd.f32 %v23615_v1, %v25614_v23  ;;  %v1283_v5 = vpop.f32.mrb[5].mxu0  ;;  %v24006_v6 = vpack.c.bf16 %v1528_v3, %v1527_v2 }
 0x1b4   : > { %v1435_v7 = vadd.f32 %v25614_v23, %v1283_v5  ;;  %v23616_v8 = vpop.f32.mrb[6].mxu0 }
 0x1b5   : > { %v1501_v12 = vmul.f32 0.2, %v1437_v4  ;;  %v1438_v11 = vadd.f32 %v23616_v8, %v25614_v23  ;;  %v1286_v13 = vpop.f32.mrb[7].mxu0  ;;  %24007 = vmatpush3.bf16.msra.mxu1 %v24006_v6  ;;  %vm1469_vm8 = vcmp.gt.f32.partialorder %v1437_v4, 0.0 }
 0x1b6   : > { %v1499_v15 = vmul.f32 0.2, %v1435_v7  ;;  %v1436_v18 = vadd.f32 %v25614_v23, %v1286_v13  ;;  %24008 = vmatprep.subr.bf16.mxu1 %v25272_v17  ;;  %vm1467_vm9 = vcmp.gt.f32.partialorder %v1435_v7, 0.0 }
 0x1b7   : > { %vm1470_vm10 = vcmp.gt.f32.partialorder %v1438_v11, 0.0  ;;  %v1502_v19 = vmul.f32 0.2, %v1438_v11  ;;  %v1533_v24 = vsel %vm1469_vm8, %v1437_v4, %v1501_v12 }
 0x1b8   : > { %vm1468_vm11 = vcmp.gt.f32.partialorder %v1436_v18, 0.0  ;;  %v1500_v20 = vmul.f32 0.2, %v1436_v18  ;;  %23646 = vmatmul.mubr.msk.f32.vlgmr.msra.gmra.mrb[0].mxu1 %vm404_vm0, %v25627_v14  ;;  %v1531_v26 = vsel %vm1467_vm9, %v1435_v7, %v1499_v15 }
 0x1b9   : > { %v1534_v25 = vsel %vm1470_vm10, %v1438_v11, %v1502_v19  ;;  %24010 = vmatpush3.bf16.msra.mxu1 %v24006_v6  ;;  %23652 = vmatprep.mubr.msk.f32.mxu1 %vm25273_vm1, %v25274_v22 }
 0x1ba   : > { %v25638_v27 = vpack.c.bf16 %v1534_v25, %v1533_v24  ;;  %v1532_v30 = vsel %vm1468_vm11, %v1436_v18, %v1500_v20  ;;  %v23619_v31 = vpop.f32.mrb[8].mxu0  ;;  %24011 = vmatprep.subr.bf16.mxu1 %v25272_v17 }
 0x1bb   : > { %v24018_v32 = vpack.c.bf16 %v1532_v30, %v1531_v26  ;;  %v1441_v33 = vadd.f32 %v23619_v31, %v25614_v23  ;;  %v1299_v36 = vpop.f32.mrb[9].mxu0 }
 0x1bc   : > { %v1439_v37 = vadd.f32 %v25614_v23, %v1299_v36  ;;  %v23620_v38 = vpop.f32.mrb[10].mxu0  ;;  %23653 = vmatmul.mubr.msk.f32.vlgmr.msra.gmra.mrb[2].mxu1 %vm404_vm0, %v25634_v21 }
 0x1bd   : > { %v1505_v39 = vmul.f32 0.2, %v1441_v33  ;;  %v1442_v42 = vadd.f32 %v23620_v38, %v25614_v23  ;;  %v1302_v43 = vpop.f32.mrb[11].mxu0  ;;  %24013 = vmatpush3.bf16.msra.mxu1 %v24012_v0  ;;  %23659 = vmatprep.mubr.msk.f32.mxu1 %vm25273_vm1, %v25646_v44  ;;  %vm1473_vm12 = vcmp.gt.f32.partialorder %v1441_v33, 0.0 }
 0x1be   : > { %v1503_v45 = vmul.f32 0.2, %v1439_v37  ;;  %v1440_v48 = vadd.f32 %v25614_v23, %v1302_v43  ;;  %24014 = vmatprep.subr.bf16.mxu1 %v25272_v17  ;;  %vm1471_vm13 = vcmp.gt.f32.partialorder %v1439_v37, 0.0 }
 0x1bf   : > { %vm1474_vm14 = vcmp.gt.f32.partialorder %v1442_v42, 0.0  ;;  %v1506_v49 = vmul.f32 0.2, %v1442_v42  ;;  %v1537_v51 = vsel %vm1473_vm12, %v1441_v33, %v1505_v39 }
 0x1c0   : > { %vm1472_vm15 = vcmp.gt.f32.partialorder %v1440_v48, 0.0  ;;  %v1504_v50 = vmul.f32 0.2, %v1440_v48  ;;  %23660 = vmatmul.mubr.msk.f32.vlgmr.msra.gmra.mrb[4].mxu1 %vm404_vm0, %v25627_v14  ;;  %v1535_v9 = vsel %vm1471_vm13, %v1439_v37, %v1503_v45 }
 0x1c1   : > { %v1538_v53 = vsel %vm1474_vm14, %v1442_v42, %v1506_v49  ;;  %24016 = vmatpush3.bf16.msra.mxu1 %v24012_v0  ;;  %23666 = vmatprep.mubr.msk.f32.mxu1 %vm25273_vm1, %v25646_v44 }
 0x1c2   : > { %v25656_v10 = vpack.c.bf16 %v1538_v53, %v1537_v51  ;;  %v1536_v16 = vsel %vm1472_vm15, %v1440_v48, %v1504_v50  ;;  %v23623_v22 = vpop.f32.mrb[12].mxu0  ;;  %24017 = vmatprep.subr.bf16.mxu1 %v25272_v17 }
 0x1c3   : > { %v25659_v28 = vpack.c.bf16 %v1536_v16, %v1535_v9  ;;  %v1445_v29 = vadd.f32 %v23623_v22, %v25614_v23  ;;  %v1315_v35 = vpop.f32.mrb[13].mxu0 }
 0x1c4   : > { %v1443_v40 = vadd.f32 %v25614_v23, %v1315_v35  ;;  %v23624_v41 = vpop.f32.mrb[14].mxu0  ;;  %23667 = vmatmul.mubr.msk.f32.vlgmr.msra.gmra.mrb[6].mxu1 %vm404_vm0, %v25634_v21 }
 0x1c5   : > { %v1509_v46 = vmul.f32 0.2, %v1445_v29  ;;  %v1446_v47 = vadd.f32 %v23624_v41, %v25614_v23  ;;  %v1318_v52 = vpop.f32.mrb[15].mxu0  ;;  %24019 = vmatpush3.bf16.msra.mxu1 %v24018_v32  ;;  %23673 = vmatprep.mubr.msk.f32.mxu1 %vm25273_vm1, %v25646_v44  ;;  %vm1477_vm2 = vcmp.gt.f32.partialorder %v1445_v29, 0.0 }
 0x1c6   : > { %v1507_v54 = vmul.f32 0.2, %v1443_v40  ;;  %v1444_v55 = vadd.f32 %v25614_v23, %v1318_v52  ;;  %24020 = vmatprep.subr.bf16.mxu1 %v25272_v17  ;;  %vm1475_vm3 = vcmp.gt.f32.partialorder %v1443_v40, 0.0 }
 0x1c7   : > { %vm1478_vm4 = vcmp.gt.f32.partialorder %v1446_v47, 0.0  ;;  %v1510_v56 = vmul.f32 0.2, %v1446_v47  ;;  %v1541_v58 = vsel %vm1477_vm2, %v1445_v29, %v1509_v46 }
 0x1c8   : > { %vm1476_vm5 = vcmp.gt.f32.partialorder %v1444_v55, 0.0  ;;  %v1508_v57 = vmul.f32 0.2, %v1444_v55  ;;  %23674 = vmatmul.mubr.msk.f32.vlgmr.msra.gmra.mrb[8].mxu1 %vm404_vm0, %v25627_v14  ;;  %v1539_v60 = vsel %vm1475_vm3, %v1443_v40, %v1507_v54 }
 0x1c9   : > { %v1542_v59 = vsel %vm1478_vm4, %v1446_v47, %v1510_v56  ;;  %24022 = vmatpush3.bf16.msra.mxu1 %v24018_v32  ;;  %23680 = vmatprep.mubr.msk.f32.mxu1 %vm25273_vm1, %v25646_v44 }
 0x1ca   : > { %v25674_v61 = vpack.c.bf16 %v1542_v59, %v1541_v58  ;;  %v1540_v62 = vsel %vm1476_vm5, %v1444_v55, %v1508_v57  ;;  %v23627_v63 = vpop.f32.mrb[16].mxu0  ;;  %24023 = vmatprep.subr.bf16.mxu1 %v25272_v17 }
 0x1cb   : > { %v25677_v0 = vpack.c.bf16 %v1540_v62, %v1539_v60  ;;  %v1449_v1 = vadd.f32 %v23627_v63, %v25614_v23  ;;  %v1331_v2 = vpop.f32.mrb[17].mxu0 }
 0x1cc   : > { %v1447_v3 = vadd.f32 %v25614_v23, %v1331_v2  ;;  %v23628_v4 = vpop.f32.mrb[18].mxu0  ;;  %23681 = vmatmul.mubr.msk.f32.vlgmr.msra.gmra.mrb[10].mxu1 %vm404_vm0, %v25634_v21 }
 0x1cd   : > { %v1513_v5 = vmul.f32 0.2, %v1449_v1  ;;  %v1450_v6 = vadd.f32 %v23628_v4, %v25614_v23  ;;  %v1334_v7 = vpop.f32.mrb[19].mxu0  ;;  %24025 = vmatpush3.bf16.msra.mxu1 %v25638_v27  ;;  %23687 = vmatprep.mubr.msk.f32.mxu1 %vm25273_vm1, %v25646_v44  ;;  %vm1481_vm6 = vcmp.gt.f32.partialorder %v1449_v1, 0.0 }
 0x1ce   : > { %v1511_v8 = vmul.f32 0.2, %v1447_v3  ;;  %v1448_v12 = vadd.f32 %v25614_v23, %v1334_v7  ;;  %24026 = vmatprep.subr.bf16.mxu1 %v25272_v17  ;;  %vm1479_vm7 = vcmp.gt.f32.partialorder %v1447_v3, 0.0 }
 0x1cf   : > { %vm1482_vm8 = vcmp.gt.f32.partialorder %v1450_v6, 0.0  ;;  %v1514_v11 = vmul.f32 0.2, %v1450_v6  ;;  %v1545_v15 = vsel %vm1481_vm6, %v1449_v1, %v1513_v5 }
 0x1d0   : > { %vm1480_vm9 = vcmp.gt.f32.partialorder %v1448_v12, 0.0  ;;  %v1512_v13 = vmul.f32 0.2, %v1448_v12  ;;  %23688 = vmatmul.mubr.msk.f32.vlgmr.msra.gmra.mrb[12].mxu1 %vm404_vm0, %v25627_v14  ;;  %v1543_v19 = vsel %vm1479_vm7, %v1447_v3, %v1511_v8 }
 0x1d1   : > { %v1546_v18 = vsel %vm1482_vm8, %v1450_v6, %v1514_v11  ;;  %24028 = vmatpush3.bf16.msra.mxu1 %v25638_v27  ;;  %23694 = vmatprep.mubr.msk.f32.mxu1 %vm25273_vm1, %v25646_v44 }
 0x1d2   : > { %v25694_v20 = vpack.c.bf16 %v1546_v18, %v1545_v15  ;;  %v1544_v24 = vsel %vm1480_vm9, %v1448_v12, %v1512_v13  ;;  %v23631_v25 = vpop.f32.mrb[20].mxu0  ;;  %24029 = vmatprep.subr.bf16.mxu1 %v25272_v17  ;;  %vm6162_vm9 = vcmask 64512  }
 0x1d3   : > { %v25697_v26 = vpack.c.bf16 %v1544_v24, %v1543_v19  ;;  %v1453_v30 = vadd.f32 %v23631_v25, %v25614_v23  ;;  %v1347_v31 = vpop.f32.mrb[21].mxu0  ;;  %v24226_v24 = vld [vmem:[%s29806_s2 + $0x208] sm:$0xff]   ;;  %v24229_v25 = vld [vmem:[%s29806_s2 + $0x250] sm:$0xff]  }
 0x1d4   : > { %v1451_v32 = vadd.f32 %v25614_v23, %v1347_v31  ;;  %v23632_v33 = vpop.f32.mrb[22].mxu0  ;;  %23695 = vmatmul.mubr.msk.f32.vlgmr.msra.gmra.mrb[14].mxu1 %vm404_vm0, %v25634_v21  ;;  %v24234_v31 = vld [vmem:[%s29806_s2 + $0x218] sm:$0xff]  }
 0x1d5   : > { %v1517_v27 = vmul.f32 0.2, %v1453_v30  ;;  %v1454_v36 = vadd.f32 %v23632_v33, %v25614_v23  ;;  %v1350_v37 = vpop.f32.mrb[23].mxu0  ;;  %24031 = vmatpush3.bf16.msra.mxu1 %v25659_v28  ;;  %23701 = vmatprep.mubr.msk.f32.mxu1 %vm25273_vm1, %v25646_v44  ;;  %vm1485_vm10 = vcmp.gt.f32.partialorder %v1453_v30, 0.0  ;;  %v24238_v33 = vld [vmem:[%s29806_s2 + $0x220] sm:$0xff]  }
 0x1d6   : > { %v1515_v38 = vmul.f32 0.2, %v1451_v32  ;;  %v1452_v39 = vadd.f32 %v25614_v23, %v1350_v37  ;;  %24032 = vmatprep.subr.bf16.mxu1 %v25272_v17  ;;  %vm1483_vm11 = vcmp.gt.f32.partialorder %v1451_v32, 0.0  ;;  %v24241_v37 = vld [vmem:[%s29806_s2 + $0x270] sm:$0xff]  }
 0x1d7   : > { %vm1486_vm12 = vcmp.gt.f32.partialorder %v1454_v36, 0.0  ;;  %v1518_v42 = vmul.f32 0.2, %v1454_v36  ;;  %v1549_v45 = vsel %vm1485_vm10, %v1453_v30, %v1517_v27  ;;  %v24233_v30 = vld [vmem:[%s29806_s2 + $0x258] sm:$0xff]   ;;  %v24239_v27 = vld [vmem:[%s29806_s2 + $0x268] sm:$0xff]  }
 0x1d8   : > { %vm1484_vm13 = vcmp.gt.f32.partialorder %v1452_v39, 0.0  ;;  %v1516_v43 = vmul.f32 0.2, %v1452_v39  ;;  %23702 = vmatmul.mubr.msk.f32.vlgmr.msra.gmra.mrb[16].mxu1 %vm404_vm0, %v25627_v14  ;;  %v1547_v49 = vsel %vm1483_vm11, %v1451_v32, %v1515_v38  ;;  %v24237_v32 = vld [vmem:[%s29806_s2 + $0x260] sm:$0xff]   ;;  %v24242_v38 = vld [vmem:[%s29806_s2 + $0x230] sm:$0xff]  }
 0x1d9   : > { %v1550_v48 = vsel %vm1486_vm12, %v1454_v36, %v1518_v42  ;;  %24034 = vmatpush3.bf16.msra.mxu1 %v25659_v28  ;;  %23708 = vmatprep.mubr.msk.f32.mxu1 %vm25273_vm1, %v25646_v44  ;;  %v24240_v36 = vld [vmem:[%s29806_s2 + $0x228] sm:$0xff]   ;;  %v24243_v42 = vld [vmem:[%s29806_s2 + $0x278] sm:$0xff]  }
 0x1da   : > { %v25714_v50 = vpack.c.bf16 %v1550_v48, %v1549_v45  ;;  %v1548_v51 = vsel %vm1484_vm13, %v1452_v39, %v1516_v43  ;;  %v23635_v53 = vpop.f32.mrb[24].mxu0  ;;  %24035 = vmatprep.subr.bf16.mxu1 %v25272_v17  ;;  %v24213_v39 = vld [vmem:[%s29806_s2 + $0x140] sm:$0xff]   ;;  %v24244_v45 = vld [vmem:[%s29806_s2 + $0x238] sm:$0xff]   ;;  %v24216_v48 = vld [vmem:[%s29806_s2 + $0x108] sm:$0xff]  }
 0x1db   : > { %v25717_v9 = vpack.c.bf16 %v1548_v51, %v1547_v49  ;;  %v1457_v16 = vadd.f32 %v23635_v53, %v25614_v23  ;;  %v1363_v22 = vpop.f32.mrb[25].mxu0  ;;  %v24214_v43 = vld [vmem:[%s29806_s2 + $0x100] sm:$0xff]   ;;  %v24217_v49 = vld [vmem:[%s29806_s2 + $0x150] sm:$0xff]   ;;  %v24219_v51 = vld [vmem:[%s29806_s2 + $0x158] sm:$0xff]  }
 0x1dc   : > { %v1455_v29 = vadd.f32 %v25614_v23, %v1363_v22  ;;  %v23636_v35 = vpop.f32.mrb[26].mxu0  ;;  %23709 = vmatmul.mubr.msk.f32.vlgmr.msra.gmra.mrb[18].mxu1 %vm404_vm0, %v25634_v21  ;;  %v24220_v53 = vld [vmem:[%s29806_s2 + $0x118] sm:$0xff]   ;;  %v24227_v22 = vld [vmem:[%s29806_s2 + $0x168] sm:$0xff]  }
 0x1dd   : > { %v1521_v28 = vmul.f32 0.2, %v1457_v16  ;;  %v1458_v40 = vadd.f32 %v23636_v35, %v25614_v23  ;;  %v1366_v41 = vpop.f32.mrb[27].mxu0  ;;  %24037 = vmatpush3.bf16.msra.mxu1 %v25656_v10  ;;  %23715 = vmatprep.mubr.msk.f32.mxu1 %vm25273_vm1, %v25646_v44  ;;  %vm1489_vm14 = vcmp.gt.f32.partialorder %v1457_v16, 0.0  ;;  %v24231_v35 = vld [vmem:[%s29806_s2 + $0x170] sm:$0xff]  }
 0x1de   : > { %v1519_v46 = vmul.f32 0.2, %v1455_v29  ;;  %v1456_v47 = vadd.f32 %v25614_v23, %v1366_v41  ;;  %24038 = vmatprep.subr.bf16.mxu1 %v25272_v17  ;;  %vm1487_vm15 = vcmp.gt.f32.partialorder %v1455_v29, 0.0  ;;  %v24236_v41 = vld [vmem:[%s29806_s2 + $0x138] sm:$0xff]  }
 0x1df   : > { %vm1490_vm2 = vcmp.gt.f32.partialorder %v1458_v40, 0.0  ;;  %v1522_v52 = vmul.f32 0.2, %v1458_v40  ;;  %v1553_v55 = vsel %vm1489_vm14, %v1457_v16, %v1521_v28  ;;  %v24224_v16 = vld [vmem:[%s29806_s2 + $0x120] sm:$0xff]   ;;  %v24232_v28 = vld [vmem:[%s29806_s2 + $0x130] sm:$0xff]  }
 0x1e0   : > { %vm1488_vm3 = vcmp.gt.f32.partialorder %v1456_v47, 0.0  ;;  %v1520_v54 = vmul.f32 0.2, %v1456_v47  ;;  %23716 = vmatmul.mubr.msk.f32.vlgmr.msra.gmra.mrb[20].mxu1 %vm404_vm0, %v25627_v14  ;;  %v1551_v57 = vsel %vm1487_vm15, %v1455_v29, %v1519_v46  ;;  %v24228_v29 = vld [vmem:[%s29806_s2 + $0x128] sm:$0xff]   ;;  %v24245_v46 = vld [vmem:[%s29806_s2 + $0x1c0] sm:$0xff]  }
 0x1e1   : > { %v1554_v56 = vsel %vm1490_vm2, %v1458_v40, %v1522_v52  ;;  %24040 = vmatpush3.bf16.msra.mxu1 %v25656_v10  ;;  %23722 = vmatprep.mubr.msk.f32.mxu1 %vm25273_vm1, %v25646_v44  ;;  %v24235_v40 = vld [vmem:[%s29806_s2 + $0x178] sm:$0xff]  }
 0x1e2   : > { %v25734_v58 = vpack.c.bf16 %v1554_v56, %v1553_v55  ;;  %v1552_v59 = vsel %vm1488_vm3, %v1456_v47, %v1520_v54  ;;  %v23639_v60 = vpop.f32.mrb[28].mxu0  ;;  %24041 = vmatprep.subr.bf16.mxu1 %v25272_v17  ;;  %v24253_v47 = vld [vmem:[%s29806_s2 + $0x340] sm:$0xff]  }
 0x1e3   : > { %v25737_v62 = vpack.c.bf16 %v1552_v59, %v1551_v57  ;;  %v1461_v63 = vadd.f32 %v23639_v60, %v25614_v23  ;;  %v1379_v1 = vpop.f32.mrb[29].mxu0  ;;  %v4034_v59 = vld [vmem:[#allocation2 + $0x8] sm:$0xfe] }
 0x1e4   : > { %v1459_v2 = vadd.f32 %v25614_v23, %v1379_v1  ;;  %v23640_v3 = vpop.f32.mrb[30].mxu0  ;;  %23723 = vmatmul.mubr.msk.f32.vlgmr.msra.gmra.mrb[22].mxu1 %vm404_vm0, %v25634_v21 }
 0x1e5   : > { %v1525_v10 = vmul.f32 0.2, %v1461_v63  ;;  %v1462_v4 = vadd.f32 %v23640_v3, %v25614_v23  ;;  %v1382_v5 = vpop.f32.mrb[31].mxu0  ;;  %24043 = vmatpush3.bf16.msra.mxu1 %v25677_v0  ;;  %23729 = vmatprep.mubr.msk.f32.mxu1 %vm25273_vm1, %v25646_v44  ;;  %vm1493_vm4 = vcmp.gt.f32.partialorder %v1461_v63, 0.0 }
 0x1e6   : > { %v1523_v6 = vmul.f32 0.2, %v1459_v2  ;;  %v1460_v7 = vadd.f32 %v25614_v23, %v1382_v5  ;;  %24044 = vmatprep.subr.bf16.mxu1 %v25272_v17  ;;  %vm1491_vm5 = vcmp.gt.f32.partialorder %v1459_v2, 0.0 }
 0x1e7   : > { %vm1494_vm6 = vcmp.gt.f32.partialorder %v1462_v4, 0.0  ;;  %v1526_v8 = vmul.f32 0.2, %v1462_v4  ;;  %v1557_v11 = vsel %vm1493_vm4, %v1461_v63, %v1525_v10  ;;  %v4046_v63 = vld [vmem:[#allocation2 + $0x68] sm:$0x1]  ;;  %v4165_v10 = vrot.slane %v4034_v59, 1 }
 0x1e8   : > { %vm1492_vm7 = vcmp.gt.f32.partialorder %v1460_v7, 0.0  ;;  %v1524_v12 = vmul.f32 0.2, %v1460_v7  ;;  %23730 = vmatmul.mubr.msk.f32.vlgmr.msra.gmra.mrb[24].mxu1 %vm404_vm0, %v25627_v14  ;;  %v1555_v15 = vsel %vm1491_vm5, %v1459_v2, %v1523_v6  ;;  %v4178_v5 = vrot.slane %v4046_v63, 1  ;;  %v4033_v6 = vld [vmem:[#allocation2] sm:$0xfe] }
 0x1e9   : > { %v1558_v13 = vsel %vm1494_vm6, %v1462_v4, %v1526_v8  ;;  %24046 = vmatpush3.bf16.msra.mxu1 %v25677_v0  ;;  %23736 = vmatprep.mubr.msk.f32.mxu1 %vm25273_vm1, %v25646_v44  ;;  %v24222_v0 = vld [vmem:[%s29806_s2 + $0x200] sm:$0xff]   ;;  %v24261_v59 = vld [vmem:[%s29806_s2 + $0x350] sm:$0xff]   ;;  %v4062_v63 = vld [vmem:[#allocation2 + $0xe8] sm:$0x1]  ;;  %vm8789_vm4 = vcmask 1043456   ;;  %vm8786_vm5 = vcmask 31744  }
 0x1ea   : > { %v25754_v18 = vpack.c.bf16 %v1558_v13, %v1557_v11  ;;  %v1556_v23 = vsel %vm1492_vm7, %v1460_v7, %v1524_v12  ;;  %24047 = vmatprep.subr.bf16.mxu1 %v25272_v17  ;;  %v4037_v12 = vld [vmem:[#allocation2 + $0x20] sm:$0x1] }
 0x1eb   : > { %v25757_v19 = vpack.c.bf16 %v1556_v23, %v1555_v15  ;;  %v4162_v23 = vrot.slane %v4033_v6, 1 }
 0x1ec   : > { %23737 = vmatmul.mubr.msk.f32.vlgmr.msra.gmra.mrb[26].mxu1 %vm404_vm0, %v25634_v21 }
 0x1ed   : > { %24049 = vmatpush3.bf16.msra.mxu1 %v25674_v61  ;;  %23743 = vmatprep.mubr.msk.f32.mxu1 %vm25273_vm1, %v25646_v44 }
 0x1ee   : > { %24050 = vmatprep.subr.bf16.mxu1 %v25272_v17 }
 0x1f0   : > { %23744 = vmatmul.mubr.msk.f32.vlgmr.msra.gmra.mrb[28].mxu1 %vm404_vm0, %v25627_v14 }
 0x1f1   : > { %24052 = vmatpush3.bf16.msra.mxu1 %v25674_v61  ;;  %23750 = vmatprep.mubr.msk.f32.mxu1 %vm25273_vm1, %v25646_v44  ;;  %v24221_v61 = vld [vmem:[%s29806_s2 + $0x240] sm:$0xff]  }
 0x1f2   : > { %24053 = vmatprep.subr.bf16.mxu1 %v25272_v17  ;;  %22057 = vmatprep.subr.bf16.mxu0 %v24221_v61 }
 0x1f3   : > { %22058 = vmatpush3.bf16.msra.mxu0 %v24222_v0 }
 0x1f4   : > { %23751 = vmatmul.mubr.msk.f32.vlgmr.msra.gmra.mrb[30].mxu1 %vm404_vm0, %v25634_v21 }
 0x1f5   : > { %24055 = vmatpush3.bf16.msra.mxu1 %v25697_v26  ;;  %23757 = vmatprep.mubr.msk.f32.mxu1 %vm25273_vm1, %v25646_v44 }
 0x1f6   : > { %24056 = vmatprep.subr.bf16.mxu1 %v25272_v17 }
 0x1f8   : > { %23758 = vmatmul.mubr.msk.f32.vlgmr.msra.gmra.mrb[32].mxu1 %vm404_vm0, %v25627_v14 }
 0x1f9   : > { %24058 = vmatpush3.bf16.msra.mxu1 %v25697_v26  ;;  %23764 = vmatprep.mubr.msk.f32.mxu1 %vm25273_vm1, %v25646_v44  ;;  %v24230_v26 = vld [vmem:[%s29806_s2 + $0x210] sm:$0xff]  }
 0x1fa   : > { %24059 = vmatprep.subr.bf16.mxu1 %v25272_v17 }
 0x1fc   : > { %23765 = vmatmul.mubr.msk.f32.vlgmr.msra.gmra.mrb[34].mxu1 %vm404_vm0, %v25634_v21 }
 0x1fd   : > { %24061 = vmatpush3.bf16.msra.mxu1 %v25694_v20  ;;  %23771 = vmatprep.mubr.msk.f32.mxu1 %vm25273_vm1, %v25646_v44 }
 0x1fe   : > { %24062 = vmatprep.subr.bf16.mxu1 %v25272_v17 }
 0x200   : > { %23772 = vmatmul.mubr.msk.f32.vlgmr.msra.gmra.mrb[36].mxu1 %vm404_vm0, %v25627_v14 }
 0x201   : > { %24064 = vmatpush3.bf16.msra.mxu1 %v25694_v20  ;;  %23778 = vmatprep.mubr.msk.f32.mxu1 %vm25273_vm1, %v25646_v44  ;;  %v24225_v20 = vld [vmem:[%s29806_s2 + $0x248] sm:$0xff]  }
 0x202   : > { %24065 = vmatprep.subr.bf16.mxu1 %v25272_v17  ;;  %22059 = vmatprep.subr.bf16.mxu0 %v24225_v20 }
 0x203   : > { %22060 = vmatpush3.bf16.msra.mxu0 %v24226_v24 }
 0x204   : > { %23779 = vmatmul.mubr.msk.f32.vlgmr.msra.gmra.mrb[38].mxu1 %vm404_vm0, %v25634_v21  ;;  %22061 = vmatprep.subr.bf16.mxu0 %v24229_v25 }
 0x205   : > { %24067 = vmatpush3.bf16.msra.mxu1 %v25717_v9  ;;  %23785 = vmatprep.mubr.msk.f32.mxu1 %vm25273_vm1, %v25646_v44 }
 0x206   : > { %24068 = vmatprep.subr.bf16.mxu1 %v25272_v17 }
 0x207   : > { %22062 = vmatpush3.bf16.msra.mxu0 %v24230_v26 }
 0x208   : > { %23786 = vmatmul.mubr.msk.f32.vlgmr.msra.gmra.mrb[40].mxu1 %vm404_vm0, %v25627_v14  ;;  %22063 = vmatprep.subr.bf16.mxu0 %v24233_v30 }
 0x209   : > { %24070 = vmatpush3.bf16.msra.mxu1 %v25717_v9  ;;  %23792 = vmatprep.mubr.msk.f32.mxu1 %vm25273_vm1, %v25646_v44  ;;  %v24223_v9 = vld [vmem:[%s29806_s2 + $0x160] sm:$0xff]  }
 0x20a   : > { %24071 = vmatprep.subr.bf16.mxu1 %v25272_v17 }
 0x20b   : > { %22064 = vmatpush3.bf16.msra.mxu0 %v24234_v31 }
 0x20c   : > { %23793 = vmatmul.mubr.msk.f32.vlgmr.msra.gmra.mrb[42].mxu1 %vm404_vm0, %v25634_v21  ;;  %22065 = vmatprep.subr.bf16.mxu0 %v24237_v32 }
 0x20d   : > { %24073 = vmatpush3.bf16.msra.mxu1 %v25714_v50  ;;  %23799 = vmatprep.mubr.msk.f32.mxu1 %vm25273_vm1, %v25646_v44 }
 0x20e   : > { %24074 = vmatprep.subr.bf16.mxu1 %v25272_v17 }
 0x20f   : > { %22066 = vmatpush3.bf16.msra.mxu0 %v24238_v33 }
 0x210   : > { %23800 = vmatmul.mubr.msk.f32.vlgmr.msra.gmra.mrb[44].mxu1 %vm404_vm0, %v25627_v14  ;;  %22067 = vmatprep.subr.bf16.mxu0 %v24239_v27 }
 0x211   : > { %24076 = vmatpush3.bf16.msra.mxu1 %v25714_v50  ;;  %23806 = vmatprep.mubr.msk.f32.mxu1 %vm25273_vm1, %v25646_v44  ;;  %v24218_v50 = vld [vmem:[%s29806_s2 + $0x110] sm:$0xff]  }
 0x212   : > { %24077 = vmatprep.subr.bf16.mxu1 %v25272_v17 }
 0x213   : > { %22068 = vmatpush3.bf16.msra.mxu0 %v24240_v36 }
 0x214   : > { %23807 = vmatmul.mubr.msk.f32.vlgmr.msra.gmra.mrb[46].mxu1 %vm404_vm0, %v25634_v21  ;;  %22069 = vmatprep.subr.bf16.mxu0 %v24241_v37 }
 0x215   : > { %24079 = vmatpush3.bf16.msra.mxu1 %v25737_v62  ;;  %23813 = vmatprep.mubr.msk.f32.mxu1 %vm25273_vm1, %v25646_v44 }
 0x216   : > { %24080 = vmatprep.subr.bf16.mxu1 %v25272_v17 }
 0x217   : > { %22070 = vmatpush3.bf16.msra.mxu0 %v24242_v38  ;;  %v24246_v38 = vld [vmem:[%s29806_s2 + $0x180] sm:$0xff]  }
 0x218   : > { %23814 = vmatmul.mubr.msk.f32.vlgmr.msra.gmra.mrb[48].mxu1 %vm404_vm0, %v25627_v14  ;;  %22071 = vmatprep.subr.bf16.mxu0 %v24243_v42  ;;  %v24247_v42 = vld [vmem:[%s29806_s2 + $0x1c8] sm:$0xff]  }
 0x219   : > { %24082 = vmatpush3.bf16.msra.mxu1 %v25737_v62  ;;  %23820 = vmatprep.mubr.msk.f32.mxu1 %vm25273_vm1, %v25646_v44  ;;  %v4038_v62 = vld [vmem:[#allocation2 + $0x28] sm:$0x1] }
 0x21a   : > { %24083 = vmatprep.subr.bf16.mxu1 %v25272_v17  ;;  %v4166_v4 = vrot.slane %v4038_v62, 1  ;;  %v4054_v62 = vld [vmem:[#allocation2 + $0xa8] sm:$0x1] }
 0x21b   : > { %22072 = vmatpush3.bf16.msra.mxu0 %v24244_v45 }
 0x21c   : > { %23821 = vmatmul.mubr.msk.f32.vlgmr.msra.gmra.mrb[50].mxu1 %vm404_vm0, %v25634_v21  ;;  %22137 = vmatprep.subr.bf16.mxu0 %v24253_v47 }
 0x21d   : > { %24085 = vmatpush3.bf16.msra.mxu1 %v25734_v58  ;;  %23827 = vmatprep.mubr.msk.f32.mxu1 %vm25273_vm1, %v25646_v44 }
 0x21e   : > { %24086 = vmatprep.subr.bf16.mxu1 %v25272_v17 }
 0x220   : > { %23828 = vmatmul.mubr.msk.f32.vlgmr.msra.gmra.mrb[52].mxu1 %vm404_vm0, %v25627_v14 }
 0x221   : > { %24088 = vmatpush3.bf16.msra.mxu1 %v25734_v58  ;;  %23834 = vmatprep.mubr.msk.f32.mxu1 %vm25273_vm1, %v25646_v44 }
 0x222   : > { %24089 = vmatprep.subr.bf16.mxu1 %v25272_v17 }
 0x224   : > { %23835 = vmatmul.mubr.msk.f32.vlgmr.msra.gmra.mrb[54].mxu1 %vm404_vm0, %v25634_v21 }
 0x225   : > { %24091 = vmatpush3.bf16.msra.mxu1 %v25757_v19  ;;  %23841 = vmatprep.mubr.msk.f32.mxu1 %vm25273_vm1, %v25646_v44 }
 0x226   : > { %24092 = vmatprep.subr.bf16.mxu1 %v25272_v17 }
 0x228   : > { %23842 = vmatmul.mubr.msk.f32.vlgmr.msra.gmra.mrb[56].mxu1 %vm404_vm0, %v25627_v14 }
 0x229   : > { %24094 = vmatpush3.bf16.msra.mxu1 %v25757_v19  ;;  %23848 = vmatprep.mubr.msk.f32.mxu1 %vm25273_vm1, %v25646_v44  ;;  %v4163_v19 = vrot.slane %v4037_v12, 1  ;;  %v24265_v12 = vld [vmem:[%s29806_s2 + $0x358] sm:$0xff]  }
 0x22a   : > { %24095 = vmatprep.subr.bf16.mxu1 %v25272_v17 }
 0x22c   : > { %23849 = vmatmul.mubr.msk.f32.vlgmr.msra.gmra.mrb[58].mxu1 %vm404_vm0, %v25634_v21 }
 0x22d   : > { %24097 = vmatpush3.bf16.msra.mxu1 %v25754_v18  ;;  %23855 = vmatprep.mubr.msk.f32.mxu1 %vm25273_vm1, %v25646_v44  ;;  %v25921_v44 = vld [vmem:[#allocation2] sm:$0xff] }
 0x22e   : > { %24098 = vmatprep.subr.bf16.mxu1 %v25272_v17  ;;  %v24215_v17 = vld [vmem:[%s29806_s2 + $0x148] sm:$0xff]  }
 0x230   : > { %23856 = vmatmul.mubr.msk.f32.vlgmr.msra.gmra.mrb[60].mxu1 %vm404_vm0, %v25627_v14 }
 0x231   : > { %24100 = vmatpush3.bf16.msra.mxu1 %v25754_v18  ;;  %23862 = vmatprep.mubr.msk.f32.mxu1 %vm25273_vm1, %v25921_v44 }
 0x232   : > { %21897 = vmatprep.subr.bf16.mxu1 %v24213_v39 }
 0x234   : > { %23863 = vmatmul.mubr.msk.f32.vlgmr.msra.gmra.mrb[62].mxu1 %vm404_vm0, %v25634_v21  ;;  %vm4161_vm0 = vcmask 1046528  }
 0x235   : > { %21898 = vmatpush3.bf16.msra.mxu1 %v24214_v43  ;;  %v4167_v13 = vsel %vm4161_vm0, %v4165_v10, %v4166_v4  ;;  %v4164_v30 = vsel %vm4161_vm0, %v4162_v23, %v4163_v19  ;;  %v24260_v10 = vld [vmem:[%s29806_s2 + $0x1a8] sm:$0xff]   ;;  %v24262_v4 = vld [vmem:[%s29806_s2 + $0x310] sm:$0xff]  }
 0x236   : > { %21899 = vmatprep.subr.bf16.mxu1 %v24215_v17 }
 0x239   : > { %21900 = vmatpush3.bf16.msra.mxu1 %v24216_v48  ;;  %v24248_v48 = vld [vmem:[%s29806_s2 + $0x188] sm:$0xff]  }
 0x23a   : > { %21901 = vmatprep.subr.bf16.mxu1 %v24217_v49  ;;  %v24249_v49 = vld [vmem:[%s29806_s2 + $0x1d0] sm:$0xff]  }
 0x23d   : > { %21902 = vmatpush3.bf16.msra.mxu1 %v24218_v50 }
 0x23e   : > { %21903 = vmatprep.subr.bf16.mxu1 %v24219_v51 }
 0x241   : > { %21904 = vmatpush3.bf16.msra.mxu1 %v24220_v53  ;;  %v24250_v53 = vld [vmem:[%s29806_s2 + $0x190] sm:$0xff]  }
 0x242   : > { %21905 = vmatprep.subr.bf16.mxu1 %v24223_v9  ;;  %v24251_v9 = vld [vmem:[%s29806_s2 + $0x1d8] sm:$0xff]  }
 0x245   : > { %21906 = vmatpush3.bf16.msra.mxu1 %v24224_v16 }
 0x246   : > { %21907 = vmatprep.subr.bf16.mxu1 %v24227_v22 }
 0x249   : > { %21908 = vmatpush3.bf16.msra.mxu1 %v24228_v29 }
 0x24a   : > { %21909 = vmatprep.subr.bf16.mxu1 %v24231_v35  ;;  %v24252_v35 = vld [vmem:[%s29806_s2 + $0x198] sm:$0xff]  }
 0x24d   : > { %21910 = vmatpush3.bf16.msra.mxu1 %v24232_v28  ;;  %v24254_v28 = vld [vmem:[%s29806_s2 + $0x300] sm:$0xff]  }
 0x24e   : > { %21911 = vmatprep.subr.bf16.mxu1 %v24235_v40 }
 0x251   : > { %21912 = vmatpush3.bf16.msra.mxu1 %v24236_v41 }
 0x252   : > { %21937 = vmatprep.subr.bf16.mxu1 %v24245_v46  ;;  %v24255_v46 = vld [vmem:[%s29806_s2 + $0x1e0] sm:$0xff]  }
 0x28b   : > { %v1640_v52 = vpop.f32.mrb[0].mxu1 }
 0x28c   : > { %1717 = vst [vmem:[#allocation2 + $0x18] sm:$0xff] %v1640_v52  ;;  %v23647_v54 = vpop.f32.mrb[1].mxu1  ;;  %v24257_v52 = vld [vmem:[%s29806_s2 + $0x348] sm:$0xff]  }
 0x28f   : > { %v1713_v55 = vpop.f32.mrb[2].mxu1 }
 0x290   : > { %v1719_v56 = vrot.slane %v1713_v55, 7  ;;  %v23654_v57 = vpop.f32.mrb[3].mxu1  ;;  %v24256_v55 = vld [vmem:[%s29806_s2 + $0x1a0] sm:$0xff]  }
 0x291   : > { %v24258_v57 = vld [vmem:[%s29806_s2 + $0x308] sm:$0xff]  }
 0x292   : > { %1721 = vst [vmem:[#allocation2 + $0x10] sm:$0xfe] %v1719_v56  ;;  %1722 = vst [vmem:[#allocation2 + $0x30] sm:$0x1] %v1719_v56 }
 0x293   : > { %v1789_v58 = vpop.f32.mrb[4].mxu1 }
 0x294   : > { %1864 = vst [vmem:[#allocation2 + $0x48] sm:$0xff] %v1789_v58  ;;  %v23661_v60 = vpop.f32.mrb[5].mxu1 }
 0x297   : > { %v1859_v1 = vpop.f32.mrb[6].mxu1 }
 0x298   : > { %v1866_v2 = vrot.slane %v1859_v1, 7  ;;  %v23668_v3 = vpop.f32.mrb[7].mxu1 }
 0x29a   : > { %1868 = vst [vmem:[#allocation2 + $0x40] sm:$0xfe] %v1866_v2  ;;  %1869 = vst [vmem:[#allocation2 + $0x60] sm:$0x1] %v1866_v2 }
 0x29b   : > { %v1936_v7 = vpop.f32.mrb[8].mxu1  ;;  %v4042_v8 = vld [vmem:[#allocation2 + $0x48] sm:$0xfe] }
 0x29c   : > { %2010 = vst [vmem:[#allocation2 + $0x58] sm:$0xff] %v1936_v7  ;;  %v23675_v11 = vpop.f32.mrb[9].mxu1  ;;  %v4177_v15 = vrot.slane %v4042_v8, 1  ;;  %v4190_v7 = vrot.slane %v4054_v62, 1  ;;  %v4202_v8 = vrot.slane %v4062_v63, 1 }
 0x29e   : > { %v4179_v18 = vsel %vm4161_vm0, %v4177_v15, %v4178_v5  ;;  %v24263_v5 = vld [vmem:[%s29806_s2 + $0x1f0] sm:$0xff]  }
 0x29f   : > { %v2006_v61 = vpop.f32.mrb[10].mxu1  ;;  %v4291_v0 = vpack.c.bf16 %v4179_v18, %v4167_v13  ;;  %v24264_v15 = vld [vmem:[%s29806_s2 + $0x1b0] sm:$0xff]   ;;  %v24266_v18 = vld [vmem:[%s29806_s2 + $0x318] sm:$0xff]  }
 0x2a0   : > { %v2012_v20 = vrot.slane %v2006_v61, 7  ;;  %v23682_v24 = vpop.f32.mrb[11].mxu1 }
 0x2a1   : > { %4595 = vmatprep.mubr.bf16.mxu1 %v4291_v0  ;;  %v4041_v25 = vld [vmem:[#allocation2 + $0x40] sm:$0xfe]  ;;  %v4045_v26 = vld [vmem:[#allocation2 + $0x60] sm:$0x1]  ;;  %v24267_v0 = vld [vmem:[%s29806_s2 + $0x1f8] sm:$0xff]  }
 0x2a2   : > { %2014 = vst [vmem:[#allocation2 + $0x50] sm:$0xfe] %v2012_v20  ;;  %2015 = vst [vmem:[#allocation2 + $0x70] sm:$0x1] %v2012_v20  ;;  %v4174_v31 = vrot.slane %v4041_v25, 1  ;;  %v4175_v32 = vrot.slane %v4045_v26, 1 }
 0x2a3   : > { %v2082_v33 = vpop.f32.mrb[12].mxu1  ;;  %v5015_v40 = vld [vmem:[#allocation2 + $0x40] sm:$0xff] }
 0x2a4   : > { %2157 = vst [vmem:[#allocation2 + $0x88] sm:$0xff] %v2082_v33  ;;  %v23689_v27 = vpop.f32.mrb[13].mxu1  ;;  %v4176_v36 = vsel %vm4161_vm0, %v4174_v31, %v4175_v32  ;;  %v5048_v37 = vpack.c.bf16 %v2082_v33, %v1789_v58  ;;  %v24259_v58 = vld [vmem:[%s29806_s2 + $0x1e8] sm:$0xff]   ;;  %v24269_v20 = vld [vmem:[%s29806_s2 + $0x360] sm:$0xff]  }
 0x2a5   : > { %v4290_v39 = vpack.c.bf16 %v4176_v36, %v4164_v30  ;;  %v24268_v30 = vld [vmem:[%s29806_s2 + $0x1b8] sm:$0xff]   ;;  %v24270_v33 = vld [vmem:[%s29806_s2 + $0x320] sm:$0xff]  }
 0x2a6   : > { %5352 = vmatprep.mubr.bf16.mxu0 %v5048_v37 }
 0x2a7   : > { %v2152_v43 = vpop.f32.mrb[14].mxu1  ;;  %4596 = vmatmul.mubr.bf16.vlgmr.msra.gmra.mrb[64].mxu1 %v4290_v39 }
 0x2a8   : > { %v2159_v45 = vrot.slane %v2152_v43, 7  ;;  %v23696_v17 = vpop.f32.mrb[15].mxu1  ;;  %21938 = vmatpush3.bf16.msra.mxu1 %v24246_v38  ;;  %v24271_v43 = vld [vmem:[%s29806_s2 + $0x40] sm:$0xff]  }
 0x2a9   : > { %21939 = vmatprep.subr.bf16.mxu1 %v24247_v42 }
 0x2aa   : > { %2161 = vst [vmem:[#allocation2 + $0x80] sm:$0xfe] %v2159_v45  ;;  %2162 = vst [vmem:[#allocation2 + $0xa0] sm:$0x1] %v2159_v45 }
 0x2ab   : > { %v2229_v50 = vpop.f32.mrb[16].mxu1  ;;  %v4050_v60 = vld [vmem:[#allocation2 + $0x88] sm:$0xfe] }
 0x2ac   : > { %2303 = vst [vmem:[#allocation2 + $0x98] sm:$0xff] %v2229_v50  ;;  %v23703_v51 = vpop.f32.mrb[17].mxu1  ;;  %21940 = vmatpush3.bf16.msra.mxu1 %v24248_v48  ;;  %v4189_v6 = vrot.slane %v4050_v60, 1  ;;  %v24273_v48 = vld [vmem:[%s29806_s2 + $0x368] sm:$0xff]  }
 0x2ad   : > { %21941 = vmatprep.subr.bf16.mxu1 %v24249_v49 }
 0x2ae   : > { %v4191_v25 = vsel %vm4161_vm0, %v4189_v6, %v4190_v7  ;;  %v26081_v6 = vld [vmem:[#allocation2 + $0x38] sm:$0x1] }
 0x2af   : > { %v2299_v16 = vpop.f32.mrb[18].mxu1  ;;  %v29832_v21 = vrot.slane %v26081_v6, 1 }
 0x2b0   : > { %v2305_v22 = vrot.slane %v2299_v16, 7  ;;  %v23710_v29 = vpop.f32.mrb[19].mxu1  ;;  %21942 = vmatpush3.bf16.msra.mxu1 %v24250_v53  ;;  %v24274_v16 = vld [vmem:[%s29806_s2 + $0x328] sm:$0xff]  }
 0x2b1   : > { %v5019_v41 = vld [vmem:[#allocation2 + $0x80] sm:$0xff]  ;;  %21943 = vmatprep.subr.bf16.mxu1 %v24251_v9  ;;  %v24277_v29 = vld [vmem:[%s29806_s2 + $0x370] sm:$0xff]  }
 0x2b2   : > { %2307 = vst [vmem:[#allocation2 + $0x90] sm:$0xfe] %v2305_v22  ;;  %2308 = vst [vmem:[#allocation2 + $0xb0] sm:$0x1] %v2305_v22  ;;  %v5047_v47 = vpack.c.bf16 %v5019_v41, %v5015_v40  ;;  %v4049_v61 = vld [vmem:[#allocation2 + $0x80] sm:$0xfe] }
 0x2b3   : > { %v26006_v54 = vpop.f32.mrb[20].mxu1  ;;  %v4053_v24 = vld [vmem:[#allocation2 + $0xa0] sm:$0x1]  ;;  %v4186_v37 = vrot.slane %v4049_v61, 1  ;;  %v24278_v41 = vld [vmem:[%s29806_s2 + $0x330] sm:$0xff]  }
 0x2b4   : > { %2450 = vst [vmem:[#allocation2 + $0xc8] sm:$0xff] %v26006_v54  ;;  %v23717_v56 = vpop.f32.mrb[21].mxu1  ;;  %5353 = vmatmul.mubr.bf16.vlgmr.msra.gmra.mrb[32].mxu0 %v5047_v47  ;;  %21944 = vmatpush3.bf16.msra.mxu1 %v24252_v35  ;;  %v4187_v38 = vrot.slane %v4053_v24, 1 }
 0x2b5   : > { %22138 = vmatpush3.bf16.msra.mxu0 %v24254_v28  ;;  %21945 = vmatprep.subr.bf16.mxu1 %v24255_v46  ;;  %v24281_v46 = vld [vmem:[%s29806_s2 + $0x378] sm:$0xff]  }
 0x2b6   : > { %22139 = vmatprep.subr.bf16.mxu0 %v24257_v52  ;;  %v4188_v51 = vsel %vm4161_vm0, %v4186_v37, %v4187_v38 }
 0x2b7   : > { %v2445_v1 = vpop.f32.mrb[22].mxu1 }
 0x2b8   : > { %v2452_v2 = vrot.slane %v2445_v1, 7  ;;  %v23724_v3 = vpop.f32.mrb[23].mxu1  ;;  %21946 = vmatpush3.bf16.msra.mxu1 %v24256_v55 }
 0x2b9   : > { %22140 = vmatpush3.bf16.msra.mxu0 %v24258_v57  ;;  %21947 = vmatprep.subr.bf16.mxu1 %v24259_v58  ;;  %v4078_v3 = vld [vmem:[#allocation2 + $0x168] sm:$0x1] }
 0x2ba   : > { %2454 = vst [vmem:[#allocation2 + $0xc0] sm:$0xfe] %v2452_v2  ;;  %2455 = vst [vmem:[#allocation2 + $0xe0] sm:$0x1] %v2452_v2  ;;  %22141 = vmatprep.subr.bf16.mxu0 %v24261_v59  ;;  %v4070_v2 = vld [vmem:[#allocation2 + $0x128] sm:$0x1] }
 0x2bb   : > { %v2522_v11 = vpop.f32.mrb[24].mxu1  ;;  %v4058_v13 = vld [vmem:[#allocation2 + $0xc8] sm:$0xfe] }
 0x2bc   : > { %2596 = vst [vmem:[#allocation2 + $0xd8] sm:$0xff] %v2522_v11  ;;  %v23731_v23 = vpop.f32.mrb[25].mxu1  ;;  %v4201_v19 = vrot.slane %v4058_v13, 1  ;;  %21948 = vmatpush3.bf16.msra.mxu1 %v24260_v10 }
 0x2bd   : > { %22142 = vmatpush3.bf16.msra.mxu0 %v24262_v4  ;;  %21949 = vmatprep.subr.bf16.mxu1 %v24263_v5 }
 0x2be   : > { %v4203_v26 = vsel %vm4161_vm0, %v4201_v19, %v4202_v8  ;;  %22143 = vmatprep.subr.bf16.mxu0 %v24265_v12  ;;  %v4214_v8 = vrot.slane %v4070_v2, 1  ;;  %v4226_v12 = vrot.slane %v4078_v3, 1  ;;  %v26084_v19 = vld [vmem:[#allocation2 + $0x68] sm:$0x1] }
 0x2bf   : > { %v2592_v31 = vpop.f32.mrb[26].mxu1  ;;  %v4295_v32 = vpack.c.bf16 %v4203_v26, %v4191_v25  ;;  %v26092_v26 = vld [vmem:[#allocation2 + $0xb8] sm:$0x1] }
 0x2c0   : > { %v2598_v27 = vrot.slane %v2592_v31, 7  ;;  %v23738_v36 = vpop.f32.mrb[27].mxu1  ;;  %21950 = vmatpush3.bf16.msra.mxu1 %v24264_v15  ;;  %v26096_v31 = vld [vmem:[#allocation2 + $0xe8] sm:$0x1] }
 0x2c1   : > { %4603 = vmatprep.mubr.bf16.mxu1 %v4295_v32  ;;  %v4057_v39 = vld [vmem:[#allocation2 + $0xc0] sm:$0xfe]  ;;  %v4061_v42 = vld [vmem:[#allocation2 + $0xe0] sm:$0x1]  ;;  %22144 = vmatpush3.bf16.msra.mxu0 %v24266_v18 }
 0x2c2   : > { %2600 = vst [vmem:[#allocation2 + $0xd0] sm:$0xfe] %v2598_v27  ;;  %2601 = vst [vmem:[#allocation2 + $0xf0] sm:$0x1] %v2598_v27  ;;  %v4198_v45 = vrot.slane %v4057_v39, 1  ;;  %v4199_v17 = vrot.slane %v4061_v42, 1  ;;  %21951 = vmatprep.subr.bf16.mxu1 %v24267_v0  ;;  %22145 = vmatprep.subr.bf16.mxu0 %v24269_v20 }
 0x2c3   : > { %v2668_v49 = vpop.f32.mrb[28].mxu1  ;;  %v5023_v58 = vld [vmem:[#allocation2 + $0xc0] sm:$0xff]  ;;  %v26086_v0 = vld [vmem:[#allocation2 + $0x78] sm:$0x1]  ;;  %v26088_v20 = vld [vmem:[#allocation2 + $0xa8] sm:$0x1] }
 0x2c4   : > { %2743 = vst [vmem:[#allocation2 + $0x108] sm:$0xff] %v2668_v49  ;;  %v23745_v50 = vpop.f32.mrb[29].mxu1  ;;  %v4200_v53 = vsel %vm4161_vm0, %v4198_v45, %v4199_v17  ;;  %v5052_v9 = vpack.c.bf16 %v2668_v49, %v26006_v54  ;;  %21952 = vmatpush3.bf16.msra.mxu1 %v24268_v30  ;;  %v24282_v54 = vld [vmem:[%s29806_s2 + $0x338] sm:$0xff]   ;;  %v26099_v45 = vld [vmem:[#allocation2 + $0x128] sm:$0x1] }
 0x2c5   : > { %v4294_v22 = vpack.c.bf16 %v4200_v53, %v4188_v51  ;;  %22146 = vmatpush3.bf16.msra.mxu0 %v24270_v33  ;;  %21977 = vmatprep.subr.bf16.mxu1 %v24271_v43  ;;  %v26094_v30 = vld [vmem:[#allocation2 + $0xf8] sm:$0x1] }
 0x2c6   : > { %5360 = vmatprep.mubr.bf16.mxu0 %v5052_v9  ;;  %22147 = vmatprep.subr.bf16.mxu0 %v24273_v48 }
 0x2c7   : > { %v2738_v35 = vpop.f32.mrb[30].mxu1  ;;  %4604 = vmatmul.mubr.bf16.gmra.mrb[68].mxu1 %v4294_v22 }
 0x2c8   : > { %v2745_v28 = vrot.slane %v2738_v35, 7  ;;  %v23752_v40 = vpop.f32.mrb[31].mxu1 }
 0x2c9   : > { %22148 = vmatpush3.bf16.msra.mxu0 %v24274_v16  ;;  %v26105_v16 = vld [vmem:[#allocation2 + $0x138] sm:$0x1] }
 0x2ca   : > { %2747 = vst [vmem:[#allocation2 + $0x100] sm:$0xfe] %v2745_v28  ;;  %2748 = vst [vmem:[#allocation2 + $0x120] sm:$0x1] %v2745_v28  ;;  %22149 = vmatprep.subr.bf16.mxu0 %v24277_v29 }
 0x2cb   : > { %v2815_v47 = vpop.f32.mrb[32].mxu1  ;;  %v4066_v1 = vld [vmem:[#allocation2 + $0x108] sm:$0xfe] }
 0x2cc   : > { %2889 = vst [vmem:[#allocation2 + $0x118] sm:$0xff] %v2815_v47  ;;  %v23759_v52 = vpop.f32.mrb[33].mxu1  ;;  %v4213_v7 = vrot.slane %v4066_v1, 1  ;;  %v26194_v47 = vld [vmem:[#allocation2 + $0xc0] sm:$0xfe] }
 0x2cd   : > { %22150 = vmatpush3.bf16.msra.mxu0 %v24278_v41  ;;  %v26111_v41 = vld [vmem:[#allocation2 + $0x1a8] sm:$0x1]  ;;  %v26196_v1 = vld [vmem:[#allocation2 + $0xe0] sm:$0x1]  ;;  %v26204_v27 = vld [vmem:[#allocation2 + $0x108] sm:$0xfe] }
 0x2ce   : > { %22151 = vmatprep.subr.bf16.mxu0 %v24281_v46  ;;  %v4215_v24 = vsel %vm4161_vm0, %v4213_v7, %v4214_v8  ;;  %v26113_v46 = vld [vmem:[#allocation2 + $0x178] sm:$0x1]  ;;  %v26116_v52 = vld [vmem:[#allocation2 + $0x168] sm:$0x1] }
 0x2cf   : > { %v2885_v55 = vpop.f32.mrb[34].mxu1 }
 0x2d0   : > { %v2891_v56 = vrot.slane %v2885_v55, 7  ;;  %v23766_v57 = vpop.f32.mrb[35].mxu1 }
 0x2d1   : > { %v5027_v59 = vld [vmem:[#allocation2 + $0x100] sm:$0xff]  ;;  %22152 = vmatpush3.bf16.msra.mxu0 %v24282_v54  ;;  %v26118_v54 = vld [vmem:[#allocation2 + $0x1a8] sm:$0x1]  ;;  %v26122_v57 = vld [vmem:[#allocation2 + $0x1b8] sm:$0x1] }
 0x2d2   : > { %2893 = vst [vmem:[#allocation2 + $0x110] sm:$0xfe] %v2891_v56  ;;  %2894 = vst [vmem:[#allocation2 + $0x130] sm:$0x1] %v2891_v56  ;;  %v5051_v60 = vpack.c.bf16 %v5027_v59, %v5023_v58  ;;  %23865 = vmatprep.subr.mxu0 %v25921_v44  ;;  %v4065_v23 = vld [vmem:[#allocation2 + $0x100] sm:$0xfe] }
 0x2d3   : > { %v26078_v62 = vpop.f32.mrb[36].mxu1  ;;  %v4069_v61 = vld [vmem:[#allocation2 + $0x120] sm:$0x1]  ;;  %v4210_v38 = vrot.slane %v4065_v23, 1  ;;  %v26120_v56 = vld [vmem:[#allocation2 + $0x1e8] sm:$0x1] }
 0x2d4   : > { %3036 = vst [vmem:[#allocation2 + $0x148] sm:$0xff] %v26078_v62  ;;  %v23773_v63 = vpop.f32.mrb[37].mxu1  ;;  %5361 = vmatmul.mubr.bf16.gmra.mrb[36].mxu0 %v5051_v60  ;;  %v4211_v39 = vrot.slane %v4069_v61, 1  ;;  %v26124_v58 = vld [vmem:[#allocation2 + $0x1f8] sm:$0x1] }
 0x2d5   : > { %v26126_v59 = vld [vmem:[#allocation2 + $0x1e8] sm:$0x1]  ;;  %v26130_v63 = vld [vmem:[#allocation2 + $0x18] sm:$0xfe]  ;;  %v26209_v53 = vld [vmem:[#allocation2 + $0x120] sm:$0x1] }
 0x2d6   : > { %v4212_v35 = vsel %vm4161_vm0, %v4210_v38, %v4211_v39  ;;  %29824 = vst [vmem:[#allocation9_spill] sm:$0xff] %v26126_v59  ;;  %v26128_v60 = vld [vmem:[#allocation2 + $0x228] sm:$0x1]  ;;  %v26153_v38 = vld [vmem:[#allocation2 + $0x60] sm:$0x1] }
 0x2d7   : > { %v3031_v10 = vpop.f32.mrb[38].mxu1  ;;  %v26155_v39 = vld [vmem:[#allocation2 + $0x58] sm:$0xfe] }
 0x2d8   : > { %v3038_v4 = vrot.slane %v3031_v10, 7  ;;  %v23780_v5 = vpop.f32.mrb[39].mxu1  ;;  %v26133_v10 = vld [vmem:[#allocation2 + $0x10] sm:$0xfe] }
 0x2d9   : > { %v26136_v5 = vld [vmem:[#allocation2 + $0x30] sm:$0x1]  ;;  %v26223_v61 = vld [vmem:[#allocation2 + $0x110] sm:$0xfe] }
 0x2da   : > { %3040 = vst [vmem:[#allocation2 + $0x140] sm:$0xfe] %v3038_v4  ;;  %3041 = vst [vmem:[#allocation2 + $0x160] sm:$0x1] %v3038_v4  ;;  %v4238_v4 = vrot.slane %v26111_v41, 1 }
 0x2db   : > { %v3108_v44 = vpop.f32.mrb[40].mxu1  ;;  %v4074_v11 = vld [vmem:[#allocation2 + $0x148] sm:$0xfe]  ;;  %v26225_v13 = vld [vmem:[#allocation2 + $0x130] sm:$0x1] }
 0x2dc   : > { %3182 = vst [vmem:[#allocation2 + $0x158] sm:$0xff] %v3108_v44  ;;  %v23787_v15 = vpop.f32.mrb[41].mxu1  ;;  %v4225_v18 = vrot.slane %v4074_v11, 1  ;;  %v4250_v44 = vrot.slane %v26120_v56, 1  ;;  %v26200_v11 = vld [vmem:[#allocation2 + $0xd0] sm:$0xfe] }
 0x2dd   : > { %v26202_v15 = vld [vmem:[#allocation2 + $0xf0] sm:$0x1] }
 0x2de   : > { %v4227_v25 = vsel %vm4161_vm0, %v4225_v18, %v4226_v12  ;;  %v26184_v12 = vld [vmem:[#allocation2 + $0x90] sm:$0xfe]  ;;  %v26235_v18 = vld [vmem:[#allocation2 + $0x148] sm:$0xfe] }
 0x2df   : > { %v3178_v32 = vpop.f32.mrb[42].mxu1  ;;  %v4299_v33 = vpack.c.bf16 %v4227_v25, %v4215_v24  ;;  %v26147_v25 = vld [vmem:[#allocation2 + $0x48] sm:$0xfe] }
 0x2e0   : > { %v3184_v36 = vrot.slane %v3178_v32, 7  ;;  %v23794_v37 = vpop.f32.mrb[43].mxu1 }
 0x2e1   : > { %4611 = vmatprep.mubr.bf16.mxu1 %v4299_v33  ;;  %v4073_v42 = vld [vmem:[#allocation2 + $0x140] sm:$0xfe]  ;;  %v4077_v43 = vld [vmem:[#allocation2 + $0x160] sm:$0x1] }
 0x2e2   : > { %3186 = vst [vmem:[#allocation2 + $0x150] sm:$0xfe] %v3184_v36  ;;  %3187 = vst [vmem:[#allocation2 + $0x170] sm:$0x1] %v3184_v36  ;;  %v4222_v17 = vrot.slane %v4073_v42, 1  ;;  %v4223_v48 = vrot.slane %v4077_v43, 1 }
 0x2e3   : > { %v3254_v51 = vpop.f32.mrb[44].mxu1  ;;  %v26151_v37 = vld [vmem:[#allocation2 + $0x40] sm:$0xfe]  ;;  %v26157_v42 = vld [vmem:[#allocation2 + $0x50] sm:$0xfe] }
 0x2e4   : > { %3329 = vst [vmem:[#allocation2 + $0x188] sm:$0xff] %v3254_v51  ;;  %v23801_v29 = vpop.f32.mrb[45].mxu1  ;;  %v4224_v28 = vsel %vm4161_vm0, %v4222_v17, %v4223_v48  ;;  %v5056_v40 = vpack.c.bf16 %v3254_v51, %v26078_v62  ;;  %v26159_v43 = vld [vmem:[#allocation2 + $0x70] sm:$0x1]  ;;  %v26161_v17 = vld [vmem:[#allocation2 + $0x88] sm:$0xfe] }
 0x2e5   : > { %v4298_v55 = vpack.c.bf16 %v4224_v28, %v4212_v35  ;;  %v26163_v48 = vld [vmem:[#allocation2 + $0x80] sm:$0xfe]  ;;  %v26198_v29 = vld [vmem:[#allocation2 + $0xd8] sm:$0xfe] }
 0x2e6   : > { %5368 = vmatprep.mubr.bf16.mxu0 %v5056_v40  ;;  %v26166_v40 = vld [vmem:[#allocation2 + $0xa0] sm:$0x1] }
 0x2e7   : > { %v3324_v62 = vpop.f32.mrb[46].mxu1  ;;  %4612 = vmatmul.mubr.bf16.gmra.mrb[72].mxu1 %v4298_v55  ;;  %v26168_v55 = vld [vmem:[#allocation2 + $0x140] sm:$0xff] }
 0x2e8   : > { %v3331_v2 = vrot.slane %v3324_v62, 7  ;;  %v23808_v3 = vpop.f32.mrb[47].mxu1  ;;  %29825 = vst [vmem:[#allocation10_spill] sm:$0xff] %v26168_v55 }
 0x2e9   : > { %v26190_v3 = vld [vmem:[#allocation2 + $0xb0] sm:$0x1]  ;;  %v26247_v59 = vld [vmem:[#allocation2 + $0x150] sm:$0xfe] }
 0x2ea   : > { %3333 = vst [vmem:[#allocation2 + $0x180] sm:$0xfe] %v3331_v2  ;;  %3334 = vst [vmem:[#allocation2 + $0x1a0] sm:$0x1] %v3331_v2  ;;  %v26172_v2 = vld [vmem:[#allocation2 + $0x98] sm:$0xfe] }
 0x2eb   : > { %v3401_v23 = vpop.f32.mrb[48].mxu1  ;;  %v4082_v7 = vld [vmem:[#allocation2 + $0x188] sm:$0xfe] }
 0x2ec   : > { %3475 = vst [vmem:[#allocation2 + $0x198] sm:$0xff] %v3401_v23  ;;  %v23815_v33 = vpop.f32.mrb[49].mxu1  ;;  %v26192_v23 = vld [vmem:[#allocation2 + $0xc8] sm:$0xfe]  ;;  %v4237_v36 = vrot.slane %v4082_v7, 1 }
 0x2ef   : > { %v3471_v51 = vpop.f32.mrb[50].mxu1 }
 0x2f0   : > { %v3477_v35 = vrot.slane %v3471_v51, 7  ;;  %v23822_v28 = vpop.f32.mrb[51].mxu1 }
 0x2f1   : > { %v26170_v62 = vld [vmem:[#allocation2 + $0x180] sm:$0xff]  ;;  %v26233_v28 = vld [vmem:[#allocation2 + $0x158] sm:$0xfe] }
 0x2f2   : > { %29826 = vst [vmem:[#allocation11_spill] sm:$0xff] %v26170_v62  ;;  %3479 = vst [vmem:[#allocation2 + $0x190] sm:$0xfe] %v3477_v35  ;;  %v5055_v33 = vpack.c.bf16 %v26170_v62, %v26168_v55  ;;  %v4081_v7 = vld [vmem:[#allocation2 + $0x180] sm:$0xfe] }
 0x2f3   : > { %3480 = vst [vmem:[#allocation2 + $0x1b0] sm:$0x1] %v3477_v35  ;;  %v26181_v32 = vpop.f32.mrb[52].mxu1  ;;  %v4085_v49 = vld [vmem:[#allocation2 + $0x1a0] sm:$0x1]  ;;  %v4234_v62 = vrot.slane %v4081_v7, 1 }
 0x2f4   : > { %29827 = vst [vmem:[#allocation12_spill] sm:$0xff] %v26181_v32  ;;  %3622 = vst [vmem:[#allocation2 + $0x1c8] sm:$0xff] %v26181_v32  ;;  %v23829_v35 = vpop.f32.mrb[53].mxu1  ;;  %5369 = vmatmul.mubr.bf16.gmra.mrb[40].mxu0 %v5055_v33  ;;  %v26206_v33 = vld [vmem:[#allocation2 + $0x100] sm:$0xfe] }
 0x2f7   : > { %v3617_v35 = vpop.f32.mrb[54].mxu1 }
 0x2f8   : > { %v3624_v50 = vrot.slane %v3617_v35, 7  ;;  %v23836_v22 = vpop.f32.mrb[55].mxu1  ;;  %v4239_v35 = vsel %vm4161_vm0, %v4237_v36, %v4238_v4  ;;  %v4235_v4 = vrot.slane %v4085_v49, 1 }
 0x2f9   : > { %v26218_v22 = vld [vmem:[#allocation2 + $0x118] sm:$0xfe] }
 0x2fa   : > { %3626 = vst [vmem:[#allocation2 + $0x1c0] sm:$0xfe] %v3624_v50  ;;  %3627 = vst [vmem:[#allocation2 + $0x1e0] sm:$0x1] %v3624_v50 }
 0x2fb   : > { %v3694_v8 = vpop.f32.mrb[56].mxu1  ;;  %v4090_v51 = vld [vmem:[#allocation2 + $0x1c8] sm:$0xfe] }
 0x2fc   : > { %3768 = vst [vmem:[#allocation2 + $0x1d8] sm:$0xff] %v3694_v8  ;;  %v23843_v24 = vpop.f32.mrb[57].mxu1  ;;  %v4249_v50 = vrot.slane %v4090_v51, 1  ;;  %v26237_v8 = vld [vmem:[#allocation2 + $0x140] sm:$0xfe] }
 0x2fd   : > { %29828 = vst [vmem:[#allocation13_spill] sm:$0xff] %v26237_v8  ;;  %v26239_v24 = vld [vmem:[#allocation2 + $0x160] sm:$0x1] }
 0x2fe   : > { %v4251_v9 = vsel %vm4161_vm0, %v4249_v50, %v4250_v44  ;;  %29829 = vst [vmem:[#allocation14_spill] sm:$0xff] %v26239_v24  ;;  %v29830_v44 = vrot.slane %v26086_v0, 1  ;;  %v29831_v50 = vrot.slane %v26155_v39, 1  ;;  %v26266_v39 = vld [vmem:[#allocation2 + $0x198] sm:$0xfe]  ;;  %v29841_v24 = vrot.slane %v26172_v2, 1 }
 0x2ff   : > { %v3764_v51 = vpop.f32.mrb[58].mxu1  ;;  %v4303_v34 = vpack.c.bf16 %v4251_v9, %v4239_v35  ;;  %v29843_v2 = vrot.slane %v26161_v17, 1  ;;  %v29846_v17 = vrot.slane %v26202_v15, 1  ;;  %v29850_v15 = vrot.slane %v26190_v3, 1 }
 0x300   : > { %v3770_v14 = vrot.slane %v3764_v51, 7  ;;  %v23850_v41 = vpop.f32.mrb[59].mxu1  ;;  %v4185_v55 = vsel %vm4161_vm0, %v29831_v50, %v29830_v44  ;;  %v4236_v50 = vsel %vm4161_vm0, %v4234_v62, %v4235_v4  ;;  %v26270_v62 = vld [vmem:[#allocation2 + $0x180] sm:$0xfe]  ;;  %v26272_v4 = vld [vmem:[#allocation2 + $0x1a0] sm:$0x1] }
 0x301   : > { %4619 = vmatprep.mubr.bf16.mxu1 %v4303_v34  ;;  %v4089_v56 = vld [vmem:[#allocation2 + $0x1c0] sm:$0xfe]  ;;  %v4093_v36 = vld [vmem:[#allocation2 + $0x1e0] sm:$0x1]  ;;  %v29833_v41 = vrot.slane %v26130_v63, 1  ;;  %v29836_v34 = vrot.slane %v26159_v43, 1 }
 0x302   : > { %3772 = vst [vmem:[#allocation2 + $0x1d0] sm:$0xfe] %v3770_v14  ;;  %3773 = vst [vmem:[#allocation2 + $0x1f0] sm:$0x1] %v3770_v14  ;;  %v4246_v9 = vrot.slane %v4089_v56, 1  ;;  %v4247_v35 = vrot.slane %v4093_v36, 1 }
 0x303   : > { %v3840_v49 = vpop.f32.mrb[60].mxu1  ;;  %v26258_v36 = vld [vmem:[#allocation2 + $0x170] sm:$0x1]  ;;  %v4173_v0 = vsel %vm4161_vm0, %v29833_v41, %v29832_v21  ;;  %v26280_v6 = vld [vmem:[#allocation2 + $0x1c0] sm:$0xfe]  ;;  %v29839_v21 = vrot.slane %v26198_v29, 1 }
 0x304   : > { %3915 = vst [vmem:[#allocation2 + $0x208] sm:$0xff] %v3840_v49  ;;  %v23857_v44 = vpop.f32.mrb[61].mxu1  ;;  %v4248_v14 = vsel %vm4161_vm0, %v4246_v9, %v4247_v35  ;;  %v5060_v56 = vpack.c.bf16 %v3840_v49, %v26181_v32  ;;  %v4293_v9 = vpack.c.bf16 %v4185_v55, %v4173_v0  ;;  %v26274_v35 = vld [vmem:[#allocation2 + $0x190] sm:$0xfe]  ;;  %v26276_v49 = vld [vmem:[#allocation2 + $0x1b0] sm:$0x1] }
 0x305   : > { %v4302_v7 = vpack.c.bf16 %v4248_v14, %v4236_v50  ;;  %v26268_v44 = vld [vmem:[#allocation2 + $0x188] sm:$0xfe]  ;;  %v26283_v41 = vld [vmem:[#allocation2 + $0x1e0] sm:$0x1]  ;;  %v29834_v55 = vrot.slane %v26136_v5, 1  ;;  %v29835_v0 = vrot.slane %v26133_v10, 1 }
 0x306   : > { %5376 = vmatprep.mubr.bf16.mxu0 %v5060_v56  ;;  %v26278_v50 = vld [vmem:[#allocation2 + $0x1c8] sm:$0xfe]  ;;  %v29837_v32 = vrot.slane %v26157_v42, 1  ;;  %v24272_v43 = vld [vmem:[%s29806_s2] sm:$0xff]   ;;  %v29840_v10 = vrot.slane %v26092_v26, 1  ;;  %v29842_v26 = vrot.slane %v26088_v20, 1 }
 0x307   : > { %v3910_v63 = vpop.f32.mrb[62].mxu1  ;;  %4620 = vmatmul.mubr.bf16.gmra.mrb[76].mxu1 %v4302_v7  ;;  %v4170_v56 = vsel %vm4161_vm0, %v29835_v0, %v29834_v55  ;;  %v29838_v7 = vrot.slane %v26094_v30, 1  ;;  %v24275_v29 = vld [vmem:[%s29806_s2 + $0x48] sm:$0xff]   ;;  %v26334_v55 = vld [vmem:[#allocation2 + $0x1c0] sm:$0xff]  ;;  %v29854_v3 = vrot.slane %v26166_v40, 1  ;;  %v29859_v40 = vrot.slane %v26151_v37, 1 }
 0x308   : > { %v3917_v14 = vrot.slane %v3910_v63, 7  ;;  %4660 = vmatprep.mubr.bf16.mxu1 %v4293_v9  ;;  %v23864_v51 = vpop.f32.mrb[63].mxu1  ;;  %v4182_v8 = vsel %vm4161_vm0, %v29837_v32, %v29836_v34  ;;  %v26300_v9 = vld [vmem:[#allocation2 + $0x1d8] sm:$0xfe]  ;;  %v4197_v34 = vsel %vm4161_vm0, %v29841_v24, %v29840_v10  ;;  %v5603_v24 = vsel %vm4161_vm0, %v29843_v2, %v29842_v26 }
 0x309   : > { %v4209_v63 = vsel %vm4161_vm0, %v29839_v21, %v29838_v7  ;;  %v26302_v51 = vld [vmem:[#allocation2 + $0x1d0] sm:$0xfe]  ;;  %v26304_v5 = vld [vmem:[#allocation2 + $0x1f0] sm:$0x1]  ;;  %v4255_v0 = vrot.slane %v26300_v9, 1  ;;  %v4292_v42 = vpack.c.bf16 %v4182_v8, %v4170_v56  ;;  %v24276_v9 = vld [vmem:[%s29806_s2 + $0x8] sm:$0xff]  }
 0x30a   : > { %3919 = vst [vmem:[#allocation2 + $0x200] sm:$0xfe] %v3917_v14  ;;  %3920 = vst [vmem:[#allocation2 + $0x220] sm:$0x1] %v3917_v14  ;;  %v4252_v7 = vrot.slane %v26302_v51, 1  ;;  %v4253_v32 = vrot.slane %v26304_v5, 1  ;;  %v4297_v14 = vpack.c.bf16 %v4209_v63, %v4197_v34 }
 0x30b   : > { %v26329_v21 = vld [vmem:[#allocation2 + $0x208] sm:$0xfe]  ;;  %v24279_v8 = vld [vmem:[%s29806_s2 + $0x50] sm:$0xff]   ;;  %v29844_v63 = vrot.slane %v26084_v19, 1  ;;  %v29845_v10 = vrot.slane %v26147_v25, 1 }
 0x30c   : > { %v5673_v34 = vrot.slane %v26329_v21, 1  ;;  %v24280_v19 = vld [vmem:[%s29806_s2 + $0x10] sm:$0xff]   ;;  %v24294_v21 = vld [vmem:[%s29806_s2 + $0x80] sm:$0xff]  }
 0x30f   : > { %4661 = vmatmul.mubr.bf16.vlgmr.msra.gmra.mrb[80].mxu1 %v4292_v42  ;;  %v5591_v42 = vsel %vm4161_vm0, %v29845_v10, %v29844_v63  ;;  %v29848_v63 = vrot.slane %v26113_v46, 1  ;;  %v29849_v10 = vrot.slane %v26233_v28, 1  ;;  %v29852_v46 = vrot.slane %v26105_v16, 1  ;;  %v24285_v16 = vld [vmem:[%s29806_s2 + $0x60] sm:$0xff]  }
 0x310   : > { %4668 = vmatprep.mubr.bf16.mxu1 %v4297_v14  ;;  %21978 = vmatpush3.bf16.msra.mxu1 %v24272_v43  ;;  %v29847_v43 = vrot.slane %v26200_v11, 1  ;;  %v5715_v2 = vpack.c.bf16 %v5603_v24, %v5591_v42  ;;  %v24283_v11 = vld [vmem:[%s29806_s2 + $0x58] sm:$0xff]   ;;  %v29853_v28 = vrot.slane %v26218_v22, 1  ;;  %v29856_v22 = vrot.slane %v26099_v45, 1 }
 0x311   : > { %21979 = vmatprep.subr.bf16.mxu1 %v24275_v29  ;;  %v5043_v56 = vld [vmem:[#allocation2 + $0x200] sm:$0xff]  ;;  %v29862_v45 = vrot.slane %v26258_v36, 1 }
 0x312   : > { %v26350_v30 = vld [vmem:[#allocation2 + $0x200] sm:$0xfe]  ;;  %v26352_v14 = vld [vmem:[#allocation2 + $0x220] sm:$0x1]  ;;  %v5059_v20 = vpack.c.bf16 %v5043_v56, %v26334_v55  ;;  %v4206_v29 = vsel %vm4161_vm0, %v29847_v43, %v29846_v17  ;;  %v4233_v56 = vsel %vm4161_vm0, %v29849_v10, %v29848_v63  ;;  %v29851_v17 = vrot.slane %v26184_v12, 1 }
 0x313   : > { %v5670_v25 = vrot.slane %v26350_v30, 1  ;;  %v5671_v26 = vrot.slane %v26352_v14, 1  ;;  %v4221_v42 = vsel %vm4161_vm0, %v29853_v28, %v29852_v46  ;;  %v29855_v12 = vrot.slane %v26163_v48, 1  ;;  %v24298_v30 = vld [vmem:[%s29806_s2 + $0x90] sm:$0xff]  }
 0x314   : > { %21980 = vmatpush3.bf16.msra.mxu1 %v24276_v9  ;;  %5377 = vmatmul.mubr.bf16.gmra.mrb[44].mxu0 %v5059_v20  ;;  %v4194_v43 = vsel %vm4161_vm0, %v29851_v17, %v29850_v15  ;;  %v4301_v63 = vpack.c.bf16 %v4233_v56, %v4221_v42  ;;  %v24284_v9 = vld [vmem:[%s29806_s2 + $0x18] sm:$0xff]   ;;  %v29860_v56 = vrot.slane %v26096_v31, 1  ;;  %v29861_v15 = vrot.slane %v26192_v23, 1  ;;  %v24287_v31 = vld [vmem:[%s29806_s2 + $0x68] sm:$0xff]  }
 0x315   : > { %6019 = vmatprep.mubr.bf16.mxu0 %v5715_v2  ;;  %v4296_v24 = vpack.c.bf16 %v4206_v29, %v4194_v43  ;;  %21981 = vmatprep.subr.bf16.mxu1 %v24279_v8  ;;  %v5600_v20 = vsel %vm4161_vm0, %v29855_v12, %v29854_v3  ;;  %v29857_v8 = vrot.slane %v26204_v27, 1  ;;  %v29858_v2 = vrot.slane %v26153_v38, 1  ;;  %v24286_v38 = vld [vmem:[%s29806_s2 + $0x20] sm:$0xff]   ;;  %v24288_v42 = vld [vmem:[%s29806_s2 + $0x28] sm:$0xff]  }
 0x316   : > { %v29863_v27 = vrot.slane %v26247_v59, 1  ;;  %v29865_v23 = vrot.slane %v26225_v13, 1  ;;  %v29866_v59 = vrot.slane %v26223_v61, 1  ;;  %v29867_v46 = vrot.slane %v26122_v57, 1  ;;  %v24289_v57 = vld [vmem:[%s29806_s2 + $0x70] sm:$0xff]  }
 0x317   : > { %4669 = vmatmul.mubr.bf16.gmra.mrb[84].mxu1 %v4296_v24  ;;  %v5627_v29 = vsel %vm4161_vm0, %v29857_v8, %v29856_v22  ;;  %v5588_v48 = vsel %vm4161_vm0, %v29859_v40, %v29858_v2  ;;  %v29869_v13 = vrot.slane %v26209_v53, 1  ;;  %v29870_v61 = vrot.slane %v26206_v33, 1  ;;  %v24292_v2 = vld [vmem:[%s29806_s2 + $0x38] sm:$0xff]  }
 0x318   : > { %4676 = vmatprep.mubr.bf16.mxu1 %v4301_v63  ;;  %21982 = vmatpush3.bf16.msra.mxu1 %v24280_v19  ;;  %v5714_v10 = vpack.c.bf16 %v5600_v20, %v5588_v48  ;;  %v5615_v19 = vsel %vm4161_vm0, %v29861_v15, %v29860_v56  ;;  %v4230_v17 = vsel %vm4161_vm0, %v29863_v27, %v29862_v45  ;;  %v29873_v12 = vrot.slane %v26196_v1, 1  ;;  %v3926_v20 = vld [vmem:[#allocation2 + $0x48] sm:$0xff]  ;;  %v24293_v48 = vld [vmem:[%s29806_s2 + $0xc0] sm:$0xff]   ;;  %v29884_v45 = vld [vmem:[#allocation13_spill] sm:$0xff] }
 0x319   : > { %21983 = vmatprep.subr.bf16.mxu1 %v24283_v11  ;;  %v5719_v37 = vpack.c.bf16 %v5627_v29, %v5615_v19  ;;  %v29864_v11 = vrot.slane %v26124_v58, 1  ;;  %v4218_v36 = vsel %vm4161_vm0, %v29866_v59, %v29865_v23  ;;  %v29868_v58 = vrot.slane %v26266_v39, 1  ;;  %v3925_v15 = vld [vmem:[#allocation2 + $0x40] sm:$0xff]  ;;  %v24295_v23 = vld [vmem:[%s29806_s2 + $0xc8] sm:$0xff]  }
 0x31a   : > { %v4300_v24 = vpack.c.bf16 %v4230_v17, %v4218_v36  ;;  %v5624_v63 = vsel %vm4161_vm0, %v29870_v61, %v29869_v13  ;;  %v29871_v39 = vrot.slane %v26118_v54, 1  ;;  %v29874_v53 = vrot.slane %v26194_v47, 1  ;;  %v24290_v47 = vld [vmem:[%s29806_s2 + $0x30] sm:$0xff]   ;;  %v29882_v19 = vld [vmem:[#allocation14_spill] sm:$0xff]  ;;  %v3934_v17 = vld [vmem:[#allocation2 + $0xc8] sm:$0xff] }
 0x31b   : > { %v4257_v43 = vsel %vm4161_vm0, %v4255_v0, %v29864_v11  ;;  %v4245_v0 = vsel %vm4161_vm0, %v29868_v58, %v29867_v46  ;;  %v29875_v22 = vrot.slane %v26116_v52, 1  ;;  %v29876_v8 = vrot.slane %v26235_v18, 1  ;;  %v24297_v46 = vld [vmem:[%s29806_s2 + $0xd0] sm:$0xff]   ;;  %v3933_v58 = vld [vmem:[#allocation2 + $0xc0] sm:$0xff]  ;;  %v3942_v13 = vld [vmem:[#allocation2 + $0x148] sm:$0xff] }
 0x31c   : > { %21984 = vmatpush3.bf16.msra.mxu1 %v24284_v9  ;;  %6020 = vmatmul.mubr.bf16.vlgmr.msra.gmra.mrb[48].mxu0 %v5714_v10  ;;  %v4305_v28 = vpack.c.bf16 %v4257_v43, %v4245_v0  ;;  %v29872_v9 = vrot.slane %v26268_v44, 1  ;;  %v5612_v33 = vsel %vm4161_vm0, %v29874_v53, %v29873_v12  ;;  %v4254_v54 = vsel %vm4161_vm0, %v4252_v7, %v4253_v32  ;;  %v24291_v44 = vld [vmem:[%s29806_s2 + $0x78] sm:$0xff]   ;;  %v26475_v32 = vld [vmem:[#allocation2] sm:$0xff]  ;;  %v24303_v12 = vld [vmem:[%s29806_s2 + $0xe8] sm:$0xff]  }
 0x31d   : > { %6027 = vmatprep.mubr.bf16.mxu0 %v5719_v37  ;;  %21985 = vmatprep.subr.bf16.mxu1 %v24285_v16  ;;  %v5718_v16 = vpack.c.bf16 %v5624_v63, %v5612_v33  ;;  %v5639_v29 = vsel %vm4161_vm0, %v29876_v8, %v29875_v22  ;;  %v29877_v52 = vrot.slane %v26276_v49, 1  ;;  %v29878_v18 = vrot.slane %v26274_v35, 1  ;;  %v29886_v37 = vld [vmem:[#allocation9_spill] sm:$0xff]  ;;  %v3929_v61 = vld [vmem:[#allocation2 + $0x80] sm:$0xff]  ;;  %v24304_v22 = vld [vmem:[%s29806_s2 + $0xa8] sm:$0xff]  }
 0x31e   : > { %v5651_v3 = vsel %vm4161_vm0, %v29872_v9, %v29871_v39  ;;  %v3954_v7 = vpack.c.bf16 %v3926_v20, %v26475_v32  ;;  %v29879_v40 = vrot.slane %v26272_v4, 1  ;;  %v29880_v49 = vrot.slane %v26270_v62, 1  ;;  %v3937_v39 = vld [vmem:[#allocation2 + $0x100] sm:$0xff]  ;;  %v29892_v20 = vld [vmem:[#allocation12_spill] sm:$0xff] }
 0x31f   : > { %4677 = vmatmul.mubr.bf16.gmra.mrb[88].mxu1 %v4300_v24  ;;  %v5723_v1 = vpack.c.bf16 %v5651_v3, %v5639_v29  ;;  %v4242_v5 = vsel %vm4161_vm0, %v29878_v18, %v29877_v52  ;;  %v29881_v10 = vrot.slane %v26128_v60, 1  ;;  %v29883_v4 = vrot.slane %v29882_v19, 1  ;;  %v24302_v9 = vld [vmem:[%s29806_s2 + $0xa0] sm:$0xff]   ;;  %v3946_v3 = vld [vmem:[#allocation2 + $0x188] sm:$0xff]  ;;  %v24305_v8 = vld [vmem:[%s29806_s2 + $0xf0] sm:$0xff]  }
 0x320   : > { %4684 = vmatprep.mubr.bf16.mxu1 %v4305_v28  ;;  %21986 = vmatpush3.bf16.msra.mxu1 %v24286_v38  ;;  %v4304_v51 = vpack.c.bf16 %v4254_v54, %v4242_v5  ;;  %v5648_v35 = vsel %vm4161_vm0, %v29880_v49, %v29879_v40  ;;  %v29885_v62 = vrot.slane %v29884_v45, 1  ;;  %v29887_v11 = vrot.slane %v29886_v37, 1  ;;  %v29891_v53 = vld [vmem:[#allocation10_spill] sm:$0xff]  ;;  %v26555_v29 = vld [vmem:[#allocation2 + $0x58] sm:$0xff]  ;;  %v24306_v54 = vld [vmem:[%s29806_s2 + $0xb0] sm:$0xff]  }
 0x321   : > { %21987 = vmatprep.subr.bf16.mxu1 %v24287_v31  ;;  %v5675_v56 = vsel %vm4161_vm0, %v5673_v34, %v29881_v10  ;;  %v29888_v43 = vrot.slane %v26278_v50, 1  ;;  %v3930_v31 = vld [vmem:[#allocation2 + $0x88] sm:$0xff]  ;;  %v3953_v59 = vpack.c.bf16 %v3925_v15, %v26475_v32  ;;  %v5672_v24 = vsel %vm4161_vm0, %v5670_v25, %v5671_v26  ;;  %v24299_v26 = vld [vmem:[%s29806_s2 + $0xd8] sm:$0xff]   ;;  %v24310_v40 = vld [vmem:[%s29806_s2 + $0x280] sm:$0xff]  }
 0x322   : > { %v5636_v27 = vsel %vm4161_vm0, %v29885_v62, %v29883_v4  ;;  %v3958_v36 = vpack.c.bf16 %v3934_v17, %v3930_v31  ;;  %v24296_v50 = vld [vmem:[%s29806_s2 + $0x88] sm:$0xff]   ;;  %v29889_v0 = vrot.slane %v26283_v41, 1  ;;  %v29890_v28 = vrot.slane %v26280_v6, 1  ;;  %v24300_v41 = vld [vmem:[%s29806_s2 + $0x98] sm:$0xff]   ;;  %v24313_v15 = vld [vmem:[%s29806_s2 + $0x2d0] sm:$0xff]  }
 0x323   : > { %v5722_v38 = vpack.c.bf16 %v5648_v35, %v5636_v27  ;;  %v5663_v60 = vsel %vm4161_vm0, %v29888_v43, %v29887_v11  ;;  %v3938_v25 = vld [vmem:[#allocation2 + $0x108] sm:$0xff]  ;;  %v3957_v63 = vpack.c.bf16 %v3933_v58, %v3929_v61  ;;  %v3961_v33 = vpack.c.bf16 %v29891_v53, %v3937_v39  ;;  %v24308_v5 = vld [vmem:[%s29806_s2 + $0xb8] sm:$0xff]   ;;  %v26590_v19 = vld [vmem:[#allocation2 + $0xd0] sm:$0xff] }
 0x324   : > { %21988 = vmatpush3.bf16.msra.mxu1 %v24288_v42  ;;  %6028 = vmatmul.mubr.bf16.gmra.mrb[52].mxu0 %v5718_v16  ;;  %v5727_v34 = vpack.c.bf16 %v5675_v56, %v5663_v60  ;;  %v5660_v42 = vsel %vm4161_vm0, %v29890_v28, %v29889_v0  ;;  %v3962_v6 = vpack.c.bf16 %v3942_v13, %v3938_v25  ;;  %v3932_v49 = vld [vmem:[#allocation2 + $0x98] sm:$0xff]  ;;  %v24311_v35 = vld [vmem:[%s29806_s2 + $0x2c8] sm:$0xff]   ;;  %v3931_v45 = vld [vmem:[#allocation2 + $0x90] sm:$0xff] }
 0x325   : > { %6035 = vmatprep.mubr.bf16.mxu0 %v5723_v1  ;;  %21989 = vmatprep.subr.bf16.mxu1 %v24289_v57  ;;  %v5726_v14 = vpack.c.bf16 %v5672_v24, %v5660_v42  ;;  %v24301_v57 = vld [vmem:[%s29806_s2 + $0xe0] sm:$0xff]   ;;  %v3966_v16 = vpack.c.bf16 %v29892_v20, %v3946_v3  ;;  %v24307_v1 = vld [vmem:[%s29806_s2 + $0xf8] sm:$0xff]   ;;  %v24312_v56 = vld [vmem:[%s29806_s2 + $0x288] sm:$0xff]  }
 0x326   : > { %v26592_v4 = vld [vmem:[#allocation2 + $0x158] sm:$0xff]  ;;  %v24314_v62 = vld [vmem:[%s29806_s2 + $0x290] sm:$0xff]   ;;  %v24317_v43 = vld [vmem:[%s29806_s2 + $0x2e0] sm:$0xff]  }
 0x327   : > { %4685 = vmatmul.mubr.bf16.gmra.mrb[92].mxu1 %v4304_v51  ;;  %v24309_v51 = vld [vmem:[%s29806_s2 + $0x2c0] sm:$0xff]   ;;  %v3940_v27 = vld [vmem:[#allocation2 + $0x118] sm:$0xff]  ;;  %v26608_v60 = vld [vmem:[#allocation2 + $0x150] sm:$0xff] }
 0x328   : > { %21990 = vmatpush3.bf16.msra.mxu1 %v24290_v47  ;;  %4917 = vmatprep.mubr.bf16.mxu1 %v3954_v7  ;;  %v3924_v47 = vld [vmem:[#allocation2 + $0x18] sm:$0xff]  ;;  %v26572_v7 = vld [vmem:[#allocation2 + $0x50] sm:$0xff]  ;;  %v3964_v37 = vpack.c.bf16 %v26592_v4, %v3940_v27  ;;  %v24318_v31 = vld [vmem:[%s29806_s2 + $0x2a0] sm:$0xff]  }
 0x329   : > { %21991 = vmatprep.subr.bf16.mxu1 %v24291_v44  ;;  %v29893_v44 = vld [vmem:[#allocation11_spill] sm:$0xff]  ;;  %v3956_v18 = vpack.c.bf16 %v26555_v29, %v3924_v47  ;;  %v24315_v17 = vld [vmem:[%s29806_s2 + $0x2d8] sm:$0xff]   ;;  %v26626_v58 = vld [vmem:[#allocation2 + $0x1d0] sm:$0xff] }
 0x32a   : > { %v3965_v52 = vpack.c.bf16 %v26334_v55, %v29893_v44  ;;  %v3923_v55 = vld [vmem:[#allocation2 + $0x10] sm:$0xff]  ;;  %v24316_v11 = vld [vmem:[%s29806_s2 + $0x298] sm:$0xff]   ;;  %v24320_v24 = vld [vmem:[%s29806_s2 + $0x2a8] sm:$0xff]  }
 0x32b   : > { %v3947_v0 = vld [vmem:[#allocation2 + $0x190] sm:$0xff]  ;;  %v24323_v42 = vld [vmem:[%s29806_s2 + $0x2f8] sm:$0xff]   ;;  %v24326_v25 = vld [vmem:[%s29806_s2 + $0x380] sm:$0xff]  }
 0x32c   : > { %21992 = vmatpush3.bf16.msra.mxu1 %v24292_v2  ;;  %6036 = vmatmul.mubr.bf16.gmra.mrb[56].mxu0 %v5722_v38  ;;  %v26574_v2 = vld [vmem:[#allocation2 + $0xd8] sm:$0xff]  ;;  %v3959_v38 = vpack.c.bf16 %v26590_v19, %v3931_v45  ;;  %v24322_v28 = vld [vmem:[%s29806_s2 + $0x2b0] sm:$0xff]   ;;  %v3967_v13 = vpack.c.bf16 %v26626_v58, %v3947_v0  ;;  %v5057_v44 = vpack.c.bf16 %v3947_v0, %v26608_v60 }
 0x32d   : > { %6043 = vmatprep.mubr.bf16.mxu0 %v5727_v34  ;;  %22017 = vmatprep.subr.bf16.mxu1 %v24293_v48  ;;  %v3955_v48 = vpack.c.bf16 %v26572_v7, %v3923_v55  ;;  %v3960_v10 = vpack.c.bf16 %v26574_v2, %v3932_v49  ;;  %v3939_v34 = vld [vmem:[#allocation2 + $0x110] sm:$0xff]  ;;  %v24324_v61 = vld [vmem:[%s29806_s2 + $0x2b8] sm:$0xff]  }
 0x32e   : > { %v24330_v39 = vld [vmem:[%s29806_s2 + $0x390] sm:$0xff]   ;;  %v24331_v3 = vld [vmem:[%s29806_s2 + $0x3d8] sm:$0xff]  }
 0x32f   : > { %4918 = vmatmul.mubr.bf16.vlgmr.msra.gmra.mrb[96].mxu1 %v3953_v59  ;;  %v24319_v59 = vld [vmem:[%s29806_s2 + $0x2e8] sm:$0xff]   ;;  %v24332_v53 = vld [vmem:[%s29806_s2 + $0x398] sm:$0xff]  }
 0x330   : > { %4925 = vmatprep.mubr.bf16.mxu1 %v3958_v36  ;;  %22018 = vmatpush3.bf16.msra.mxu1 %v24294_v21  ;;  %v26610_v21 = vld [vmem:[#allocation2 + $0x1d8] sm:$0xff]  ;;  %v3963_v36 = vpack.c.bf16 %v26608_v60, %v3939_v34 }
 0x331   : > { %22019 = vmatprep.subr.bf16.mxu1 %v24295_v23  ;;  %v3948_v23 = vld [vmem:[#allocation2 + $0x198] sm:$0xff] }
 0x332   : > { %v5473_v47 = vld [vmem:[#allocation2 + $0xb8] sm:$0x1] }
 0x333   : > { %v5608_v55 = vrot.slane %v5473_v47, 1 }
 0x334   : > { %22020 = vmatpush3.bf16.msra.mxu1 %v24296_v50  ;;  %6044 = vmatmul.mubr.bf16.gmra.mrb[60].mxu0 %v5726_v14  ;;  %v3968_v50 = vpack.c.bf16 %v26610_v21, %v3948_v23  ;;  %v5050_v14 = vpack.c.bf16 %v3932_v49, %v26555_v29  ;;  %v24334_v29 = vld [vmem:[%s29806_s2 + $0x3a0] sm:$0xff]   ;;  %v24337_v49 = vld [vmem:[%s29806_s2 + $0x3f0] sm:$0xff]  }
 0x335   : > { %22021 = vmatprep.subr.bf16.mxu1 %v24297_v46  ;;  %23867 = vmatprep.mubr.msk.f32.mxu0 %vm25273_vm1, %v26475_v32  ;;  %v24321_v46 = vld [vmem:[%s29806_s2 + $0x2f0] sm:$0xff]  }
 0x337   : > { %4926 = vmatmul.mubr.bf16.gmra.mrb[100].mxu1 %v3957_v63  ;;  %v5049_v63 = vpack.c.bf16 %v3931_v45, %v26572_v7  ;;  %v5465_v7 = vld [vmem:[#allocation2 + $0x78] sm:$0x1] }
 0x338   : > { %4933 = vmatprep.mubr.bf16.mxu1 %v3962_v6  ;;  %22022 = vmatpush3.bf16.msra.mxu1 %v24298_v30  ;;  %v24325_v30 = vld [vmem:[%s29806_s2 + $0x3c0] sm:$0xff]   ;;  %v5054_v6 = vpack.c.bf16 %v3940_v27, %v26574_v2  ;;  %v5489_v45 = vld [vmem:[#allocation2 + $0x138] sm:$0x1] }
 0x339   : > { %22023 = vmatprep.subr.bf16.mxu1 %v24299_v26  ;;  %v24327_v26 = vld [vmem:[%s29806_s2 + $0x3c8] sm:$0xff]  }
 0x33c   : > { %22024 = vmatpush3.bf16.msra.mxu1 %v24300_v41  ;;  %v24328_v41 = vld [vmem:[%s29806_s2 + $0x388] sm:$0xff]  }
 0x33d   : > { %22025 = vmatprep.subr.bf16.mxu1 %v24301_v57  ;;  %v24329_v57 = vld [vmem:[%s29806_s2 + $0x3d0] sm:$0xff]  }
 0x33f   : > { %4934 = vmatmul.mubr.bf16.gmra.mrb[104].mxu1 %v3961_v33  ;;  %v24333_v33 = vld [vmem:[%s29806_s2 + $0x3e0] sm:$0xff]  }
 0x340   : > { %4941 = vmatprep.mubr.bf16.mxu1 %v3966_v16  ;;  %22026 = vmatpush3.bf16.msra.mxu1 %v24302_v9  ;;  %v5053_v9 = vpack.c.bf16 %v3939_v34, %v26590_v19  ;;  %v24338_v19 = vld [vmem:[%s29806_s2 + $0x3b0] sm:$0xff]   ;;  %v5481_v34 = vld [vmem:[#allocation2 + $0xf8] sm:$0x1] }
 0x341   : > { %22027 = vmatprep.subr.bf16.mxu1 %v24303_v12  ;;  %v5058_v12 = vpack.c.bf16 %v3948_v23, %v26592_v4  ;;  %v5485_v4 = vld [vmem:[#allocation2 + $0x118] sm:$0xfe] }
 0x342   : > { %v5631_v23 = vrot.slane %v5485_v4, 1 }
 0x344   : > { %22028 = vmatpush3.bf16.msra.mxu1 %v24304_v22 }
 0x345   : > { %22029 = vmatprep.subr.bf16.mxu1 %v24305_v8 }
 0x347   : > { %4942 = vmatmul.mubr.bf16.gmra.mrb[108].mxu1 %v3965_v52  ;;  %v24335_v52 = vld [vmem:[%s29806_s2 + $0x3e8] sm:$0xff]  }
 0x348   : > { %22030 = vmatpush3.bf16.msra.mxu1 %v24306_v54  ;;  %4982 = vmatprep.mubr.bf16.mxu1 %v3956_v18  ;;  %v5469_v54 = vld [vmem:[#allocation2 + $0x98] sm:$0xfe] }
 0x349   : > { %22031 = vmatprep.subr.bf16.mxu1 %v24307_v1  ;;  %v5607_v2 = vrot.slane %v5469_v54, 1 }
 0x34c   : > { %22032 = vmatpush3.bf16.msra.mxu1 %v24308_v5  ;;  %v5062_v5 = vpack.c.bf16 %v26475_v32, %v26610_v21  ;;  %v5477_v21 = vld [vmem:[#allocation2 + $0xd8] sm:$0xfe] }
 0x34d   : > { %22097 = vmatprep.subr.bf16.mxu1 %v24309_v51  ;;  %v5461_v51 = vld [vmem:[#allocation2 + $0x58] sm:$0xfe] }
 0x34f   : > { %4983 = vmatmul.mubr.bf16.vlgmr.msra.gmra.mrb[112].mxu1 %v3955_v48  ;;  %v5596_v48 = vrot.slane %v5465_v7, 1  ;;  %v5504_v7 = vld [vmem:[#allocation2 + $0x1b0] sm:$0x1] }
 0x350   : > { %4990 = vmatprep.mubr.bf16.mxu1 %v3960_v10  ;;  %22098 = vmatpush3.bf16.msra.mxu1 %v24310_v40  ;;  %v24336_v40 = vld [vmem:[%s29806_s2 + $0x3a8] sm:$0xff]   ;;  %v5609_v10 = vsel %vm4161_vm0, %v5607_v2, %v5608_v55  ;;  %v5509_v55 = vld [vmem:[#allocation2 + $0x1d8] sm:$0xfe]  ;;  %v5653_v4 = vrot.slane %v5504_v7, 1 }
 0x351   : > { %22099 = vmatprep.subr.bf16.mxu1 %v24311_v35  ;;  %v5595_v35 = vrot.slane %v5461_v51, 1  ;;  %v5500_v51 = vld [vmem:[#allocation2 + $0x190] sm:$0xfe] }
 0x353   : > { %v5597_v27 = vsel %vm4161_vm0, %v5595_v35, %v5596_v48 }
 0x354   : > { %22100 = vmatpush3.bf16.msra.mxu1 %v24312_v56  ;;  %v5468_v56 = vld [vmem:[#allocation2 + $0x90] sm:$0xfe] }
 0x355   : > { %22101 = vmatprep.subr.bf16.mxu1 %v24313_v15  ;;  %v5472_v15 = vld [vmem:[#allocation2 + $0xb0] sm:$0x1] }
 0x356   : > { %v5605_v60 = vrot.slane %v5472_v15, 1 }
 0x357   : > { %4991 = vmatmul.mubr.bf16.gmra.mrb[116].mxu1 %v3959_v38  ;;  %v5460_v38 = vld [vmem:[#allocation2 + $0x50] sm:$0xfe] }
 0x358   : > { %4998 = vmatprep.mubr.bf16.mxu1 %v3964_v37  ;;  %22102 = vmatpush3.bf16.msra.mxu1 %v24314_v62  ;;  %v5061_v62 = vpack.c.bf16 %v26475_v32, %v26626_v58  ;;  %v5464_v37 = vld [vmem:[#allocation2 + $0x70] sm:$0x1] }
 0x359   : > { %22103 = vmatprep.subr.bf16.mxu1 %v24315_v17  ;;  %v24339_v17 = vld [vmem:[%s29806_s2 + $0x3f8] sm:$0xff]  }
 0x35c   : > { %22104 = vmatpush3.bf16.msra.mxu1 %v24316_v11  ;;  %v5717_v11 = vpack.c.bf16 %v5609_v10, %v5597_v27  ;;  %v5492_v10 = vld [vmem:[#allocation2 + $0x150] sm:$0xfe] }
 0x35d   : > { %22105 = vmatprep.subr.bf16.mxu1 %v24317_v43  ;;  %v5604_v43 = vrot.slane %v5468_v56, 1  ;;  %v5496_v56 = vld [vmem:[#allocation2 + $0x170] sm:$0x1] }
 0x35f   : > { %4999 = vmatmul.mubr.bf16.gmra.mrb[120].mxu1 %v3963_v36 }
 0x360   : > { %5006 = vmatprep.mubr.bf16.mxu1 %v3968_v50  ;;  %22106 = vmatpush3.bf16.msra.mxu1 %v24318_v31  ;;  %v24340_v50 = vld [vmem:[%s29806_s2 + $0x3b8] sm:$0xff]  }
 0x361   : > { %22107 = vmatprep.subr.bf16.mxu1 %v24319_v59  ;;  %v5632_v59 = vrot.slane %v5489_v45, 1  ;;  %v5667_v45 = vrot.slane %v5509_v55, 1 }
 0x364   : > { %22108 = vmatpush3.bf16.msra.mxu1 %v24320_v24  ;;  %v5592_v24 = vrot.slane %v5460_v38, 1  ;;  %v5640_v38 = vrot.slane %v5492_v10, 1 }
 0x365   : > { %22109 = vmatprep.subr.bf16.mxu1 %v24321_v46  ;;  %v5593_v46 = vrot.slane %v5464_v37, 1  ;;  %v5641_v37 = vrot.slane %v5496_v56, 1 }
 0x367   : > { %5007 = vmatmul.mubr.bf16.gmra.mrb[124].mxu1 %v3967_v13 }
 0x368   : > { %22110 = vmatpush3.bf16.msra.mxu1 %v24322_v28  ;;  %5417 = vmatprep.mubr.bf16.mxu1 %v5050_v14  ;;  %v5619_v28 = vrot.slane %v5477_v21, 1  ;;  %v5606_v14 = vsel %vm4161_vm0, %v5604_v43, %v5605_v60  ;;  %v5516_v60 = vld [vmem:[#allocation2 + $0x210] sm:$0xfe]  ;;  %v5520_v21 = vld [vmem:[#allocation2 + $0x230] sm:$0x1] }
 0x369   : > { %22111 = vmatprep.subr.bf16.mxu1 %v24323_v42  ;;  %v5620_v42 = vrot.slane %v5481_v34, 1 }
 0x36c   : > { %22112 = vmatpush3.bf16.msra.mxu1 %v24324_v61 }
 0x36d   : > { %22177 = vmatprep.subr.bf16.mxu1 %v24325_v30  ;;  %v5633_v30 = vsel %vm4161_vm0, %v5631_v23, %v5632_v59  ;;  %v5508_v59 = vld [vmem:[#allocation2 + $0x1d0] sm:$0xfe] }
 0x36f   : > { %5418 = vmatmul.mubr.bf16.vlgmr.msra.gmra.mrb[128].mxu1 %v5049_v63  ;;  %v5594_v63 = vsel %vm4161_vm0, %v5592_v24, %v5593_v46  ;;  %v5642_v46 = vsel %vm4161_vm0, %v5640_v38, %v5641_v37 }
 0x370   : > { %5425 = vmatprep.mubr.bf16.mxu1 %v5054_v6  ;;  %22178 = vmatpush3.bf16.msra.mxu1 %v24326_v25  ;;  %v5484_v25 = vld [vmem:[#allocation2 + $0x110] sm:$0xfe]  ;;  %v5501_v6 = vld [vmem:[#allocation2 + $0x198] sm:$0xfe] }
 0x371   : > { %22179 = vmatprep.subr.bf16.mxu1 %v24327_v26  ;;  %v5488_v26 = vld [vmem:[#allocation2 + $0x130] sm:$0x1] }
 0x374   : > { %22180 = vmatpush3.bf16.msra.mxu1 %v24328_v41  ;;  %v5505_v41 = vld [vmem:[#allocation2 + $0x1b8] sm:$0x1] }
 0x375   : > { %22181 = vmatprep.subr.bf16.mxu1 %v24329_v57  ;;  %v5716_v57 = vpack.c.bf16 %v5606_v14, %v5594_v63 }
 0x377   : > { %5426 = vmatmul.mubr.bf16.gmra.mrb[132].mxu1 %v5053_v9  ;;  %v5476_v9 = vld [vmem:[#allocation2 + $0xd0] sm:$0xfe] }
 0x378   : > { %5433 = vmatprep.mubr.bf16.mxu1 %v5058_v12  ;;  %22182 = vmatpush3.bf16.msra.mxu1 %v24330_v39  ;;  %v5621_v39 = vsel %vm4161_vm0, %v5619_v28, %v5620_v42  ;;  %v5616_v54 = vrot.slane %v5476_v9, 1  ;;  %v5676_v42 = vrot.slane %v5516_v60, 1  ;;  %v26721_v9 = vld [vmem:[#allocation2] sm:$0xff] }
 0x379   : > { %22183 = vmatprep.subr.bf16.mxu1 %v24331_v3  ;;  %v5480_v3 = vld [vmem:[#allocation2 + $0xf0] sm:$0x1]  ;;  %v5721_v12 = vpack.c.bf16 %v5633_v30, %v5621_v39 }
 0x37a   : > { %v21913_v20 = vpop.f32.mrb[64].mxu1  ;;  %v5617_v47 = vrot.slane %v5480_v3, 1 }
 0x37b   : > { %v21914_v16 = vpop.f32.mrb[65].mxu1 }
 0x37c   : > { %v26670_v22 = vadd.f32 %v21914_v16, %v21913_v20  ;;  %v21916_v8 = vpop.f32.mrb[66].mxu1  ;;  %22184 = vmatpush3.bf16.msra.mxu1 %v24332_v53  ;;  %v5628_v53 = vrot.slane %v5484_v25, 1  ;;  %v5493_v20 = vld [vmem:[#allocation2 + $0x158] sm:$0xfe]  ;;  %v5497_v16 = vld [vmem:[#allocation2 + $0x178] sm:$0x1]  ;;  %v5618_v2 = vsel %vm4161_vm0, %v5616_v54, %v5617_v47 }
 0x37d   : > { %v21917_v1 = vpop.f32.mrb[67].mxu1  ;;  %22185 = vmatprep.subr.bf16.mxu1 %v24333_v33  ;;  %v5629_v33 = vrot.slane %v5488_v26, 1  ;;  %v5664_v25 = vrot.slane %v5508_v59, 1 }
 0x37e   : > { %v26679_v18 = vadd.f32 %v21917_v1, %v21916_v8  ;;  %v5655_v8 = vrot.slane %v5501_v6, 1  ;;  %v5643_v1 = vrot.slane %v5493_v20, 1 }
 0x37f   : > { %5434 = vmatmul.mubr.bf16.gmra.mrb[136].mxu1 %v5057_v44  ;;  %v5644_v44 = vrot.slane %v5497_v16, 1 }
 0x380   : > { %5441 = vmatprep.mubr.bf16.mxu1 %v5062_v5  ;;  %22186 = vmatpush3.bf16.msra.mxu1 %v24334_v29  ;;  %v5656_v29 = vrot.slane %v5505_v41, 1 }
 0x381   : > { %22187 = vmatprep.subr.bf16.mxu1 %v24335_v52  ;;  %v5630_v52 = vsel %vm4161_vm0, %v5628_v53, %v5629_v33  ;;  %v5645_v48 = vsel %vm4161_vm0, %v5643_v1, %v5644_v44 }
 0x382   : > { %v5657_v5 = vsel %vm4161_vm0, %v5655_v8, %v5656_v29  ;;  %v5720_v35 = vpack.c.bf16 %v5630_v52, %v5618_v2 }
 0x383   : > { %v5725_v15 = vpack.c.bf16 %v5657_v5, %v5645_v48 }
 0x384   : > { %22188 = vmatpush3.bf16.msra.mxu1 %v24336_v40  ;;  %v5517_v40 = vld [vmem:[#allocation2 + $0x218] sm:$0xfe] }
 0x385   : > { %22189 = vmatprep.subr.bf16.mxu1 %v24337_v49  ;;  %v5521_v49 = vld [vmem:[#allocation2 + $0x238] sm:$0x1]  ;;  %v5679_v27 = vrot.slane %v5517_v40, 1 }
 0x387   : > { %v22073_v31 = vpop.f32.mrb[32].mxu0  ;;  %5442 = vmatmul.mubr.bf16.gmra.mrb[140].mxu1 %v5061_v62 }
 0x388   : > { %v22074_v36 = vpop.f32.mrb[33].mxu0  ;;  %22190 = vmatpush3.bf16.msra.mxu1 %v24338_v19  ;;  %6084 = vmatprep.mubr.bf16.mxu1 %v5717_v11  ;;  %v5652_v19 = vrot.slane %v5500_v51, 1 }
 0x389   : > { %v26702_v58 = vadd.f32 %v22074_v36, %v22073_v31  ;;  %v22076_v0 = vpop.f32.mrb[34].mxu0  ;;  %22191 = vmatprep.subr.bf16.mxu1 %v24339_v17  ;;  %v5680_v17 = vrot.slane %v5521_v49, 1  ;;  %v5512_v36 = vld [vmem:[#allocation2 + $0x1f0] sm:$0x1] }
 0x38a   : > { %v22077_v13 = vpop.f32.mrb[35].mxu0  ;;  %v5654_v43 = vsel %vm4161_vm0, %v5652_v19, %v5653_v4  ;;  %v5665_v26 = vrot.slane %v5512_v36, 1 }
 0x38b   : > { %v26705_v61 = vadd.f32 %v22077_v13, %v22076_v0  ;;  %v5681_v23 = vsel %vm4161_vm0, %v5679_v27, %v5680_v17  ;;  %v5724_v28 = vpack.c.bf16 %v5654_v43, %v5642_v46  ;;  %v5677_v13 = vrot.slane %v5520_v21, 1 }
 0x38c   : > { %22192 = vmatpush3.bf16.msra.mxu1 %v24340_v50  ;;  %v5666_v63 = vsel %vm4161_vm0, %v5664_v25, %v5665_v26 }
 0x38d   : > { %23905 = vmatprep.subr.mxu1 %v26475_v32  ;;  %v5513_v32 = vld [vmem:[#allocation2 + $0x1f8] sm:$0x1]  ;;  %v5678_v6 = vsel %vm4161_vm0, %v5676_v42, %v5677_v13 }
 0x38e   : > { %v5668_v62 = vrot.slane %v5513_v32, 1  ;;  %v5728_v41 = vpack.c.bf16 %v5678_v6, %v5666_v63 }
 0x38f   : > { %6085 = vmatmul.mubr.bf16.vlgmr.msra.gmra.mrb[144].mxu1 %v5716_v57 }
 0x390   : > { %6092 = vmatprep.mubr.bf16.mxu1 %v5721_v12  ;;  %v5669_v31 = vsel %vm4161_vm0, %v5667_v45, %v5668_v62 }
 0x391   : > { %v5729_v30 = vpack.c.bf16 %v5681_v23, %v5669_v31 }
 0x397   : > { %6093 = vmatmul.mubr.bf16.gmra.mrb[148].mxu1 %v5720_v35 }
 0x398   : > { %6100 = vmatprep.mubr.bf16.mxu1 %v5725_v15 }
 0x39a   : > { %v21919_v11 = vpop.f32.mrb[68].mxu1 }
 0x39b   : > { %v21920_v34 = vpop.f32.mrb[69].mxu1 }
 0x39c   : > { %v21921_v50 = vadd.f32 %v21920_v34, %v21919_v11  ;;  %v21922_v24 = vpop.f32.mrb[70].mxu1 }
 0x39d   : > { %v21923_v0 = vpop.f32.mrb[71].mxu1 }
 0x39e   : > { %v21924_v14 = vadd.f32 %v21923_v0, %v21922_v24 }
 0x39f   : > { %6101 = vmatmul.mubr.bf16.gmra.mrb[152].mxu1 %v5724_v28 }
 0x3a0   : > { %6108 = vmatprep.mubr.bf16.mxu1 %v5729_v30 }
 0x3a7   : > { %v22079_v57 = vpop.f32.mrb[36].mxu0  ;;  %6109 = vmatmul.mubr.bf16.gmra.mrb[156].mxu1 %v5728_v41 }
 0x3a8   : > { %v22080_v39 = vpop.f32.mrb[37].mxu0  ;;  %23907 = vmatprep.mubr.msk.f32.mxu1 %vm25273_vm1, %v26721_v9 }
 0x3a9   : > { %v26725_v3 = vadd.f32 %v22080_v39, %v22079_v57  ;;  %v22082_v12 = vpop.f32.mrb[38].mxu0 }
 0x3aa   : > { %v22083_v53 = vpop.f32.mrb[39].mxu0 }
 0x3ab   : > { %v26727_v33 = vadd.f32 %v22083_v53, %v22082_v12 }
 0x3ba   : > { %v21925_v20 = vpop.f32.mrb[72].mxu1 }
 0x3bb   : > { %v21926_v16 = vpop.f32.mrb[73].mxu1 }
 0x3bc   : > { %v21927_v8 = vadd.f32 %v21926_v16, %v21925_v20  ;;  %v21928_v29 = vpop.f32.mrb[74].mxu1 }
 0x3bd   : > { %v21929_v54 = vpop.f32.mrb[75].mxu1 }
 0x3be   : > { %v21930_v47 = vadd.f32 %v21929_v54, %v21928_v29 }
 0x3c7   : > { %v22085_v1 = vpop.f32.mrb[40].mxu0 }
 0x3c8   : > { %v22086_v44 = vpop.f32.mrb[41].mxu0 }
 0x3c9   : > { %v26729_v52 = vadd.f32 %v22086_v44, %v22085_v1  ;;  %v22088_v5 = vpop.f32.mrb[42].mxu0 }
 0x3ca   : > { %v22089_v51 = vpop.f32.mrb[43].mxu0 }
 0x3cb   : > { %v26731_v7 = vadd.f32 %v22089_v51, %v22088_v5 }
 0x3da   : > { %v21931_v32 = vpop.f32.mrb[76].mxu1 }
 0x3db   : > { %v21932_v2 = vpop.f32.mrb[77].mxu1 }
 0x3dc   : > { %v21933_v55 = vadd.f32 %v21932_v2, %v21931_v32  ;;  %v21934_v40 = vpop.f32.mrb[78].mxu1 }
 0x3dd   : > { %v21935_v49 = vpop.f32.mrb[79].mxu1 }
 0x3de   : > { %v21936_v35 = vadd.f32 %v21935_v49, %v21934_v40 }
 0x3e2   : > { %v21953_v48 = vpop.f32.mrb[80].mxu1 }
 0x3e3   : > { %v21954_v10 = vpop.f32.mrb[81].mxu1 }
 0x3e4   : > { %v21955_v56 = vadd.f32 %v21954_v10, %v21953_v48  ;;  %v21956_v15 = vpop.f32.mrb[82].mxu1 }
 0x3e5   : > { %v21957_v19 = vpop.f32.mrb[83].mxu1 }
 0x3e6   : > { %v4663_v4 = vadd.f32 %v21955_v56, %v26670_v22  ;;  %v21958_v45 = vadd.f32 %v21957_v19, %v21956_v15 }
 0x3e7   : > { %v22091_v62 = vpop.f32.mrb[44].mxu0 }
 0x3e8   : > { %v4666_v27 = vadd.f32 %v21958_v45, %v26679_v18  ;;  %v22092_v17 = vpop.f32.mrb[45].mxu0 }
 0x3e9   : > { %v26735_v38 = vadd.f32 %v22092_v17, %v22091_v62  ;;  %v22094_v37 = vpop.f32.mrb[46].mxu0 }
 0x3ea   : > { %v21959_v11 = vpop.f32.mrb[84].mxu1  ;;  %v22095_v43 = vpop.f32.mrb[47].mxu0 }
 0x3eb   : > { %v26737_v60 = vadd.f32 %v22095_v43, %v22094_v37  ;;  %v21960_v21 = vpop.f32.mrb[85].mxu1 }
 0x3ec   : > { %v21961_v34 = vadd.f32 %v21960_v21, %v21959_v11  ;;  %v21962_v31 = vpop.f32.mrb[86].mxu1 }
 0x3ed   : > { %v21963_v23 = vpop.f32.mrb[87].mxu1 }
 0x3ee   : > { %v4671_v59 = vadd.f32 %v21961_v34, %v21921_v50  ;;  %v21964_v36 = vadd.f32 %v21963_v23, %v21962_v31 }
 0x3ef   : > { %v22153_v24 = vpop.f32.mrb[48].mxu0 }
 0x3f0   : > { %v4674_v22 = vadd.f32 %v21964_v36, %v21924_v14  ;;  %v22154_v46 = vpop.f32.mrb[49].mxu0 }
 0x3f1   : > { %v26739_v0 = vadd.f32 %v22154_v46, %v22153_v24  ;;  %v22156_v18 = vpop.f32.mrb[50].mxu0 }
 0x3f2   : > { %v21965_v28 = vpop.f32.mrb[88].mxu1  ;;  %v22157_v42 = vpop.f32.mrb[51].mxu0 }
 0x3f3   : > { %v26741_v13 = vadd.f32 %v22157_v42, %v22156_v18  ;;  %v21966_v30 = vpop.f32.mrb[89].mxu1 }
 0x3f4   : > { %v21967_v25 = vadd.f32 %v21966_v30, %v21965_v28  ;;  %v21968_v26 = vpop.f32.mrb[90].mxu1 }
 0x3f5   : > { %v21969_v63 = vpop.f32.mrb[91].mxu1 }
 0x3f6   : > { %v4679_v6 = vadd.f32 %v21967_v25, %v21927_v8  ;;  %v21970_v41 = vadd.f32 %v21969_v63, %v21968_v26 }
 0x3f7   : > { %v22159_v57 = vpop.f32.mrb[52].mxu0 }
 0x3f8   : > { %v4682_v39 = vadd.f32 %v21970_v41, %v21930_v47  ;;  %v22160_v50 = vpop.f32.mrb[53].mxu0 }
 0x3f9   : > { %v26743_v12 = vadd.f32 %v22160_v50, %v22159_v57  ;;  %v22162_v14 = vpop.f32.mrb[54].mxu0 }
 0x3fa   : > { %v21971_v53 = vpop.f32.mrb[92].mxu1  ;;  %v22163_v20 = vpop.f32.mrb[55].mxu0 }
 0x3fb   : > { %v26745_v16 = vadd.f32 %v22163_v20, %v22162_v14  ;;  %v21972_v29 = vpop.f32.mrb[93].mxu1 }
 0x3fc   : > { %v21973_v54 = vadd.f32 %v21972_v29, %v21971_v53  ;;  %v21974_v1 = vpop.f32.mrb[94].mxu1 }
 0x3fd   : > { %v21975_v44 = vpop.f32.mrb[95].mxu1 }
 0x3fe   : > { %v4687_v5 = vadd.f32 %v21973_v54, %v21933_v55  ;;  %v21976_v51 = vadd.f32 %v21975_v44, %v21974_v1 }
 0x3ff   : > { %v22165_v32 = vpop.f32.mrb[56].mxu0 }
 0x400   : > { %v4690_v2 = vadd.f32 %v21976_v51, %v21936_v35  ;;  %v22166_v8 = vpop.f32.mrb[57].mxu0 }
 0x401   : > { %v26747_v40 = vadd.f32 %v22166_v8, %v22165_v32  ;;  %v22168_v47 = vpop.f32.mrb[58].mxu0 }
 0x402   : > { %v21993_v49 = vpop.f32.mrb[96].mxu1  ;;  %v22169_v48 = vpop.f32.mrb[59].mxu0 }
 0x403   : > { %v26749_v10 = vadd.f32 %v22169_v48, %v22168_v47  ;;  %v21994_v56 = vpop.f32.mrb[97].mxu1 }
 0x404   : > { %v21995_v15 = vadd.f32 %v21994_v56, %v21993_v49  ;;  %v21996_v19 = vpop.f32.mrb[98].mxu1 }
 0x405   : > { %v21997_v45 = vpop.f32.mrb[99].mxu1 }
 0x406   : > { %v4920_v62 = vadd.f32 %v21995_v15, %v4663_v4  ;;  %v21998_v17 = vadd.f32 %v21997_v45, %v21996_v19 }
 0x407   : > { %v22171_v37 = vpop.f32.mrb[60].mxu0 }
 0x408   : > { %v4923_v11 = vadd.f32 %v21998_v17, %v4666_v27  ;;  %v22172_v55 = vpop.f32.mrb[61].mxu0 }
 0x409   : > { %v26751_v43 = vadd.f32 %v22172_v55, %v22171_v37  ;;  %v22174_v35 = vpop.f32.mrb[62].mxu0 }
 0x40a   : > { %v21999_v21 = vpop.f32.mrb[100].mxu1  ;;  %v22175_v34 = vpop.f32.mrb[63].mxu0 }
 0x40b   : > { %v26753_v31 = vadd.f32 %v22175_v34, %v22174_v35  ;;  %v22000_v23 = vpop.f32.mrb[101].mxu1 }
 0x40c   : > { %v22001_v36 = vadd.f32 %v22000_v23, %v21999_v21  ;;  %v22002_v24 = vpop.f32.mrb[102].mxu1 }
 0x40d   : > { %v22003_v46 = vpop.f32.mrb[103].mxu1 }
 0x40e   : > { %v4928_v18 = vadd.f32 %v22001_v36, %v4671_v59  ;;  %v22004_v28 = vadd.f32 %v22003_v46, %v22002_v24 }
 0x410   : > { %v4931_v42 = vadd.f32 %v22004_v28, %v4674_v22 }
 0x412   : > { %v22005_v30 = vpop.f32.mrb[104].mxu1 }
 0x413   : > { %v22006_v4 = vpop.f32.mrb[105].mxu1 }
 0x414   : > { %v22007_v25 = vadd.f32 %v22006_v4, %v22005_v30  ;;  %v22008_v26 = vpop.f32.mrb[106].mxu1 }
 0x415   : > { %v22009_v27 = vpop.f32.mrb[107].mxu1 }
 0x416   : > { %v4936_v63 = vadd.f32 %v22007_v25, %v4679_v6  ;;  %v22010_v41 = vadd.f32 %v22009_v27, %v22008_v26 }
 0x418   : > { %v4939_v57 = vadd.f32 %v22010_v41, %v4682_v39 }
 0x41a   : > { %v22011_v50 = vpop.f32.mrb[108].mxu1 }
 0x41b   : > { %v22012_v14 = vpop.f32.mrb[109].mxu1 }
 0x41c   : > { %v22013_v53 = vadd.f32 %v22012_v14, %v22011_v50  ;;  %v22014_v20 = vpop.f32.mrb[110].mxu1 }
 0x41d   : > { %v22015_v29 = vpop.f32.mrb[111].mxu1 }
 0x41e   : > { %v4944_v54 = vadd.f32 %v22013_v53, %v4687_v5  ;;  %v22016_v1 = vadd.f32 %v22015_v29, %v22014_v20 }
 0x420   : > { %v4947_v44 = vadd.f32 %v22016_v1, %v4690_v2 }
 0x422   : > { %v22033_v51 = vpop.f32.mrb[112].mxu1 }
 0x423   : > { %v22034_v59 = vpop.f32.mrb[113].mxu1 }
 0x424   : > { %v22035_v32 = vadd.f32 %v22034_v59, %v22033_v51  ;;  %v22036_v22 = vpop.f32.mrb[114].mxu1 }
 0x425   : > { %v22037_v8 = vpop.f32.mrb[115].mxu1 }
 0x426   : > { %v4985_v47 = vadd.f32 %v22035_v32, %v4920_v62  ;;  %v22038_v49 = vadd.f32 %v22037_v8, %v22036_v22 }
 0x428   : > { %v4988_v48 = vadd.f32 %v22038_v49, %v4923_v11 }
 0x42a   : > { %v22039_v56 = vpop.f32.mrb[116].mxu1 }
 0x42b   : > { %v22040_v6 = vpop.f32.mrb[117].mxu1 }
 0x42c   : > { %v22041_v15 = vadd.f32 %v22040_v6, %v22039_v56  ;;  %v22042_v39 = vpop.f32.mrb[118].mxu1 }
 0x42d   : > { %v22043_v19 = vpop.f32.mrb[119].mxu1 }
 0x42e   : > { %v4993_v45 = vadd.f32 %v22041_v15, %v4928_v18  ;;  %v22044_v17 = vadd.f32 %v22043_v19, %v22042_v39 }
 0x430   : > { %v4996_v37 = vadd.f32 %v22044_v17, %v4931_v42 }
 0x432   : > { %v22045_v55 = vpop.f32.mrb[120].mxu1 }
 0x433   : > { %v22046_v5 = vpop.f32.mrb[121].mxu1 }
 0x434   : > { %v22047_v35 = vadd.f32 %v22046_v5, %v22045_v55  ;;  %v22048_v2 = vpop.f32.mrb[122].mxu1 }
 0x435   : > { %v22049_v21 = vpop.f32.mrb[123].mxu1 }
 0x436   : > { %v5001_v34 = vadd.f32 %v22047_v35, %v4936_v63  ;;  %v22050_v23 = vadd.f32 %v22049_v21, %v22048_v2 }
 0x438   : > { %v5004_v36 = vadd.f32 %v22050_v23, %v4939_v57 }
 0x43a   : > { %v22051_v24 = vpop.f32.mrb[124].mxu1 }
 0x43b   : > { %v22052_v62 = vpop.f32.mrb[125].mxu1 }
 0x43c   : > { %v22053_v46 = vadd.f32 %v22052_v62, %v22051_v24  ;;  %v22054_v11 = vpop.f32.mrb[126].mxu1 }
 0x43d   : > { %v22055_v28 = vpop.f32.mrb[127].mxu1 }
 0x43e   : > { %v5009_v30 = vadd.f32 %v22053_v46, %v4944_v54  ;;  %v22056_v4 = vadd.f32 %v22055_v28, %v22054_v11  ;;  %v26773_v46 = vld [vmem:[%s29807_s3 + $0x1] ss:$0 sm:$0xff] }
 0x440   : > { %v5012_v25 = vadd.f32 %v22056_v4, %v4947_v44 }
 0x442   : > { %v22113_v26 = vpop.f32.mrb[128].mxu1 }
 0x443   : > { %v22114_v18 = vpop.f32.mrb[129].mxu1 }
 0x444   : > { %v22115_v27 = vadd.f32 %v22114_v18, %v22113_v26  ;;  %v22116_v42 = vpop.f32.mrb[130].mxu1 }
 0x445   : > { %v22117_v41 = vpop.f32.mrb[131].mxu1 }
 0x446   : > { %v5420_v50 = vadd.f32 %v22115_v27, %v26702_v58  ;;  %v22118_v14 = vadd.f32 %v22117_v41, %v22116_v42 }
 0x448   : > { %v5450_v53 = vadd.f32 %v5420_v50, %v4985_v47  ;;  %v5423_v63 = vadd.f32 %v22118_v14, %v26705_v61 }
 0x44a   : > { %v5451_v57 = vadd.f32 %v5423_v63, %v4988_v48  ;;  %v22119_v20 = vpop.f32.mrb[132].mxu1 }
 0x44b   : > { %v22120_v29 = vpop.f32.mrb[133].mxu1 }
 0x44c   : > { %v22121_v1 = vadd.f32 %v22120_v29, %v22119_v20  ;;  %v22122_v51 = vpop.f32.mrb[134].mxu1 }
 0x44d   : > { %v22123_v59 = vpop.f32.mrb[135].mxu1 }
 0x44e   : > { %v5428_v54 = vadd.f32 %v22121_v1, %v26725_v3  ;;  %v22124_v44 = vadd.f32 %v22123_v59, %v22122_v51  ;;  %v29895_v51 = vld [vmem:[#allocation8_spill] sm:$0xff] }
 0x450   : > { %v5452_v32 = vadd.f32 %v5428_v54, %v4993_v45  ;;  %v5431_v22 = vadd.f32 %v22124_v44, %v26727_v33 }
 0x452   : > { %v5453_v8 = vadd.f32 %v5431_v22, %v4996_v37  ;;  %v22125_v49 = vpop.f32.mrb[136].mxu1 }
 0x453   : > { %v22126_v56 = vpop.f32.mrb[137].mxu1 }
 0x454   : > { %v22127_v58 = vadd.f32 %v22126_v56, %v22125_v49  ;;  %v22128_v6 = vpop.f32.mrb[138].mxu1 }
 0x455   : > { %v22129_v47 = vpop.f32.mrb[139].mxu1 }
 0x456   : > { %v5436_v61 = vadd.f32 %v22127_v58, %v26729_v52  ;;  %v22130_v48 = vadd.f32 %v22129_v47, %v22128_v6 }
 0x458   : > { %v5454_v15 = vadd.f32 %v5436_v61, %v5001_v34  ;;  %v5439_v39 = vadd.f32 %v22130_v48, %v26731_v7 }
 0x45a   : > { %v26761_v19 = vadd.f32 %v5439_v39, %v5004_v36  ;;  %v22131_v17 = vpop.f32.mrb[140].mxu1 }
 0x45b   : > { %v22132_v3 = vpop.f32.mrb[141].mxu1 }
 0x45c   : > { %v22133_v55 = vadd.f32 %v22132_v3, %v22131_v17  ;;  %v22134_v45 = vpop.f32.mrb[142].mxu1 }
 0x45d   : > { %v22135_v5 = vpop.f32.mrb[143].mxu1 }
 0x45e   : > { %v5444_v33 = vadd.f32 %v22133_v55, %v26735_v38  ;;  %v22136_v37 = vadd.f32 %v22135_v5, %v22134_v45 }
 0x460   : > { %v26764_v35 = vadd.f32 %v5444_v33, %v5009_v30  ;;  %v5447_v2 = vadd.f32 %v22136_v37, %v26737_v60 }
 0x462   : > { %v26767_v21 = vadd.f32 %v5447_v2, %v5012_v25  ;;  %v22193_v52 = vpop.f32.mrb[144].mxu1 }
 0x463   : > { %v22194_v34 = vpop.f32.mrb[145].mxu1 }
 0x464   : > { %v22195_v23 = vadd.f32 %v22194_v34, %v22193_v52  ;;  %v22196_v7 = vpop.f32.mrb[146].mxu1 }
 0x465   : > { %v22197_v36 = vpop.f32.mrb[147].mxu1 }
 0x466   : > { %v6087_v24 = vadd.f32 %v22195_v23, %v26739_v0  ;;  %v22198_v62 = vadd.f32 %v22197_v36, %v22196_v7  ;;  %v24341_v36 = vld [vmem:[%s29806_s2 + $0x540] sm:$0xff]  }
 0x468   : > { %v6117_v38 = vadd.f32 %v6087_v24, %v5450_v53  ;;  %v6090_v11 = vadd.f32 %v22198_v62, %v26741_v13  ;;  %v29894_v53 = vld [vmem:[#allocation7_spill] sm:$0xff]  ;;  %v24342_v24 = vld [vmem:[%s29806_s2 + $0x500] sm:$0xff]  }
 0x469   : > { %v24343_v62 = vld [vmem:[%s29806_s2 + $0x548] sm:$0xff]  }
 0x46a   : > { %v6130_v60 = vadd.f32 %v26773_v46, %v6117_v38  ;;  %v6118_v28 = vadd.f32 %v6090_v11, %v5451_v57  ;;  %v22199_v30 = vpop.f32.mrb[148].mxu1  ;;  %v24345_v38 = vld [vmem:[%s29806_s2 + $0x550] sm:$0xff]  }
 0x46b   : > { %v22200_v4 = vpop.f32.mrb[149].mxu1  ;;  %v24346_v11 = vld [vmem:[%s29806_s2 + $0x510] sm:$0xff]  }
 0x46c   : > { %v6131_v25 = vadd.f32 %v26773_v46, %v6118_v28  ;;  %v22201_v26 = vadd.f32 %v22200_v4, %v22199_v30  ;;  %v22202_v18 = vpop.f32.mrb[150].mxu1  ;;  %vm6138_vm8 = vcmp.gt.f32.partialorder %v6130_v60, 0.0  ;;  %v6146_v0 = vmul.f32 0.2, %v6130_v60  ;;  %v24349_v28 = vld [vmem:[%s29806_s2 + $0x5c0] sm:$0xff]   ;;  %v24348_v30 = vld [vmem:[%s29806_s2 + $0x518] sm:$0xff]  }
 0x46d   : > { %v22203_v27 = vpop.f32.mrb[151].mxu1  ;;  %v24351_v4 = vld [vmem:[%s29806_s2 + $0x560] sm:$0xff]  }
 0x46e   : > { %v6095_v42 = vadd.f32 %v22201_v26, %v26743_v12  ;;  %v22204_v41 = vadd.f32 %v22203_v27, %v22202_v18  ;;  %v6154_v50 = vsel %vm6138_vm8, %v6130_v60, %v6146_v0  ;;  %v6147_v63 = vmul.f32 0.2, %v6131_v25  ;;  %v24347_v60 = vld [vmem:[%s29806_s2 + $0x558] sm:$0xff]   ;;  %v24353_v26 = vld [vmem:[%s29806_s2 + $0x5c8] sm:$0xff]   ;;  %v24352_v18 = vld [vmem:[%s29806_s2 + $0x520] sm:$0xff]  }
 0x46f   : > { %23866 = vmatpush3.msra.mxu0 %v6154_v50  ;;  %vm6139_vm10 = vcmp.gt.f32.partialorder %v6131_v25, 0.0  ;;  %v24354_v0 = vld [vmem:[%s29806_s2 + $0x588] sm:$0xff]   ;;  %v24357_v27 = vld [vmem:[%s29806_s2 + $0x5d0] sm:$0xff]  }
 0x470   : > { %v6119_v14 = vadd.f32 %v6095_v42, %v5452_v32  ;;  %v6098_v13 = vadd.f32 %v22204_v41, %v26745_v16  ;;  %23868 = vmatmul.mubr.msk.f32.vlgmr.msra.gmra.mrb[64].mxu0 %vm6162_vm9, %v29894_v53  ;;  %23870 = vmatprep.subr.mxu0 %v26721_v9  ;;  %v6155_v59 = vsel %vm6139_vm10, %v6131_v25, %v6147_v63  ;;  %v24350_v25 = vld [vmem:[%s29806_s2 + $0x580] sm:$0xff]   ;;  %v24356_v42 = vld [vmem:[%s29806_s2 + $0x528] sm:$0xff]   ;;  %v24359_v41 = vld [vmem:[%s29806_s2 + $0x570] sm:$0xff]   ;;  %vm15210_vm10 = vcmask 15360  }
 0x471   : > { %23871 = vmatpush3.msra.mxu0 %v6154_v50  ;;  %23872 = vmatprep.mubr.msk.f32.mxu0 %vm25273_vm1, %v26721_v9  ;;  %v24358_v50 = vld [vmem:[%s29806_s2 + $0x590] sm:$0xff]  }
 0x472   : > { %v6120_v57 = vadd.f32 %v6098_v13, %v5453_v8  ;;  %v22205_v20 = vpop.f32.mrb[152].mxu1  ;;  %23875 = vmatprep.subr.mxu0 %v26721_v9  ;;  %v6132_v12 = vadd.f32 %v26773_v46, %v6119_v14  ;;  %v24360_v14 = vld [vmem:[%s29806_s2 + $0x530] sm:$0xff]   ;;  %v7405_v13 = vld [vmem:[#allocation3 + $0x8] sm:$0x1e] }
 0x473   : > { %v22206_v29 = vpop.f32.mrb[153].mxu1  ;;  %v7409_v63 = vpack.c.bf16 %v7405_v13, %v7405_v13 }
 0x474   : > { %v22207_v1 = vadd.f32 %v22206_v29, %v22205_v20  ;;  %v22208_v16 = vpop.f32.mrb[154].mxu1  ;;  %23873 = vmatmul.mubr.msk.f32.vlgmr.msra.gmra.mrb[66].mxu0 %vm6162_vm9, %v29895_v51  ;;  %v6148_v22 = vmul.f32 0.2, %v6132_v12  ;;  %vm6140_vm11 = vcmp.gt.f32.partialorder %v6132_v12, 0.0  ;;  %v6133_v6 = vadd.f32 %v26773_v46, %v6120_v57  ;;  %v7404_v57 = vld [vmem:[#allocation3] sm:$0x1e] }
 0x475   : > { %23876 = vmatpush3.msra.mxu0 %v6155_v59  ;;  %v22209_v54 = vpop.f32.mrb[155].mxu1  ;;  %23877 = vmatprep.mubr.msk.f32.mxu0 %vm25273_vm1, %v26721_v9  ;;  %v7408_v20 = vpack.c.bf16 %v7404_v57, %v7404_v57  ;;  %v7487_v29 = vshll.u32 %v7409_v63, 16 }
 0x476   : > { %v6103_v44 = vadd.f32 %v22207_v1, %v26747_v40  ;;  %v22210_v32 = vadd.f32 %v22209_v54, %v22208_v16  ;;  %23880 = vmatprep.subr.mxu0 %v26721_v9  ;;  %v6156_v61 = vsel %vm6140_vm11, %v6132_v12, %v6148_v22  ;;  %v6149_v37 = vmul.f32 0.2, %v6133_v6  ;;  %v24363_v12 = vld [vmem:[%s29806_s2 + $0x578] sm:$0xff]  }
 0x477   : > { %vm6141_vm14 = vcmp.gt.f32.partialorder %v6133_v6, 0.0  ;;  %v24364_v1 = vld [vmem:[%s29806_s2 + $0x538] sm:$0xff]   ;;  %v7480_v16 = vshll.u32 %v7408_v20, 16  ;;  %v7489_v54 = vrot.slane %v7487_v29, 1 }
 0x478   : > { %v6121_v8 = vadd.f32 %v6103_v44, %v5454_v15  ;;  %v6106_v49 = vadd.f32 %v22210_v32, %v26749_v10  ;;  %23878 = vmatmul.mubr.msk.f32.vlgmr.msra.gmra.mrb[68].mxu0 %vm6162_vm9, %v29894_v53  ;;  %v7478_v44 = vshrl.u32 %v7408_v20, 16 }
 0x479   : > { %23881 = vmatpush3.msra.mxu0 %v6155_v59  ;;  %23882 = vmatprep.mubr.msk.f32.mxu0 %vm25273_vm1, %v26721_v9  ;;  %v7485_v59 = vshrl.u32 %v7409_v63, 16  ;;  %v7482_v32 = vrot.slane %v7480_v16, 1 }
 0x47a   : > { %v6134_v56 = vadd.f32 %v26773_v46, %v6121_v8  ;;  %v6122_v58 = vadd.f32 %v6106_v49, %v26761_v19  ;;  %v22211_v40 = vpop.f32.mrb[156].mxu1  ;;  %23885 = vmatprep.subr.mxu0 %v26721_v9  ;;  %v24367_v8 = vld [vmem:[%s29806_s2 + $0x440] sm:$0xff]  }
 0x47b   : > { %v22212_v47 = vpop.f32.mrb[157].mxu1  ;;  %v7490_v22 = vor.u32 %v7489_v54, %v7485_v59  ;;  %v7483_v49 = vor.u32 %v7482_v32, %v7478_v44 }
 0x47c   : > { %v6135_v10 = vadd.f32 %v26773_v46, %v6122_v58  ;;  %v22213_v48 = vadd.f32 %v22212_v47, %v22211_v40  ;;  %v22214_v15 = vpop.f32.mrb[158].mxu1  ;;  %23883 = vmatmul.mubr.msk.f32.vlgmr.msra.gmra.mrb[70].mxu0 %vm6162_vm9, %v29895_v51  ;;  %vm6142_vm12 = vcmp.gt.f32.partialorder %v6134_v56, 0.0  ;;  %v6150_v39 = vmul.f32 0.2, %v6134_v56  ;;  %v24371_v58 = vld [vmem:[%s29806_s2 + $0x448] sm:$0xff]   ;;  %v24376_v47 = vld [vmem:[%s29806_s2 + $0x410] sm:$0xff]  }
 0x47d   : > { %23886 = vmatpush3.msra.mxu0 %v6156_v61  ;;  %v22215_v17 = vpop.f32.mrb[159].mxu1  ;;  %23887 = vmatprep.mubr.msk.f32.mxu0 %vm25273_vm1, %v26721_v9  ;;  %v24372_v40 = vld [vmem:[%s29806_s2 + $0x408] sm:$0xff]  }
 0x47e   : > { %v6111_v19 = vadd.f32 %v22213_v48, %v26751_v43  ;;  %v22216_v3 = vadd.f32 %v22215_v17, %v22214_v15  ;;  %23890 = vmatprep.subr.mxu0 %v26721_v9  ;;  %v6158_v55 = vsel %vm6142_vm12, %v6134_v56, %v6150_v39  ;;  %vm6143_vm13 = vcmp.gt.f32.partialorder %v6135_v10, 0.0  ;;  %v24368_v56 = vld [vmem:[%s29806_s2 + $0x400] sm:$0xff]   ;;  %v24361_v48 = vld [vmem:[%s29806_s2 + $0x5d8] sm:$0xff]  }
 0x47f   : > { %23906 = vmatpush3.msra.mxu1 %v6158_v55  ;;  %v6151_v45 = vmul.f32 0.2, %v6135_v10  ;;  %v24362_v15 = vld [vmem:[%s29806_s2 + $0x598] sm:$0xff]   ;;  %v24383_v39 = vld [vmem:[%s29806_s2 + $0x460] sm:$0xff]  }
 0x480   : > { %v6123_v5 = vadd.f32 %v6111_v19, %v26764_v35  ;;  %v6114_v33 = vadd.f32 %v22216_v3, %v26753_v31  ;;  %23888 = vmatmul.mubr.msk.f32.vlgmr.msra.gmra.mrb[72].mxu0 %vm6162_vm9, %v29894_v53  ;;  %23915 = vmatprep.subr.mxu1 %v26721_v9  ;;  %v6157_v35 = vsel %vm6141_vm14, %v6133_v6, %v6149_v37  ;;  %v24375_v6 = vld [vmem:[%s29806_s2 + $0x450] sm:$0xff]   ;;  %v24384_v17 = vld [vmem:[%s29806_s2 + $0x420] sm:$0xff]   ;;  %v24387_v19 = vld [vmem:[%s29806_s2 + $0x468] sm:$0xff]  }
 0x481   : > { %23891 = vmatpush3.msra.mxu0 %v6156_v61  ;;  %23908 = vmatmul.mubr.msk.f32.vlgmr.msra.gmra.mrb[160].mxu1 %vm6162_vm9, %v29894_v53  ;;  %v6159_v43 = vsel %vm6143_vm13, %v6135_v10, %v6151_v45  ;;  %v24379_v61 = vld [vmem:[%s29806_s2 + $0x458] sm:$0xff]   ;;  %v24388_v3 = vld [vmem:[%s29806_s2 + $0x428] sm:$0xff]   ;;  %v24366_v45 = vld [vmem:[%s29806_s2 + $0x5a0] sm:$0xff]  }
 0x482   : > { %v6136_v2 = vadd.f32 %v26773_v46, %v6123_v5  ;;  %v6124_v52 = vadd.f32 %v6114_v33, %v26767_v21  ;;  %23916 = vmatpush3.msra.mxu1 %v6159_v43  ;;  %23892 = vmatprep.mubr.msk.f32.mxu0 %vm25273_vm1, %v26721_v9  ;;  %v24380_v10 = vld [vmem:[%s29806_s2 + $0x418] sm:$0xff]   ;;  %v24369_v5 = vld [vmem:[%s29806_s2 + $0x5e8] sm:$0xff]   ;;  %v24391_v33 = vld [vmem:[%s29806_s2 + $0x470] sm:$0xff]  }
 0x483   : > { %23895 = vmatprep.subr.mxu0 %v26721_v9  ;;  %23917 = vmatprep.mubr.msk.f32.mxu1 %vm25273_vm1, %v26721_v9  ;;  %v24370_v37 = vld [vmem:[%s29806_s2 + $0x5a8] sm:$0xff]  }
 0x484   : > { %v6137_v31 = vadd.f32 %v26773_v46, %v6124_v52  ;;  %23893 = vmatmul.mubr.msk.f32.vlgmr.msra.gmra.mrb[74].mxu0 %vm6162_vm9, %v29895_v51  ;;  %23925 = vmatprep.subr.mxu1 %v26721_v9  ;;  %vm6144_vm15 = vcmp.gt.f32.partialorder %v6136_v2, 0.0  ;;  %v6152_v34 = vmul.f32 0.2, %v6136_v2  ;;  %v24344_v46 = vld [vmem:[%s29806_s2 + $0x508] sm:$0xff]   ;;  %v24395_v52 = vld [vmem:[%s29806_s2 + $0x478] sm:$0xff]  }
 0x485   : > { %23896 = vmatpush3.msra.mxu0 %v6157_v35  ;;  %23918 = vmatmul.mubr.msk.f32.vlgmr.msra.gmra.mrb[162].mxu1 %vm6162_vm9, %v29894_v53 }
 0x486   : > { %23897 = vmatprep.mubr.msk.f32.mxu0 %vm25273_vm1, %v26721_v9  ;;  %23900 = vmatprep.subr.mxu0 %v26721_v9  ;;  %v6160_v21 = vsel %vm6144_vm15, %v6136_v2, %v6152_v34  ;;  %vm6145_vm2 = vcmp.gt.f32.partialorder %v6137_v31, 0.0  ;;  %v6153_v23 = vmul.f32 0.2, %v6137_v31  ;;  %v24373_v2 = vld [vmem:[%s29806_s2 + $0x5f0] sm:$0xff]   ;;  %v24377_v34 = vld [vmem:[%s29806_s2 + $0x5f8] sm:$0xff]  }
 0x487   : > { %23926 = vmatpush3.msra.mxu1 %v6160_v21  ;;  %23927 = vmatprep.mubr.msk.f32.mxu1 %vm25273_vm1, %v26721_v9 }
 0x488   : > { %23898 = vmatmul.mubr.msk.f32.vlgmr.msra.gmra.mrb[76].mxu0 %vm6162_vm9, %v29894_v53  ;;  %23935 = vmatprep.subr.mxu1 %v26721_v9  ;;  %v6161_v7 = vsel %vm6145_vm2, %v6137_v31, %v6153_v23  ;;  %v24374_v31 = vld [vmem:[%s29806_s2 + $0x5b0] sm:$0xff]  }
 0x489   : > { %23901 = vmatpush3.msra.mxu0 %v6157_v35  ;;  %23928 = vmatmul.mubr.msk.f32.vlgmr.msra.gmra.mrb[164].mxu1 %vm6162_vm9, %v29894_v53  ;;  %v24396_v35 = vld [vmem:[%s29806_s2 + $0x438] sm:$0xff]  }
 0x48a   : > { %23936 = vmatpush3.msra.mxu1 %v6161_v7  ;;  %23902 = vmatprep.mubr.msk.f32.mxu0 %vm25273_vm1, %v26721_v9 }
 0x48b   : > { %23910 = vmatprep.subr.mxu0 %v26721_v9  ;;  %23937 = vmatprep.mubr.msk.f32.mxu1 %vm25273_vm1, %v26721_v9 }
 0x48c   : > { %23903 = vmatmul.mubr.msk.f32.vlgmr.msra.gmra.mrb[78].mxu0 %vm6162_vm9, %v29895_v51  ;;  %22249 = vmatprep.subr.bf16.mxu1 %v24341_v36  ;;  %v7331_v36 = vld [vmem:[#allocation3] sm:$0xf] }
 0x48d   : > { %23911 = vmatpush3.msra.mxu0 %v6158_v55  ;;  %23912 = vmatprep.mubr.msk.f32.mxu0 %vm25273_vm1, %v26721_v9  ;;  %v24365_v55 = vld [vmem:[%s29806_s2 + $0x5e0] sm:$0xff]  }
 0x48e   : > { %23920 = vmatprep.subr.mxu0 %v26721_v9  ;;  %23938 = vmatmul.mubr.msk.f32.vlgmr.msra.gmra.mrb[166].mxu1 %vm6162_vm9, %v29894_v53 }
 0x48f   : > { %22250 = vmatpush3.bf16.msra.mxu1 %v24342_v24  ;;  %7733 = vmatprep.mubr.bf16.mxu1 %v7490_v22  ;;  %v24378_v24 = vld [vmem:[%s29806_s2 + $0x5b8] sm:$0xff]  }
 0x490   : > { %23913 = vmatmul.mubr.msk.f32.vlgmr.msra.gmra.mrb[80].mxu0 %vm6162_vm9, %v29895_v51  ;;  %22251 = vmatprep.subr.bf16.mxu1 %v24343_v62  ;;  %v7335_v62 = vpack.c.bf16 %v7331_v36, %v7331_v36  ;;  %v24432_v36 = vld [vmem:[%s29806_s2 + $0x700] sm:$0xff]  }
 0x491   : > { %23921 = vmatpush3.msra.mxu0 %v6159_v43  ;;  %23922 = vmatprep.mubr.msk.f32.mxu0 %vm25273_vm1, %v26721_v9  ;;  %v24392_v43 = vld [vmem:[%s29806_s2 + $0x430] sm:$0xff]  }
 0x492   : > { %23930 = vmatprep.subr.mxu0 %v26721_v9 }
 0x493   : > { %22252 = vmatpush3.bf16.msra.mxu1 %v24344_v46  ;;  %v24400_v46 = vld [vmem:[%s29806_s2 + $0x600] sm:$0xff]  }
 0x494   : > { %23923 = vmatmul.mubr.msk.f32.vlgmr.msra.gmra.mrb[82].mxu0 %vm6162_vm9, %v29895_v51  ;;  %22253 = vmatprep.subr.bf16.mxu1 %v24345_v38  ;;  %v24381_v38 = vld [vmem:[%s29806_s2 + $0x4c0] sm:$0xff]  }
 0x495   : > { %23931 = vmatpush3.msra.mxu0 %v6160_v21  ;;  %23932 = vmatprep.mubr.msk.f32.mxu0 %vm25273_vm1, %v26721_v9  ;;  %v7332_v21 = vld [vmem:[#allocation3 + $0x8] sm:$0xf] }
 0x496   : > { %23940 = vmatprep.subr.mxu0 %v26721_v9  ;;  %v7336_v23 = vpack.c.bf16 %v7332_v21, %v7332_v21 }
 0x497   : > { %22254 = vmatpush3.bf16.msra.mxu1 %v24346_v11  ;;  %v24403_v11 = vld [vmem:[%s29806_s2 + $0x648] sm:$0xff]  }
 0x498   : > { %23933 = vmatmul.mubr.msk.f32.vlgmr.msra.gmra.mrb[84].mxu0 %vm6162_vm9, %v29895_v51  ;;  %22255 = vmatprep.subr.bf16.mxu1 %v24347_v60  ;;  %v24404_v60 = vld [vmem:[%s29806_s2 + $0x608] sm:$0xff]  }
 0x499   : > { %23941 = vmatpush3.msra.mxu0 %v6161_v7  ;;  %23942 = vmatprep.mubr.msk.f32.mxu0 %vm25273_vm1, %v26721_v9  ;;  %v24355_v9 = vld [vmem:[%s29806_s2 + $0x568] sm:$0xff]   ;;  %v24399_v7 = vld [vmem:[%s29806_s2 + $0x640] sm:$0xff]  }
 0x49a   : > { %22271 = vmatprep.subr.bf16.mxu0 %v24349_v28  ;;  %v24407_v28 = vld [vmem:[%s29806_s2 + $0x650] sm:$0xff]  }
 0x49b   : > { %22256 = vmatpush3.bf16.msra.mxu1 %v24348_v30  ;;  %v24408_v30 = vld [vmem:[%s29806_s2 + $0x610] sm:$0xff]  }
 0x49c   : > { %23943 = vmatmul.mubr.msk.f32.vlgmr.msra.gmra.mrb[86].mxu0 %vm6162_vm9, %v29895_v51  ;;  %22257 = vmatprep.subr.bf16.mxu1 %v24351_v4  ;;  %v24411_v4 = vld [vmem:[%s29806_s2 + $0x658] sm:$0xff]   ;;  %vm15213_vm9 = vcmask 1041408  }
 0x49d   : > { %22272 = vmatpush3.bf16.msra.mxu0 %v24350_v25  ;;  %v24412_v25 = vld [vmem:[%s29806_s2 + $0x618] sm:$0xff]  }
 0x49e   : > { %22273 = vmatprep.subr.bf16.mxu0 %v24353_v26  ;;  %v24415_v26 = vld [vmem:[%s29806_s2 + $0x660] sm:$0xff]  }
 0x49f   : > { %22258 = vmatpush3.bf16.msra.mxu1 %v24352_v18  ;;  %v24416_v18 = vld [vmem:[%s29806_s2 + $0x620] sm:$0xff]  }
 0x4a0   : > { %22259 = vmatprep.subr.bf16.mxu1 %v24355_v9  ;;  %v24419_v9 = vld [vmem:[%s29806_s2 + $0x668] sm:$0xff]  }
 0x4a1   : > { %22274 = vmatpush3.bf16.msra.mxu0 %v24354_v0  ;;  %v24420_v0 = vld [vmem:[%s29806_s2 + $0x628] sm:$0xff]  }
 0x4a2   : > { %22275 = vmatprep.subr.bf16.mxu0 %v24357_v27  ;;  %v24423_v27 = vld [vmem:[%s29806_s2 + $0x670] sm:$0xff]  }
 0x4a3   : > { %22260 = vmatpush3.bf16.msra.mxu1 %v24356_v42  ;;  %v24424_v42 = vld [vmem:[%s29806_s2 + $0x630] sm:$0xff]  }
 0x4a4   : > { %22261 = vmatprep.subr.bf16.mxu1 %v24359_v41  ;;  %v24427_v41 = vld [vmem:[%s29806_s2 + $0x678] sm:$0xff]  }
 0x4a5   : > { %22276 = vmatpush3.bf16.msra.mxu0 %v24358_v50  ;;  %v24428_v50 = vld [vmem:[%s29806_s2 + $0x638] sm:$0xff]  }
 0x4a6   : > { %22277 = vmatprep.subr.bf16.mxu0 %v24361_v48 }
 0x4a7   : > { %22262 = vmatpush3.bf16.msra.mxu1 %v24360_v14  ;;  %v24431_v14 = vld [vmem:[%s29806_s2 + $0x740] sm:$0xff]  }
 0x4a8   : > { %22263 = vmatprep.subr.bf16.mxu1 %v24363_v12 }
 0x4a9   : > { %22278 = vmatpush3.bf16.msra.mxu0 %v24362_v15 }
 0x4aa   : > { %22279 = vmatprep.subr.bf16.mxu0 %v24365_v55 }
 0x4ab   : > { %22264 = vmatpush3.bf16.msra.mxu1 %v24364_v1 }
 0x4ac   : > { %22293 = vmatprep.subr.bf16.mxu1 %v24367_v8 }
 0x4ad   : > { %22280 = vmatpush3.bf16.msra.mxu0 %v24366_v45 }
 0x4ae   : > { %7734 = vmatmul.mubr.bf16.vlgmr.msra.gmra.mrb[168].mxu1 %v7483_v49  ;;  %22281 = vmatprep.subr.bf16.mxu0 %v24369_v5 }
 0x4af   : > { %22294 = vmatpush3.bf16.msra.mxu1 %v24368_v56  ;;  %8005 = vmatprep.mubr.bf16.mxu1 %v7336_v23 }
 0x4b0   : > { %22295 = vmatprep.subr.bf16.mxu1 %v24371_v58 }
 0x4b1   : > { %22282 = vmatpush3.bf16.msra.mxu0 %v24370_v37  ;;  %v24382_v37 = vld [vmem:[%s29806_s2 + $0x480] sm:$0xff]  }
 0x4b2   : > { %22283 = vmatprep.subr.bf16.mxu0 %v24373_v2 }
 0x4b3   : > { %22296 = vmatpush3.bf16.msra.mxu1 %v24372_v40 }
 0x4b4   : > { %22297 = vmatprep.subr.bf16.mxu1 %v24375_v6 }
 0x4b5   : > { %22284 = vmatpush3.bf16.msra.mxu0 %v24374_v31 }
 0x4b6   : > { %22285 = vmatprep.subr.bf16.mxu0 %v24377_v34 }
 0x4b7   : > { %22298 = vmatpush3.bf16.msra.mxu1 %v24376_v47 }
 0x4b8   : > { %22299 = vmatprep.subr.bf16.mxu1 %v24379_v61 }
 0x4b9   : > { %22286 = vmatpush3.bf16.msra.mxu0 %v24378_v24 }
 0x4ba   : > { %22315 = vmatprep.subr.bf16.mxu0 %v24381_v38 }
 0x4bb   : > { %22300 = vmatpush3.bf16.msra.mxu1 %v24380_v10 }
 0x4bc   : > { %22301 = vmatprep.subr.bf16.mxu1 %v24383_v39 }
 0x4bf   : > { %22302 = vmatpush3.bf16.msra.mxu1 %v24384_v17 }
 0x4c0   : > { %22303 = vmatprep.subr.bf16.mxu1 %v24387_v19 }
 0x4c3   : > { %22304 = vmatpush3.bf16.msra.mxu1 %v24388_v3 }
 0x4c4   : > { %22305 = vmatprep.subr.bf16.mxu1 %v24391_v33 }
 0x4c7   : > { %22306 = vmatpush3.bf16.msra.mxu1 %v24392_v43 }
 0x4c8   : > { %22307 = vmatprep.subr.bf16.mxu1 %v24395_v52  ;;  %v24385_v52 = vld [vmem:[%s29806_s2 + $0x4c8] sm:$0xff]  }
 0x4cb   : > { %22308 = vmatpush3.bf16.msra.mxu1 %v24396_v35 }
 0x4cc   : > { %22337 = vmatprep.subr.bf16.mxu1 %v24399_v7 }
 0x4ce   : > { %8006 = vmatmul.mubr.bf16.vlgmr.msra.gmra.mrb[172].mxu1 %v7335_v62 }
 0x4cf   : > { %22338 = vmatpush3.bf16.msra.mxu1 %v24400_v46  ;;  %v24435_v46 = vld [vmem:[%s29806_s2 + $0x748] sm:$0xff]  }
 0x4d0   : > { %22339 = vmatprep.subr.bf16.mxu1 %v24403_v11  ;;  %v24386_v11 = vld [vmem:[%s29806_s2 + $0x488] sm:$0xff]  }
 0x4d3   : > { %22340 = vmatpush3.bf16.msra.mxu1 %v24404_v60 }
 0x4d4   : > { %22341 = vmatprep.subr.bf16.mxu1 %v24407_v28  ;;  %v24389_v28 = vld [vmem:[%s29806_s2 + $0x4d0] sm:$0xff]  }
 0x4d7   : > { %22342 = vmatpush3.bf16.msra.mxu1 %v24408_v30 }
 0x4d8   : > { %22343 = vmatprep.subr.bf16.mxu1 %v24411_v4 }
 0x4db   : > { %22344 = vmatpush3.bf16.msra.mxu1 %v24412_v25  ;;  %v24436_v25 = vld [vmem:[%s29806_s2 + $0x708] sm:$0xff]  }
 0x4dc   : > { %22345 = vmatprep.subr.bf16.mxu1 %v24415_v26 }
 0x4df   : > { %22346 = vmatpush3.bf16.msra.mxu1 %v24416_v18  ;;  %v24439_v18 = vld [vmem:[%s29806_s2 + $0x750] sm:$0xff]  }
 0x4e0   : > { %22347 = vmatprep.subr.bf16.mxu1 %v24419_v9  ;;  %v24390_v9 = vld [vmem:[%s29806_s2 + $0x490] sm:$0xff]  }
 0x4e3   : > { %22348 = vmatpush3.bf16.msra.mxu1 %v24420_v0 }
 0x4e4   : > { %22349 = vmatprep.subr.bf16.mxu1 %v24423_v27  ;;  %v24393_v27 = vld [vmem:[%s29806_s2 + $0x4d8] sm:$0xff]  }
 0x4e7   : > { %22350 = vmatpush3.bf16.msra.mxu1 %v24424_v42 }
 0x4e8   : > { %22351 = vmatprep.subr.bf16.mxu1 %v24427_v41 }
 0x4eb   : > { %22352 = vmatpush3.bf16.msra.mxu1 %v24428_v50  ;;  %v24440_v50 = vld [vmem:[%s29806_s2 + $0x710] sm:$0xff]  }
 0x4ec   : > { %22381 = vmatprep.subr.bf16.mxu1 %v24431_v14 }
 0x543   : > { %v6231_v13 = vpop.f32.mrb[64].mxu0 }
 0x544   : > { %6307 = vst [vmem:[#allocation3 + $0x18] sm:$0xf] %v6231_v13  ;;  %v23869_v63 = vpop.f32.mrb[65].mxu0  ;;  %v24443_v13 = vld [vmem:[%s29806_s2 + $0x758] sm:$0xff]  }
 0x547   : > { %v6303_v57 = vpop.f32.mrb[66].mxu0 }
 0x548   : > { %v6309_v20 = vrot.slane %v6303_v57, 7  ;;  %v23874_v12 = vpop.f32.mrb[67].mxu0  ;;  %v24394_v57 = vld [vmem:[%s29806_s2 + $0x498] sm:$0xff]  }
 0x549   : > { %v24397_v12 = vld [vmem:[%s29806_s2 + $0x4e0] sm:$0xff]  }
 0x54a   : > { %6311 = vst [vmem:[#allocation3 + $0x10] sm:$0x1e] %v6309_v20 }
 0x54b   : > { %v7407_v29 = vld [vmem:[#allocation3 + $0x18] sm:$0x1e]  ;;  %v6378_v1 = vpop.f32.mrb[68].mxu0 }
 0x54c   : > { %v7411_v16 = vpack.c.bf16 %v7407_v29, %v7407_v29  ;;  %6453 = vst [vmem:[#allocation3 + $0x28] sm:$0xf] %v6378_v1  ;;  %v23879_v59 = vpop.f32.mrb[69].mxu0  ;;  %v7334_v45 = vld [vmem:[#allocation3 + $0x18] sm:$0xf] }
 0x54d   : > { %v7338_v23 = vpack.c.bf16 %v7334_v45, %v7334_v45  ;;  %v24447_v59 = vld [vmem:[%s29806_s2 + $0x760] sm:$0xff]  }
 0x54e   : > { %v7501_v54 = vshll.u32 %v7411_v16, 16  ;;  %v7499_v32 = vshrl.u32 %v7411_v16, 16  ;;  %v24444_v16 = vld [vmem:[%s29806_s2 + $0x718] sm:$0xff]  }
 0x54f   : > { %v6448_v44 = vpop.f32.mrb[70].mxu0 }
 0x550   : > { %v7503_v22 = vrot.slane %v7501_v54, 1  ;;  %v6455_v8 = vrot.slane %v6448_v44, 7  ;;  %v23884_v49 = vpop.f32.mrb[71].mxu0  ;;  %v24398_v54 = vld [vmem:[%s29806_s2 + $0x4a0] sm:$0xff]  }
 0x551   : > { %v7406_v56 = vld [vmem:[#allocation3 + $0x10] sm:$0x1e]  ;;  %v24448_v49 = vld [vmem:[%s29806_s2 + $0x720] sm:$0xff]  }
 0x552   : > { %v7504_v58 = vor.u32 %v7503_v22, %v7499_v32  ;;  %v7410_v40 = vpack.c.bf16 %v7406_v56, %v7406_v56  ;;  %6457 = vst [vmem:[#allocation3 + $0x20] sm:$0x1e] %v6455_v8  ;;  %v24401_v32 = vld [vmem:[%s29806_s2 + $0x4e8] sm:$0xff]  }
 0x553   : > { %v6524_v6 = vpop.f32.mrb[72].mxu0  ;;  %v8054_v47 = vld [vmem:[#allocation3 + $0x28] sm:$0xf] }
 0x554   : > { %v8400_v61 = vld [vmem:[#allocation3 + $0x28] sm:$0x1e]  ;;  %7773 = vmatprep.mubr.bf16.mxu0 %v7504_v58  ;;  %v7494_v10 = vshll.u32 %v7410_v40, 16  ;;  %6598 = vst [vmem:[#allocation3 + $0x38] sm:$0xf] %v6524_v6  ;;  %v23889_v48 = vpop.f32.mrb[73].mxu0  ;;  %v8058_v15 = vpack.c.bf16 %v8054_v47, %v8054_v47 }
 0x555   : > { %v8404_v39 = vpack.c.bf16 %v8400_v61, %v8400_v61  ;;  %v6815_v17 = vpop.f32.mrb[160].mxu1  ;;  %v7492_v3 = vshrl.u32 %v7410_v40, 16  ;;  %v24451_v58 = vld [vmem:[%s29806_s2 + $0x768] sm:$0xff]   ;;  %v24405_v47 = vld [vmem:[%s29806_s2 + $0x4f0] sm:$0xff]  }
 0x556   : > { %6889 = vst [vmem:[#allocation3 + $0x58] sm:$0xf] %v6815_v17  ;;  %v23909_v19 = vpop.f32.mrb[161].mxu1  ;;  %v7496_v55 = vrot.slane %v7494_v10, 1  ;;  %8350 = vmatprep.mubr.bf16.mxu1 %v8058_v15  ;;  %v24402_v40 = vld [vmem:[%s29806_s2 + $0x4a8] sm:$0xff]   ;;  %v24406_v17 = vld [vmem:[%s29806_s2 + $0x4b0] sm:$0xff]  }
 0x557   : > { %v8480_v5 = vshrl.u32 %v8404_v39, 16  ;;  %v8482_v33 = vshll.u32 %v8404_v39, 16  ;;  %v6594_v43 = vpop.f32.mrb[74].mxu0  ;;  %v24452_v15 = vld [vmem:[%s29806_s2 + $0x728] sm:$0xff]   ;;  %v24455_v39 = vld [vmem:[%s29806_s2 + $0x770] sm:$0xff]  }
 0x558   : > { %v7497_v2 = vor.u32 %v7496_v55, %v7492_v3  ;;  %v6600_v31 = vrot.slane %v6594_v43, 7  ;;  %v23894_v35 = vpop.f32.mrb[75].mxu0  ;;  %v6960_v21 = vpop.f32.mrb[162].mxu1  ;;  %v24409_v3 = vld [vmem:[%s29806_s2 + $0x4f8] sm:$0xff]  }
 0x559   : > { %v8484_v34 = vrot.slane %v8482_v33, 1  ;;  %v8053_v7 = vld [vmem:[#allocation3 + $0x20] sm:$0xf]  ;;  %7035 = vst [vmem:[#allocation3 + $0x68] sm:$0xf] %v6960_v21  ;;  %v23919_v24 = vpop.f32.mrb[163].mxu1 }
 0x55a   : > { %7774 = vmatmul.mubr.bf16.vlgmr.msra.gmra.mrb[88].mxu0 %v7497_v2  ;;  %6602 = vst [vmem:[#allocation3 + $0x30] sm:$0x1e] %v6600_v31  ;;  %v8057_v62 = vpack.c.bf16 %v8053_v7, %v8053_v7  ;;  %v8399_v56 = vld [vmem:[#allocation3 + $0x20] sm:$0x1e]  ;;  %v24456_v33 = vld [vmem:[%s29806_s2 + $0x730] sm:$0xff]   ;;  %v24410_v43 = vld [vmem:[%s29806_s2 + $0x4b8] sm:$0xff]  }
 0x55b   : > { %v8485_v38 = vor.u32 %v8484_v34, %v8480_v5  ;;  %22316 = vmatpush3.bf16.msra.mxu0 %v24382_v37  ;;  %8045 = vmatprep.mubr.bf16.mxu0 %v7338_v23  ;;  %v6669_v60 = vpop.f32.mrb[76].mxu0  ;;  %v8403_v61 = vpack.c.bf16 %v8399_v56, %v8399_v56  ;;  %v24459_v37 = vld [vmem:[%s29806_s2 + $0x778] sm:$0xff]   ;;  %v24413_v2 = vld [vmem:[%s29806_s2 + $0x6c0] sm:$0xff]   ;;  %v7333_v34 = vld [vmem:[#allocation3 + $0x10] sm:$0xf] }
 0x55c   : > { %22317 = vmatprep.subr.bf16.mxu0 %v24385_v52  ;;  %8351 = vmatmul.mubr.bf16.vlgmr.msra.gmra.mrb[176].mxu1 %v8057_v62  ;;  %6744 = vst [vmem:[#allocation3 + $0x48] sm:$0xf] %v6669_v60  ;;  %v23899_v30 = vpop.f32.mrb[77].mxu0  ;;  %v7106_v4 = vpop.f32.mrb[164].mxu1  ;;  %v8056_v52 = vld [vmem:[#allocation3 + $0x38] sm:$0xf] }
 0x55d   : > { %22382 = vmatpush3.bf16.msra.mxu1 %v24432_v36  ;;  %8728 = vmatprep.mubr.bf16.mxu1 %v8485_v38  ;;  %7180 = vst [vmem:[#allocation3 + $0x78] sm:$0xf] %v7106_v4  ;;  %v23929_v26 = vpop.f32.mrb[165].mxu1  ;;  %v8475_v55 = vshll.u32 %v8403_v61, 16  ;;  %v8473_v31 = vshrl.u32 %v8403_v61, 16  ;;  %v24460_v21 = vld [vmem:[%s29806_s2 + $0x738] sm:$0xff]   ;;  %v8060_v7 = vpack.c.bf16 %v8056_v52, %v8056_v52  ;;  %v7337_v36 = vpack.c.bf16 %v7333_v34, %v7333_v34 }
 0x55e   : > { %22383 = vmatprep.subr.bf16.mxu1 %v24435_v46  ;;  %v24414_v23 = vld [vmem:[%s29806_s2 + $0x680] sm:$0xff]   ;;  %v24417_v24 = vld [vmem:[%s29806_s2 + $0x6c8] sm:$0xff]   ;;  %v24422_v60 = vld [vmem:[%s29806_s2 + $0x690] sm:$0xff]  }
 0x55f   : > { %22318 = vmatpush3.bf16.msra.mxu0 %v24386_v11  ;;  %v6739_v0 = vpop.f32.mrb[78].mxu0  ;;  %v8477_v35 = vrot.slane %v8475_v55, 1  ;;  %v27164_v46 = vld [vmem:[#allocation2] sm:$0xff]  ;;  %v24418_v38 = vld [vmem:[%s29806_s2 + $0x688] sm:$0xff]   ;;  %v24421_v11 = vld [vmem:[%s29806_s2 + $0x6d0] sm:$0xff]  }
 0x560   : > { %22319 = vmatprep.subr.bf16.mxu0 %v24389_v28  ;;  %v6746_v42 = vrot.slane %v6739_v0, 7  ;;  %v23904_v41 = vpop.f32.mrb[79].mxu0  ;;  %v24425_v28 = vld [vmem:[%s29806_s2 + $0x6d8] sm:$0xff]   ;;  %v24429_v4 = vld [vmem:[%s29806_s2 + $0x6e0] sm:$0xff]   ;;  %v24433_v26 = vld [vmem:[%s29806_s2 + $0x6e8] sm:$0xff]  }
 0x561   : > { %22384 = vmatpush3.bf16.msra.mxu1 %v24436_v25  ;;  %v7251_v14 = vpop.f32.mrb[166].mxu1  ;;  %v8478_v62 = vor.u32 %v8477_v35, %v8473_v31  ;;  %v24426_v30 = vld [vmem:[%s29806_s2 + $0x698] sm:$0xff]   ;;  %v24430_v25 = vld [vmem:[%s29806_s2 + $0x6a0] sm:$0xff]   ;;  %v24434_v0 = vld [vmem:[%s29806_s2 + $0x6a8] sm:$0xff]  }
 0x562   : > { %22385 = vmatprep.subr.bf16.mxu1 %v24439_v18  ;;  %6748 = vst [vmem:[#allocation3 + $0x40] sm:$0x1e] %v6746_v42  ;;  %7326 = vst [vmem:[#allocation3 + $0x88] sm:$0xf] %v7251_v14  ;;  %v23939_v63 = vpop.f32.mrb[167].mxu1  ;;  %v24438_v41 = vld [vmem:[%s29806_s2 + $0x6b0] sm:$0xff]  }
 0x563   : > { %22320 = vmatpush3.bf16.msra.mxu0 %v24390_v9  ;;  %v6885_v20 = vpop.f32.mrb[80].mxu0  ;;  %v8402_v18 = vld [vmem:[#allocation3 + $0x38] sm:$0x1e]  ;;  %v8055_v63 = vld [vmem:[#allocation3 + $0x30] sm:$0xf]  ;;  %v24462_v56 = vld [vmem:[%s29806_s2 + $0x7a0] sm:$0xff]  }
 0x564   : > { %22321 = vmatprep.subr.bf16.mxu0 %v24393_v27  ;;  %v6891_v29 = vrot.slane %v6885_v20, 7  ;;  %v23914_v1 = vpop.f32.mrb[81].mxu0  ;;  %v24437_v27 = vld [vmem:[%s29806_s2 + $0x6f0] sm:$0xff]   ;;  %v8406_v42 = vpack.c.bf16 %v8402_v18, %v8402_v18 }
 0x565   : > { %22386 = vmatpush3.bf16.msra.mxu1 %v24440_v50  ;;  %v24441_v50 = vld [vmem:[%s29806_s2 + $0x6f8] sm:$0xff]   ;;  %v24446_v1 = vld [vmem:[%s29806_s2 + $0x780] sm:$0xff]  }
 0x566   : > { %22387 = vmatprep.subr.bf16.mxu1 %v24443_v13  ;;  %6893 = vst [vmem:[#allocation3 + $0x50] sm:$0x1e] %v6891_v29  ;;  %v8496_v14 = vshll.u32 %v8406_v42, 16  ;;  %v24442_v13 = vld [vmem:[%s29806_s2 + $0x6b8] sm:$0xff]   ;;  %v8494_v20 = vshrl.u32 %v8406_v42, 16  ;;  %v8059_v29 = vpack.c.bf16 %v8055_v63, %v8055_v63 }
 0x567   : > { %22322 = vmatpush3.bf16.msra.mxu0 %v24394_v57  ;;  %v7030_v44 = vpop.f32.mrb[82].mxu0  ;;  %v24445_v57 = vld [vmem:[%s29806_s2 + $0x7c0] sm:$0xff]  }
 0x568   : > { %22323 = vmatprep.subr.bf16.mxu0 %v24397_v12  ;;  %v7037_v22 = vrot.slane %v7030_v44, 7  ;;  %v23924_v8 = vpop.f32.mrb[83].mxu0  ;;  %v8498_v12 = vrot.slane %v8496_v14, 1  ;;  %v24453_v44 = vld [vmem:[%s29806_s2 + $0x7d0] sm:$0xff]  }
 0x569   : > { %22388 = vmatpush3.bf16.msra.mxu1 %v24444_v16  ;;  %v24449_v16 = vld [vmem:[%s29806_s2 + $0x7c8] sm:$0xff]   ;;  %v24458_v8 = vld [vmem:[%s29806_s2 + $0x798] sm:$0xff]  }
 0x56a   : > { %22389 = vmatprep.subr.bf16.mxu1 %v24447_v59  ;;  %7039 = vst [vmem:[#allocation3 + $0x60] sm:$0x1e] %v7037_v22  ;;  %v8499_v59 = vor.u32 %v8498_v12, %v8494_v20  ;;  %v24457_v22 = vld [vmem:[%s29806_s2 + $0x7d8] sm:$0xff]  }
 0x56b   : > { %22324 = vmatpush3.bf16.msra.mxu0 %v24398_v54  ;;  %v7176_v6 = vpop.f32.mrb[84].mxu0  ;;  %v24450_v54 = vld [vmem:[%s29806_s2 + $0x788] sm:$0xff]  }
 0x56c   : > { %22325 = vmatprep.subr.bf16.mxu0 %v24401_v32  ;;  %v7182_v10 = vrot.slane %v7176_v6, 7  ;;  %v23934_v48 = vpop.f32.mrb[85].mxu0  ;;  %v24454_v32 = vld [vmem:[%s29806_s2 + $0x790] sm:$0xff]   ;;  %v24464_v6 = vld [vmem:[%s29806_s2 + $0x7a8] sm:$0xff]  }
 0x56d   : > { %22390 = vmatpush3.bf16.msra.mxu1 %v24448_v49  ;;  %v24461_v49 = vld [vmem:[%s29806_s2 + $0x7e0] sm:$0xff]  }
 0x56e   : > { %22391 = vmatprep.subr.bf16.mxu1 %v24451_v58  ;;  %7184 = vst [vmem:[#allocation3 + $0x70] sm:$0x1e] %v7182_v10  ;;  %v24463_v58 = vld [vmem:[%s29806_s2 + $0x7e8] sm:$0xff]  }
 0x56f   : > { %22326 = vmatpush3.bf16.msra.mxu0 %v24402_v40  ;;  %v7321_v19 = vpop.f32.mrb[86].mxu0  ;;  %v8401_v40 = vld [vmem:[#allocation3 + $0x30] sm:$0x1e] }
 0x570   : > { %22327 = vmatprep.subr.bf16.mxu0 %v24405_v47  ;;  %v7328_v45 = vrot.slane %v7321_v19, 7  ;;  %v23944_v5 = vpop.f32.mrb[87].mxu0  ;;  %v24465_v47 = vld [vmem:[%s29806_s2 + $0x7f0] sm:$0xff]   ;;  %v8405_v61 = vpack.c.bf16 %v8401_v40, %v8401_v40  ;;  %v24467_v19 = vld [vmem:[%s29806_s2 + $0x7f8] sm:$0xff]  }
 0x571   : > { %22392 = vmatpush3.bf16.msra.mxu1 %v24452_v15  ;;  %v24468_v5 = vld [vmem:[%s29806_s2 + $0x7b8] sm:$0xff]  }
 0x572   : > { %22393 = vmatprep.subr.bf16.mxu1 %v24455_v39  ;;  %7330 = vst [vmem:[#allocation3 + $0x80] sm:$0x1e] %v7328_v45  ;;  %v24466_v39 = vld [vmem:[%s29806_s2 + $0x7b0] sm:$0xff]  }
 0x573   : > { %22328 = vmatpush3.bf16.msra.mxu0 %v24406_v17 }
 0x574   : > { %22329 = vmatprep.subr.bf16.mxu0 %v24409_v3  ;;  %v8489_v3 = vshll.u32 %v8405_v61, 16 }
 0x575   : > { %22394 = vmatpush3.bf16.msra.mxu1 %v24456_v33 }
 0x576   : > { %22395 = vmatprep.subr.bf16.mxu1 %v24459_v37 }
 0x577   : > { %22330 = vmatpush3.bf16.msra.mxu0 %v24410_v43  ;;  %v8487_v43 = vshrl.u32 %v8405_v61, 16 }
 0x578   : > { %22359 = vmatprep.subr.bf16.mxu0 %v24413_v2  ;;  %v8491_v2 = vrot.slane %v8489_v3, 1 }
 0x579   : > { %22396 = vmatpush3.bf16.msra.mxu1 %v24460_v21 }
 0x57a   : > { %8046 = vmatmul.mubr.bf16.vlgmr.msra.gmra.mrb[92].mxu0 %v7337_v36  ;;  %23945 = vmatprep.subr.mxu1 %v27164_v46  ;;  %v8492_v31 = vor.u32 %v8491_v2, %v8487_v43  ;;  %v24474_v43 = vld [vmem:[%s29806_s2 + $0x5c8] sm:$0xff]  }
 0x57b   : > { %22360 = vmatpush3.bf16.msra.mxu0 %v24414_v23  ;;  %8390 = vmatprep.mubr.bf16.mxu0 %v8060_v7 }
 0x57c   : > { %22361 = vmatprep.subr.bf16.mxu0 %v24417_v24  ;;  %8729 = vmatmul.mubr.bf16.vlgmr.msra.gmra.mrb[180].mxu1 %v8478_v62 }
 0x57d   : > { %23947 = vmatprep.mubr.msk.f32.mxu1 %vm25273_vm1, %v27164_v46 }
 0x57f   : > { %22362 = vmatpush3.bf16.msra.mxu0 %v24418_v38 }
 0x580   : > { %22363 = vmatprep.subr.bf16.mxu0 %v24421_v11 }
 0x581   : > { %v22265_v9 = vpop.f32.mrb[168].mxu1 }
 0x582   : > { %v22266_v10 = vpop.f32.mrb[169].mxu1 }
 0x583   : > { %22364 = vmatpush3.bf16.msra.mxu0 %v24422_v60  ;;  %v22267_v48 = vadd.f32 %v22266_v10, %v22265_v9  ;;  %v22268_v15 = vpop.f32.mrb[170].mxu1 }
 0x584   : > { %22365 = vmatprep.subr.bf16.mxu0 %v24425_v28  ;;  %v22269_v17 = vpop.f32.mrb[171].mxu1 }
 0x585   : > { %v24470_v17 = vld [vmem:[%s29806_s2 + $0x5c0] sm:$0xff]  }
 0x587   : > { %22366 = vmatpush3.bf16.msra.mxu0 %v24426_v30 }
 0x588   : > { %22367 = vmatprep.subr.bf16.mxu0 %v24429_v4 }
 0x58b   : > { %22368 = vmatpush3.bf16.msra.mxu0 %v24430_v25 }
 0x58c   : > { %22369 = vmatprep.subr.bf16.mxu0 %v24433_v26 }
 0x58f   : > { %22370 = vmatpush3.bf16.msra.mxu0 %v24434_v0 }
 0x590   : > { %22371 = vmatprep.subr.bf16.mxu0 %v24437_v27 }
 0x593   : > { %22372 = vmatpush3.bf16.msra.mxu0 %v24438_v41 }
 0x594   : > { %22373 = vmatprep.subr.bf16.mxu0 %v24441_v50 }
 0x597   : > { %22374 = vmatpush3.bf16.msra.mxu0 %v24442_v13 }
 0x598   : > { %22403 = vmatprep.subr.bf16.mxu0 %v24445_v57 }
 0x59a   : > { %8391 = vmatmul.mubr.bf16.vlgmr.msra.gmra.mrb[96].mxu0 %v8059_v29 }
 0x59b   : > { %22404 = vmatpush3.bf16.msra.mxu0 %v24446_v1  ;;  %8768 = vmatprep.mubr.bf16.mxu0 %v8499_v59  ;;  %v9013_v1 = vld [vmem:[#allocation3 + $0x28] sm:$0x1e]  ;;  %v9015_v59 = vld [vmem:[#allocation3 + $0x38] sm:$0x1e] }
 0x59c   : > { %22405 = vmatprep.subr.bf16.mxu0 %v24449_v16 }
 0x59f   : > { %22406 = vmatpush3.bf16.msra.mxu0 %v24450_v54 }
 0x5a0   : > { %22407 = vmatprep.subr.bf16.mxu0 %v24453_v44 }
 0x5a1   : > { %v22309_v55 = vpop.f32.mrb[172].mxu1 }
 0x5a2   : > { %v22310_v45 = vpop.f32.mrb[173].mxu1 }
 0x5a3   : > { %22408 = vmatpush3.bf16.msra.mxu0 %v24454_v32  ;;  %v22311_v33 = vadd.f32 %v22310_v45, %v22309_v55  ;;  %v22312_v37 = vpop.f32.mrb[174].mxu1  ;;  %v24471_v45 = vld [vmem:[%s29806_s2 + $0x500] sm:$0xff]  }
 0x5a4   : > { %22409 = vmatprep.subr.bf16.mxu0 %v24457_v22  ;;  %v22313_v52 = vpop.f32.mrb[175].mxu1  ;;  %v9017_v22 = vpack.c.bf16 %v9013_v1, %v9013_v1  ;;  %v24473_v37 = vld [vmem:[%s29806_s2 + $0x548] sm:$0xff]  }
 0x5a5   : > { %v24475_v52 = vld [vmem:[%s29806_s2 + $0x508] sm:$0xff]  }
 0x5a6   : > { %v9092_v10 = vshrl.u32 %v9017_v22, 16 }
 0x5a7   : > { %22410 = vmatpush3.bf16.msra.mxu0 %v24458_v8 }
 0x5a8   : > { %22411 = vmatprep.subr.bf16.mxu0 %v24461_v49  ;;  %v9019_v49 = vpack.c.bf16 %v9015_v59, %v9015_v59  ;;  %v24501_v59 = vld [vmem:[%s29806_s2 + $0x440] sm:$0xff]  }
 0x5ab   : > { %22412 = vmatpush3.bf16.msra.mxu0 %v24462_v56 }
 0x5ac   : > { %22413 = vmatprep.subr.bf16.mxu0 %v24463_v58  ;;  %v19397_v58 = vld [vmem:[%s29807_s3 + $0x2] ss:$0 sm:$0xff] }
 0x5af   : > { %22414 = vmatpush3.bf16.msra.mxu0 %v24464_v6  ;;  %v9094_v6 = vshll.u32 %v9017_v22, 16  ;;  %v24503_v22 = vld [vmem:[%s29806_s2 + $0x400] sm:$0xff]  }
 0x5b0   : > { %22415 = vmatprep.subr.bf16.mxu0 %v24465_v47  ;;  %v9108_v47 = vshll.u32 %v9019_v49, 16 }
 0x5b1   : > { %v9096_v15 = vrot.slane %v9094_v6, 1  ;;  %v24505_v6 = vld [vmem:[%s29806_s2 + $0x448] sm:$0xff]  }
 0x5b2   : > { %v9110_v3 = vrot.slane %v9108_v47, 1 }
 0x5b3   : > { %22416 = vmatpush3.bf16.msra.mxu0 %v24466_v39  ;;  %v24469_v39 = vld [vmem:[%s29806_s2 + $0x540] sm:$0xff]  }
 0x5b4   : > { %22417 = vmatprep.subr.bf16.mxu0 %v24467_v19  ;;  %v9106_v19 = vshrl.u32 %v9019_v49, 16 }
 0x5b6   : > { %v9111_v2 = vor.u32 %v9110_v3, %v9106_v19  ;;  %v24511_v19 = vld [vmem:[%s29806_s2 + $0x410] sm:$0xff]  }
 0x5b7   : > { %22418 = vmatpush3.bf16.msra.mxu0 %v24468_v5  ;;  %v24472_v5 = vld [vmem:[%s29806_s2 + $0x580] sm:$0xff]   ;;  %v24512_v3 = vld [vmem:[%s29806_s2 + $0x490] sm:$0xff]  }
 0x5b8   : > { %23950 = vmatprep.subr.mxu0 %v27164_v46 }
 0x5ba   : > { %8769 = vmatmul.mubr.bf16.vlgmr.msra.gmra.mrb[100].mxu0 %v8492_v31  ;;  %v24476_v31 = vld [vmem:[%s29806_s2 + $0x588] sm:$0xff]  }
 0x5bb   : > { %23952 = vmatprep.mubr.msk.f32.mxu0 %vm25273_vm1, %v27164_v46 }
 0x62d   : > { %v22287_v35 = vpop.f32.mrb[88].mxu0 }
 0x62e   : > { %v22288_v34 = vpop.f32.mrb[89].mxu0 }
 0x62f   : > { %v22289_v21 = vadd.f32 %v22288_v34, %v22287_v35  ;;  %v22290_v23 = vpop.f32.mrb[90].mxu0  ;;  %v22353_v7 = vpop.f32.mrb[176].mxu1  ;;  %v24477_v35 = vld [vmem:[%s29806_s2 + $0x550] sm:$0xff]  }
 0x630   : > { %v22291_v36 = vpop.f32.mrb[91].mxu0  ;;  %v22354_v24 = vpop.f32.mrb[177].mxu1  ;;  %v24478_v34 = vld [vmem:[%s29806_s2 + $0x5d0] sm:$0xff]  }
 0x631   : > { %v7776_v62 = vadd.f32 %v22289_v21, %v22267_v48  ;;  %v22355_v38 = vadd.f32 %v22354_v24, %v22353_v7  ;;  %v22356_v11 = vpop.f32.mrb[178].mxu1  ;;  %v24479_v21 = vld [vmem:[%s29806_s2 + $0x510] sm:$0xff]   ;;  %v24481_v7 = vld [vmem:[%s29806_s2 + $0x558] sm:$0xff]  }
 0x632   : > { %v22357_v60 = vpop.f32.mrb[179].mxu1  ;;  %v24480_v23 = vld [vmem:[%s29806_s2 + $0x590] sm:$0xff]   ;;  %v24482_v36 = vld [vmem:[%s29806_s2 + $0x5d8] sm:$0xff]   ;;  %v24486_v11 = vld [vmem:[%s29806_s2 + $0x5e0] sm:$0xff]  }
 0x633   : > { %v8008_v28 = vadd.f32 %v22311_v33, %v7776_v62  ;;  %v9097_v33 = vor.u32 %v9096_v15, %v9092_v10  ;;  %v24483_v24 = vld [vmem:[%s29806_s2 + $0x518] sm:$0xff]   ;;  %v24487_v60 = vld [vmem:[%s29806_s2 + $0x520] sm:$0xff]   ;;  %v24508_v15 = vld [vmem:[%s29806_s2 + $0x488] sm:$0xff]  }
 0x634   : > { %v24484_v62 = vld [vmem:[%s29806_s2 + $0x598] sm:$0xff]  }
 0x64d   : > { %v22331_v30 = vpop.f32.mrb[92].mxu0 }
 0x64e   : > { %v22332_v4 = vpop.f32.mrb[93].mxu0 }
 0x64f   : > { %v22333_v25 = vadd.f32 %v22332_v4, %v22331_v30  ;;  %v22334_v26 = vpop.f32.mrb[94].mxu0  ;;  %v22397_v18 = vpop.f32.mrb[180].mxu1  ;;  %v24489_v30 = vld [vmem:[%s29806_s2 + $0x568] sm:$0xff]  }
 0x650   : > { %v22335_v9 = vpop.f32.mrb[95].mxu0  ;;  %v22398_v0 = vpop.f32.mrb[181].mxu1  ;;  %v24490_v4 = vld [vmem:[%s29806_s2 + $0x5e8] sm:$0xff]   ;;  %v9014_v26 = vld [vmem:[#allocation3 + $0x30] sm:$0x1e] }
 0x651   : > { %v8048_v27 = vadd.f32 %v22333_v25, %v8008_v28  ;;  %v22399_v42 = vadd.f32 %v22398_v0, %v22397_v18  ;;  %v22400_v41 = vpop.f32.mrb[182].mxu1  ;;  %v24488_v28 = vld [vmem:[%s29806_s2 + $0x5a0] sm:$0xff]   ;;  %v24491_v18 = vld [vmem:[%s29806_s2 + $0x528] sm:$0xff]   ;;  %v24493_v0 = vld [vmem:[%s29806_s2 + $0x570] sm:$0xff]  }
 0x652   : > { %v22401_v50 = vpop.f32.mrb[183].mxu1  ;;  %v9012_v25 = vld [vmem:[#allocation3 + $0x20] sm:$0x1e]  ;;  %v24492_v9 = vld [vmem:[%s29806_s2 + $0x5a8] sm:$0xff]   ;;  %v9018_v41 = vpack.c.bf16 %v9014_v26, %v9014_v26 }
 0x653   : > { %v24495_v50 = vld [vmem:[%s29806_s2 + $0x530] sm:$0xff]   ;;  %v24535_v26 = vld [vmem:[%s29806_s2 + $0x600] sm:$0xff]  }
 0x66d   : > { %v22375_v14 = vpop.f32.mrb[96].mxu0 }
 0x66e   : > { %v22376_v13 = vpop.f32.mrb[97].mxu0 }
 0x66f   : > { %v22377_v63 = vadd.f32 %v22376_v13, %v22375_v14  ;;  %v22378_v57 = vpop.f32.mrb[98].mxu0  ;;  %v24496_v14 = vld [vmem:[%s29806_s2 + $0x5b0] sm:$0xff]   ;;  %v24497_v13 = vld [vmem:[%s29806_s2 + $0x578] sm:$0xff]  }
 0x670   : > { %v22379_v20 = vpop.f32.mrb[99].mxu0  ;;  %v24498_v57 = vld [vmem:[%s29806_s2 + $0x5f8] sm:$0xff]  }
 0x671   : > { %v8393_v12 = vadd.f32 %v22377_v63, %v22355_v38  ;;  %v24485_v38 = vld [vmem:[%s29806_s2 + $0x560] sm:$0xff]   ;;  %v9101_v20 = vshll.u32 %v9018_v41, 16 }
 0x673   : > { %v8398_v29 = vadd.f32 %v8393_v12, %v8048_v27  ;;  %v9016_v27 = vpack.c.bf16 %v9012_v25, %v9012_v25  ;;  %v24499_v12 = vld [vmem:[%s29806_s2 + $0x538] sm:$0xff]   ;;  %v8942_v25 = vld [vmem:[#allocation3 + $0x30] sm:$0xf] }
 0x675   : > { %v9087_v63 = vshll.u32 %v9016_v27, 16  ;;  %v9085_v1 = vshrl.u32 %v9016_v27, 16  ;;  %v9663_v27 = vld [vmem:[#allocation3 + $0x58] sm:$0xf] }
 0x68d   : > { %v22419_v16 = vpop.f32.mrb[100].mxu0 }
 0x68e   : > { %v22420_v54 = vpop.f32.mrb[101].mxu0 }
 0x68f   : > { %v22421_v44 = vadd.f32 %v22420_v54, %v22419_v16  ;;  %v22422_v32 = vpop.f32.mrb[102].mxu0  ;;  %v9089_v16 = vrot.slane %v9087_v63, 1  ;;  %v9099_v54 = vshrl.u32 %v9018_v41, 16  ;;  %v24537_v41 = vld [vmem:[%s29806_s2 + $0x648] sm:$0xff]  }
 0x690   : > { %v22423_v8 = vpop.f32.mrb[103].mxu0  ;;  %v24502_v32 = vld [vmem:[%s29806_s2 + $0x4c0] sm:$0xff]   ;;  %v24539_v63 = vld [vmem:[%s29806_s2 + $0x608] sm:$0xff]  }
 0x691   : > { %v8771_v56 = vadd.f32 %v22421_v44, %v22399_v42  ;;  %v24494_v42 = vld [vmem:[%s29806_s2 + $0x5f0] sm:$0xff]   ;;  %v9103_v44 = vrot.slane %v9101_v20, 1  ;;  %v8941_v8 = vld [vmem:[#allocation3 + $0x28] sm:$0xf]  ;;  %v9090_v49 = vor.u32 %v9089_v16, %v9085_v1  ;;  %v24545_v16 = vld [vmem:[%s29806_s2 + $0x658] sm:$0xff]  }
 0x692   : > { %v8945_v47 = vpack.c.bf16 %v8941_v8, %v8941_v8  ;;  %v24541_v20 = vld [vmem:[%s29806_s2 + $0x650] sm:$0xff]   ;;  %v24551_v8 = vld [vmem:[%s29806_s2 + $0x620] sm:$0xff]  }
 0x693   : > { %v8776_v40 = vadd.f32 %v8771_v56, %v8398_v29  ;;  %v24500_v29 = vld [vmem:[%s29806_s2 + $0x5b8] sm:$0xff]   ;;  %v24504_v56 = vld [vmem:[%s29806_s2 + $0x480] sm:$0xff]   ;;  %v24544_v1 = vld [vmem:[%s29806_s2 + $0x690] sm:$0xff]  }
 0x695   : > { %v8782_v61 = vadd.f32 %v19397_v58, %v8776_v40  ;;  %v8943_v58 = vld [vmem:[#allocation3 + $0x38] sm:$0xf]  ;;  %v9104_v40 = vor.u32 %v9103_v44, %v9099_v54 }
 0x696   : > { %v8947_v10 = vpack.c.bf16 %v8943_v58, %v8943_v58  ;;  %v24547_v54 = vld [vmem:[%s29806_s2 + $0x618] sm:$0xff]   ;;  %v24554_v58 = vld [vmem:[%s29806_s2 + $0x6e8] sm:$0xff]  }
 0x697   : > { %vm8783_vm3 = vcmp.gt.f32.partialorder %v8782_v61, 0.0  ;;  %v8784_v48 = vmul.f32 0.2, %v8782_v61  ;;  %v24548_v44 = vld [vmem:[%s29806_s2 + $0x698] sm:$0xff]  }
 0x699   : > { %v8785_v55 = vsel %vm8783_vm3, %v8782_v61, %v8784_v48  ;;  %v24506_v61 = vld [vmem:[%s29806_s2 + $0x4c8] sm:$0xff]  }
 0x69a   : > { %23946 = vmatpush3.msk.msra.mxu1 %vm8789_vm4, %v8785_v55  ;;  %23951 = vmatpush3.msk.msra.mxu0 %vm8789_vm4, %v8785_v55  ;;  %v24507_v48 = vld [vmem:[%s29806_s2 + $0x408] sm:$0xff]   ;;  %v24513_v55 = vld [vmem:[%s29806_s2 + $0x458] sm:$0xff]  }
 0x69b   : > { %23948 = vmatmul.mubr.msk.f32.vlgmr.msra.gmra.mrb[184].mxu1 %vm8786_vm5, %v29894_v53  ;;  %23953 = vmatmul.mubr.msk.f32.vlgmr.msra.gmra.mrb[104].mxu0 %vm8786_vm5, %v29895_v51 }
 0x69c   : > { %22429 = vmatprep.subr.bf16.mxu1 %v24469_v39  ;;  %22451 = vmatprep.subr.bf16.mxu0 %v24470_v17  ;;  %v24509_v39 = vld [vmem:[%s29806_s2 + $0x450] sm:$0xff]  }
 0x69d   : > { %22430 = vmatpush3.bf16.msra.mxu1 %v24471_v45  ;;  %9340 = vmatprep.mubr.bf16.mxu1 %v9097_v33  ;;  %v24510_v17 = vld [vmem:[%s29806_s2 + $0x4d0] sm:$0xff]   ;;  %v24514_v45 = vld [vmem:[%s29806_s2 + $0x4d8] sm:$0xff]  }
 0x69e   : > { %22452 = vmatpush3.bf16.msra.mxu0 %v24472_v5  ;;  %9380 = vmatprep.mubr.bf16.mxu0 %v9111_v2  ;;  %v24515_v5 = vld [vmem:[%s29806_s2 + $0x418] sm:$0xff]   ;;  %v24519_v2 = vld [vmem:[%s29806_s2 + $0x420] sm:$0xff]  }
 0x69f   : > { %22431 = vmatprep.subr.bf16.mxu1 %v24473_v37  ;;  %22453 = vmatprep.subr.bf16.mxu0 %v24474_v43  ;;  %v24516_v33 = vld [vmem:[%s29806_s2 + $0x498] sm:$0xff]   ;;  %v24517_v37 = vld [vmem:[%s29806_s2 + $0x460] sm:$0xff]  }
 0x6a0   : > { %v24518_v43 = vld [vmem:[%s29806_s2 + $0x4e0] sm:$0xff]  }
 0x6a1   : > { %22432 = vmatpush3.bf16.msra.mxu1 %v24475_v52  ;;  %v24520_v52 = vld [vmem:[%s29806_s2 + $0x4a0] sm:$0xff]  }
 0x6a2   : > { %22454 = vmatpush3.bf16.msra.mxu0 %v24476_v31  ;;  %22433 = vmatprep.subr.bf16.mxu1 %v24477_v35  ;;  %v24521_v31 = vld [vmem:[%s29806_s2 + $0x468] sm:$0xff]  }
 0x6a3   : > { %22455 = vmatprep.subr.bf16.mxu0 %v24478_v34  ;;  %v24522_v35 = vld [vmem:[%s29806_s2 + $0x4e8] sm:$0xff]  }
 0x6a4   : > { %v24523_v34 = vld [vmem:[%s29806_s2 + $0x428] sm:$0xff]  }
 0x6a5   : > { %22434 = vmatpush3.bf16.msra.mxu1 %v24479_v21  ;;  %v24524_v21 = vld [vmem:[%s29806_s2 + $0x4a8] sm:$0xff]  }
 0x6a6   : > { %22456 = vmatpush3.bf16.msra.mxu0 %v24480_v23  ;;  %22435 = vmatprep.subr.bf16.mxu1 %v24481_v7  ;;  %v24525_v23 = vld [vmem:[%s29806_s2 + $0x470] sm:$0xff]  }
 0x6a7   : > { %22457 = vmatprep.subr.bf16.mxu0 %v24482_v36  ;;  %v24526_v7 = vld [vmem:[%s29806_s2 + $0x4f0] sm:$0xff]  }
 0x6a8   : > { %v24527_v36 = vld [vmem:[%s29806_s2 + $0x430] sm:$0xff]  }
 0x6a9   : > { %22436 = vmatpush3.bf16.msra.mxu1 %v24483_v24  ;;  %v24528_v24 = vld [vmem:[%s29806_s2 + $0x4b0] sm:$0xff]  }
 0x6aa   : > { %22458 = vmatpush3.bf16.msra.mxu0 %v24484_v62  ;;  %22437 = vmatprep.subr.bf16.mxu1 %v24485_v38  ;;  %v24529_v62 = vld [vmem:[%s29806_s2 + $0x478] sm:$0xff]  }
 0x6ab   : > { %22459 = vmatprep.subr.bf16.mxu0 %v24486_v11  ;;  %v24530_v38 = vld [vmem:[%s29806_s2 + $0x4f8] sm:$0xff]  }
 0x6ac   : > { %v24531_v11 = vld [vmem:[%s29806_s2 + $0x438] sm:$0xff]  }
 0x6ad   : > { %22438 = vmatpush3.bf16.msra.mxu1 %v24487_v60  ;;  %v24532_v60 = vld [vmem:[%s29806_s2 + $0x4b8] sm:$0xff]  }
 0x6ae   : > { %22460 = vmatpush3.bf16.msra.mxu0 %v24488_v28  ;;  %22439 = vmatprep.subr.bf16.mxu1 %v24489_v30  ;;  %v24533_v28 = vld [vmem:[%s29806_s2 + $0x640] sm:$0xff]  }
 0x6af   : > { %22461 = vmatprep.subr.bf16.mxu0 %v24490_v4  ;;  %v8940_v30 = vld [vmem:[#allocation3 + $0x20] sm:$0xf] }
 0x6b0   : > { %v24534_v4 = vld [vmem:[%s29806_s2 + $0x6c0] sm:$0xff]  }
 0x6b1   : > { %22440 = vmatpush3.bf16.msra.mxu1 %v24491_v18  ;;  %v9661_v18 = vld [vmem:[#allocation3 + $0x48] sm:$0xf] }
 0x6b2   : > { %22462 = vmatpush3.bf16.msra.mxu0 %v24492_v9  ;;  %22441 = vmatprep.subr.bf16.mxu1 %v24493_v0  ;;  %v8944_v9 = vpack.c.bf16 %v8940_v30, %v8940_v30  ;;  %v24536_v0 = vld [vmem:[%s29806_s2 + $0x680] sm:$0xff]   ;;  %v24571_v30 = vld [vmem:[%s29806_s2 + $0x708] sm:$0xff]  }
 0x6b3   : > { %22463 = vmatprep.subr.bf16.mxu0 %v24494_v42  ;;  %v8946_v42 = vpack.c.bf16 %v8942_v25, %v8942_v25  ;;  %v24573_v25 = vld [vmem:[%s29806_s2 + $0x750] sm:$0xff]  }
 0x6b5   : > { %22442 = vmatpush3.bf16.msra.mxu1 %v24495_v50  ;;  %v9665_v50 = vpack.c.bf16 %v9661_v18, %v9661_v18  ;;  %v24575_v18 = vld [vmem:[%s29806_s2 + $0x710] sm:$0xff]  }
 0x6b6   : > { %22464 = vmatpush3.bf16.msra.mxu0 %v24496_v14  ;;  %22443 = vmatprep.subr.bf16.mxu1 %v24497_v13  ;;  %v24538_v14 = vld [vmem:[%s29806_s2 + $0x6c8] sm:$0xff]   ;;  %v9667_v13 = vpack.c.bf16 %v9663_v27, %v9663_v27  ;;  %v24578_v27 = vld [vmem:[%s29806_s2 + $0x7d8] sm:$0xff]  }
 0x6b7   : > { %22465 = vmatprep.subr.bf16.mxu0 %v24498_v57  ;;  %v24540_v57 = vld [vmem:[%s29806_s2 + $0x688] sm:$0xff]  }
 0x6b9   : > { %22444 = vmatpush3.bf16.msra.mxu1 %v24499_v12  ;;  %v24542_v12 = vld [vmem:[%s29806_s2 + $0x6d0] sm:$0xff]  }
 0x6ba   : > { %22466 = vmatpush3.bf16.msra.mxu0 %v24500_v29  ;;  %22473 = vmatprep.subr.bf16.mxu1 %v24501_v59  ;;  %v24543_v29 = vld [vmem:[%s29806_s2 + $0x610] sm:$0xff]   ;;  %v24546_v59 = vld [vmem:[%s29806_s2 + $0x6d8] sm:$0xff]  }
 0x6bb   : > { %22495 = vmatprep.subr.bf16.mxu0 %v24502_v32  ;;  %v24549_v32 = vld [vmem:[%s29806_s2 + $0x660] sm:$0xff]  }
 0x6bc   : > { %9341 = vmatmul.mubr.bf16.vlgmr.msra.gmra.mrb[188].mxu1 %v9090_v49  ;;  %v24552_v49 = vld [vmem:[%s29806_s2 + $0x6a0] sm:$0xff]  }
 0x6bd   : > { %9381 = vmatmul.mubr.bf16.vlgmr.msra.gmra.mrb[108].mxu0 %v9104_v40  ;;  %22474 = vmatpush3.bf16.msra.mxu1 %v24503_v22  ;;  %v24550_v22 = vld [vmem:[%s29806_s2 + $0x6e0] sm:$0xff]   ;;  %v24555_v40 = vld [vmem:[%s29806_s2 + $0x628] sm:$0xff]  }
 0x6be   : > { %9612 = vmatprep.mubr.bf16.mxu1 %v8945_v47  ;;  %22496 = vmatpush3.bf16.msra.mxu0 %v24504_v56  ;;  %v24553_v56 = vld [vmem:[%s29806_s2 + $0x668] sm:$0xff]  }
 0x6bf   : > { %9652 = vmatprep.mubr.bf16.mxu0 %v8947_v10  ;;  %22475 = vmatprep.subr.bf16.mxu1 %v24505_v6  ;;  %v10006_v6 = vld [vmem:[#allocation3 + $0x48] sm:$0x1e]  ;;  %v10008_v10 = vld [vmem:[#allocation3 + $0x58] sm:$0x1e] }
 0x6c0   : > { %22497 = vmatprep.subr.bf16.mxu0 %v24506_v61  ;;  %v24556_v47 = vld [vmem:[%s29806_s2 + $0x6a8] sm:$0xff]   ;;  %v24557_v61 = vld [vmem:[%s29806_s2 + $0x670] sm:$0xff]  }
 0x6c1   : > { %22476 = vmatpush3.bf16.msra.mxu1 %v24507_v48  ;;  %v24558_v48 = vld [vmem:[%s29806_s2 + $0x6f0] sm:$0xff]  }
 0x6c2   : > { %22498 = vmatpush3.bf16.msra.mxu0 %v24508_v15  ;;  %22477 = vmatprep.subr.bf16.mxu1 %v24509_v39  ;;  %v10010_v15 = vpack.c.bf16 %v10006_v6, %v10006_v6  ;;  %v24559_v39 = vld [vmem:[%s29806_s2 + $0x630] sm:$0xff]   ;;  %v24595_v6 = vld [vmem:[%s29806_s2 + $0x738] sm:$0xff]  }
 0x6c3   : > { %22499 = vmatprep.subr.bf16.mxu0 %v24510_v17  ;;  %v10012_v17 = vpack.c.bf16 %v10008_v10, %v10008_v10 }
 0x6c5   : > { %22478 = vmatpush3.bf16.msra.mxu1 %v24511_v19  ;;  %v24560_v19 = vld [vmem:[%s29806_s2 + $0x6b0] sm:$0xff]  }
 0x6c6   : > { %22500 = vmatpush3.bf16.msra.mxu0 %v24512_v3  ;;  %22479 = vmatprep.subr.bf16.mxu1 %v24513_v55  ;;  %v24561_v3 = vld [vmem:[%s29806_s2 + $0x678] sm:$0xff]  }
 0x6c7   : > { %22501 = vmatprep.subr.bf16.mxu0 %v24514_v45  ;;  %v24562_v55 = vld [vmem:[%s29806_s2 + $0x6f8] sm:$0xff]   ;;  %v10087_v45 = vshll.u32 %v10010_v15, 16 }
 0x6c9   : > { %22480 = vmatpush3.bf16.msra.mxu1 %v24515_v5  ;;  %v24563_v5 = vld [vmem:[%s29806_s2 + $0x638] sm:$0xff]  }
 0x6ca   : > { %22502 = vmatpush3.bf16.msra.mxu0 %v24516_v33  ;;  %22481 = vmatprep.subr.bf16.mxu1 %v24517_v37  ;;  %v10101_v33 = vshll.u32 %v10012_v17, 16  ;;  %v24564_v37 = vld [vmem:[%s29806_s2 + $0x6b8] sm:$0xff]  }
 0x6cb   : > { %22503 = vmatprep.subr.bf16.mxu0 %v24518_v43  ;;  %v24565_v43 = vld [vmem:[%s29806_s2 + $0x740] sm:$0xff]  }
 0x6cd   : > { %22482 = vmatpush3.bf16.msra.mxu1 %v24519_v2  ;;  %v9660_v2 = vld [vmem:[#allocation3 + $0x40] sm:$0xf] }
 0x6ce   : > { %22504 = vmatpush3.bf16.msra.mxu0 %v24520_v52  ;;  %22483 = vmatprep.subr.bf16.mxu1 %v24521_v31  ;;  %v24566_v52 = vld [vmem:[%s29806_s2 + $0x7c0] sm:$0xff]   ;;  %v9662_v31 = vld [vmem:[#allocation3 + $0x50] sm:$0xf] }
 0x6cf   : > { %22505 = vmatprep.subr.bf16.mxu0 %v24522_v35  ;;  %v10085_v35 = vshrl.u32 %v10010_v15, 16 }
 0x6d1   : > { %22484 = vmatpush3.bf16.msra.mxu1 %v24523_v34  ;;  %v10089_v34 = vrot.slane %v10087_v45, 1 }
 0x6d2   : > { %22506 = vmatpush3.bf16.msra.mxu0 %v24524_v21  ;;  %22485 = vmatprep.subr.bf16.mxu1 %v24525_v23  ;;  %v24567_v21 = vld [vmem:[%s29806_s2 + $0x700] sm:$0xff]   ;;  %v10099_v23 = vshrl.u32 %v10012_v17, 16 }
 0x6d3   : > { %22507 = vmatprep.subr.bf16.mxu0 %v24526_v7  ;;  %v10103_v7 = vrot.slane %v10101_v33, 1 }
 0x6d5   : > { %22486 = vmatpush3.bf16.msra.mxu1 %v24527_v36  ;;  %v9664_v36 = vpack.c.bf16 %v9660_v2, %v9660_v2 }
 0x6d6   : > { %22508 = vmatpush3.bf16.msra.mxu0 %v24528_v24  ;;  %22487 = vmatprep.subr.bf16.mxu1 %v24529_v62  ;;  %v24568_v24 = vld [vmem:[%s29806_s2 + $0x780] sm:$0xff]   ;;  %v9666_v62 = vpack.c.bf16 %v9662_v31, %v9662_v31 }
 0x6d7   : > { %22509 = vmatprep.subr.bf16.mxu0 %v24530_v38  ;;  %v24569_v38 = vld [vmem:[%s29806_s2 + $0x748] sm:$0xff]  }
 0x6d9   : > { %22488 = vmatpush3.bf16.msra.mxu1 %v24531_v11  ;;  %v10090_v11 = vor.u32 %v10089_v34, %v10085_v35 }
 0x6da   : > { %22510 = vmatpush3.bf16.msra.mxu0 %v24532_v60  ;;  %22517 = vmatprep.subr.bf16.mxu1 %v24533_v28  ;;  %v24570_v60 = vld [vmem:[%s29806_s2 + $0x7c8] sm:$0xff]   ;;  %v10104_v28 = vor.u32 %v10103_v7, %v10099_v23 }
 0x6db   : > { %22539 = vmatprep.subr.bf16.mxu0 %v24534_v4  ;;  %v24572_v4 = vld [vmem:[%s29806_s2 + $0x788] sm:$0xff]  }
 0x6dc   : > { %9613 = vmatmul.mubr.bf16.vlgmr.msra.gmra.mrb[192].mxu1 %v8944_v9  ;;  %v24576_v9 = vld [vmem:[%s29806_s2 + $0x790] sm:$0xff]  }
 0x6dd   : > { %9653 = vmatmul.mubr.bf16.vlgmr.msra.gmra.mrb[112].mxu0 %v8946_v42  ;;  %22518 = vmatpush3.bf16.msra.mxu1 %v24535_v26  ;;  %v24574_v26 = vld [vmem:[%s29806_s2 + $0x7d0] sm:$0xff]   ;;  %v24579_v42 = vld [vmem:[%s29806_s2 + $0x718] sm:$0xff]  }
 0x6de   : > { %9956 = vmatprep.mubr.bf16.mxu1 %v9665_v50  ;;  %22540 = vmatpush3.bf16.msra.mxu0 %v24536_v0  ;;  %v24577_v0 = vld [vmem:[%s29806_s2 + $0x758] sm:$0xff]   ;;  %v24581_v50 = vld [vmem:[%s29806_s2 + $0x760] sm:$0xff]  }
 0x6df   : > { %9996 = vmatprep.mubr.bf16.mxu0 %v9667_v13  ;;  %22519 = vmatprep.subr.bf16.mxu1 %v24537_v41  ;;  %v24580_v41 = vld [vmem:[%s29806_s2 + $0x798] sm:$0xff]   ;;  %v24583_v13 = vld [vmem:[%s29806_s2 + $0x720] sm:$0xff]  }
 0x6e0   : > { %22541 = vmatprep.subr.bf16.mxu0 %v24538_v14  ;;  %v24582_v14 = vld [vmem:[%s29806_s2 + $0x7e0] sm:$0xff]  }
 0x6e1   : > { %22520 = vmatpush3.bf16.msra.mxu1 %v24539_v63  ;;  %v24584_v63 = vld [vmem:[%s29806_s2 + $0x7a0] sm:$0xff]  }
 0x6e2   : > { %22542 = vmatpush3.bf16.msra.mxu0 %v24540_v57  ;;  %22521 = vmatprep.subr.bf16.mxu1 %v24541_v20  ;;  %v24585_v57 = vld [vmem:[%s29806_s2 + $0x768] sm:$0xff]  }
 0x6e3   : > { %22543 = vmatprep.subr.bf16.mxu0 %v24542_v12  ;;  %v24586_v20 = vld [vmem:[%s29806_s2 + $0x7e8] sm:$0xff]   ;;  %v10005_v12 = vld [vmem:[#allocation3 + $0x40] sm:$0x1e] }
 0x6e5   : > { %22522 = vmatpush3.bf16.msra.mxu1 %v24543_v29  ;;  %v10007_v29 = vld [vmem:[#allocation3 + $0x50] sm:$0x1e] }
 0x6e6   : > { %22544 = vmatpush3.bf16.msra.mxu0 %v24544_v1  ;;  %22523 = vmatprep.subr.bf16.mxu1 %v24545_v16  ;;  %v24587_v1 = vld [vmem:[%s29806_s2 + $0x728] sm:$0xff]  }
 0x6e7   : > { %22545 = vmatprep.subr.bf16.mxu0 %v24546_v59  ;;  %v24588_v16 = vld [vmem:[%s29806_s2 + $0x7a8] sm:$0xff]   ;;  %v24589_v59 = vld [vmem:[%s29806_s2 + $0x770] sm:$0xff]  }
 0x6e9   : > { %22524 = vmatpush3.bf16.msra.mxu1 %v24547_v54  ;;  %v10009_v54 = vpack.c.bf16 %v10005_v12, %v10005_v12 }
 0x6ea   : > { %22546 = vmatpush3.bf16.msra.mxu0 %v24548_v44  ;;  %22525 = vmatprep.subr.bf16.mxu1 %v24549_v32  ;;  %v24590_v44 = vld [vmem:[%s29806_s2 + $0x7f0] sm:$0xff]   ;;  %v10011_v32 = vpack.c.bf16 %v10007_v29, %v10007_v29  ;;  %v10613_v29 = vld [vmem:[#allocation3 + $0x48] sm:$0x1e] }
 0x6eb   : > { %22547 = vmatprep.subr.bf16.mxu0 %v24550_v22  ;;  %v24591_v22 = vld [vmem:[%s29806_s2 + $0x730] sm:$0xff]  }
 0x6ed   : > { %22526 = vmatpush3.bf16.msra.mxu1 %v24551_v8  ;;  %v24592_v8 = vld [vmem:[%s29806_s2 + $0x7b0] sm:$0xff]  }
 0x6ee   : > { %22548 = vmatpush3.bf16.msra.mxu0 %v24552_v49  ;;  %22527 = vmatprep.subr.bf16.mxu1 %v24553_v56  ;;  %v24593_v49 = vld [vmem:[%s29806_s2 + $0x778] sm:$0xff]   ;;  %v10080_v56 = vshll.u32 %v10009_v54, 16 }
 0x6ef   : > { %22549 = vmatprep.subr.bf16.mxu0 %v24554_v58  ;;  %v24594_v58 = vld [vmem:[%s29806_s2 + $0x7f8] sm:$0xff]  }
 0x6f0   : > { %v10082_v10 = vrot.slane %v10080_v56, 1  ;;  %v10617_v56 = vpack.c.bf16 %v10613_v29, %v10613_v29 }
 0x6f1   : > { %22528 = vmatpush3.bf16.msra.mxu1 %v24555_v40  ;;  %v10094_v40 = vshll.u32 %v10011_v32, 16 }
 0x6f2   : > { %22550 = vmatpush3.bf16.msra.mxu0 %v24556_v47  ;;  %22529 = vmatprep.subr.bf16.mxu1 %v24557_v61  ;;  %v24596_v47 = vld [vmem:[%s29806_s2 + $0x7b8] sm:$0xff]   ;;  %v10078_v61 = vshrl.u32 %v10009_v54, 16 }
 0x6f3   : > { %22551 = vmatprep.subr.bf16.mxu0 %v24558_v48  ;;  %v10092_v48 = vshrl.u32 %v10011_v32, 16  ;;  %v10096_v15 = vrot.slane %v10094_v40, 1 }
 0x6f5   : > { %22530 = vmatpush3.bf16.msra.mxu1 %v24559_v39  ;;  %v10083_v39 = vor.u32 %v10082_v10, %v10078_v61  ;;  %v10097_v17 = vor.u32 %v10096_v15, %v10092_v48  ;;  %v10694_v10 = vshll.u32 %v10617_v56, 16 }
 0x6f6   : > { %22552 = vmatpush3.bf16.msra.mxu0 %v24560_v19  ;;  %22531 = vmatprep.subr.bf16.mxu1 %v24561_v3 }
 0x6f7   : > { %22553 = vmatprep.subr.bf16.mxu0 %v24562_v55 }
 0x6f9   : > { %22532 = vmatpush3.bf16.msra.mxu1 %v24563_v5 }
 0x6fa   : > { %22554 = vmatpush3.bf16.msra.mxu0 %v24564_v37  ;;  %22561 = vmatprep.subr.bf16.mxu1 %v24565_v43 }
 0x6fb   : > { %22583 = vmatprep.subr.bf16.mxu0 %v24566_v52 }
 0x6fc   : > { %9957 = vmatmul.mubr.bf16.vlgmr.msra.gmra.mrb[196].mxu1 %v9664_v36 }
 0x6fd   : > { %9997 = vmatmul.mubr.bf16.vlgmr.msra.gmra.mrb[116].mxu0 %v9666_v62  ;;  %22562 = vmatpush3.bf16.msra.mxu1 %v24567_v21 }
 0x6fe   : > { %10333 = vmatprep.mubr.bf16.mxu1 %v10090_v11  ;;  %22584 = vmatpush3.bf16.msra.mxu0 %v24568_v24 }
 0x6ff   : > { %10373 = vmatprep.mubr.bf16.mxu0 %v10104_v28  ;;  %22563 = vmatprep.subr.bf16.mxu1 %v24569_v38 }
 0x700   : > { %22585 = vmatprep.subr.bf16.mxu0 %v24570_v60 }
 0x701   : > { %22564 = vmatpush3.bf16.msra.mxu1 %v24571_v30 }
 0x702   : > { %22586 = vmatpush3.bf16.msra.mxu0 %v24572_v4  ;;  %22565 = vmatprep.subr.bf16.mxu1 %v24573_v25 }
 0x703   : > { %22587 = vmatprep.subr.bf16.mxu0 %v24574_v26 }
 0x705   : > { %22566 = vmatpush3.bf16.msra.mxu1 %v24575_v18 }
 0x706   : > { %22588 = vmatpush3.bf16.msra.mxu0 %v24576_v9  ;;  %22567 = vmatprep.subr.bf16.mxu1 %v24577_v0 }
 0x707   : > { %22589 = vmatprep.subr.bf16.mxu0 %v24578_v27 }
 0x709   : > { %22568 = vmatpush3.bf16.msra.mxu1 %v24579_v42 }
 0x70a   : > { %22590 = vmatpush3.bf16.msra.mxu0 %v24580_v41  ;;  %22569 = vmatprep.subr.bf16.mxu1 %v24581_v50 }
 0x70b   : > { %22591 = vmatprep.subr.bf16.mxu0 %v24582_v14 }
 0x70d   : > { %22570 = vmatpush3.bf16.msra.mxu1 %v24583_v13 }
 0x70e   : > { %22592 = vmatpush3.bf16.msra.mxu0 %v24584_v63  ;;  %22571 = vmatprep.subr.bf16.mxu1 %v24585_v57 }
 0x70f   : > { %22593 = vmatprep.subr.bf16.mxu0 %v24586_v20 }
 0x711   : > { %22572 = vmatpush3.bf16.msra.mxu1 %v24587_v1 }
 0x712   : > { %22594 = vmatpush3.bf16.msra.mxu0 %v24588_v16  ;;  %22573 = vmatprep.subr.bf16.mxu1 %v24589_v59  ;;  %v10615_v59 = vld [vmem:[#allocation3 + $0x58] sm:$0x1e] }
 0x713   : > { %22595 = vmatprep.subr.bf16.mxu0 %v24590_v44  ;;  %v10619_v40 = vpack.c.bf16 %v10615_v59, %v10615_v59 }
 0x715   : > { %22574 = vmatpush3.bf16.msra.mxu1 %v24591_v22  ;;  %v10708_v48 = vshll.u32 %v10619_v40, 16 }
 0x716   : > { %22596 = vmatpush3.bf16.msra.mxu0 %v24592_v8  ;;  %22575 = vmatprep.subr.bf16.mxu1 %v24593_v49 }
 0x717   : > { %22597 = vmatprep.subr.bf16.mxu0 %v24594_v58 }
 0x719   : > { %22576 = vmatpush3.bf16.msra.mxu1 %v24595_v6 }
 0x71a   : > { %22598 = vmatpush3.bf16.msra.mxu0 %v24596_v47  ;;  %23955 = vmatprep.subr.mxu1 %v27164_v46  ;;  %v19786_v47 = vld [vmem:[%s29807_s3 + $0x2] ss:$0 sm:$0xff] }
 0x71b   : > { %23960 = vmatprep.subr.mxu0 %v27164_v46 }
 0x71c   : > { %10334 = vmatmul.mubr.bf16.vlgmr.msra.gmra.mrb[200].mxu1 %v10083_v39 }
 0x71d   : > { %10374 = vmatmul.mubr.bf16.vlgmr.msra.gmra.mrb[120].mxu0 %v10097_v17  ;;  %23957 = vmatprep.mubr.msk.f32.mxu1 %vm25273_vm1, %v27164_v46  ;;  %v10692_v17 = vshrl.u32 %v10617_v56, 16  ;;  %v10541_v56 = vld [vmem:[#allocation3 + $0x48] sm:$0xf] }
 0x71e   : > { %23962 = vmatprep.mubr.msk.f32.mxu0 %vm25273_vm1, %v27164_v46 }
 0x76e   : > { %v8931_v19 = vpop.f32.mrb[104].mxu0  ;;  %v8859_v3 = vpop.f32.mrb[184].mxu1 }
 0x76f   : > { %v8937_v55 = vrot.slane %v8931_v19, 7  ;;  %8935 = vst [vmem:[#allocation4 + $0xc] sm:$0x3] %v8859_v3  ;;  %v23949_v45 = vpop.f32.mrb[185].mxu1  ;;  %v23954_v5 = vpop.f32.mrb[105].mxu0  ;;  %v10696_v19 = vrot.slane %v10694_v10, 1  ;;  %v10545_v10 = vpack.c.bf16 %v10541_v56, %v10541_v56 }
 0x770   : > { %v24597_v3 = vld [vmem:[%s29806_s2 + $0x540] sm:$0xff]   ;;  %v10706_v45 = vshrl.u32 %v10619_v40, 16  ;;  %v10710_v5 = vrot.slane %v10708_v48, 1  ;;  %v24634_v48 = vld [vmem:[%s29806_s2 + $0x4c8] sm:$0xff]  }
 0x771   : > { %8939 = vst [vmem:[#allocation4 + $0x8] sm:$0x6] %v8937_v55  ;;  %v24598_v55 = vld [vmem:[%s29806_s2 + $0x5c0] sm:$0xff]  }
 0x772   : > { %v24632_v40 = vld [vmem:[%s29806_s2 + $0x480] sm:$0xff]  }
 0x773   : > { %v24680_v56 = vld [vmem:[%s29806_s2 + $0x6a0] sm:$0xff]  }
 0x78f   : > { %v22445_v33 = vpop.f32.mrb[188].mxu1 }
 0x790   : > { %v22467_v37 = vpop.f32.mrb[108].mxu0  ;;  %v22446_v43 = vpop.f32.mrb[189].mxu1 }
 0x791   : > { %v22447_v2 = vadd.f32 %v22446_v43, %v22445_v33  ;;  %v22468_v52 = vpop.f32.mrb[109].mxu0  ;;  %v22448_v31 = vpop.f32.mrb[190].mxu1  ;;  %v24600_v43 = vld [vmem:[%s29806_s2 + $0x580] sm:$0xff]  }
 0x792   : > { %v22469_v35 = vadd.f32 %v22468_v52, %v22467_v37  ;;  %v22470_v34 = vpop.f32.mrb[110].mxu0  ;;  %v22449_v21 = vpop.f32.mrb[191].mxu1  ;;  %v24599_v37 = vld [vmem:[%s29806_s2 + $0x500] sm:$0xff]   ;;  %v24601_v52 = vld [vmem:[%s29806_s2 + $0x548] sm:$0xff]  }
 0x793   : > { %v22471_v23 = vpop.f32.mrb[111].mxu0  ;;  %v24602_v31 = vld [vmem:[%s29806_s2 + $0x5c8] sm:$0xff]  }
 0x794   : > { %v9383_v7 = vadd.f32 %v22469_v35, %v22447_v2  ;;  %v10697_v2 = vor.u32 %v10696_v19, %v10692_v17  ;;  %v10711_v35 = vor.u32 %v10710_v5, %v10706_v45  ;;  %v24603_v34 = vld [vmem:[%s29806_s2 + $0x508] sm:$0xff]   ;;  %v24605_v23 = vld [vmem:[%s29806_s2 + $0x550] sm:$0xff]   ;;  %v24641_v5 = vld [vmem:[%s29806_s2 + $0x458] sm:$0xff]  }
 0x795   : > { %v24604_v21 = vld [vmem:[%s29806_s2 + $0x588] sm:$0xff]   ;;  %v24637_v19 = vld [vmem:[%s29806_s2 + $0x450] sm:$0xff]  }
 0x796   : > { %v24636_v17 = vld [vmem:[%s29806_s2 + $0x488] sm:$0xff]   ;;  %v24640_v45 = vld [vmem:[%s29806_s2 + $0x490] sm:$0xff]  }
 0x7af   : > { %v22489_v36 = vpop.f32.mrb[192].mxu1 }
 0x7b0   : > { %v22511_v46 = vpop.f32.mrb[112].mxu0  ;;  %v22490_v24 = vpop.f32.mrb[193].mxu1 }
 0x7b1   : > { %v22491_v62 = vadd.f32 %v22490_v24, %v22489_v36  ;;  %v22512_v38 = vpop.f32.mrb[113].mxu0  ;;  %v22492_v11 = vpop.f32.mrb[194].mxu1  ;;  %v24607_v36 = vld [vmem:[%s29806_s2 + $0x510] sm:$0xff]   ;;  %v24609_v24 = vld [vmem:[%s29806_s2 + $0x558] sm:$0xff]  }
 0x7b2   : > { %v22513_v60 = vadd.f32 %v22512_v38, %v22511_v46  ;;  %v22514_v28 = vpop.f32.mrb[114].mxu0  ;;  %v22493_v30 = vpop.f32.mrb[195].mxu1  ;;  %v24608_v46 = vld [vmem:[%s29806_s2 + $0x590] sm:$0xff]   ;;  %v24611_v38 = vld [vmem:[%s29806_s2 + $0x518] sm:$0xff]  }
 0x7b3   : > { %v9615_v4 = vadd.f32 %v22491_v62, %v9383_v7  ;;  %v22515_v25 = vpop.f32.mrb[115].mxu0  ;;  %v24606_v7 = vld [vmem:[%s29806_s2 + $0x5d0] sm:$0xff]   ;;  %v24610_v62 = vld [vmem:[%s29806_s2 + $0x5d8] sm:$0xff]   ;;  %v24614_v28 = vld [vmem:[%s29806_s2 + $0x5e0] sm:$0xff]  }
 0x7b4   : > { %v24612_v11 = vld [vmem:[%s29806_s2 + $0x598] sm:$0xff]   ;;  %v24615_v30 = vld [vmem:[%s29806_s2 + $0x520] sm:$0xff]   ;;  %v24617_v25 = vld [vmem:[%s29806_s2 + $0x568] sm:$0xff]  }
 0x7b5   : > { %v9655_v26 = vadd.f32 %v22513_v60, %v9615_v4  ;;  %v24613_v60 = vld [vmem:[%s29806_s2 + $0x560] sm:$0xff]  }
 0x7b6   : > { %v24616_v4 = vld [vmem:[%s29806_s2 + $0x5a0] sm:$0xff]  }
 0x7cf   : > { %v22533_v18 = vpop.f32.mrb[196].mxu1 }
 0x7d0   : > { %v22555_v9 = vpop.f32.mrb[116].mxu0  ;;  %v22534_v0 = vpop.f32.mrb[197].mxu1 }
 0x7d1   : > { %v22535_v27 = vadd.f32 %v22534_v0, %v22533_v18  ;;  %v22556_v42 = vpop.f32.mrb[117].mxu0  ;;  %v22536_v41 = vpop.f32.mrb[198].mxu1  ;;  %v10612_v18 = vld [vmem:[#allocation3 + $0x40] sm:$0x1e]  ;;  %v24619_v0 = vld [vmem:[%s29806_s2 + $0x528] sm:$0xff]  }
 0x7d2   : > { %v22557_v50 = vadd.f32 %v22556_v42, %v22555_v9  ;;  %v22558_v14 = vpop.f32.mrb[118].mxu0  ;;  %v22537_v13 = vpop.f32.mrb[199].mxu1  ;;  %v10614_v9 = vld [vmem:[#allocation3 + $0x50] sm:$0x1e]  ;;  %v10616_v41 = vpack.c.bf16 %v10612_v18, %v10612_v18  ;;  %v24663_v18 = vld [vmem:[%s29806_s2 + $0x600] sm:$0xff]  }
 0x7d3   : > { %v22559_v63 = vpop.f32.mrb[119].mxu0  ;;  %v24621_v42 = vld [vmem:[%s29806_s2 + $0x570] sm:$0xff]   ;;  %v10618_v14 = vpack.c.bf16 %v10614_v9, %v10614_v9  ;;  %v11261_v9 = vld [vmem:[#allocation3 + $0x68] sm:$0xf] }
 0x7d4   : > { %v9999_v57 = vadd.f32 %v22557_v50, %v22535_v27  ;;  %v24620_v27 = vld [vmem:[%s29806_s2 + $0x5a8] sm:$0xff]   ;;  %v24622_v50 = vld [vmem:[%s29806_s2 + $0x5f0] sm:$0xff]   ;;  %v10685_v59 = vshrl.u32 %v10616_v41, 16 }
 0x7d5   : > { %v24623_v13 = vld [vmem:[%s29806_s2 + $0x530] sm:$0xff]   ;;  %v10701_v29 = vshll.u32 %v10618_v14, 16 }
 0x7d6   : > { %v10004_v20 = vadd.f32 %v9999_v57, %v9655_v26  ;;  %v24618_v26 = vld [vmem:[%s29806_s2 + $0x5e8] sm:$0xff]   ;;  %v24624_v63 = vld [vmem:[%s29806_s2 + $0x5b0] sm:$0xff]   ;;  %v24625_v57 = vld [vmem:[%s29806_s2 + $0x578] sm:$0xff]  }
 0x7ef   : > { %v22577_v12 = vpop.f32.mrb[200].mxu1 }
 0x7f0   : > { %v22599_v1 = vpop.f32.mrb[120].mxu0  ;;  %v22578_v16 = vpop.f32.mrb[201].mxu1 }
 0x7f1   : > { %v22579_v54 = vadd.f32 %v22578_v16, %v22577_v12  ;;  %v22600_v44 = vpop.f32.mrb[121].mxu0  ;;  %v22580_v32 = vpop.f32.mrb[202].mxu1  ;;  %v24626_v12 = vld [vmem:[%s29806_s2 + $0x5f8] sm:$0xff]  }
 0x7f2   : > { %v22601_v22 = vadd.f32 %v22600_v44, %v22599_v1  ;;  %v22602_v8 = vpop.f32.mrb[122].mxu0  ;;  %v22581_v49 = vpop.f32.mrb[203].mxu1  ;;  %v24627_v1 = vld [vmem:[%s29806_s2 + $0x538] sm:$0xff]   ;;  %v24629_v44 = vld [vmem:[%s29806_s2 + $0x440] sm:$0xff]   ;;  %v10699_v32 = vshrl.u32 %v10618_v14, 16  ;;  %v11265_v14 = vpack.c.bf16 %v11261_v9, %v11261_v9  ;;  %v24704_v9 = vld [vmem:[%s29806_s2 + $0x790] sm:$0xff]  }
 0x7f3   : > { %v22603_v58 = vpop.f32.mrb[123].mxu0  ;;  %v24628_v16 = vld [vmem:[%s29806_s2 + $0x5b8] sm:$0xff]   ;;  %v24630_v8 = vld [vmem:[%s29806_s2 + $0x4c0] sm:$0xff]  }
 0x7f4   : > { %v10376_v6 = vadd.f32 %v22601_v22, %v22579_v54  ;;  %v10703_v22 = vrot.slane %v10701_v29, 1  ;;  %v24631_v49 = vld [vmem:[%s29806_s2 + $0x400] sm:$0xff]   ;;  %v24670_v29 = vld [vmem:[%s29806_s2 + $0x6d0] sm:$0xff]  }
 0x7f6   : > { %v10381_v61 = vadd.f32 %v10376_v6, %v10004_v20  ;;  %v10687_v20 = vshll.u32 %v10616_v41, 16  ;;  %v10543_v6 = vld [vmem:[#allocation3 + $0x58] sm:$0xf] }
 0x7f8   : > { %v10387_v15 = vadd.f32 %v19786_v47, %v10381_v61  ;;  %v10689_v54 = vrot.slane %v10687_v20, 1  ;;  %v10704_v47 = vor.u32 %v10703_v22, %v10699_v32  ;;  %v24633_v61 = vld [vmem:[%s29806_s2 + $0x448] sm:$0xff]   ;;  %v24676_v32 = vld [vmem:[%s29806_s2 + $0x698] sm:$0xff]   ;;  %v24677_v22 = vld [vmem:[%s29806_s2 + $0x660] sm:$0xff]  }
 0x7f9   : > { %v24668_v20 = vld [vmem:[%s29806_s2 + $0x688] sm:$0xff]  }
 0x7fa   : > { %vm10388_vm6 = vcmp.gt.f32.partialorder %v10387_v15, 0.0  ;;  %v10389_v39 = vmul.f32 0.2, %v10387_v15  ;;  %v10690_v58 = vor.u32 %v10689_v54, %v10685_v59  ;;  %v24673_v59 = vld [vmem:[%s29806_s2 + $0x658] sm:$0xff]  }
 0x7fb   : > { %v24674_v54 = vld [vmem:[%s29806_s2 + $0x6d8] sm:$0xff]  }
 0x7fc   : > { %v10390_v33 = vsel %vm10388_vm6, %v10387_v15, %v10389_v39  ;;  %v10547_v15 = vpack.c.bf16 %v10543_v6, %v10543_v6  ;;  %v24635_v39 = vld [vmem:[%s29806_s2 + $0x408] sm:$0xff]  }
 0x7fd   : > { %23956 = vmatpush3.msk.msra.mxu1 %vm8789_vm4, %v10390_v33  ;;  %23961 = vmatpush3.msk.msra.mxu0 %vm8789_vm4, %v10390_v33  ;;  %v24642_v33 = vld [vmem:[%s29806_s2 + $0x4d8] sm:$0xff]   ;;  %v24683_v6 = vld [vmem:[%s29806_s2 + $0x628] sm:$0xff]  }
 0x7fe   : > { %23958 = vmatmul.mubr.msk.f32.vlgmr.msra.gmra.mrb[186].mxu1 %vm8786_vm5, %v29894_v53  ;;  %23963 = vmatmul.mubr.msk.f32.vlgmr.msra.gmra.mrb[106].mxu0 %vm8786_vm5, %v29895_v51 }
 0x7ff   : > { %22609 = vmatprep.subr.bf16.mxu1 %v24597_v3  ;;  %22631 = vmatprep.subr.bf16.mxu0 %v24598_v55  ;;  %v24638_v3 = vld [vmem:[%s29806_s2 + $0x4d0] sm:$0xff]  }
 0x800   : > { %22610 = vmatpush3.bf16.msra.mxu1 %v24599_v37  ;;  %10940 = vmatprep.mubr.bf16.mxu1 %v10697_v2  ;;  %v24639_v55 = vld [vmem:[%s29806_s2 + $0x410] sm:$0xff]   ;;  %v24643_v37 = vld [vmem:[%s29806_s2 + $0x418] sm:$0xff]   ;;  %v24645_v2 = vld [vmem:[%s29806_s2 + $0x460] sm:$0xff]  }
 0x801   : > { %22632 = vmatpush3.bf16.msra.mxu0 %v24600_v43  ;;  %10980 = vmatprep.mubr.bf16.mxu0 %v10711_v35  ;;  %v24644_v43 = vld [vmem:[%s29806_s2 + $0x498] sm:$0xff]   ;;  %v24648_v35 = vld [vmem:[%s29806_s2 + $0x4a0] sm:$0xff]  }
 0x802   : > { %22611 = vmatprep.subr.bf16.mxu1 %v24601_v52  ;;  %22633 = vmatprep.subr.bf16.mxu0 %v24602_v31  ;;  %v24646_v52 = vld [vmem:[%s29806_s2 + $0x4e0] sm:$0xff]  }
 0x803   : > { %v24647_v31 = vld [vmem:[%s29806_s2 + $0x420] sm:$0xff]  }
 0x804   : > { %22612 = vmatpush3.bf16.msra.mxu1 %v24603_v34  ;;  %v24649_v34 = vld [vmem:[%s29806_s2 + $0x468] sm:$0xff]  }
 0x805   : > { %22634 = vmatpush3.bf16.msra.mxu0 %v24604_v21  ;;  %22613 = vmatprep.subr.bf16.mxu1 %v24605_v23  ;;  %v24650_v21 = vld [vmem:[%s29806_s2 + $0x4e8] sm:$0xff]  }
 0x806   : > { %22635 = vmatprep.subr.bf16.mxu0 %v24606_v7  ;;  %v24651_v23 = vld [vmem:[%s29806_s2 + $0x428] sm:$0xff]  }
 0x807   : > { %v24652_v7 = vld [vmem:[%s29806_s2 + $0x4a8] sm:$0xff]  }
 0x808   : > { %22614 = vmatpush3.bf16.msra.mxu1 %v24607_v36  ;;  %v24653_v36 = vld [vmem:[%s29806_s2 + $0x470] sm:$0xff]  }
 0x809   : > { %22636 = vmatpush3.bf16.msra.mxu0 %v24608_v46  ;;  %22615 = vmatprep.subr.bf16.mxu1 %v24609_v24  ;;  %v24654_v46 = vld [vmem:[%s29806_s2 + $0x4f0] sm:$0xff]  }
 0x80a   : > { %22637 = vmatprep.subr.bf16.mxu0 %v24610_v62  ;;  %v24655_v24 = vld [vmem:[%s29806_s2 + $0x430] sm:$0xff]  }
 0x80b   : > { %v24656_v62 = vld [vmem:[%s29806_s2 + $0x4b0] sm:$0xff]  }
 0x80c   : > { %22616 = vmatpush3.bf16.msra.mxu1 %v24611_v38  ;;  %v24657_v38 = vld [vmem:[%s29806_s2 + $0x478] sm:$0xff]  }
 0x80d   : > { %22638 = vmatpush3.bf16.msra.mxu0 %v24612_v11  ;;  %22617 = vmatprep.subr.bf16.mxu1 %v24613_v60  ;;  %v24658_v11 = vld [vmem:[%s29806_s2 + $0x4f8] sm:$0xff]  }
 0x80e   : > { %22639 = vmatprep.subr.bf16.mxu0 %v24614_v28  ;;  %v24659_v60 = vld [vmem:[%s29806_s2 + $0x438] sm:$0xff]  }
 0x80f   : > { %v24660_v28 = vld [vmem:[%s29806_s2 + $0x4b8] sm:$0xff]  }
 0x810   : > { %22618 = vmatpush3.bf16.msra.mxu1 %v24615_v30  ;;  %v24661_v30 = vld [vmem:[%s29806_s2 + $0x640] sm:$0xff]  }
 0x811   : > { %22640 = vmatpush3.bf16.msra.mxu0 %v24616_v4  ;;  %22619 = vmatprep.subr.bf16.mxu1 %v24617_v25  ;;  %v10540_v4 = vld [vmem:[#allocation3 + $0x40] sm:$0xf] }
 0x812   : > { %22641 = vmatprep.subr.bf16.mxu0 %v24618_v26  ;;  %v24662_v25 = vld [vmem:[%s29806_s2 + $0x6c0] sm:$0xff]   ;;  %v10542_v26 = vld [vmem:[#allocation3 + $0x50] sm:$0xf] }
 0x813   : > { %v10546_v41 = vpack.c.bf16 %v10542_v26, %v10542_v26  ;;  %v24702_v26 = vld [vmem:[%s29806_s2 + $0x7d0] sm:$0xff]  }
 0x814   : > { %22620 = vmatpush3.bf16.msra.mxu1 %v24619_v0  ;;  %v10544_v0 = vpack.c.bf16 %v10540_v4, %v10540_v4  ;;  %v24700_v4 = vld [vmem:[%s29806_s2 + $0x788] sm:$0xff]  }
 0x815   : > { %22642 = vmatpush3.bf16.msra.mxu0 %v24620_v27  ;;  %22621 = vmatprep.subr.bf16.mxu1 %v24621_v42  ;;  %v24664_v27 = vld [vmem:[%s29806_s2 + $0x680] sm:$0xff]   ;;  %v11263_v42 = vld [vmem:[#allocation3 + $0x78] sm:$0xf] }
 0x816   : > { %22643 = vmatprep.subr.bf16.mxu0 %v24622_v50  ;;  %v24665_v50 = vld [vmem:[%s29806_s2 + $0x648] sm:$0xff]  }
 0x818   : > { %22622 = vmatpush3.bf16.msra.mxu1 %v24623_v13  ;;  %v24666_v13 = vld [vmem:[%s29806_s2 + $0x6c8] sm:$0xff]  }
 0x819   : > { %22644 = vmatpush3.bf16.msra.mxu0 %v24624_v63  ;;  %22623 = vmatprep.subr.bf16.mxu1 %v24625_v57  ;;  %v11267_v63 = vpack.c.bf16 %v11263_v42, %v11263_v42  ;;  %v24667_v57 = vld [vmem:[%s29806_s2 + $0x608] sm:$0xff]   ;;  %v24707_v42 = vld [vmem:[%s29806_s2 + $0x718] sm:$0xff]  }
 0x81a   : > { %22645 = vmatprep.subr.bf16.mxu0 %v24626_v12  ;;  %v24669_v12 = vld [vmem:[%s29806_s2 + $0x650] sm:$0xff]  }
 0x81c   : > { %22624 = vmatpush3.bf16.msra.mxu1 %v24627_v1  ;;  %v24671_v1 = vld [vmem:[%s29806_s2 + $0x610] sm:$0xff]  }
 0x81d   : > { %22646 = vmatpush3.bf16.msra.mxu0 %v24628_v16  ;;  %22653 = vmatprep.subr.bf16.mxu1 %v24629_v44  ;;  %v24672_v16 = vld [vmem:[%s29806_s2 + $0x690] sm:$0xff]   ;;  %v24675_v44 = vld [vmem:[%s29806_s2 + $0x618] sm:$0xff]  }
 0x81e   : > { %22675 = vmatprep.subr.bf16.mxu0 %v24630_v8  ;;  %v24678_v8 = vld [vmem:[%s29806_s2 + $0x6e0] sm:$0xff]  }
 0x81f   : > { %10941 = vmatmul.mubr.bf16.vlgmr.msra.gmra.mrb[204].mxu1 %v10690_v58  ;;  %v24681_v58 = vld [vmem:[%s29806_s2 + $0x668] sm:$0xff]  }
 0x820   : > { %10981 = vmatmul.mubr.bf16.vlgmr.msra.gmra.mrb[124].mxu0 %v10704_v47  ;;  %22654 = vmatpush3.bf16.msra.mxu1 %v24631_v49  ;;  %v24679_v49 = vld [vmem:[%s29806_s2 + $0x620] sm:$0xff]   ;;  %v11606_v47 = vld [vmem:[#allocation3 + $0x68] sm:$0x1e] }
 0x821   : > { %11212 = vmatprep.mubr.bf16.mxu1 %v10545_v10  ;;  %22676 = vmatpush3.bf16.msra.mxu0 %v24632_v40  ;;  %v24682_v40 = vld [vmem:[%s29806_s2 + $0x6e8] sm:$0xff]   ;;  %v24685_v10 = vld [vmem:[%s29806_s2 + $0x670] sm:$0xff]  }
 0x822   : > { %11252 = vmatprep.mubr.bf16.mxu0 %v10547_v15  ;;  %22655 = vmatprep.subr.bf16.mxu1 %v24633_v61  ;;  %v24684_v61 = vld [vmem:[%s29806_s2 + $0x6a8] sm:$0xff]   ;;  %v24686_v15 = vld [vmem:[%s29806_s2 + $0x6f0] sm:$0xff]  }
 0x823   : > { %22677 = vmatprep.subr.bf16.mxu0 %v24634_v48  ;;  %v11608_v48 = vld [vmem:[#allocation3 + $0x78] sm:$0x1e] }
 0x824   : > { %22656 = vmatpush3.bf16.msra.mxu1 %v24635_v39  ;;  %v11610_v39 = vpack.c.bf16 %v11606_v47, %v11606_v47  ;;  %v24724_v47 = vld [vmem:[%s29806_s2 + $0x7b8] sm:$0xff]  }
 0x825   : > { %22678 = vmatpush3.bf16.msra.mxu0 %v24636_v17  ;;  %22657 = vmatprep.subr.bf16.mxu1 %v24637_v19  ;;  %v24687_v17 = vld [vmem:[%s29806_s2 + $0x630] sm:$0xff]   ;;  %v11612_v19 = vpack.c.bf16 %v11608_v48, %v11608_v48 }
 0x826   : > { %22679 = vmatprep.subr.bf16.mxu0 %v24638_v3  ;;  %v24688_v3 = vld [vmem:[%s29806_s2 + $0x6b0] sm:$0xff]  }
 0x828   : > { %22658 = vmatpush3.bf16.msra.mxu1 %v24639_v55  ;;  %v24689_v55 = vld [vmem:[%s29806_s2 + $0x678] sm:$0xff]  }
 0x829   : > { %22680 = vmatpush3.bf16.msra.mxu0 %v24640_v45  ;;  %22659 = vmatprep.subr.bf16.mxu1 %v24641_v5  ;;  %v24690_v45 = vld [vmem:[%s29806_s2 + $0x6f8] sm:$0xff]   ;;  %v11687_v5 = vshll.u32 %v11610_v39, 16 }
 0x82a   : > { %22681 = vmatprep.subr.bf16.mxu0 %v24642_v33  ;;  %v24691_v33 = vld [vmem:[%s29806_s2 + $0x638] sm:$0xff]  }
 0x82c   : > { %22660 = vmatpush3.bf16.msra.mxu1 %v24643_v37  ;;  %v11701_v37 = vshll.u32 %v11612_v19, 16 }
 0x82d   : > { %22682 = vmatpush3.bf16.msra.mxu0 %v24644_v43  ;;  %22661 = vmatprep.subr.bf16.mxu1 %v24645_v2  ;;  %v24692_v43 = vld [vmem:[%s29806_s2 + $0x6b8] sm:$0xff]   ;;  %v24693_v2 = vld [vmem:[%s29806_s2 + $0x740] sm:$0xff]  }
 0x82e   : > { %22683 = vmatprep.subr.bf16.mxu0 %v24646_v52  ;;  %v11260_v52 = vld [vmem:[#allocation3 + $0x60] sm:$0xf] }
 0x830   : > { %22662 = vmatpush3.bf16.msra.mxu1 %v24647_v31  ;;  %v24694_v31 = vld [vmem:[%s29806_s2 + $0x7c0] sm:$0xff]  }
 0x831   : > { %22684 = vmatpush3.bf16.msra.mxu0 %v24648_v35  ;;  %22663 = vmatprep.subr.bf16.mxu1 %v24649_v34  ;;  %v11262_v35 = vld [vmem:[#allocation3 + $0x70] sm:$0xf]  ;;  %v11685_v34 = vshrl.u32 %v11610_v39, 16 }
 0x832   : > { %22685 = vmatprep.subr.bf16.mxu0 %v24650_v21  ;;  %v11689_v21 = vrot.slane %v11687_v5, 1 }
 0x834   : > { %22664 = vmatpush3.bf16.msra.mxu1 %v24651_v23  ;;  %v24695_v23 = vld [vmem:[%s29806_s2 + $0x700] sm:$0xff]  }
 0x835   : > { %22686 = vmatpush3.bf16.msra.mxu0 %v24652_v7  ;;  %22665 = vmatprep.subr.bf16.mxu1 %v24653_v36  ;;  %v11699_v7 = vshrl.u32 %v11612_v19, 16  ;;  %v11703_v36 = vrot.slane %v11701_v37, 1 }
 0x836   : > { %22687 = vmatprep.subr.bf16.mxu0 %v24654_v46  ;;  %v11264_v46 = vpack.c.bf16 %v11260_v52, %v11260_v52 }
 0x838   : > { %22666 = vmatpush3.bf16.msra.mxu1 %v24655_v24  ;;  %v24696_v24 = vld [vmem:[%s29806_s2 + $0x780] sm:$0xff]  }
 0x839   : > { %22688 = vmatpush3.bf16.msra.mxu0 %v24656_v62  ;;  %22667 = vmatprep.subr.bf16.mxu1 %v24657_v38  ;;  %v11266_v62 = vpack.c.bf16 %v11262_v35, %v11262_v35  ;;  %v24697_v38 = vld [vmem:[%s29806_s2 + $0x748] sm:$0xff]  }
 0x83a   : > { %22689 = vmatprep.subr.bf16.mxu0 %v24658_v11  ;;  %v11690_v11 = vor.u32 %v11689_v21, %v11685_v34 }
 0x83c   : > { %22668 = vmatpush3.bf16.msra.mxu1 %v24659_v60  ;;  %v24698_v60 = vld [vmem:[%s29806_s2 + $0x7c8] sm:$0xff]  }
 0x83d   : > { %22690 = vmatpush3.bf16.msra.mxu0 %v24660_v28  ;;  %22697 = vmatprep.subr.bf16.mxu1 %v24661_v30  ;;  %v11704_v28 = vor.u32 %v11703_v36, %v11699_v7  ;;  %v24699_v30 = vld [vmem:[%s29806_s2 + $0x708] sm:$0xff]  }
 0x83e   : > { %22719 = vmatprep.subr.bf16.mxu0 %v24662_v25  ;;  %v24701_v25 = vld [vmem:[%s29806_s2 + $0x750] sm:$0xff]  }
 0x83f   : > { %11213 = vmatmul.mubr.bf16.vlgmr.msra.gmra.mrb[208].mxu1 %v10544_v0  ;;  %v24705_v0 = vld [vmem:[%s29806_s2 + $0x758] sm:$0xff]  }
 0x840   : > { %11253 = vmatmul.mubr.bf16.vlgmr.msra.gmra.mrb[128].mxu0 %v10546_v41  ;;  %22698 = vmatpush3.bf16.msra.mxu1 %v24663_v18  ;;  %v24703_v18 = vld [vmem:[%s29806_s2 + $0x710] sm:$0xff]   ;;  %v24708_v41 = vld [vmem:[%s29806_s2 + $0x798] sm:$0xff]  }
 0x841   : > { %11556 = vmatprep.mubr.bf16.mxu1 %v11265_v14  ;;  %22720 = vmatpush3.bf16.msra.mxu0 %v24664_v27  ;;  %v24706_v27 = vld [vmem:[%s29806_s2 + $0x7d8] sm:$0xff]   ;;  %v24710_v14 = vld [vmem:[%s29806_s2 + $0x7e0] sm:$0xff]  }
 0x842   : > { %11596 = vmatprep.mubr.bf16.mxu0 %v11267_v63  ;;  %22699 = vmatprep.subr.bf16.mxu1 %v24665_v50  ;;  %v24709_v50 = vld [vmem:[%s29806_s2 + $0x760] sm:$0xff]  }
 0x843   : > { %22721 = vmatprep.subr.bf16.mxu0 %v24666_v13  ;;  %v24711_v13 = vld [vmem:[%s29806_s2 + $0x720] sm:$0xff]  }
 0x844   : > { %22700 = vmatpush3.bf16.msra.mxu1 %v24667_v57  ;;  %v24712_v63 = vld [vmem:[%s29806_s2 + $0x7a0] sm:$0xff]   ;;  %v24713_v57 = vld [vmem:[%s29806_s2 + $0x768] sm:$0xff]  }
 0x845   : > { %22722 = vmatpush3.bf16.msra.mxu0 %v24668_v20  ;;  %22701 = vmatprep.subr.bf16.mxu1 %v24669_v12  ;;  %v24714_v20 = vld [vmem:[%s29806_s2 + $0x7e8] sm:$0xff]   ;;  %v11605_v12 = vld [vmem:[#allocation3 + $0x60] sm:$0x1e] }
 0x846   : > { %22723 = vmatprep.subr.bf16.mxu0 %v24670_v29  ;;  %v11607_v29 = vld [vmem:[#allocation3 + $0x70] sm:$0x1e] }
 0x848   : > { %22702 = vmatpush3.bf16.msra.mxu1 %v24671_v1  ;;  %v24715_v1 = vld [vmem:[%s29806_s2 + $0x728] sm:$0xff]  }
 0x849   : > { %22724 = vmatpush3.bf16.msra.mxu0 %v24672_v16  ;;  %22703 = vmatprep.subr.bf16.mxu1 %v24673_v59  ;;  %v24716_v16 = vld [vmem:[%s29806_s2 + $0x7a8] sm:$0xff]   ;;  %v24717_v59 = vld [vmem:[%s29806_s2 + $0x770] sm:$0xff]  }
 0x84a   : > { %22725 = vmatprep.subr.bf16.mxu0 %v24674_v54  ;;  %v11609_v54 = vpack.c.bf16 %v11605_v12, %v11605_v12 }
 0x84c   : > { %22704 = vmatpush3.bf16.msra.mxu1 %v24675_v44  ;;  %v24718_v44 = vld [vmem:[%s29806_s2 + $0x7f0] sm:$0xff]  }
 0x84d   : > { %22726 = vmatpush3.bf16.msra.mxu0 %v24676_v32  ;;  %22705 = vmatprep.subr.bf16.mxu1 %v24677_v22  ;;  %v11611_v32 = vpack.c.bf16 %v11607_v29, %v11607_v29  ;;  %v24719_v22 = vld [vmem:[%s29806_s2 + $0x730] sm:$0xff]  }
 0x84e   : > { %22727 = vmatprep.subr.bf16.mxu0 %v24678_v8  ;;  %v24720_v8 = vld [vmem:[%s29806_s2 + $0x7b0] sm:$0xff]  }
 0x84f   : > { %v11692_v48 = vshrl.u32 %v11611_v32, 16 }
 0x850   : > { %22706 = vmatpush3.bf16.msra.mxu1 %v24679_v49  ;;  %v24721_v49 = vld [vmem:[%s29806_s2 + $0x778] sm:$0xff]  }
 0x851   : > { %22728 = vmatpush3.bf16.msra.mxu0 %v24680_v56  ;;  %22707 = vmatprep.subr.bf16.mxu1 %v24681_v58  ;;  %v11680_v56 = vshll.u32 %v11609_v54, 16  ;;  %v24722_v58 = vld [vmem:[%s29806_s2 + $0x7f8] sm:$0xff]  }
 0x852   : > { %22729 = vmatprep.subr.bf16.mxu0 %v24682_v40  ;;  %v11694_v40 = vshll.u32 %v11611_v32, 16 }
 0x854   : > { %22708 = vmatpush3.bf16.msra.mxu1 %v24683_v6  ;;  %v24723_v6 = vld [vmem:[%s29806_s2 + $0x738] sm:$0xff]  }
 0x855   : > { %22730 = vmatpush3.bf16.msra.mxu0 %v24684_v61  ;;  %22709 = vmatprep.subr.bf16.mxu1 %v24685_v10  ;;  %v11678_v61 = vshrl.u32 %v11609_v54, 16  ;;  %v11682_v10 = vrot.slane %v11680_v56, 1  ;;  %v12214_v54 = vld [vmem:[#allocation3 + $0x78] sm:$0x1e] }
 0x856   : > { %22731 = vmatprep.subr.bf16.mxu0 %v24686_v15  ;;  %v11696_v15 = vrot.slane %v11694_v40, 1 }
 0x857   : > { %v11683_v39 = vor.u32 %v11682_v10, %v11678_v61  ;;  %v20175_v61 = vld [vmem:[%s29807_s3 + $0x2] ss:$0 sm:$0xff] }
 0x858   : > { %22710 = vmatpush3.bf16.msra.mxu1 %v24687_v17  ;;  %v28051_v17 = vld [vmem:[#allocation2] sm:$0xff]  ;;  %v11697_v19 = vor.u32 %v11696_v15, %v11692_v48 }
 0x859   : > { %22732 = vmatpush3.bf16.msra.mxu0 %v24688_v3  ;;  %22711 = vmatprep.subr.bf16.mxu1 %v24689_v55 }
 0x85a   : > { %22733 = vmatprep.subr.bf16.mxu0 %v24690_v45 }
 0x85c   : > { %22712 = vmatpush3.bf16.msra.mxu1 %v24691_v33 }
 0x85d   : > { %22734 = vmatpush3.bf16.msra.mxu0 %v24692_v43  ;;  %22741 = vmatprep.subr.bf16.mxu1 %v24693_v2 }
 0x85e   : > { %22763 = vmatprep.subr.bf16.mxu0 %v24694_v31 }
 0x85f   : > { %11557 = vmatmul.mubr.bf16.vlgmr.msra.gmra.mrb[212].mxu1 %v11264_v46 }
 0x860   : > { %11597 = vmatmul.mubr.bf16.vlgmr.msra.gmra.mrb[132].mxu0 %v11266_v62  ;;  %22742 = vmatpush3.bf16.msra.mxu1 %v24695_v23 }
 0x861   : > { %11933 = vmatprep.mubr.bf16.mxu1 %v11690_v11  ;;  %22764 = vmatpush3.bf16.msra.mxu0 %v24696_v24 }
 0x862   : > { %11973 = vmatprep.mubr.bf16.mxu0 %v11704_v28  ;;  %22743 = vmatprep.subr.bf16.mxu1 %v24697_v38 }
 0x863   : > { %22765 = vmatprep.subr.bf16.mxu0 %v24698_v60 }
 0x864   : > { %22744 = vmatpush3.bf16.msra.mxu1 %v24699_v30 }
 0x865   : > { %22766 = vmatpush3.bf16.msra.mxu0 %v24700_v4  ;;  %22745 = vmatprep.subr.bf16.mxu1 %v24701_v25 }
 0x866   : > { %22767 = vmatprep.subr.bf16.mxu0 %v24702_v26 }
 0x868   : > { %22746 = vmatpush3.bf16.msra.mxu1 %v24703_v18 }
 0x869   : > { %22768 = vmatpush3.bf16.msra.mxu0 %v24704_v9  ;;  %22747 = vmatprep.subr.bf16.mxu1 %v24705_v0 }
 0x86a   : > { %22769 = vmatprep.subr.bf16.mxu0 %v24706_v27 }
 0x86c   : > { %22748 = vmatpush3.bf16.msra.mxu1 %v24707_v42 }
 0x86d   : > { %22770 = vmatpush3.bf16.msra.mxu0 %v24708_v41  ;;  %22749 = vmatprep.subr.bf16.mxu1 %v24709_v50 }
 0x86e   : > { %22771 = vmatprep.subr.bf16.mxu0 %v24710_v14 }
 0x870   : > { %22750 = vmatpush3.bf16.msra.mxu1 %v24711_v13 }
 0x871   : > { %22772 = vmatpush3.bf16.msra.mxu0 %v24712_v63  ;;  %22751 = vmatprep.subr.bf16.mxu1 %v24713_v57 }
 0x872   : > { %22773 = vmatprep.subr.bf16.mxu0 %v24714_v20 }
 0x874   : > { %22752 = vmatpush3.bf16.msra.mxu1 %v24715_v1  ;;  %v12212_v1 = vld [vmem:[#allocation3 + $0x68] sm:$0x1e] }
 0x875   : > { %22774 = vmatpush3.bf16.msra.mxu0 %v24716_v16  ;;  %22753 = vmatprep.subr.bf16.mxu1 %v24717_v59 }
 0x876   : > { %22775 = vmatprep.subr.bf16.mxu0 %v24718_v44 }
 0x878   : > { %22754 = vmatpush3.bf16.msra.mxu1 %v24719_v22 }
 0x879   : > { %22776 = vmatpush3.bf16.msra.mxu0 %v24720_v8  ;;  %22755 = vmatprep.subr.bf16.mxu1 %v24721_v49 }
 0x87a   : > { %22777 = vmatprep.subr.bf16.mxu0 %v24722_v58  ;;  %v12216_v58 = vpack.c.bf16 %v12212_v1, %v12212_v1  ;;  %v24754_v1 = vld [vmem:[%s29806_s2 + $0x5f8] sm:$0xff]  }
 0x87c   : > { %22756 = vmatpush3.bf16.msra.mxu1 %v24723_v6  ;;  %v12218_v6 = vpack.c.bf16 %v12214_v54, %v12214_v54  ;;  %v12293_v48 = vshll.u32 %v12216_v58, 16  ;;  %v24756_v54 = vld [vmem:[%s29806_s2 + $0x5b8] sm:$0xff]  }
 0x87d   : > { %22778 = vmatpush3.bf16.msra.mxu0 %v24724_v47  ;;  %23965 = vmatprep.subr.mxu1 %v28051_v17 }
 0x87e   : > { %23970 = vmatprep.subr.mxu0 %v28051_v17  ;;  %v12307_v15 = vshll.u32 %v12218_v6, 16 }
 0x87f   : > { %11934 = vmatmul.mubr.bf16.vlgmr.msra.gmra.mrb[216].mxu1 %v11683_v39 }
 0x880   : > { %11974 = vmatmul.mubr.bf16.vlgmr.msra.gmra.mrb[136].mxu0 %v11697_v19  ;;  %23967 = vmatprep.mubr.msk.f32.mxu1 %vm25273_vm1, %v28051_v17 }
 0x881   : > { %23972 = vmatprep.mubr.msk.f32.mxu0 %vm25273_vm1, %v28051_v17 }
 0x8d1   : > { %v10530_v3 = vpop.f32.mrb[106].mxu0  ;;  %v10460_v55 = vpop.f32.mrb[186].mxu1 }
 0x8d2   : > { %v10537_v45 = vrot.slane %v10530_v3, 7  ;;  %10535 = vst [vmem:[#allocation4 + $0x14] sm:$0x3] %v10460_v55  ;;  %v23959_v5 = vpop.f32.mrb[187].mxu1  ;;  %v23964_v33 = vpop.f32.mrb[107].mxu0  ;;  %v12291_v3 = vshrl.u32 %v12216_v58, 16 }
 0x8d3   : > { %v12295_v55 = vrot.slane %v12293_v48, 1  ;;  %v24726_v5 = vld [vmem:[%s29806_s2 + $0x5c0] sm:$0xff]   ;;  %v12305_v33 = vshrl.u32 %v12218_v6, 16  ;;  %v24761_v48 = vld [vmem:[%s29806_s2 + $0x448] sm:$0xff]  }
 0x8d4   : > { %10539 = vst [vmem:[#allocation4 + $0x10] sm:$0x6] %v10537_v45  ;;  %v24725_v45 = vld [vmem:[%s29806_s2 + $0x540] sm:$0xff]  }
 0x8d5   : > { %v24759_v58 = vld [vmem:[%s29806_s2 + $0x400] sm:$0xff]  }
 0x8f2   : > { %v22625_v37 = vpop.f32.mrb[204].mxu1 }
 0x8f3   : > { %v22647_v43 = vpop.f32.mrb[124].mxu0  ;;  %v22626_v2 = vpop.f32.mrb[205].mxu1 }
 0x8f4   : > { %v22627_v52 = vadd.f32 %v22626_v2, %v22625_v37  ;;  %v22648_v31 = vpop.f32.mrb[125].mxu0  ;;  %v22628_v35 = vpop.f32.mrb[206].mxu1  ;;  %v12309_v37 = vrot.slane %v12307_v15, 1  ;;  %v24727_v2 = vld [vmem:[%s29806_s2 + $0x500] sm:$0xff]  }
 0x8f5   : > { %v22649_v34 = vadd.f32 %v22648_v31, %v22647_v43  ;;  %v22650_v21 = vpop.f32.mrb[126].mxu0  ;;  %v22629_v23 = vpop.f32.mrb[207].mxu1  ;;  %v12296_v31 = vor.u32 %v12295_v55, %v12291_v3  ;;  %v24729_v35 = vld [vmem:[%s29806_s2 + $0x548] sm:$0xff]  }
 0x8f6   : > { %v22651_v7 = vpop.f32.mrb[127].mxu0  ;;  %v12310_v21 = vor.u32 %v12309_v37, %v12305_v33  ;;  %v24731_v23 = vld [vmem:[%s29806_s2 + $0x508] sm:$0xff]   ;;  %v24767_v33 = vld [vmem:[%s29806_s2 + $0x410] sm:$0xff]  }
 0x8f7   : > { %v10983_v36 = vadd.f32 %v22649_v34, %v22627_v52  ;;  %v24728_v52 = vld [vmem:[%s29806_s2 + $0x580] sm:$0xff]   ;;  %v24730_v34 = vld [vmem:[%s29806_s2 + $0x5c8] sm:$0xff]   ;;  %v24768_v37 = vld [vmem:[%s29806_s2 + $0x490] sm:$0xff]  }
 0x8f8   : > { %v24732_v7 = vld [vmem:[%s29806_s2 + $0x588] sm:$0xff]  }
 0x8f9   : > { %v24763_v3 = vld [vmem:[%s29806_s2 + $0x408] sm:$0xff]  }
 0x8fa   : > { %v24764_v55 = vld [vmem:[%s29806_s2 + $0x488] sm:$0xff]  }
 0x912   : > { %v22669_v46 = vpop.f32.mrb[208].mxu1 }
 0x913   : > { %v22691_v24 = vpop.f32.mrb[128].mxu0  ;;  %v22670_v62 = vpop.f32.mrb[209].mxu1 }
 0x914   : > { %v22671_v38 = vadd.f32 %v22670_v62, %v22669_v46  ;;  %v22692_v11 = vpop.f32.mrb[129].mxu0  ;;  %v22672_v60 = vpop.f32.mrb[210].mxu1  ;;  %v24734_v46 = vld [vmem:[%s29806_s2 + $0x5d0] sm:$0xff]  }
 0x915   : > { %v22693_v28 = vadd.f32 %v22692_v11, %v22691_v24  ;;  %v22694_v30 = vpop.f32.mrb[130].mxu0  ;;  %v22673_v4 = vpop.f32.mrb[211].mxu1  ;;  %v24735_v24 = vld [vmem:[%s29806_s2 + $0x510] sm:$0xff]   ;;  %v24738_v11 = vld [vmem:[%s29806_s2 + $0x5d8] sm:$0xff]  }
 0x916   : > { %v11215_v25 = vadd.f32 %v22671_v38, %v10983_v36  ;;  %v22695_v26 = vpop.f32.mrb[131].mxu0  ;;  %v24733_v36 = vld [vmem:[%s29806_s2 + $0x550] sm:$0xff]   ;;  %v24737_v38 = vld [vmem:[%s29806_s2 + $0x558] sm:$0xff]   ;;  %v24741_v30 = vld [vmem:[%s29806_s2 + $0x560] sm:$0xff]  }
 0x917   : > { %v24736_v62 = vld [vmem:[%s29806_s2 + $0x590] sm:$0xff]   ;;  %v24739_v60 = vld [vmem:[%s29806_s2 + $0x518] sm:$0xff]   ;;  %v24742_v4 = vld [vmem:[%s29806_s2 + $0x5e0] sm:$0xff]  }
 0x918   : > { %v11255_v18 = vadd.f32 %v22693_v28, %v11215_v25  ;;  %v24740_v28 = vld [vmem:[%s29806_s2 + $0x598] sm:$0xff]   ;;  %v24743_v25 = vld [vmem:[%s29806_s2 + $0x520] sm:$0xff]  }
 0x919   : > { %v24744_v26 = vld [vmem:[%s29806_s2 + $0x5a0] sm:$0xff]  }
 0x932   : > { %v22713_v9 = vpop.f32.mrb[212].mxu1 }
 0x933   : > { %v22735_v0 = vpop.f32.mrb[132].mxu0  ;;  %v22714_v27 = vpop.f32.mrb[213].mxu1 }
 0x934   : > { %v22715_v42 = vadd.f32 %v22714_v27, %v22713_v9  ;;  %v22736_v41 = vpop.f32.mrb[133].mxu0  ;;  %v22716_v50 = vpop.f32.mrb[214].mxu1  ;;  %v24746_v9 = vld [vmem:[%s29806_s2 + $0x5e8] sm:$0xff]   ;;  %v12213_v27 = vld [vmem:[#allocation3 + $0x70] sm:$0x1e] }
 0x935   : > { %v22737_v14 = vadd.f32 %v22736_v41, %v22735_v0  ;;  %v22738_v13 = vpop.f32.mrb[134].mxu0  ;;  %v22717_v63 = vpop.f32.mrb[215].mxu1  ;;  %v12211_v0 = vld [vmem:[#allocation3 + $0x60] sm:$0x1e]  ;;  %v24748_v41 = vld [vmem:[%s29806_s2 + $0x5a8] sm:$0xff]   ;;  %v24749_v50 = vld [vmem:[%s29806_s2 + $0x570] sm:$0xff]  }
 0x936   : > { %v22739_v57 = vpop.f32.mrb[135].mxu0  ;;  %v24750_v13 = vld [vmem:[%s29806_s2 + $0x5f0] sm:$0xff]   ;;  %v12217_v63 = vpack.c.bf16 %v12213_v27, %v12213_v27  ;;  %v24791_v27 = vld [vmem:[%s29806_s2 + $0x600] sm:$0xff]  }
 0x937   : > { %v11599_v20 = vadd.f32 %v22737_v14, %v22715_v42  ;;  %v24747_v42 = vld [vmem:[%s29806_s2 + $0x528] sm:$0xff]   ;;  %v12215_v14 = vpack.c.bf16 %v12211_v0, %v12211_v0  ;;  %v24751_v57 = vld [vmem:[%s29806_s2 + $0x530] sm:$0xff]  }
 0x938   : > { %v12141_v0 = vld [vmem:[#allocation3 + $0x70] sm:$0xf] }
 0x939   : > { %v11604_v12 = vadd.f32 %v11599_v20, %v11255_v18  ;;  %v24745_v18 = vld [vmem:[%s29806_s2 + $0x568] sm:$0xff]   ;;  %v24752_v20 = vld [vmem:[%s29806_s2 + $0x5b0] sm:$0xff]  }
 0x952   : > { %v22757_v29 = vpop.f32.mrb[216].mxu1 }
 0x953   : > { %v22779_v16 = vpop.f32.mrb[136].mxu0  ;;  %v22758_v59 = vpop.f32.mrb[217].mxu1 }
 0x954   : > { %v22759_v44 = vadd.f32 %v22758_v59, %v22757_v29  ;;  %v22780_v32 = vpop.f32.mrb[137].mxu0  ;;  %v22760_v22 = vpop.f32.mrb[218].mxu1  ;;  %v12286_v29 = vshll.u32 %v12215_v14, 16  ;;  %v24755_v59 = vld [vmem:[%s29806_s2 + $0x538] sm:$0xff]  }
 0x955   : > { %v22781_v8 = vadd.f32 %v22780_v32, %v22779_v16  ;;  %v22782_v49 = vpop.f32.mrb[138].mxu0  ;;  %v22761_v56 = vpop.f32.mrb[219].mxu1  ;;  %v12300_v16 = vshll.u32 %v12217_v63, 16  ;;  %v24757_v22 = vld [vmem:[%s29806_s2 + $0x440] sm:$0xff]  }
 0x956   : > { %v22783_v40 = vpop.f32.mrb[139].mxu0  ;;  %v12288_v32 = vrot.slane %v12286_v29, 1  ;;  %v24758_v56 = vld [vmem:[%s29806_s2 + $0x4c0] sm:$0xff]   ;;  %v24795_v29 = vld [vmem:[%s29806_s2 + $0x608] sm:$0xff]  }
 0x957   : > { %v11976_v47 = vadd.f32 %v22781_v8, %v22759_v44  ;;  %v12284_v44 = vshrl.u32 %v12215_v14, 16  ;;  %v12298_v8 = vshrl.u32 %v12217_v63, 16  ;;  %v12302_v49 = vrot.slane %v12300_v16, 1  ;;  %v12140_v40 = vld [vmem:[#allocation3 + $0x68] sm:$0xf]  ;;  %v24792_v14 = vld [vmem:[%s29806_s2 + $0x680] sm:$0xff]  }
 0x958   : > { %v12144_v15 = vpack.c.bf16 %v12140_v40, %v12140_v40  ;;  %v24793_v63 = vld [vmem:[%s29806_s2 + $0x648] sm:$0xff]   ;;  %v24797_v16 = vld [vmem:[%s29806_s2 + $0x650] sm:$0xff]   ;;  %v24807_v40 = vld [vmem:[%s29806_s2 + $0x620] sm:$0xff]  }
 0x959   : > { %v11981_v10 = vadd.f32 %v11976_v47, %v11604_v12  ;;  %v24753_v12 = vld [vmem:[%s29806_s2 + $0x578] sm:$0xff]   ;;  %v12289_v6 = vor.u32 %v12288_v32, %v12284_v44  ;;  %v24760_v47 = vld [vmem:[%s29806_s2 + $0x480] sm:$0xff]   ;;  %v24800_v44 = vld [vmem:[%s29806_s2 + $0x690] sm:$0xff]  }
 0x95a   : > { %v24801_v32 = vld [vmem:[%s29806_s2 + $0x658] sm:$0xff]  }
 0x95b   : > { %v11987_v39 = vadd.f32 %v20175_v61, %v11981_v10  ;;  %v12142_v61 = vld [vmem:[#allocation3 + $0x78] sm:$0xf]  ;;  %v12303_v10 = vor.u32 %v12302_v49, %v12298_v8 }
 0x95c   : > { %v24803_v8 = vld [vmem:[%s29806_s2 + $0x618] sm:$0xff]  }
 0x95d   : > { %vm11988_vm7 = vcmp.gt.f32.partialorder %v11987_v39, 0.0  ;;  %v11989_v19 = vmul.f32 0.2, %v11987_v39  ;;  %v24804_v49 = vld [vmem:[%s29806_s2 + $0x698] sm:$0xff]  }
 0x95f   : > { %v11990_v43 = vsel %vm11988_vm7, %v11987_v39, %v11989_v19  ;;  %v24762_v39 = vld [vmem:[%s29806_s2 + $0x4c8] sm:$0xff]   ;;  %v12146_v19 = vpack.c.bf16 %v12142_v61, %v12142_v61 }
 0x960   : > { %23966 = vmatpush3.msk.msra.mxu1 %vm8789_vm4, %v11990_v43  ;;  %23971 = vmatpush3.msk.msra.mxu0 %vm8789_vm4, %v11990_v43  ;;  %v24769_v43 = vld [vmem:[%s29806_s2 + $0x458] sm:$0xff]   ;;  %v24810_v61 = vld [vmem:[%s29806_s2 + $0x6e8] sm:$0xff]  }
 0x961   : > { %23968 = vmatmul.mubr.msk.f32.vlgmr.msra.gmra.mrb[220].mxu1 %vm8786_vm5, %v29894_v53  ;;  %23973 = vmatmul.mubr.msk.f32.vlgmr.msra.gmra.mrb[140].mxu0 %vm8786_vm5, %v29895_v51 }
 0x962   : > { %22789 = vmatprep.subr.bf16.mxu1 %v24725_v45  ;;  %22811 = vmatprep.subr.bf16.mxu0 %v24726_v5  ;;  %v24765_v45 = vld [vmem:[%s29806_s2 + $0x450] sm:$0xff]  }
 0x963   : > { %22790 = vmatpush3.bf16.msra.mxu1 %v24727_v2  ;;  %12539 = vmatprep.mubr.bf16.mxu1 %v12296_v31  ;;  %v24766_v5 = vld [vmem:[%s29806_s2 + $0x4d0] sm:$0xff]   ;;  %v24770_v2 = vld [vmem:[%s29806_s2 + $0x4d8] sm:$0xff]  }
 0x964   : > { %22812 = vmatpush3.bf16.msra.mxu0 %v24728_v52  ;;  %12579 = vmatprep.mubr.bf16.mxu0 %v12310_v21  ;;  %v24771_v52 = vld [vmem:[%s29806_s2 + $0x418] sm:$0xff]   ;;  %v24775_v21 = vld [vmem:[%s29806_s2 + $0x420] sm:$0xff]  }
 0x965   : > { %22791 = vmatprep.subr.bf16.mxu1 %v24729_v35  ;;  %22813 = vmatprep.subr.bf16.mxu0 %v24730_v34  ;;  %v24772_v31 = vld [vmem:[%s29806_s2 + $0x498] sm:$0xff]   ;;  %v24773_v35 = vld [vmem:[%s29806_s2 + $0x460] sm:$0xff]  }
 0x966   : > { %v24774_v34 = vld [vmem:[%s29806_s2 + $0x4e0] sm:$0xff]  }
 0x967   : > { %22792 = vmatpush3.bf16.msra.mxu1 %v24731_v23  ;;  %v24776_v23 = vld [vmem:[%s29806_s2 + $0x4a0] sm:$0xff]  }
 0x968   : > { %22814 = vmatpush3.bf16.msra.mxu0 %v24732_v7  ;;  %22793 = vmatprep.subr.bf16.mxu1 %v24733_v36  ;;  %v24777_v7 = vld [vmem:[%s29806_s2 + $0x468] sm:$0xff]  }
 0x969   : > { %22815 = vmatprep.subr.bf16.mxu0 %v24734_v46  ;;  %v24778_v36 = vld [vmem:[%s29806_s2 + $0x4e8] sm:$0xff]  }
 0x96a   : > { %v24779_v46 = vld [vmem:[%s29806_s2 + $0x428] sm:$0xff]  }
 0x96b   : > { %22794 = vmatpush3.bf16.msra.mxu1 %v24735_v24  ;;  %v24780_v24 = vld [vmem:[%s29806_s2 + $0x4a8] sm:$0xff]  }
 0x96c   : > { %22816 = vmatpush3.bf16.msra.mxu0 %v24736_v62  ;;  %22795 = vmatprep.subr.bf16.mxu1 %v24737_v38  ;;  %v24781_v62 = vld [vmem:[%s29806_s2 + $0x470] sm:$0xff]  }
 0x96d   : > { %22817 = vmatprep.subr.bf16.mxu0 %v24738_v11  ;;  %v24782_v38 = vld [vmem:[%s29806_s2 + $0x4f0] sm:$0xff]  }
 0x96e   : > { %v24783_v11 = vld [vmem:[%s29806_s2 + $0x430] sm:$0xff]  }
 0x96f   : > { %22796 = vmatpush3.bf16.msra.mxu1 %v24739_v60  ;;  %v24784_v60 = vld [vmem:[%s29806_s2 + $0x4b0] sm:$0xff]  }
 0x970   : > { %22818 = vmatpush3.bf16.msra.mxu0 %v24740_v28  ;;  %22797 = vmatprep.subr.bf16.mxu1 %v24741_v30  ;;  %v24785_v28 = vld [vmem:[%s29806_s2 + $0x478] sm:$0xff]  }
 0x971   : > { %22819 = vmatprep.subr.bf16.mxu0 %v24742_v4  ;;  %v24786_v30 = vld [vmem:[%s29806_s2 + $0x4f8] sm:$0xff]  }
 0x972   : > { %v24787_v4 = vld [vmem:[%s29806_s2 + $0x438] sm:$0xff]  }
 0x973   : > { %22798 = vmatpush3.bf16.msra.mxu1 %v24743_v25  ;;  %v24788_v25 = vld [vmem:[%s29806_s2 + $0x4b8] sm:$0xff]  }
 0x974   : > { %22820 = vmatpush3.bf16.msra.mxu0 %v24744_v26  ;;  %22799 = vmatprep.subr.bf16.mxu1 %v24745_v18  ;;  %v24789_v26 = vld [vmem:[%s29806_s2 + $0x640] sm:$0xff]  }
 0x975   : > { %22821 = vmatprep.subr.bf16.mxu0 %v24746_v9  ;;  %v12139_v18 = vld [vmem:[#allocation3 + $0x60] sm:$0xf] }
 0x976   : > { %v24790_v9 = vld [vmem:[%s29806_s2 + $0x6c0] sm:$0xff]  }
 0x977   : > { %22800 = vmatpush3.bf16.msra.mxu1 %v24747_v42  ;;  %v12860_v42 = vld [vmem:[#allocation3 + $0x88] sm:$0xf] }
 0x978   : > { %22822 = vmatpush3.bf16.msra.mxu0 %v24748_v41  ;;  %22801 = vmatprep.subr.bf16.mxu1 %v24749_v50  ;;  %v12862_v41 = vld [vmem:[#allocation3 + $0x98] sm:$0xf]  ;;  %v12143_v50 = vpack.c.bf16 %v12139_v18, %v12139_v18  ;;  %v24827_v18 = vld [vmem:[%s29806_s2 + $0x708] sm:$0xff]  }
 0x979   : > { %22823 = vmatprep.subr.bf16.mxu0 %v24750_v13  ;;  %v12145_v13 = vpack.c.bf16 %v12141_v0, %v12141_v0  ;;  %v24829_v0 = vld [vmem:[%s29806_s2 + $0x750] sm:$0xff]  }
 0x97b   : > { %22802 = vmatpush3.bf16.msra.mxu1 %v24751_v57  ;;  %v24794_v57 = vld [vmem:[%s29806_s2 + $0x6c8] sm:$0xff]  }
 0x97c   : > { %22824 = vmatpush3.bf16.msra.mxu0 %v24752_v20  ;;  %22803 = vmatprep.subr.bf16.mxu1 %v24753_v12  ;;  %v12864_v20 = vpack.c.bf16 %v12860_v42, %v12860_v42  ;;  %v12866_v12 = vpack.c.bf16 %v12862_v41, %v12862_v41  ;;  %v24831_v42 = vld [vmem:[%s29806_s2 + $0x710] sm:$0xff]  }
 0x97d   : > { %22825 = vmatprep.subr.bf16.mxu0 %v24754_v1  ;;  %v24796_v1 = vld [vmem:[%s29806_s2 + $0x688] sm:$0xff]   ;;  %v24832_v41 = vld [vmem:[%s29806_s2 + $0x790] sm:$0xff]  }
 0x97f   : > { %22804 = vmatpush3.bf16.msra.mxu1 %v24755_v59  ;;  %v24798_v59 = vld [vmem:[%s29806_s2 + $0x6d0] sm:$0xff]  }
 0x980   : > { %22826 = vmatpush3.bf16.msra.mxu0 %v24756_v54  ;;  %22833 = vmatprep.subr.bf16.mxu1 %v24757_v22  ;;  %v24799_v54 = vld [vmem:[%s29806_s2 + $0x610] sm:$0xff]   ;;  %v24802_v22 = vld [vmem:[%s29806_s2 + $0x6d8] sm:$0xff]  }
 0x981   : > { %22855 = vmatprep.subr.bf16.mxu0 %v24758_v56  ;;  %v24805_v56 = vld [vmem:[%s29806_s2 + $0x660] sm:$0xff]  }
 0x982   : > { %12540 = vmatmul.mubr.bf16.vlgmr.msra.gmra.mrb[224].mxu1 %v12289_v6  ;;  %v24808_v6 = vld [vmem:[%s29806_s2 + $0x6a0] sm:$0xff]  }
 0x983   : > { %12580 = vmatmul.mubr.bf16.vlgmr.msra.gmra.mrb[144].mxu0 %v12303_v10  ;;  %22834 = vmatpush3.bf16.msra.mxu1 %v24759_v58  ;;  %v24806_v58 = vld [vmem:[%s29806_s2 + $0x6e0] sm:$0xff]   ;;  %v24811_v10 = vld [vmem:[%s29806_s2 + $0x628] sm:$0xff]  }
 0x984   : > { %12811 = vmatprep.mubr.bf16.mxu1 %v12144_v15  ;;  %22856 = vmatpush3.bf16.msra.mxu0 %v24760_v47  ;;  %v24809_v47 = vld [vmem:[%s29806_s2 + $0x668] sm:$0xff]   ;;  %v13207_v15 = vld [vmem:[#allocation3 + $0x98] sm:$0x1e] }
 0x985   : > { %12851 = vmatprep.mubr.bf16.mxu0 %v12146_v19  ;;  %22835 = vmatprep.subr.bf16.mxu1 %v24761_v48  ;;  %v13205_v48 = vld [vmem:[#allocation3 + $0x88] sm:$0x1e]  ;;  %v24813_v19 = vld [vmem:[%s29806_s2 + $0x670] sm:$0xff]  }
 0x986   : > { %22857 = vmatprep.subr.bf16.mxu0 %v24762_v39  ;;  %v24812_v39 = vld [vmem:[%s29806_s2 + $0x6a8] sm:$0xff]  }
 0x987   : > { %22836 = vmatpush3.bf16.msra.mxu1 %v24763_v3  ;;  %v24814_v3 = vld [vmem:[%s29806_s2 + $0x6f0] sm:$0xff]  }
 0x988   : > { %22858 = vmatpush3.bf16.msra.mxu0 %v24764_v55  ;;  %22837 = vmatprep.subr.bf16.mxu1 %v24765_v45  ;;  %v13209_v55 = vpack.c.bf16 %v13205_v48, %v13205_v48  ;;  %v13211_v45 = vpack.c.bf16 %v13207_v15, %v13207_v15  ;;  %v24851_v48 = vld [vmem:[%s29806_s2 + $0x738] sm:$0xff]  }
 0x989   : > { %22859 = vmatprep.subr.bf16.mxu0 %v24766_v5  ;;  %v24815_v5 = vld [vmem:[%s29806_s2 + $0x630] sm:$0xff]  }
 0x98b   : > { %22838 = vmatpush3.bf16.msra.mxu1 %v24767_v33  ;;  %v24816_v33 = vld [vmem:[%s29806_s2 + $0x6b0] sm:$0xff]  }
 0x98c   : > { %22860 = vmatpush3.bf16.msra.mxu0 %v24768_v37  ;;  %22839 = vmatprep.subr.bf16.mxu1 %v24769_v43  ;;  %v24817_v37 = vld [vmem:[%s29806_s2 + $0x678] sm:$0xff]  }
 0x98d   : > { %22861 = vmatprep.subr.bf16.mxu0 %v24770_v2  ;;  %v24818_v43 = vld [vmem:[%s29806_s2 + $0x6f8] sm:$0xff]   ;;  %v13286_v2 = vshll.u32 %v13209_v55, 16 }
 0x98f   : > { %22840 = vmatpush3.bf16.msra.mxu1 %v24771_v52  ;;  %v13300_v52 = vshll.u32 %v13211_v45, 16 }
 0x990   : > { %22862 = vmatpush3.bf16.msra.mxu0 %v24772_v31  ;;  %22841 = vmatprep.subr.bf16.mxu1 %v24773_v35  ;;  %v24819_v31 = vld [vmem:[%s29806_s2 + $0x638] sm:$0xff]  }
 0x991   : > { %22863 = vmatprep.subr.bf16.mxu0 %v24774_v34  ;;  %v24820_v35 = vld [vmem:[%s29806_s2 + $0x6b8] sm:$0xff]   ;;  %v12861_v34 = vld [vmem:[#allocation3 + $0x90] sm:$0xf] }
 0x993   : > { %22842 = vmatpush3.bf16.msra.mxu1 %v24775_v21  ;;  %v24821_v21 = vld [vmem:[%s29806_s2 + $0x740] sm:$0xff]  }
 0x994   : > { %22864 = vmatpush3.bf16.msra.mxu0 %v24776_v23  ;;  %22843 = vmatprep.subr.bf16.mxu1 %v24777_v7  ;;  %v12859_v23 = vld [vmem:[#allocation3 + $0x80] sm:$0xf] }
 0x995   : > { %22865 = vmatprep.subr.bf16.mxu0 %v24778_v36  ;;  %v24822_v7 = vld [vmem:[%s29806_s2 + $0x7c0] sm:$0xff]   ;;  %v13284_v36 = vshrl.u32 %v13209_v55, 16 }
 0x997   : > { %22844 = vmatpush3.bf16.msra.mxu1 %v24779_v46  ;;  %v13288_v46 = vrot.slane %v13286_v2, 1 }
 0x998   : > { %22866 = vmatpush3.bf16.msra.mxu0 %v24780_v24  ;;  %22845 = vmatprep.subr.bf16.mxu1 %v24781_v62  ;;  %v13298_v24 = vshrl.u32 %v13211_v45, 16  ;;  %v13302_v62 = vrot.slane %v13300_v52, 1 }
 0x999   : > { %22867 = vmatprep.subr.bf16.mxu0 %v24782_v38  ;;  %v12865_v38 = vpack.c.bf16 %v12861_v34, %v12861_v34 }
 0x99b   : > { %22846 = vmatpush3.bf16.msra.mxu1 %v24783_v11  ;;  %v24823_v11 = vld [vmem:[%s29806_s2 + $0x700] sm:$0xff]  }
 0x99c   : > { %22868 = vmatpush3.bf16.msra.mxu0 %v24784_v60  ;;  %22847 = vmatprep.subr.bf16.mxu1 %v24785_v28  ;;  %v12863_v60 = vpack.c.bf16 %v12859_v23, %v12859_v23  ;;  %v24824_v28 = vld [vmem:[%s29806_s2 + $0x780] sm:$0xff]  }
 0x99d   : > { %22869 = vmatprep.subr.bf16.mxu0 %v24786_v30  ;;  %v24825_v30 = vld [vmem:[%s29806_s2 + $0x748] sm:$0xff]  }
 0x99f   : > { %22848 = vmatpush3.bf16.msra.mxu1 %v24787_v4  ;;  %v24826_v4 = vld [vmem:[%s29806_s2 + $0x7c8] sm:$0xff]  }
 0x9a0   : > { %22870 = vmatpush3.bf16.msra.mxu0 %v24788_v25  ;;  %22877 = vmatprep.subr.bf16.mxu1 %v24789_v26  ;;  %v13289_v25 = vor.u32 %v13288_v46, %v13284_v36  ;;  %v13303_v26 = vor.u32 %v13302_v62, %v13298_v24 }
 0x9a1   : > { %22899 = vmatprep.subr.bf16.mxu0 %v24790_v9  ;;  %v24828_v9 = vld [vmem:[%s29806_s2 + $0x788] sm:$0xff]  }
 0x9a2   : > { %12812 = vmatmul.mubr.bf16.vlgmr.msra.gmra.mrb[228].mxu1 %v12143_v50  ;;  %v24833_v50 = vld [vmem:[%s29806_s2 + $0x758] sm:$0xff]  }
 0x9a3   : > { %12852 = vmatmul.mubr.bf16.vlgmr.msra.gmra.mrb[148].mxu0 %v12145_v13  ;;  %22878 = vmatpush3.bf16.msra.mxu1 %v24791_v27  ;;  %v24830_v27 = vld [vmem:[%s29806_s2 + $0x7d0] sm:$0xff]   ;;  %v24835_v13 = vld [vmem:[%s29806_s2 + $0x718] sm:$0xff]  }
 0x9a4   : > { %13155 = vmatprep.mubr.bf16.mxu1 %v12864_v20  ;;  %22900 = vmatpush3.bf16.msra.mxu0 %v24792_v14  ;;  %v24834_v14 = vld [vmem:[%s29806_s2 + $0x7d8] sm:$0xff]   ;;  %v24838_v20 = vld [vmem:[%s29806_s2 + $0x7e0] sm:$0xff]  }
 0x9a5   : > { %22879 = vmatprep.subr.bf16.mxu1 %v24793_v63  ;;  %22901 = vmatprep.subr.bf16.mxu0 %v24794_v57  ;;  %v24836_v63 = vld [vmem:[%s29806_s2 + $0x798] sm:$0xff]   ;;  %v24837_v57 = vld [vmem:[%s29806_s2 + $0x760] sm:$0xff]  }
 0x9a6   : > { %13195 = vmatprep.mubr.bf16.mxu0 %v12866_v12  ;;  %v24839_v12 = vld [vmem:[%s29806_s2 + $0x720] sm:$0xff]  }
 0x9a7   : > { %22880 = vmatpush3.bf16.msra.mxu1 %v24795_v29  ;;  %v24840_v29 = vld [vmem:[%s29806_s2 + $0x7a0] sm:$0xff]  }
 0x9a8   : > { %22902 = vmatpush3.bf16.msra.mxu0 %v24796_v1  ;;  %22881 = vmatprep.subr.bf16.mxu1 %v24797_v16  ;;  %v24841_v1 = vld [vmem:[%s29806_s2 + $0x768] sm:$0xff]   ;;  %v13206_v16 = vld [vmem:[#allocation3 + $0x90] sm:$0x1e] }
 0x9a9   : > { %22903 = vmatprep.subr.bf16.mxu0 %v24798_v59  ;;  %v24842_v59 = vld [vmem:[%s29806_s2 + $0x7e8] sm:$0xff]  }
 0x9ab   : > { %22882 = vmatpush3.bf16.msra.mxu1 %v24799_v54  ;;  %v13204_v54 = vld [vmem:[#allocation3 + $0x80] sm:$0x1e] }
 0x9ac   : > { %22904 = vmatpush3.bf16.msra.mxu0 %v24800_v44  ;;  %22883 = vmatprep.subr.bf16.mxu1 %v24801_v32  ;;  %v24843_v44 = vld [vmem:[%s29806_s2 + $0x728] sm:$0xff]   ;;  %v13210_v32 = vpack.c.bf16 %v13206_v16, %v13206_v16 }
 0x9ad   : > { %22905 = vmatprep.subr.bf16.mxu0 %v24802_v22  ;;  %v24844_v22 = vld [vmem:[%s29806_s2 + $0x7a8] sm:$0xff]  }
 0x9ae   : > { %v13291_v15 = vshrl.u32 %v13210_v32, 16 }
 0x9af   : > { %22884 = vmatpush3.bf16.msra.mxu1 %v24803_v8  ;;  %v24845_v8 = vld [vmem:[%s29806_s2 + $0x770] sm:$0xff]  }
 0x9b0   : > { %22906 = vmatpush3.bf16.msra.mxu0 %v24804_v49  ;;  %22885 = vmatprep.subr.bf16.mxu1 %v24805_v56  ;;  %v13208_v49 = vpack.c.bf16 %v13204_v54, %v13204_v54  ;;  %v24846_v56 = vld [vmem:[%s29806_s2 + $0x7f0] sm:$0xff]   ;;  %v28460_v54 = vld [vmem:[#allocation4 + $0x8] sm:$0x66] }
 0x9b1   : > { %22907 = vmatprep.subr.bf16.mxu0 %v24806_v58  ;;  %v24847_v58 = vld [vmem:[%s29806_s2 + $0x730] sm:$0xff]  }
 0x9b3   : > { %22886 = vmatpush3.bf16.msra.mxu1 %v24807_v40  ;;  %v13293_v40 = vshll.u32 %v13210_v32, 16 }
 0x9b4   : > { %22908 = vmatpush3.bf16.msra.mxu0 %v24808_v6  ;;  %22887 = vmatprep.subr.bf16.mxu1 %v24809_v47  ;;  %v24848_v6 = vld [vmem:[%s29806_s2 + $0x7b0] sm:$0xff]   ;;  %v24849_v47 = vld [vmem:[%s29806_s2 + $0x778] sm:$0xff]  }
 0x9b5   : > { %22909 = vmatprep.subr.bf16.mxu0 %v24810_v61  ;;  %v13279_v61 = vshll.u32 %v13208_v49, 16 }
 0x9b7   : > { %22888 = vmatpush3.bf16.msra.mxu1 %v24811_v10  ;;  %v24850_v10 = vld [vmem:[%s29806_s2 + $0x7f8] sm:$0xff]   ;;  %v13281_v55 = vrot.slane %v13279_v61, 1 }
 0x9b8   : > { %22910 = vmatpush3.bf16.msra.mxu0 %v24812_v39  ;;  %22889 = vmatprep.subr.bf16.mxu1 %v24813_v19  ;;  %v13295_v39 = vrot.slane %v13293_v40, 1  ;;  %v24852_v19 = vld [vmem:[%s29806_s2 + $0x7b8] sm:$0xff]  }
 0x9b9   : > { %22911 = vmatprep.subr.bf16.mxu0 %v24814_v3  ;;  %v13277_v3 = vshrl.u32 %v13208_v49, 16 }
 0x9ba   : > { %v13296_v45 = vor.u32 %v13295_v39, %v13291_v15 }
 0x9bb   : > { %22890 = vmatpush3.bf16.msra.mxu1 %v24815_v5  ;;  %v13282_v5 = vor.u32 %v13281_v55, %v13277_v3 }
 0x9bc   : > { %22912 = vmatpush3.bf16.msra.mxu0 %v24816_v33  ;;  %22891 = vmatprep.subr.bf16.mxu1 %v24817_v37 }
 0x9bd   : > { %22913 = vmatprep.subr.bf16.mxu0 %v24818_v43 }
 0x9bf   : > { %22892 = vmatpush3.bf16.msra.mxu1 %v24819_v31 }
 0x9c0   : > { %22914 = vmatpush3.bf16.msra.mxu0 %v24820_v35  ;;  %22921 = vmatprep.subr.bf16.mxu1 %v24821_v21 }
 0x9c1   : > { %22943 = vmatprep.subr.bf16.mxu0 %v24822_v7 }
 0x9c2   : > { %13156 = vmatmul.mubr.bf16.vlgmr.msra.gmra.mrb[232].mxu1 %v12863_v60 }
 0x9c3   : > { %13196 = vmatmul.mubr.bf16.vlgmr.msra.gmra.mrb[152].mxu0 %v12865_v38  ;;  %22922 = vmatpush3.bf16.msra.mxu1 %v24823_v11 }
 0x9c4   : > { %13532 = vmatprep.mubr.bf16.mxu1 %v13289_v25  ;;  %22944 = vmatpush3.bf16.msra.mxu0 %v24824_v28 }
 0x9c5   : > { %22923 = vmatprep.subr.bf16.mxu1 %v24825_v30  ;;  %22945 = vmatprep.subr.bf16.mxu0 %v24826_v4 }
 0x9c6   : > { %13572 = vmatprep.mubr.bf16.mxu0 %v13303_v26 }
 0x9c7   : > { %22924 = vmatpush3.bf16.msra.mxu1 %v24827_v18 }
 0x9c8   : > { %22946 = vmatpush3.bf16.msra.mxu0 %v24828_v9  ;;  %22925 = vmatprep.subr.bf16.mxu1 %v24829_v0 }
 0x9c9   : > { %22947 = vmatprep.subr.bf16.mxu0 %v24830_v27 }
 0x9cb   : > { %22926 = vmatpush3.bf16.msra.mxu1 %v24831_v42 }
 0x9cc   : > { %22948 = vmatpush3.bf16.msra.mxu0 %v24832_v41  ;;  %22927 = vmatprep.subr.bf16.mxu1 %v24833_v50 }
 0x9cd   : > { %22949 = vmatprep.subr.bf16.mxu0 %v24834_v14 }
 0x9cf   : > { %22928 = vmatpush3.bf16.msra.mxu1 %v24835_v13 }
 0x9d0   : > { %22950 = vmatpush3.bf16.msra.mxu0 %v24836_v63  ;;  %22929 = vmatprep.subr.bf16.mxu1 %v24837_v57 }
 0x9d1   : > { %22951 = vmatprep.subr.bf16.mxu0 %v24838_v20 }
 0x9d3   : > { %22930 = vmatpush3.bf16.msra.mxu1 %v24839_v12 }
 0x9d4   : > { %22952 = vmatpush3.bf16.msra.mxu0 %v24840_v29  ;;  %22931 = vmatprep.subr.bf16.mxu1 %v24841_v1 }
 0x9d5   : > { %22953 = vmatprep.subr.bf16.mxu0 %v24842_v59  ;;  %v28458_v59 = vld [vmem:[#allocation4] sm:$0x66] }
 0x9d7   : > { %22932 = vmatpush3.bf16.msra.mxu1 %v24843_v44  ;;  %v13820_v44 = vcombine.high %v28458_v59, %v28458_v59 }
 0x9d8   : > { %22954 = vmatpush3.bf16.msra.mxu0 %v24844_v22  ;;  %22933 = vmatprep.subr.bf16.mxu1 %v24845_v8  ;;  %v13821_v22 = vcombine.high %v28460_v54, %v28460_v54 }
 0x9d9   : > { %22955 = vmatprep.subr.bf16.mxu0 %v24846_v56 }
 0x9db   : > { %22934 = vmatpush3.bf16.msra.mxu1 %v24847_v58 }
 0x9dc   : > { %22956 = vmatpush3.bf16.msra.mxu0 %v24848_v6  ;;  %22935 = vmatprep.subr.bf16.mxu1 %v24849_v47 }
 0x9dd   : > { %22957 = vmatprep.subr.bf16.mxu0 %v24850_v10  ;;  %v13825_v10 = vpack.c.bf16 %v13820_v44, %v13820_v44 }
 0x9df   : > { %22936 = vmatpush3.bf16.msra.mxu1 %v24851_v48  ;;  %v13827_v48 = vpack.c.bf16 %v13821_v22, %v13821_v22  ;;  %v13903_v55 = vshll.u32 %v13825_v10, 16  ;;  %v28569_v22 = vld [vmem:[#allocation4] sm:$0x33] }
 0x9e0   : > { %22958 = vmatpush3.bf16.msra.mxu0 %v24852_v19  ;;  %23975 = vmatprep.subr.mxu1 %v28051_v17  ;;  %v20564_v19 = vld [vmem:[%s29807_s3 + $0x2] ss:$0 sm:$0xff] }
 0x9e1   : > { %23980 = vmatprep.subr.mxu0 %v28051_v17 }
 0x9e2   : > { %13533 = vmatmul.mubr.bf16.vlgmr.msra.gmra.mrb[236].mxu1 %v13282_v5 }
 0x9e3   : > { %13573 = vmatmul.mubr.bf16.vlgmr.msra.gmra.mrb[156].mxu0 %v13296_v45  ;;  %23977 = vmatprep.mubr.msk.f32.mxu1 %vm25273_vm1, %v28051_v17  ;;  %v13917_v45 = vshll.u32 %v13827_v48, 16 }
 0x9e4   : > { %23982 = vmatprep.mubr.msk.f32.mxu0 %vm25273_vm1, %v28051_v17 }
 0xa34   : > { %v12130_v33 = vpop.f32.mrb[140].mxu0  ;;  %v12060_v37 = vpop.f32.mrb[220].mxu1 }
 0xa35   : > { %v12136_v43 = vrot.slane %v12130_v33, 7  ;;  %12134 = vst [vmem:[#allocation4 + $0x1c] sm:$0x3] %v12060_v37  ;;  %v23969_v2 = vpop.f32.mrb[221].mxu1  ;;  %v23974_v52 = vpop.f32.mrb[141].mxu0  ;;  %v24853_v37 = vld [vmem:[%s29806_s2 + $0x940] sm:$0xff]  }
 0xa36   : > { %v13905_v2 = vrot.slane %v13903_v55, 1  ;;  %v24854_v52 = vld [vmem:[%s29806_s2 + $0x9c0] sm:$0xff]   ;;  %v24893_v55 = vld [vmem:[%s29806_s2 + $0x8c8] sm:$0xff]  }
 0xa37   : > { %12138 = vst [vmem:[#allocation4 + $0x18] sm:$0x6] %v12136_v43  ;;  %v13901_v43 = vshrl.u32 %v13825_v10, 16 }
 0xa55   : > { %v22805_v31 = vpop.f32.mrb[224].mxu1 }
 0xa56   : > { %v22827_v35 = vpop.f32.mrb[144].mxu0  ;;  %v22806_v34 = vpop.f32.mrb[225].mxu1 }
 0xa57   : > { %v22807_v21 = vadd.f32 %v22806_v34, %v22805_v31  ;;  %v22828_v23 = vpop.f32.mrb[145].mxu0  ;;  %v22808_v7 = vpop.f32.mrb[226].mxu1  ;;  %v13919_v31 = vrot.slane %v13917_v45, 1  ;;  %v24855_v34 = vld [vmem:[%s29806_s2 + $0x900] sm:$0xff]  }
 0xa58   : > { %v22829_v36 = vadd.f32 %v22828_v23, %v22827_v35  ;;  %v22830_v46 = vpop.f32.mrb[146].mxu0  ;;  %v22809_v24 = vpop.f32.mrb[227].mxu1  ;;  %v13915_v23 = vshrl.u32 %v13827_v48, 16  ;;  %v24858_v7 = vld [vmem:[%s29806_s2 + $0x948] sm:$0xff]  }
 0xa59   : > { %v22831_v62 = vpop.f32.mrb[147].mxu0  ;;  %v13906_v46 = vor.u32 %v13905_v2, %v13901_v43  ;;  %v24896_v43 = vld [vmem:[%s29806_s2 + $0x850] sm:$0xff]  }
 0xa5a   : > { %v12582_v38 = vadd.f32 %v22829_v36, %v22807_v21  ;;  %v24856_v21 = vld [vmem:[%s29806_s2 + $0x980] sm:$0xff]   ;;  %v24859_v36 = vld [vmem:[%s29806_s2 + $0x9c8] sm:$0xff]   ;;  %v13920_v24 = vor.u32 %v13919_v31, %v13915_v23  ;;  %v24897_v2 = vld [vmem:[%s29806_s2 + $0x8d0] sm:$0xff]  }
 0xa5b   : > { %v24860_v62 = vld [vmem:[%s29806_s2 + $0x908] sm:$0xff]   ;;  %v24899_v31 = vld [vmem:[%s29806_s2 + $0x890] sm:$0xff]   ;;  %v24903_v23 = vld [vmem:[%s29806_s2 + $0x898] sm:$0xff]  }
 0xa75   : > { %v22849_v11 = vpop.f32.mrb[228].mxu1 }
 0xa76   : > { %v22871_v17 = vpop.f32.mrb[148].mxu0  ;;  %v22850_v60 = vpop.f32.mrb[229].mxu1 }
 0xa77   : > { %v22851_v28 = vadd.f32 %v22850_v60, %v22849_v11  ;;  %v22872_v30 = vpop.f32.mrb[149].mxu0  ;;  %v22852_v4 = vpop.f32.mrb[230].mxu1  ;;  %v24862_v11 = vld [vmem:[%s29806_s2 + $0x950] sm:$0xff]  }
 0xa78   : > { %v22873_v25 = vadd.f32 %v22872_v30, %v22871_v17  ;;  %v22874_v26 = vpop.f32.mrb[150].mxu0  ;;  %v22853_v18 = vpop.f32.mrb[231].mxu1  ;;  %v24863_v17 = vld [vmem:[%s29806_s2 + $0x9d0] sm:$0xff]   ;;  %v24866_v30 = vld [vmem:[%s29806_s2 + $0x958] sm:$0xff]  }
 0xa79   : > { %v12814_v9 = vadd.f32 %v22851_v28, %v12582_v38  ;;  %v22875_v0 = vpop.f32.mrb[151].mxu0  ;;  %v24861_v38 = vld [vmem:[%s29806_s2 + $0x988] sm:$0xff]   ;;  %v24864_v60 = vld [vmem:[%s29806_s2 + $0x910] sm:$0xff]   ;;  %v24867_v4 = vld [vmem:[%s29806_s2 + $0x9d8] sm:$0xff]  }
 0xa7a   : > { %v24865_v28 = vld [vmem:[%s29806_s2 + $0x990] sm:$0xff]   ;;  %v24869_v26 = vld [vmem:[%s29806_s2 + $0x998] sm:$0xff]   ;;  %v24870_v18 = vld [vmem:[%s29806_s2 + $0x960] sm:$0xff]  }
 0xa7b   : > { %v12854_v27 = vadd.f32 %v22873_v25, %v12814_v9  ;;  %v24868_v25 = vld [vmem:[%s29806_s2 + $0x918] sm:$0xff]   ;;  %v24871_v9 = vld [vmem:[%s29806_s2 + $0x9e0] sm:$0xff]  }
 0xa7c   : > { %v24872_v0 = vld [vmem:[%s29806_s2 + $0x920] sm:$0xff]  }
 0xa95   : > { %v22893_v42 = vpop.f32.mrb[232].mxu1 }
 0xa96   : > { %v22915_v41 = vpop.f32.mrb[152].mxu0  ;;  %v22894_v50 = vpop.f32.mrb[233].mxu1 }
 0xa97   : > { %v22895_v14 = vadd.f32 %v22894_v50, %v22893_v42  ;;  %v22916_v13 = vpop.f32.mrb[153].mxu0  ;;  %v22896_v63 = vpop.f32.mrb[234].mxu1  ;;  %v24874_v42 = vld [vmem:[%s29806_s2 + $0x968] sm:$0xff]   ;;  %v13824_v50 = vpack.c.bf16 %v28458_v59, %v28458_v59  ;;  %v24883_v59 = vld [vmem:[%s29806_s2 + $0x9f8] sm:$0xff]  }
 0xa98   : > { %v22917_v57 = vadd.f32 %v22916_v13, %v22915_v41  ;;  %v22897_v20 = vpop.f32.mrb[235].mxu1  ;;  %v22918_v12 = vpop.f32.mrb[154].mxu0  ;;  %v24875_v41 = vld [vmem:[%s29806_s2 + $0x9e8] sm:$0xff]   ;;  %v13826_v63 = vpack.c.bf16 %v28460_v54, %v28460_v54 }
 0xa99   : > { %v22919_v29 = vpop.f32.mrb[155].mxu0  ;;  %v24877_v13 = vld [vmem:[%s29806_s2 + $0x9a8] sm:$0xff]   ;;  %v24879_v20 = vld [vmem:[%s29806_s2 + $0x9f0] sm:$0xff]   ;;  %v13896_v12 = vshll.u32 %v13824_v50, 16  ;;  %v13894_v44 = vshrl.u32 %v13824_v50, 16 }
 0xa9a   : > { %v13198_v1 = vadd.f32 %v22917_v57, %v22895_v14  ;;  %v24876_v14 = vld [vmem:[%s29806_s2 + $0x928] sm:$0xff]   ;;  %v24878_v57 = vld [vmem:[%s29806_s2 + $0x970] sm:$0xff]   ;;  %v13910_v54 = vshll.u32 %v13826_v63, 16  ;;  %v13908_v10 = vshrl.u32 %v13826_v63, 16  ;;  %v24923_v63 = vld [vmem:[%s29806_s2 + $0xa00] sm:$0xff]  }
 0xa9b   : > { %v24880_v29 = vld [vmem:[%s29806_s2 + $0x930] sm:$0xff]  }
 0xa9c   : > { %v13203_v16 = vadd.f32 %v13198_v1, %v12854_v27  ;;  %v24873_v27 = vld [vmem:[%s29806_s2 + $0x9a0] sm:$0xff]   ;;  %v24881_v1 = vld [vmem:[%s29806_s2 + $0x9b0] sm:$0xff]  }
 0xab5   : > { %v22937_v32 = vpop.f32.mrb[236].mxu1 }
 0xab6   : > { %v22959_v8 = vpop.f32.mrb[156].mxu0  ;;  %v22938_v49 = vpop.f32.mrb[237].mxu1 }
 0xab7   : > { %v22939_v56 = vadd.f32 %v22938_v49, %v22937_v32  ;;  %v22960_v58 = vpop.f32.mrb[157].mxu0  ;;  %v22940_v40 = vpop.f32.mrb[238].mxu1  ;;  %v13898_v32 = vrot.slane %v13896_v12, 1  ;;  %v24885_v49 = vld [vmem:[%s29806_s2 + $0x9b8] sm:$0xff]  }
 0xab8   : > { %v22961_v6 = vadd.f32 %v22960_v58, %v22959_v8  ;;  %v22941_v47 = vpop.f32.mrb[239].mxu1  ;;  %v22962_v61 = vpop.f32.mrb[158].mxu0  ;;  %v24884_v8 = vld [vmem:[%s29806_s2 + $0x938] sm:$0xff]   ;;  %v13912_v58 = vrot.slane %v13910_v54, 1  ;;  %v24887_v40 = vld [vmem:[%s29806_s2 + $0x840] sm:$0xff]   ;;  %v24930_v54 = vld [vmem:[%s29806_s2 + $0xa88] sm:$0xff]  }
 0xab9   : > { %v22963_v15 = vpop.f32.mrb[159].mxu0  ;;  %v13743_v47 = vcombine.high %v28569_v22, %v28569_v22  ;;  %v13899_v61 = vor.u32 %v13898_v32, %v13894_v44  ;;  %v24931_v44 = vld [vmem:[%s29806_s2 + $0xa50] sm:$0xff]  }
 0xaba   : > { %v13575_v39 = vadd.f32 %v22961_v6, %v22939_v56  ;;  %v28577_v56 = vld [vmem:[#allocation4 + $0x8] sm:$0x33]  ;;  %v24888_v6 = vld [vmem:[%s29806_s2 + $0x8c0] sm:$0xff]   ;;  %v24932_v32 = vld [vmem:[%s29806_s2 + $0xad0] sm:$0xff]  }
 0xabb   : > { %v13744_v48 = vcombine.high %v28577_v56, %v28577_v56  ;;  %v24889_v15 = vld [vmem:[%s29806_s2 + $0x800] sm:$0xff]   ;;  %v13748_v45 = vpack.c.bf16 %v13743_v47, %v13743_v47 }
 0xabc   : > { %v13580_v3 = vadd.f32 %v13575_v39, %v13203_v16  ;;  %v24882_v16 = vld [vmem:[%s29806_s2 + $0x978] sm:$0xff]   ;;  %v24890_v39 = vld [vmem:[%s29806_s2 + $0x880] sm:$0xff]  }
 0xabd   : > { %v24940_v47 = vld [vmem:[%s29806_s2 + $0xae0] sm:$0xff]  }
 0xabe   : > { %v13586_v5 = vadd.f32 %v20564_v19, %v13580_v3  ;;  %v13913_v19 = vor.u32 %v13912_v58, %v13908_v10  ;;  %v24892_v3 = vld [vmem:[%s29806_s2 + $0x848] sm:$0xff]   ;;  %v24937_v58 = vld [vmem:[%s29806_s2 + $0xa18] sm:$0xff]   ;;  %v28748_v10 = vld [vmem:[#allocation4 + $0x10] sm:$0x66] }
 0xac0   : > { %vm13587_vm0 = vcmp.gt.f32.partialorder %v13586_v5, 0.0  ;;  %v13588_v33 = vmul.f32 0.2, %v13586_v5 }
 0xac2   : > { %v13589_v35 = vsel %vm13587_vm0, %v13586_v5, %v13588_v33  ;;  %v13750_v5 = vpack.c.bf16 %v13744_v48, %v13744_v48  ;;  %v24894_v33 = vld [vmem:[%s29806_s2 + $0x808] sm:$0xff]   ;;  %v24942_v48 = vld [vmem:[%s29806_s2 + $0xaa0] sm:$0xff]  }
 0xac3   : > { %23976 = vmatpush3.msk.msra.mxu1 %vm8789_vm4, %v13589_v35  ;;  %23981 = vmatpush3.msk.msra.mxu0 %vm8789_vm4, %v13589_v35  ;;  %v24900_v35 = vld [vmem:[%s29806_s2 + $0x858] sm:$0xff]  }
 0xac4   : > { %23983 = vmatmul.mubr.msk.f32.vlgmr.msra.gmra.mrb[142].mxu0 %vm8786_vm5, %v29895_v51  ;;  %22969 = vmatprep.subr.bf16.mxu1 %v24853_v37  ;;  %v24895_v37 = vld [vmem:[%s29806_s2 + $0x888] sm:$0xff]  }
 0xac5   : > { %22991 = vmatprep.subr.bf16.mxu0 %v24854_v52  ;;  %23978 = vmatmul.mubr.msk.f32.vlgmr.msra.gmra.mrb[222].mxu1 %vm8786_vm5, %v29894_v53  ;;  %v24898_v52 = vld [vmem:[%s29806_s2 + $0x810] sm:$0xff]  }
 0xac6   : > { %22970 = vmatpush3.bf16.msra.mxu1 %v24855_v34  ;;  %22992 = vmatpush3.bf16.msra.mxu0 %v24856_v21  ;;  %v24901_v34 = vld [vmem:[%s29806_s2 + $0x8d8] sm:$0xff]  }
 0xac7   : > { %14189 = vmatprep.mubr.bf16.mxu0 %v13920_v24  ;;  %22971 = vmatprep.subr.bf16.mxu1 %v24858_v7  ;;  %v24902_v21 = vld [vmem:[%s29806_s2 + $0x818] sm:$0xff]   ;;  %v24904_v7 = vld [vmem:[%s29806_s2 + $0x860] sm:$0xff]  }
 0xac8   : > { %22993 = vmatprep.subr.bf16.mxu0 %v24859_v36  ;;  %14149 = vmatprep.mubr.bf16.mxu1 %v13906_v46  ;;  %v24905_v36 = vld [vmem:[%s29806_s2 + $0x8e0] sm:$0xff]  }
 0xac9   : > { %v24906_v46 = vld [vmem:[%s29806_s2 + $0x820] sm:$0xff]  }
 0xaca   : > { %22972 = vmatpush3.bf16.msra.mxu1 %v24860_v62  ;;  %22994 = vmatpush3.bf16.msra.mxu0 %v24861_v38  ;;  %v24907_v24 = vld [vmem:[%s29806_s2 + $0x8a0] sm:$0xff]   ;;  %v24908_v62 = vld [vmem:[%s29806_s2 + $0x868] sm:$0xff]  }
 0xacb   : > { %22973 = vmatprep.subr.bf16.mxu1 %v24862_v11  ;;  %22995 = vmatprep.subr.bf16.mxu0 %v24863_v17  ;;  %v24909_v38 = vld [vmem:[%s29806_s2 + $0x8e8] sm:$0xff]  }
 0xacc   : > { %v24910_v11 = vld [vmem:[%s29806_s2 + $0x828] sm:$0xff]  }
 0xacd   : > { %v24911_v17 = vld [vmem:[%s29806_s2 + $0x8a8] sm:$0xff]  }
 0xace   : > { %22974 = vmatpush3.bf16.msra.mxu1 %v24864_v60  ;;  %22996 = vmatpush3.bf16.msra.mxu0 %v24865_v28  ;;  %v24912_v60 = vld [vmem:[%s29806_s2 + $0x870] sm:$0xff]  }
 0xacf   : > { %22975 = vmatprep.subr.bf16.mxu1 %v24866_v30  ;;  %22997 = vmatprep.subr.bf16.mxu0 %v24867_v4  ;;  %v24913_v28 = vld [vmem:[%s29806_s2 + $0x8f0] sm:$0xff]  }
 0xad0   : > { %v24914_v30 = vld [vmem:[%s29806_s2 + $0x830] sm:$0xff]  }
 0xad1   : > { %v24915_v4 = vld [vmem:[%s29806_s2 + $0x8b0] sm:$0xff]  }
 0xad2   : > { %22976 = vmatpush3.bf16.msra.mxu1 %v24868_v25  ;;  %22998 = vmatpush3.bf16.msra.mxu0 %v24869_v26  ;;  %v24916_v25 = vld [vmem:[%s29806_s2 + $0x878] sm:$0xff]  }
 0xad3   : > { %22977 = vmatprep.subr.bf16.mxu1 %v24870_v18  ;;  %22999 = vmatprep.subr.bf16.mxu0 %v24871_v9  ;;  %v24917_v26 = vld [vmem:[%s29806_s2 + $0x8f8] sm:$0xff]   ;;  %v28673_v18 = vld [vmem:[#allocation4 + $0x10] sm:$0x33] }
 0xad4   : > { %v24918_v9 = vld [vmem:[%s29806_s2 + $0x838] sm:$0xff]   ;;  %v14473_v50 = vcombine.high %v28673_v18, %v28673_v18 }
 0xad6   : > { %22978 = vmatpush3.bf16.msra.mxu1 %v24872_v0  ;;  %23000 = vmatpush3.bf16.msra.mxu0 %v24873_v27  ;;  %v24919_v0 = vld [vmem:[%s29806_s2 + $0x8b8] sm:$0xff]   ;;  %v14478_v12 = vpack.c.bf16 %v14473_v50, %v14473_v50  ;;  %v24967_v50 = vld [vmem:[%s29806_s2 + $0xb10] sm:$0xff]  }
 0xad7   : > { %22979 = vmatprep.subr.bf16.mxu1 %v24874_v42  ;;  %23001 = vmatprep.subr.bf16.mxu0 %v24875_v41  ;;  %v28681_v27 = vld [vmem:[#allocation4 + $0x18] sm:$0x33]  ;;  %v24921_v42 = vld [vmem:[%s29806_s2 + $0xa40] sm:$0xff]  }
 0xad8   : > { %v24922_v41 = vld [vmem:[%s29806_s2 + $0xac0] sm:$0xff]  }
 0xada   : > { %22980 = vmatpush3.bf16.msra.mxu1 %v24876_v14  ;;  %23002 = vmatpush3.bf16.msra.mxu0 %v24877_v13  ;;  %v13747_v14 = vpack.c.bf16 %v28569_v22, %v28569_v22  ;;  %v14474_v13 = vcombine.high %v28681_v27, %v28681_v27  ;;  %v24933_v22 = vld [vmem:[%s29806_s2 + $0xa10] sm:$0xff]  }
 0xadb   : > { %22981 = vmatprep.subr.bf16.mxu1 %v24878_v57  ;;  %23003 = vmatprep.subr.bf16.mxu0 %v24879_v20  ;;  %v13749_v57 = vpack.c.bf16 %v28577_v56, %v28577_v56  ;;  %v24925_v20 = vld [vmem:[%s29806_s2 + $0xa80] sm:$0xff]   ;;  %v24936_v56 = vld [vmem:[%s29806_s2 + $0xad8] sm:$0xff]  }
 0xade   : > { %22982 = vmatpush3.bf16.msra.mxu1 %v24880_v29  ;;  %23004 = vmatpush3.bf16.msra.mxu0 %v24881_v1  ;;  %v24927_v29 = vld [vmem:[%s29806_s2 + $0xa48] sm:$0xff]  }
 0xadf   : > { %22983 = vmatprep.subr.bf16.mxu1 %v24882_v16  ;;  %23005 = vmatprep.subr.bf16.mxu0 %v24883_v59  ;;  %v24928_v1 = vld [vmem:[%s29806_s2 + $0xac8] sm:$0xff]   ;;  %v14480_v16 = vpack.c.bf16 %v14474_v13, %v14474_v13  ;;  %v24969_v13 = vld [vmem:[%s29806_s2 + $0xb58] sm:$0xff]  }
 0xae0   : > { %v24929_v59 = vld [vmem:[%s29806_s2 + $0xa08] sm:$0xff]  }
 0xae2   : > { %22984 = vmatpush3.bf16.msra.mxu1 %v24884_v8  ;;  %23006 = vmatpush3.bf16.msra.mxu0 %v24885_v49  ;;  %v24934_v8 = vld [vmem:[%s29806_s2 + $0xa90] sm:$0xff]   ;;  %v24935_v49 = vld [vmem:[%s29806_s2 + $0xa58] sm:$0xff]  }
 0xae3   : > { %23013 = vmatprep.subr.bf16.mxu1 %v24887_v40  ;;  %23035 = vmatprep.subr.bf16.mxu0 %v24888_v6  ;;  %v24938_v40 = vld [vmem:[%s29806_s2 + $0xa98] sm:$0xff]   ;;  %v24939_v6 = vld [vmem:[%s29806_s2 + $0xa60] sm:$0xff]  }
 0xae5   : > { %14150 = vmatmul.mubr.bf16.vlgmr.msra.gmra.mrb[240].mxu1 %v13899_v61  ;;  %14190 = vmatmul.mubr.bf16.vlgmr.msra.gmra.mrb[160].mxu0 %v13913_v19  ;;  %v24941_v61 = vld [vmem:[%s29806_s2 + $0xa20] sm:$0xff]   ;;  %v24944_v19 = vld [vmem:[%s29806_s2 + $0xae8] sm:$0xff]  }
 0xae6   : > { %23014 = vmatpush3.bf16.msra.mxu1 %v24889_v15  ;;  %23036 = vmatpush3.bf16.msra.mxu0 %v24890_v39  ;;  %v24943_v15 = vld [vmem:[%s29806_s2 + $0xa68] sm:$0xff]   ;;  %v28756_v39 = vld [vmem:[#allocation4 + $0x18] sm:$0x66] }
 0xae7   : > { %14461 = vmatprep.mubr.bf16.mxu0 %v13750_v5  ;;  %23015 = vmatprep.subr.bf16.mxu1 %v24892_v3  ;;  %v14823_v3 = vcombine.high %v28748_v10, %v28748_v10  ;;  %v24946_v5 = vld [vmem:[%s29806_s2 + $0xaa8] sm:$0xff]  }
 0xae8   : > { %23037 = vmatprep.subr.bf16.mxu0 %v24893_v55  ;;  %14421 = vmatprep.mubr.bf16.mxu1 %v13748_v45  ;;  %v24945_v55 = vld [vmem:[%s29806_s2 + $0xa28] sm:$0xff]   ;;  %v14824_v45 = vcombine.high %v28756_v39, %v28756_v39 }
 0xaea   : > { %23016 = vmatpush3.bf16.msra.mxu1 %v24894_v33  ;;  %23038 = vmatpush3.bf16.msra.mxu0 %v24895_v37  ;;  %v24947_v33 = vld [vmem:[%s29806_s2 + $0xa70] sm:$0xff]  }
 0xaeb   : > { %23017 = vmatprep.subr.bf16.mxu1 %v24896_v43  ;;  %23039 = vmatprep.subr.bf16.mxu0 %v24897_v2  ;;  %v24948_v37 = vld [vmem:[%s29806_s2 + $0xaf0] sm:$0xff]   ;;  %v14828_v43 = vpack.c.bf16 %v14823_v3, %v14823_v3 }
 0xaec   : > { %v24949_v2 = vld [vmem:[%s29806_s2 + $0xa30] sm:$0xff]  }
 0xaee   : > { %23018 = vmatpush3.bf16.msra.mxu1 %v24898_v52  ;;  %23040 = vmatpush3.bf16.msra.mxu0 %v24899_v31  ;;  %v14830_v52 = vpack.c.bf16 %v14824_v45, %v14824_v45  ;;  %v24950_v31 = vld [vmem:[%s29806_s2 + $0xab0] sm:$0xff]  }
 0xaef   : > { %23019 = vmatprep.subr.bf16.mxu1 %v24900_v35  ;;  %23041 = vmatprep.subr.bf16.mxu0 %v24901_v34  ;;  %v24951_v35 = vld [vmem:[%s29806_s2 + $0xa78] sm:$0xff]  }
 0xaf0   : > { %v24952_v34 = vld [vmem:[%s29806_s2 + $0xaf8] sm:$0xff]  }
 0xaf2   : > { %23020 = vmatpush3.bf16.msra.mxu1 %v24902_v21  ;;  %23042 = vmatpush3.bf16.msra.mxu0 %v24903_v23  ;;  %v14906_v21 = vshll.u32 %v14828_v43, 16  ;;  %v24953_v23 = vld [vmem:[%s29806_s2 + $0xa38] sm:$0xff]  }
 0xaf3   : > { %23021 = vmatprep.subr.bf16.mxu1 %v24904_v7  ;;  %23043 = vmatprep.subr.bf16.mxu0 %v24905_v36  ;;  %v14920_v7 = vshll.u32 %v14830_v52, 16  ;;  %v24954_v36 = vld [vmem:[%s29806_s2 + $0xab8] sm:$0xff]  }
 0xaf6   : > { %23022 = vmatpush3.bf16.msra.mxu1 %v24906_v46  ;;  %23044 = vmatpush3.bf16.msra.mxu0 %v24907_v24  ;;  %v24955_v46 = vld [vmem:[%s29806_s2 + $0xb40] sm:$0xff]  }
 0xaf7   : > { %23023 = vmatprep.subr.bf16.mxu1 %v24908_v62  ;;  %23045 = vmatprep.subr.bf16.mxu0 %v24909_v38  ;;  %v24956_v24 = vld [vmem:[%s29806_s2 + $0xbc0] sm:$0xff]   ;;  %v14908_v62 = vrot.slane %v14906_v21, 1 }
 0xaf8   : > { %v24957_v38 = vld [vmem:[%s29806_s2 + $0xb00] sm:$0xff]  }
 0xafa   : > { %23024 = vmatpush3.bf16.msra.mxu1 %v24910_v11  ;;  %23046 = vmatpush3.bf16.msra.mxu0 %v24911_v17  ;;  %v14922_v11 = vrot.slane %v14920_v7, 1  ;;  %v14477_v17 = vpack.c.bf16 %v28673_v18, %v28673_v18  ;;  %v24962_v18 = vld [vmem:[%s29806_s2 + $0xbc8] sm:$0xff]  }
 0xafb   : > { %23025 = vmatprep.subr.bf16.mxu1 %v24912_v60  ;;  %23047 = vmatprep.subr.bf16.mxu0 %v24913_v28  ;;  %v14904_v60 = vshrl.u32 %v14828_v43, 16  ;;  %v24959_v28 = vld [vmem:[%s29806_s2 + $0xb80] sm:$0xff]  }
 0xafe   : > { %23026 = vmatpush3.bf16.msra.mxu1 %v24914_v30  ;;  %23048 = vmatpush3.bf16.msra.mxu0 %v24915_v4  ;;  %v14479_v30 = vpack.c.bf16 %v28681_v27, %v28681_v27  ;;  %v14918_v4 = vshrl.u32 %v14830_v52, 16  ;;  %v24964_v27 = vld [vmem:[%s29806_s2 + $0xb88] sm:$0xff]  }
 0xaff   : > { %23027 = vmatprep.subr.bf16.mxu1 %v24916_v25  ;;  %23049 = vmatprep.subr.bf16.mxu0 %v24917_v26  ;;  %v24961_v25 = vld [vmem:[%s29806_s2 + $0xb48] sm:$0xff]   ;;  %v14909_v26 = vor.u32 %v14908_v62, %v14904_v60 }
 0xb02   : > { %23028 = vmatpush3.bf16.msra.mxu1 %v24918_v9  ;;  %23050 = vmatpush3.bf16.msra.mxu0 %v24919_v0  ;;  %v14923_v9 = vor.u32 %v14922_v11, %v14918_v4  ;;  %v24963_v0 = vld [vmem:[%s29806_s2 + $0xb08] sm:$0xff]  }
 0xb03   : > { %23057 = vmatprep.subr.bf16.mxu1 %v24921_v42  ;;  %23079 = vmatprep.subr.bf16.mxu0 %v24922_v41  ;;  %v24965_v42 = vld [vmem:[%s29806_s2 + $0xb50] sm:$0xff]  }
 0xb04   : > { %v24966_v41 = vld [vmem:[%s29806_s2 + $0xbd0] sm:$0xff]  }
 0xb05   : > { %14422 = vmatmul.mubr.bf16.vlgmr.msra.gmra.mrb[244].mxu1 %v13747_v14  ;;  %14462 = vmatmul.mubr.bf16.vlgmr.msra.gmra.mrb[164].mxu0 %v13749_v57  ;;  %v24968_v14 = vld [vmem:[%s29806_s2 + $0xb90] sm:$0xff]   ;;  %v24971_v57 = vld [vmem:[%s29806_s2 + $0xb18] sm:$0xff]  }
 0xb06   : > { %23058 = vmatpush3.bf16.msra.mxu1 %v24923_v63  ;;  %14770 = vmatprep.mubr.bf16.mxu1 %v14478_v12  ;;  %v24970_v63 = vld [vmem:[%s29806_s2 + $0xbd8] sm:$0xff]   ;;  %v24973_v12 = vld [vmem:[%s29806_s2 + $0xb60] sm:$0xff]  }
 0xb07   : > { %23080 = vmatpush3.bf16.msra.mxu0 %v24925_v20  ;;  %14810 = vmatprep.mubr.bf16.mxu0 %v14480_v16  ;;  %v24972_v20 = vld [vmem:[%s29806_s2 + $0xb98] sm:$0xff]   ;;  %v24976_v16 = vld [vmem:[%s29806_s2 + $0xba0] sm:$0xff]  }
 0xb08   : > { %23059 = vmatprep.subr.bf16.mxu1 %v24927_v29  ;;  %23081 = vmatprep.subr.bf16.mxu0 %v24928_v1  ;;  %v24974_v29 = vld [vmem:[%s29806_s2 + $0xbe0] sm:$0xff]  }
 0xb09   : > { %v24975_v1 = vld [vmem:[%s29806_s2 + $0xb20] sm:$0xff]  }
 0xb0a   : > { %23060 = vmatpush3.bf16.msra.mxu1 %v24929_v59  ;;  %v24977_v59 = vld [vmem:[%s29806_s2 + $0xb68] sm:$0xff]  }
 0xb0b   : > { %23082 = vmatpush3.bf16.msra.mxu0 %v24930_v54  ;;  %23061 = vmatprep.subr.bf16.mxu1 %v24931_v44  ;;  %v24978_v54 = vld [vmem:[%s29806_s2 + $0xbe8] sm:$0xff]  }
 0xb0c   : > { %23083 = vmatprep.subr.bf16.mxu0 %v24932_v32  ;;  %v24979_v44 = vld [vmem:[%s29806_s2 + $0xb28] sm:$0xff]   ;;  %v14827_v32 = vpack.c.bf16 %v28748_v10, %v28748_v10 }
 0xb0e   : > { %23062 = vmatpush3.bf16.msra.mxu1 %v24933_v22  ;;  %v24980_v22 = vld [vmem:[%s29806_s2 + $0xba8] sm:$0xff]   ;;  %v14897_v3 = vshrl.u32 %v14827_v32, 16 }
 0xb0f   : > { %23084 = vmatpush3.bf16.msra.mxu0 %v24934_v8  ;;  %23063 = vmatprep.subr.bf16.mxu1 %v24935_v49  ;;  %v24981_v8 = vld [vmem:[%s29806_s2 + $0xb70] sm:$0xff]   ;;  %v14829_v49 = vpack.c.bf16 %v28756_v39, %v28756_v39 }
 0xb10   : > { %23085 = vmatprep.subr.bf16.mxu0 %v24936_v56  ;;  %v24982_v56 = vld [vmem:[%s29806_s2 + $0xbf0] sm:$0xff]  }
 0xb11   : > { %v14913_v10 = vshll.u32 %v14829_v49, 16 }
 0xb12   : > { %23064 = vmatpush3.bf16.msra.mxu1 %v24937_v58  ;;  %v24983_v58 = vld [vmem:[%s29806_s2 + $0xb30] sm:$0xff]  }
 0xb13   : > { %23086 = vmatpush3.bf16.msra.mxu0 %v24938_v40  ;;  %23065 = vmatprep.subr.bf16.mxu1 %v24939_v6  ;;  %v24984_v40 = vld [vmem:[%s29806_s2 + $0xbb0] sm:$0xff]   ;;  %v24985_v6 = vld [vmem:[%s29806_s2 + $0xb78] sm:$0xff]  }
 0xb14   : > { %23087 = vmatprep.subr.bf16.mxu0 %v24940_v47  ;;  %v14899_v47 = vshll.u32 %v14827_v32, 16 }
 0xb16   : > { %23066 = vmatpush3.bf16.msra.mxu1 %v24941_v61  ;;  %v24986_v61 = vld [vmem:[%s29806_s2 + $0xbf8] sm:$0xff]   ;;  %v14901_v39 = vrot.slane %v14899_v47, 1 }
 0xb17   : > { %23088 = vmatpush3.bf16.msra.mxu0 %v24942_v48  ;;  %23067 = vmatprep.subr.bf16.mxu1 %v24943_v15  ;;  %v24987_v48 = vld [vmem:[%s29806_s2 + $0xb38] sm:$0xff]  }
 0xb18   : > { %23089 = vmatprep.subr.bf16.mxu0 %v24944_v19  ;;  %v24988_v15 = vld [vmem:[%s29806_s2 + $0xbb8] sm:$0xff]   ;;  %v14915_v19 = vrot.slane %v14913_v10, 1  ;;  %v14902_v45 = vor.u32 %v14901_v39, %v14897_v3  ;;  %v20953_v3 = vld [vmem:[%s29807_s3 + $0x3] ss:$0 sm:$0xff] }
 0xb1a   : > { %23068 = vmatpush3.bf16.msra.mxu1 %v24945_v55  ;;  %v14911_v55 = vshrl.u32 %v14829_v49, 16 }
 0xb1b   : > { %23090 = vmatpush3.bf16.msra.mxu0 %v24946_v5  ;;  %23069 = vmatprep.subr.bf16.mxu1 %v24947_v33  ;;  %v28899_v5 = vld [vmem:[#allocation2] sm:$0xff] }
 0xb1c   : > { %23091 = vmatprep.subr.bf16.mxu0 %v24948_v37  ;;  %v14916_v33 = vor.u32 %v14915_v19, %v14911_v55 }
 0xb1e   : > { %23070 = vmatpush3.bf16.msra.mxu1 %v24949_v2 }
 0xb1f   : > { %23092 = vmatpush3.bf16.msra.mxu0 %v24950_v31  ;;  %23071 = vmatprep.subr.bf16.mxu1 %v24951_v35 }
 0xb20   : > { %23093 = vmatprep.subr.bf16.mxu0 %v24952_v34 }
 0xb22   : > { %23072 = vmatpush3.bf16.msra.mxu1 %v24953_v23 }
 0xb23   : > { %23094 = vmatpush3.bf16.msra.mxu0 %v24954_v36  ;;  %23101 = vmatprep.subr.bf16.mxu1 %v24955_v46 }
 0xb24   : > { %23123 = vmatprep.subr.bf16.mxu0 %v24956_v24 }
 0xb25   : > { %14771 = vmatmul.mubr.bf16.vlgmr.msra.gmra.mrb[248].mxu1 %v14477_v17 }
 0xb26   : > { %14811 = vmatmul.mubr.bf16.vlgmr.msra.gmra.mrb[168].mxu0 %v14479_v30  ;;  %23102 = vmatpush3.bf16.msra.mxu1 %v24957_v38 }
 0xb27   : > { %15152 = vmatprep.mubr.bf16.mxu1 %v14909_v26  ;;  %23124 = vmatpush3.bf16.msra.mxu0 %v24959_v28 }
 0xb28   : > { %15192 = vmatprep.mubr.bf16.mxu0 %v14923_v9  ;;  %23103 = vmatprep.subr.bf16.mxu1 %v24961_v25 }
 0xb29   : > { %23125 = vmatprep.subr.bf16.mxu0 %v24962_v18 }
 0xb2a   : > { %23104 = vmatpush3.bf16.msra.mxu1 %v24963_v0 }
 0xb2b   : > { %23126 = vmatpush3.bf16.msra.mxu0 %v24964_v27  ;;  %23105 = vmatprep.subr.bf16.mxu1 %v24965_v42 }
 0xb2c   : > { %23127 = vmatprep.subr.bf16.mxu0 %v24966_v41 }
 0xb2e   : > { %23106 = vmatpush3.bf16.msra.mxu1 %v24967_v50 }
 0xb2f   : > { %23128 = vmatpush3.bf16.msra.mxu0 %v24968_v14  ;;  %23107 = vmatprep.subr.bf16.mxu1 %v24969_v13 }
 0xb30   : > { %23129 = vmatprep.subr.bf16.mxu0 %v24970_v63 }
 0xb32   : > { %23108 = vmatpush3.bf16.msra.mxu1 %v24971_v57 }
 0xb33   : > { %23130 = vmatpush3.bf16.msra.mxu0 %v24972_v20  ;;  %23109 = vmatprep.subr.bf16.mxu1 %v24973_v12 }
 0xb34   : > { %23131 = vmatprep.subr.bf16.mxu0 %v24974_v29 }
 0xb36   : > { %23110 = vmatpush3.bf16.msra.mxu1 %v24975_v1 }
 0xb37   : > { %23132 = vmatpush3.bf16.msra.mxu0 %v24976_v16  ;;  %23111 = vmatprep.subr.bf16.mxu1 %v24977_v59 }
 0xb38   : > { %23133 = vmatprep.subr.bf16.mxu0 %v24978_v54  ;;  %v28907_v54 = vld [vmem:[#allocation4 + $0x10] sm:$0x66] }
 0xb39   : > { %v15441_v32 = vcombine.high %v28907_v54, %v28907_v54 }
 0xb3a   : > { %23112 = vmatpush3.bf16.msra.mxu1 %v24979_v44  ;;  %v28909_v44 = vld [vmem:[#allocation4 + $0x18] sm:$0x66] }
 0xb3b   : > { %23134 = vmatpush3.bf16.msra.mxu0 %v24980_v22  ;;  %23113 = vmatprep.subr.bf16.mxu1 %v24981_v8  ;;  %v15442_v8 = vcombine.high %v28909_v44, %v28909_v44 }
 0xb3c   : > { %23135 = vmatprep.subr.bf16.mxu0 %v24982_v56 }
 0xb3d   : > { %v15448_v39 = vpack.c.bf16 %v15442_v8, %v15442_v8  ;;  %v29021_v8 = vld [vmem:[#allocation4 + $0x10] sm:$0x33] }
 0xb3e   : > { %23114 = vmatpush3.bf16.msra.mxu1 %v24983_v58 }
 0xb3f   : > { %23136 = vmatpush3.bf16.msra.mxu0 %v24984_v40  ;;  %23115 = vmatprep.subr.bf16.mxu1 %v24985_v6 }
 0xb40   : > { %23137 = vmatprep.subr.bf16.mxu0 %v24986_v61 }
 0xb42   : > { %23116 = vmatpush3.bf16.msra.mxu1 %v24987_v48  ;;  %v15446_v48 = vpack.c.bf16 %v15441_v32, %v15441_v32 }
 0xb43   : > { %23138 = vmatpush3.bf16.msra.mxu0 %v24988_v15  ;;  %23985 = vmatprep.subr.mxu1 %v28899_v5 }
 0xb44   : > { %23990 = vmatprep.subr.mxu0 %v28899_v5 }
 0xb45   : > { %15153 = vmatmul.mubr.bf16.vlgmr.msra.gmra.mrb[252].mxu1 %v14902_v45  ;;  %v15523_v45 = vshll.u32 %v15446_v48, 16 }
 0xb46   : > { %15193 = vmatmul.mubr.bf16.vlgmr.msra.gmra.mrb[172].mxu0 %v14916_v33  ;;  %23987 = vmatprep.mubr.msk.f32.mxu1 %vm25273_vm1, %v28899_v5  ;;  %v15537_v33 = vshll.u32 %v15448_v39, 16 }
 0xb47   : > { %23992 = vmatprep.mubr.msk.f32.mxu0 %vm25273_vm1, %v28899_v5 }
 0xb97   : > { %v13729_v37 = vpop.f32.mrb[142].mxu0 }
 0xb98   : > { %v13736_v43 = vrot.slane %v13729_v37, 7  ;;  %v13659_v2 = vpop.f32.mrb[222].mxu1  ;;  %v23984_v52 = vpop.f32.mrb[143].mxu0 }
 0xb99   : > { %13734 = vst [vmem:[#allocation4 + $0x24] sm:$0x3] %v13659_v2  ;;  %v23979_v31 = vpop.f32.mrb[223].mxu1  ;;  %v15525_v2 = vrot.slane %v15523_v45, 1  ;;  %v24989_v52 = vld [vmem:[%s29806_s2 + $0x940] sm:$0xff]   ;;  %v25029_v45 = vld [vmem:[%s29806_s2 + $0x848] sm:$0xff]  }
 0xb9a   : > { %13738 = vst [vmem:[#allocation4 + $0x20] sm:$0x6] %v13736_v43  ;;  %v24990_v31 = vld [vmem:[%s29806_s2 + $0x9c0] sm:$0xff]  }
 0xbb8   : > { %v22985_v35 = vpop.f32.mrb[240].mxu1  ;;  %v23007_v34 = vpop.f32.mrb[160].mxu0 }
 0xbb9   : > { %v22986_v21 = vpop.f32.mrb[241].mxu1  ;;  %v23008_v23 = vpop.f32.mrb[161].mxu0 }
 0xbba   : > { %v22987_v7 = vadd.f32 %v22986_v21, %v22985_v35  ;;  %v23009_v36 = vadd.f32 %v23008_v23, %v23007_v34  ;;  %v23010_v46 = vpop.f32.mrb[162].mxu0  ;;  %v22988_v24 = vpop.f32.mrb[242].mxu1  ;;  %v15539_v35 = vrot.slane %v15537_v33, 1  ;;  %v24991_v21 = vld [vmem:[%s29806_s2 + $0x900] sm:$0xff]   ;;  %v15521_v23 = vshrl.u32 %v15446_v48, 16 }
 0xbbb   : > { %v23011_v62 = vpop.f32.mrb[163].mxu0  ;;  %v22989_v38 = vpop.f32.mrb[243].mxu1  ;;  %v24995_v24 = vld [vmem:[%s29806_s2 + $0x948] sm:$0xff]  }
 0xbbc   : > { %v14192_v11 = vadd.f32 %v23009_v36, %v22987_v7  ;;  %v24993_v7 = vld [vmem:[%s29806_s2 + $0x980] sm:$0xff]   ;;  %v15535_v36 = vshrl.u32 %v15448_v39, 16  ;;  %v15526_v46 = vor.u32 %v15525_v2, %v15521_v23  ;;  %v24996_v62 = vld [vmem:[%s29806_s2 + $0x9c8] sm:$0xff]   ;;  %v25037_v23 = vld [vmem:[%s29806_s2 + $0x858] sm:$0xff]  }
 0xbbd   : > { %v25031_v2 = vld [vmem:[%s29806_s2 + $0x808] sm:$0xff]  }
 0xbbe   : > { %v15540_v38 = vor.u32 %v15539_v35, %v15535_v36  ;;  %v25034_v35 = vld [vmem:[%s29806_s2 + $0x8d0] sm:$0xff]   ;;  %v25039_v36 = vld [vmem:[%s29806_s2 + $0x818] sm:$0xff]  }
 0xbd8   : > { %v23029_v17 = vpop.f32.mrb[244].mxu1  ;;  %v23051_v60 = vpop.f32.mrb[164].mxu0 }
 0xbd9   : > { %v23030_v28 = vpop.f32.mrb[245].mxu1  ;;  %v23052_v30 = vpop.f32.mrb[165].mxu0 }
 0xbda   : > { %v23031_v4 = vadd.f32 %v23030_v28, %v23029_v17  ;;  %v23053_v25 = vadd.f32 %v23052_v30, %v23051_v60  ;;  %v23054_v26 = vpop.f32.mrb[166].mxu0  ;;  %v23032_v18 = vpop.f32.mrb[246].mxu1  ;;  %v24998_v17 = vld [vmem:[%s29806_s2 + $0x988] sm:$0xff]   ;;  %v24999_v60 = vld [vmem:[%s29806_s2 + $0x950] sm:$0xff]  }
 0xbdb   : > { %v23055_v9 = vpop.f32.mrb[167].mxu0  ;;  %v23033_v0 = vpop.f32.mrb[247].mxu1  ;;  %v25000_v28 = vld [vmem:[%s29806_s2 + $0x9d0] sm:$0xff]   ;;  %v25004_v26 = vld [vmem:[%s29806_s2 + $0x9d8] sm:$0xff]  }
 0xbdc   : > { %v14424_v27 = vadd.f32 %v23031_v4, %v14192_v11  ;;  %v24997_v11 = vld [vmem:[%s29806_s2 + $0x908] sm:$0xff]   ;;  %v25001_v30 = vld [vmem:[%s29806_s2 + $0x910] sm:$0xff]   ;;  %v25005_v18 = vld [vmem:[%s29806_s2 + $0x918] sm:$0xff]  }
 0xbdd   : > { %v25002_v4 = vld [vmem:[%s29806_s2 + $0x990] sm:$0xff]   ;;  %v25006_v9 = vld [vmem:[%s29806_s2 + $0x998] sm:$0xff]   ;;  %v25007_v0 = vld [vmem:[%s29806_s2 + $0x960] sm:$0xff]  }
 0xbde   : > { %v14464_v42 = vadd.f32 %v23053_v25, %v14424_v27  ;;  %v25003_v25 = vld [vmem:[%s29806_s2 + $0x958] sm:$0xff]   ;;  %v25008_v27 = vld [vmem:[%s29806_s2 + $0x9e0] sm:$0xff]  }
 0xbf8   : > { %v23073_v41 = vpop.f32.mrb[248].mxu1 }
 0xbf9   : > { %v23095_v50 = vpop.f32.mrb[168].mxu0  ;;  %v23074_v14 = vpop.f32.mrb[249].mxu1 }
 0xbfa   : > { %v23075_v13 = vadd.f32 %v23074_v14, %v23073_v41  ;;  %v23096_v63 = vpop.f32.mrb[169].mxu0  ;;  %v23076_v57 = vpop.f32.mrb[250].mxu1  ;;  %v25010_v41 = vld [vmem:[%s29806_s2 + $0x9a0] sm:$0xff]   ;;  %v25012_v14 = vld [vmem:[%s29806_s2 + $0x9e8] sm:$0xff]  }
 0xbfb   : > { %v23097_v20 = vadd.f32 %v23096_v63, %v23095_v50  ;;  %v23098_v12 = vpop.f32.mrb[170].mxu0  ;;  %v23077_v29 = vpop.f32.mrb[251].mxu1  ;;  %v25011_v50 = vld [vmem:[%s29806_s2 + $0x968] sm:$0xff]   ;;  %v15445_v63 = vpack.c.bf16 %v28907_v54, %v28907_v54  ;;  %v25019_v54 = vld [vmem:[%s29806_s2 + $0x978] sm:$0xff]  }
 0xbfc   : > { %v23099_v1 = vpop.f32.mrb[171].mxu0  ;;  %v25014_v57 = vld [vmem:[%s29806_s2 + $0x9a8] sm:$0xff]   ;;  %v15447_v12 = vpack.c.bf16 %v28909_v44, %v28909_v44  ;;  %v25016_v29 = vld [vmem:[%s29806_s2 + $0x9f0] sm:$0xff]   ;;  %v25020_v44 = vld [vmem:[%s29806_s2 + $0x9f8] sm:$0xff]  }
 0xbfd   : > { %v14813_v16 = vadd.f32 %v23097_v20, %v23075_v13  ;;  %v25013_v13 = vld [vmem:[%s29806_s2 + $0x928] sm:$0xff]   ;;  %v25015_v20 = vld [vmem:[%s29806_s2 + $0x970] sm:$0xff]  }
 0xbfe   : > { %v25017_v1 = vld [vmem:[%s29806_s2 + $0x930] sm:$0xff]   ;;  %v15530_v32 = vshll.u32 %v15447_v12, 16  ;;  %v15528_v48 = vshrl.u32 %v15447_v12, 16  ;;  %v15369_v12 = vpack.c.bf16 %v29021_v8, %v29021_v8 }
 0xbff   : > { %v14818_v59 = vadd.f32 %v14813_v16, %v14464_v42  ;;  %v25009_v42 = vld [vmem:[%s29806_s2 + $0x920] sm:$0xff]   ;;  %v15516_v16 = vshll.u32 %v15445_v63, 16 }
 0xc18   : > { %v23117_v22 = vpop.f32.mrb[252].mxu1 }
 0xc19   : > { %v23139_v49 = vpop.f32.mrb[172].mxu0  ;;  %v23118_v56 = vpop.f32.mrb[253].mxu1 }
 0xc1a   : > { %v23119_v58 = vadd.f32 %v23118_v56, %v23117_v22  ;;  %v23140_v40 = vpop.f32.mrb[173].mxu0  ;;  %v23120_v6 = vpop.f32.mrb[254].mxu1  ;;  %v25021_v22 = vld [vmem:[%s29806_s2 + $0x938] sm:$0xff]  }
 0xc1b   : > { %v23141_v47 = vadd.f32 %v23140_v40, %v23139_v49  ;;  %v23142_v61 = vpop.f32.mrb[174].mxu0  ;;  %v23121_v10 = vpop.f32.mrb[255].mxu1  ;;  %v15518_v49 = vrot.slane %v15516_v16, 1  ;;  %v25022_v56 = vld [vmem:[%s29806_s2 + $0x9b8] sm:$0xff]   ;;  %v15532_v6 = vrot.slane %v15530_v32, 1  ;;  %v25062_v16 = vld [vmem:[%s29806_s2 + $0xa48] sm:$0xff]  }
 0xc1c   : > { %v23143_v15 = vpop.f32.mrb[175].mxu0  ;;  %v29029_v40 = vld [vmem:[#allocation4 + $0x18] sm:$0x33]  ;;  %v15514_v61 = vshrl.u32 %v15445_v63, 16  ;;  %v15365_v10 = vcombine.high %v29021_v8, %v29021_v8  ;;  %v25064_v32 = vld [vmem:[%s29806_s2 + $0xa08] sm:$0xff]   ;;  %v25066_v8 = vld [vmem:[%s29806_s2 + $0xa50] sm:$0xff]  }
 0xc1d   : > { %v15195_v19 = vadd.f32 %v23141_v47, %v23119_v58  ;;  %v25023_v58 = vld [vmem:[%s29806_s2 + $0x840] sm:$0xff]   ;;  %v15366_v39 = vcombine.high %v29029_v40, %v29029_v40 }
 0xc1e   : > { %v25024_v47 = vld [vmem:[%s29806_s2 + $0x8c0] sm:$0xff]   ;;  %v15370_v33 = vpack.c.bf16 %v15365_v10, %v15365_v10 }
 0xc1f   : > { %v15200_v55 = vadd.f32 %v15195_v19, %v14818_v59  ;;  %v25018_v59 = vld [vmem:[%s29806_s2 + $0x9b0] sm:$0xff]   ;;  %v25025_v15 = vld [vmem:[%s29806_s2 + $0x800] sm:$0xff]   ;;  %v15519_v19 = vor.u32 %v15518_v49, %v15514_v61  ;;  %v25073_v61 = vld [vmem:[%s29806_s2 + $0xa98] sm:$0xff]  }
 0xc20   : > { %v25067_v49 = vld [vmem:[%s29806_s2 + $0xad0] sm:$0xff]   ;;  %v25074_v10 = vld [vmem:[%s29806_s2 + $0xa60] sm:$0xff]  }
 0xc21   : > { %v15206_v37 = vadd.f32 %v20953_v3, %v15200_v55  ;;  %v25027_v3 = vld [vmem:[%s29806_s2 + $0x880] sm:$0xff]   ;;  %v15533_v55 = vor.u32 %v15532_v6, %v15528_v48  ;;  %v25071_v6 = vld [vmem:[%s29806_s2 + $0xad8] sm:$0xff]  }
 0xc22   : > { %v25075_v48 = vld [vmem:[%s29806_s2 + $0xae0] sm:$0xff]  }
 0xc23   : > { %vm15207_vm8 = vcmp.gt.f32.partialorder %v15206_v37, 0.0  ;;  %v15208_v43 = vmul.f32 0.2, %v15206_v37 }
 0xc25   : > { %v15209_v34 = vsel %vm15207_vm8, %v15206_v37, %v15208_v43  ;;  %v25030_v37 = vld [vmem:[%s29806_s2 + $0x8c8] sm:$0xff]   ;;  %v15372_v43 = vpack.c.bf16 %v15366_v39, %v15366_v39  ;;  %v29197_v39 = vld [vmem:[#allocation4 + $0x20] sm:$0x66] }
 0xc26   : > { %23986 = vmatpush3.msk.msra.mxu1 %vm15213_vm9, %v15209_v34  ;;  %23991 = vmatpush3.msk.msra.mxu0 %vm15213_vm9, %v15209_v34  ;;  %v25035_v34 = vld [vmem:[%s29806_s2 + $0x810] sm:$0xff]  }
 0xc27   : > { %23988 = vmatmul.mubr.msk.f32.vlgmr.msra.gmra.mrb[0].mxu1 %vm15210_vm10, %v29894_v53  ;;  %23993 = vmatmul.mubr.msk.f32.vlgmr.msra.gmra.mrb[176].mxu0 %vm15210_vm10, %v29895_v51 }
 0xc28   : > { %23149 = vmatprep.subr.bf16.mxu1 %v24989_v52  ;;  %23171 = vmatprep.subr.bf16.mxu0 %v24990_v31  ;;  %v25032_v52 = vld [vmem:[%s29806_s2 + $0x888] sm:$0xff]   ;;  %v25033_v31 = vld [vmem:[%s29806_s2 + $0x850] sm:$0xff]  }
 0xc29   : > { %23150 = vmatpush3.bf16.msra.mxu1 %v24991_v21  ;;  %15769 = vmatprep.mubr.bf16.mxu1 %v15526_v46  ;;  %v25036_v21 = vld [vmem:[%s29806_s2 + $0x890] sm:$0xff]   ;;  %v25040_v46 = vld [vmem:[%s29806_s2 + $0x898] sm:$0xff]  }
 0xc2a   : > { %23172 = vmatpush3.bf16.msra.mxu0 %v24993_v7  ;;  %15809 = vmatprep.mubr.bf16.mxu0 %v15540_v38  ;;  %v25038_v7 = vld [vmem:[%s29806_s2 + $0x8d8] sm:$0xff]   ;;  %v25043_v38 = vld [vmem:[%s29806_s2 + $0x820] sm:$0xff]  }
 0xc2b   : > { %23151 = vmatprep.subr.bf16.mxu1 %v24995_v24  ;;  %23173 = vmatprep.subr.bf16.mxu0 %v24996_v62  ;;  %v25041_v24 = vld [vmem:[%s29806_s2 + $0x860] sm:$0xff]  }
 0xc2c   : > { %v25042_v62 = vld [vmem:[%s29806_s2 + $0x8e0] sm:$0xff]  }
 0xc2d   : > { %23152 = vmatpush3.bf16.msra.mxu1 %v24997_v11  ;;  %v25044_v11 = vld [vmem:[%s29806_s2 + $0x8a0] sm:$0xff]  }
 0xc2e   : > { %23174 = vmatpush3.bf16.msra.mxu0 %v24998_v17  ;;  %23153 = vmatprep.subr.bf16.mxu1 %v24999_v60  ;;  %v25045_v17 = vld [vmem:[%s29806_s2 + $0x868] sm:$0xff]  }
 0xc2f   : > { %23175 = vmatprep.subr.bf16.mxu0 %v25000_v28  ;;  %v25046_v60 = vld [vmem:[%s29806_s2 + $0x8e8] sm:$0xff]  }
 0xc30   : > { %v25047_v28 = vld [vmem:[%s29806_s2 + $0x828] sm:$0xff]  }
 0xc31   : > { %23154 = vmatpush3.bf16.msra.mxu1 %v25001_v30  ;;  %v25048_v30 = vld [vmem:[%s29806_s2 + $0x8a8] sm:$0xff]  }
 0xc32   : > { %23176 = vmatpush3.bf16.msra.mxu0 %v25002_v4  ;;  %23155 = vmatprep.subr.bf16.mxu1 %v25003_v25  ;;  %v25049_v4 = vld [vmem:[%s29806_s2 + $0x870] sm:$0xff]  }
 0xc33   : > { %23177 = vmatprep.subr.bf16.mxu0 %v25004_v26  ;;  %v25050_v25 = vld [vmem:[%s29806_s2 + $0x8f0] sm:$0xff]  }
 0xc34   : > { %v25051_v26 = vld [vmem:[%s29806_s2 + $0x830] sm:$0xff]  }
 0xc35   : > { %23156 = vmatpush3.bf16.msra.mxu1 %v25005_v18  ;;  %v25052_v18 = vld [vmem:[%s29806_s2 + $0x8b0] sm:$0xff]  }
 0xc36   : > { %23178 = vmatpush3.bf16.msra.mxu0 %v25006_v9  ;;  %23157 = vmatprep.subr.bf16.mxu1 %v25007_v0  ;;  %v25053_v9 = vld [vmem:[%s29806_s2 + $0x878] sm:$0xff]  }
 0xc37   : > { %23179 = vmatprep.subr.bf16.mxu0 %v25008_v27  ;;  %v25054_v0 = vld [vmem:[%s29806_s2 + $0x8f8] sm:$0xff]  }
 0xc38   : > { %v25055_v27 = vld [vmem:[%s29806_s2 + $0x838] sm:$0xff]  }
 0xc39   : > { %23158 = vmatpush3.bf16.msra.mxu1 %v25009_v42  ;;  %v29125_v42 = vld [vmem:[#allocation4 + $0x20] sm:$0x33] }
 0xc3a   : > { %23180 = vmatpush3.bf16.msra.mxu0 %v25010_v41  ;;  %23159 = vmatprep.subr.bf16.mxu1 %v25011_v50  ;;  %v29127_v41 = vld [vmem:[#allocation4 + $0x28] sm:$0x33]  ;;  %v25056_v50 = vld [vmem:[%s29806_s2 + $0x8b8] sm:$0xff]   ;;  %v16093_v63 = vcombine.high %v29125_v42, %v29125_v42 }
 0xc3b   : > { %23181 = vmatprep.subr.bf16.mxu0 %v25012_v14  ;;  %v25057_v14 = vld [vmem:[%s29806_s2 + $0xa40] sm:$0xff]  }
 0xc3d   : > { %23160 = vmatpush3.bf16.msra.mxu1 %v25013_v13  ;;  %v25058_v13 = vld [vmem:[%s29806_s2 + $0xac0] sm:$0xff]  }
 0xc3e   : > { %23182 = vmatpush3.bf16.msra.mxu0 %v25014_v57  ;;  %23161 = vmatprep.subr.bf16.mxu1 %v25015_v20  ;;  %v16094_v57 = vcombine.high %v29127_v41, %v29127_v41  ;;  %v25059_v20 = vld [vmem:[%s29806_s2 + $0xa00] sm:$0xff]  }
 0xc3f   : > { %23183 = vmatprep.subr.bf16.mxu0 %v25016_v29  ;;  %v25061_v29 = vld [vmem:[%s29806_s2 + $0xa80] sm:$0xff]  }
 0xc41   : > { %23162 = vmatpush3.bf16.msra.mxu1 %v25017_v1  ;;  %v15371_v1 = vpack.c.bf16 %v29029_v40, %v29029_v40  ;;  %v25070_v40 = vld [vmem:[%s29806_s2 + $0xa58] sm:$0xff]  }
 0xc42   : > { %23184 = vmatpush3.bf16.msra.mxu0 %v25018_v59  ;;  %23163 = vmatprep.subr.bf16.mxu1 %v25019_v54  ;;  %v25063_v59 = vld [vmem:[%s29806_s2 + $0xac8] sm:$0xff]   ;;  %v16098_v54 = vpack.c.bf16 %v16093_v63, %v16093_v63  ;;  %v25101_v63 = vld [vmem:[%s29806_s2 + $0xbd0] sm:$0xff]  }
 0xc43   : > { %23185 = vmatprep.subr.bf16.mxu0 %v25020_v44  ;;  %v16100_v44 = vpack.c.bf16 %v16094_v57, %v16094_v57  ;;  %v25102_v57 = vld [vmem:[%s29806_s2 + $0xb10] sm:$0xff]  }
 0xc45   : > { %23164 = vmatpush3.bf16.msra.mxu1 %v25021_v22  ;;  %v25065_v22 = vld [vmem:[%s29806_s2 + $0xa88] sm:$0xff]  }
 0xc46   : > { %23186 = vmatpush3.bf16.msra.mxu0 %v25022_v56  ;;  %23193 = vmatprep.subr.bf16.mxu1 %v25023_v58  ;;  %v25068_v56 = vld [vmem:[%s29806_s2 + $0xa10] sm:$0xff]  }
 0xc47   : > { %23215 = vmatprep.subr.bf16.mxu0 %v25024_v47  ;;  %v25069_v58 = vld [vmem:[%s29806_s2 + $0xa90] sm:$0xff]   ;;  %v25072_v47 = vld [vmem:[%s29806_s2 + $0xa18] sm:$0xff]  }
 0xc48   : > { %15770 = vmatmul.mubr.bf16.vlgmr.msra.gmra.mrb[4].mxu1 %v15519_v19  ;;  %v29199_v19 = vld [vmem:[#allocation4 + $0x28] sm:$0x66] }
 0xc49   : > { %15810 = vmatmul.mubr.bf16.vlgmr.msra.gmra.mrb[180].mxu0 %v15533_v55  ;;  %23194 = vmatpush3.bf16.msra.mxu1 %v25025_v15  ;;  %v25076_v15 = vld [vmem:[%s29806_s2 + $0xa20] sm:$0xff]   ;;  %v25078_v55 = vld [vmem:[%s29806_s2 + $0xa68] sm:$0xff]  }
 0xc4a   : > { %16041 = vmatprep.mubr.bf16.mxu1 %v15370_v33  ;;  %23216 = vmatpush3.bf16.msra.mxu0 %v25027_v3  ;;  %v25077_v3 = vld [vmem:[%s29806_s2 + $0xaa0] sm:$0xff]   ;;  %v16442_v33 = vcombine.high %v29197_v39, %v29197_v39 }
 0xc4b   : > { %16081 = vmatprep.mubr.bf16.mxu0 %v15372_v43  ;;  %23195 = vmatprep.subr.bf16.mxu1 %v25029_v45  ;;  %v25079_v45 = vld [vmem:[%s29806_s2 + $0xae8] sm:$0xff]  }
 0xc4c   : > { %23217 = vmatprep.subr.bf16.mxu0 %v25030_v37  ;;  %v16443_v37 = vcombine.high %v29199_v19, %v29199_v19  ;;  %v25080_v43 = vld [vmem:[%s29806_s2 + $0xa28] sm:$0xff]  }
 0xc4d   : > { %23196 = vmatpush3.bf16.msra.mxu1 %v25031_v2  ;;  %v25081_v2 = vld [vmem:[%s29806_s2 + $0xaa8] sm:$0xff]  }
 0xc4e   : > { %23218 = vmatpush3.bf16.msra.mxu0 %v25032_v52  ;;  %23197 = vmatprep.subr.bf16.mxu1 %v25033_v31  ;;  %v25082_v52 = vld [vmem:[%s29806_s2 + $0xa70] sm:$0xff]  }
 0xc4f   : > { %23219 = vmatprep.subr.bf16.mxu0 %v25034_v35  ;;  %v25083_v31 = vld [vmem:[%s29806_s2 + $0xaf0] sm:$0xff]   ;;  %v16447_v35 = vpack.c.bf16 %v16442_v33, %v16442_v33 }
 0xc51   : > { %23198 = vmatpush3.bf16.msra.mxu1 %v25035_v34  ;;  %v16449_v34 = vpack.c.bf16 %v16443_v37, %v16443_v37  ;;  %v25123_v37 = vld [vmem:[%s29806_s2 + $0xbb8] sm:$0xff]  }
 0xc52   : > { %23220 = vmatpush3.bf16.msra.mxu0 %v25036_v21  ;;  %23199 = vmatprep.subr.bf16.mxu1 %v25037_v23  ;;  %v25084_v21 = vld [vmem:[%s29806_s2 + $0xa30] sm:$0xff]  }
 0xc53   : > { %23221 = vmatprep.subr.bf16.mxu0 %v25038_v7  ;;  %v25085_v23 = vld [vmem:[%s29806_s2 + $0xab0] sm:$0xff]   ;;  %v25086_v7 = vld [vmem:[%s29806_s2 + $0xa78] sm:$0xff]  }
 0xc55   : > { %23200 = vmatpush3.bf16.msra.mxu1 %v25039_v36  ;;  %v25087_v36 = vld [vmem:[%s29806_s2 + $0xaf8] sm:$0xff]  }
 0xc56   : > { %23222 = vmatpush3.bf16.msra.mxu0 %v25040_v46  ;;  %23201 = vmatprep.subr.bf16.mxu1 %v25041_v24  ;;  %v16524_v46 = vshll.u32 %v16447_v35, 16  ;;  %v16538_v24 = vshll.u32 %v16449_v34, 16 }
 0xc57   : > { %23223 = vmatprep.subr.bf16.mxu0 %v25042_v62  ;;  %v25088_v62 = vld [vmem:[%s29806_s2 + $0xa38] sm:$0xff]  }
 0xc59   : > { %23202 = vmatpush3.bf16.msra.mxu1 %v25043_v38  ;;  %v25089_v38 = vld [vmem:[%s29806_s2 + $0xab8] sm:$0xff]  }
 0xc5a   : > { %23224 = vmatpush3.bf16.msra.mxu0 %v25044_v11  ;;  %23203 = vmatprep.subr.bf16.mxu1 %v25045_v17  ;;  %v25091_v11 = vld [vmem:[%s29806_s2 + $0xb40] sm:$0xff]  }
 0xc5b   : > { %23225 = vmatprep.subr.bf16.mxu0 %v25046_v60  ;;  %v25092_v17 = vld [vmem:[%s29806_s2 + $0xbc0] sm:$0xff]   ;;  %v16526_v60 = vrot.slane %v16524_v46, 1 }
 0xc5d   : > { %23204 = vmatpush3.bf16.msra.mxu1 %v25047_v28  ;;  %v16536_v28 = vshrl.u32 %v16449_v34, 16 }
 0xc5e   : > { %23226 = vmatpush3.bf16.msra.mxu0 %v25048_v30  ;;  %23205 = vmatprep.subr.bf16.mxu1 %v25049_v4  ;;  %v16540_v30 = vrot.slane %v16538_v24, 1  ;;  %v16099_v4 = vpack.c.bf16 %v29127_v41, %v29127_v41 }
 0xc5f   : > { %23227 = vmatprep.subr.bf16.mxu0 %v25050_v25  ;;  %v25093_v25 = vld [vmem:[%s29806_s2 + $0xb00] sm:$0xff]  }
 0xc61   : > { %23206 = vmatpush3.bf16.msra.mxu1 %v25051_v26  ;;  %v16097_v26 = vpack.c.bf16 %v29125_v42, %v29125_v42  ;;  %v25098_v42 = vld [vmem:[%s29806_s2 + $0xb08] sm:$0xff]  }
 0xc62   : > { %23228 = vmatpush3.bf16.msra.mxu0 %v25052_v18  ;;  %23207 = vmatprep.subr.bf16.mxu1 %v25053_v9  ;;  %v16522_v18 = vshrl.u32 %v16447_v35, 16  ;;  %v25095_v9 = vld [vmem:[%s29806_s2 + $0xb80] sm:$0xff]  }
 0xc63   : > { %23229 = vmatprep.subr.bf16.mxu0 %v25054_v0  ;;  %v25096_v0 = vld [vmem:[%s29806_s2 + $0xb48] sm:$0xff]  }
 0xc64   : > { %v16527_v41 = vor.u32 %v16526_v60, %v16522_v18 }
 0xc65   : > { %23208 = vmatpush3.bf16.msra.mxu1 %v25055_v27  ;;  %v25097_v27 = vld [vmem:[%s29806_s2 + $0xbc8] sm:$0xff]  }
 0xc66   : > { %23230 = vmatpush3.bf16.msra.mxu0 %v25056_v50  ;;  %23237 = vmatprep.subr.bf16.mxu1 %v25057_v14  ;;  %v16541_v50 = vor.u32 %v16540_v30, %v16536_v28  ;;  %v25099_v14 = vld [vmem:[%s29806_s2 + $0xb88] sm:$0xff]  }
 0xc67   : > { %23259 = vmatprep.subr.bf16.mxu0 %v25058_v13  ;;  %v25100_v13 = vld [vmem:[%s29806_s2 + $0xb50] sm:$0xff]  }
 0xc68   : > { %16042 = vmatmul.mubr.bf16.vlgmr.msra.gmra.mrb[8].mxu1 %v15369_v12  ;;  %v25104_v12 = vld [vmem:[%s29806_s2 + $0xb58] sm:$0xff]  }
 0xc69   : > { %16082 = vmatmul.mubr.bf16.vlgmr.msra.gmra.mrb[184].mxu0 %v15371_v1  ;;  %23238 = vmatpush3.bf16.msra.mxu1 %v25059_v20  ;;  %v25103_v20 = vld [vmem:[%s29806_s2 + $0xb90] sm:$0xff]   ;;  %v25106_v1 = vld [vmem:[%s29806_s2 + $0xb18] sm:$0xff]  }
 0xc6a   : > { %16389 = vmatprep.mubr.bf16.mxu1 %v16098_v54  ;;  %23260 = vmatpush3.bf16.msra.mxu0 %v25061_v29  ;;  %v25105_v29 = vld [vmem:[%s29806_s2 + $0xbd8] sm:$0xff]   ;;  %v25109_v54 = vld [vmem:[%s29806_s2 + $0xbe0] sm:$0xff]  }
 0xc6b   : > { %23239 = vmatprep.subr.bf16.mxu1 %v25062_v16  ;;  %23261 = vmatprep.subr.bf16.mxu0 %v25063_v59  ;;  %v25107_v16 = vld [vmem:[%s29806_s2 + $0xb98] sm:$0xff]   ;;  %v25108_v59 = vld [vmem:[%s29806_s2 + $0xb60] sm:$0xff]  }
 0xc6c   : > { %16429 = vmatprep.mubr.bf16.mxu0 %v16100_v44  ;;  %v25110_v44 = vld [vmem:[%s29806_s2 + $0xb20] sm:$0xff]  }
 0xc6d   : > { %23240 = vmatpush3.bf16.msra.mxu1 %v25064_v32  ;;  %v25111_v32 = vld [vmem:[%s29806_s2 + $0xba0] sm:$0xff]  }
 0xc6e   : > { %23262 = vmatpush3.bf16.msra.mxu0 %v25065_v22  ;;  %23241 = vmatprep.subr.bf16.mxu1 %v25066_v8  ;;  %v25112_v22 = vld [vmem:[%s29806_s2 + $0xb68] sm:$0xff]  }
 0xc6f   : > { %23263 = vmatprep.subr.bf16.mxu0 %v25067_v49  ;;  %v25113_v8 = vld [vmem:[%s29806_s2 + $0xbe8] sm:$0xff]  }
 0xc70   : > { %v25114_v49 = vld [vmem:[%s29806_s2 + $0xb28] sm:$0xff]  }
 0xc71   : > { %23242 = vmatpush3.bf16.msra.mxu1 %v25068_v56  ;;  %v16448_v56 = vpack.c.bf16 %v29199_v19, %v29199_v19  ;;  %v25121_v19 = vld [vmem:[%s29806_s2 + $0xbf8] sm:$0xff]  }
 0xc72   : > { %23264 = vmatpush3.bf16.msra.mxu0 %v25069_v58  ;;  %23243 = vmatprep.subr.bf16.mxu1 %v25070_v40  ;;  %v16446_v58 = vpack.c.bf16 %v29197_v39, %v29197_v39  ;;  %v25115_v40 = vld [vmem:[%s29806_s2 + $0xba8] sm:$0xff]   ;;  %v25120_v39 = vld [vmem:[%s29806_s2 + $0xb78] sm:$0xff]  }
 0xc73   : > { %23265 = vmatprep.subr.bf16.mxu0 %v25071_v6  ;;  %v25116_v6 = vld [vmem:[%s29806_s2 + $0xb70] sm:$0xff]  }
 0xc75   : > { %23244 = vmatpush3.bf16.msra.mxu1 %v25072_v47  ;;  %v25117_v47 = vld [vmem:[%s29806_s2 + $0xbf0] sm:$0xff]  }
 0xc76   : > { %23266 = vmatpush3.bf16.msra.mxu0 %v25073_v61  ;;  %23245 = vmatprep.subr.bf16.mxu1 %v25074_v10  ;;  %v25118_v61 = vld [vmem:[%s29806_s2 + $0xb30] sm:$0xff]   ;;  %v16531_v10 = vshll.u32 %v16448_v56, 16 }
 0xc77   : > { %23267 = vmatprep.subr.bf16.mxu0 %v25075_v48  ;;  %v16517_v48 = vshll.u32 %v16446_v58, 16 }
 0xc79   : > { %23246 = vmatpush3.bf16.msra.mxu1 %v25076_v15  ;;  %v25119_v15 = vld [vmem:[%s29806_s2 + $0xbb0] sm:$0xff]   ;;  %v16519_v33 = vrot.slane %v16517_v48, 1  ;;  %v21342_v48 = vld [vmem:[%s29807_s3 + $0x3] ss:$0 sm:$0xff] }
 0xc7a   : > { %23268 = vmatpush3.bf16.msra.mxu0 %v25077_v3  ;;  %23247 = vmatprep.subr.bf16.mxu1 %v25078_v55  ;;  %v25122_v3 = vld [vmem:[%s29806_s2 + $0xb38] sm:$0xff]   ;;  %v16529_v55 = vshrl.u32 %v16448_v56, 16 }
 0xc7b   : > { %23269 = vmatprep.subr.bf16.mxu0 %v25079_v45  ;;  %v16533_v45 = vrot.slane %v16531_v10, 1 }
 0xc7d   : > { %23248 = vmatpush3.bf16.msra.mxu1 %v25080_v43  ;;  %v16515_v43 = vshrl.u32 %v16446_v58, 16 }
 0xc7e   : > { %23270 = vmatpush3.bf16.msra.mxu0 %v25081_v2  ;;  %23249 = vmatprep.subr.bf16.mxu1 %v25082_v52  ;;  %v16534_v2 = vor.u32 %v16533_v45, %v16529_v55 }
 0xc7f   : > { %23271 = vmatprep.subr.bf16.mxu0 %v25083_v31  ;;  %v16520_v52 = vor.u32 %v16519_v33, %v16515_v43  ;;  %v25125_v43 = vld [vmem:[%s29806_s2 + $0xd40] sm:$0xff]  }
 0xc81   : > { %23250 = vmatpush3.bf16.msra.mxu1 %v25084_v21 }
 0xc82   : > { %23272 = vmatpush3.bf16.msra.mxu0 %v25085_v23  ;;  %23251 = vmatprep.subr.bf16.mxu1 %v25086_v7 }
 0xc83   : > { %23273 = vmatprep.subr.bf16.mxu0 %v25087_v36 }
 0xc85   : > { %23252 = vmatpush3.bf16.msra.mxu1 %v25088_v62 }
 0xc86   : > { %23274 = vmatpush3.bf16.msra.mxu0 %v25089_v38  ;;  %23281 = vmatprep.subr.bf16.mxu1 %v25091_v11 }
 0xc87   : > { %23303 = vmatprep.subr.bf16.mxu0 %v25092_v17 }
 0xc88   : > { %16390 = vmatmul.mubr.bf16.vlgmr.msra.gmra.mrb[12].mxu1 %v16097_v26 }
 0xc89   : > { %16430 = vmatmul.mubr.bf16.vlgmr.msra.gmra.mrb[188].mxu0 %v16099_v4  ;;  %23282 = vmatpush3.bf16.msra.mxu1 %v25093_v25 }
 0xc8a   : > { %16770 = vmatprep.mubr.bf16.mxu1 %v16527_v41  ;;  %23304 = vmatpush3.bf16.msra.mxu0 %v25095_v9 }
 0xc8b   : > { %23283 = vmatprep.subr.bf16.mxu1 %v25096_v0  ;;  %23305 = vmatprep.subr.bf16.mxu0 %v25097_v27 }
 0xc8c   : > { %16810 = vmatprep.mubr.bf16.mxu0 %v16541_v50 }
 0xc8d   : > { %23284 = vmatpush3.bf16.msra.mxu1 %v25098_v42 }
 0xc8e   : > { %23306 = vmatpush3.bf16.msra.mxu0 %v25099_v14  ;;  %23285 = vmatprep.subr.bf16.mxu1 %v25100_v13 }
 0xc8f   : > { %23307 = vmatprep.subr.bf16.mxu0 %v25101_v63 }
 0xc91   : > { %23286 = vmatpush3.bf16.msra.mxu1 %v25102_v57 }
 0xc92   : > { %23308 = vmatpush3.bf16.msra.mxu0 %v25103_v20  ;;  %23287 = vmatprep.subr.bf16.mxu1 %v25104_v12 }
 0xc93   : > { %23309 = vmatprep.subr.bf16.mxu0 %v25105_v29 }
 0xc95   : > { %23288 = vmatpush3.bf16.msra.mxu1 %v25106_v1 }
 0xc96   : > { %23310 = vmatpush3.bf16.msra.mxu0 %v25107_v16  ;;  %23289 = vmatprep.subr.bf16.mxu1 %v25108_v59 }
 0xc97   : > { %23311 = vmatprep.subr.bf16.mxu0 %v25109_v54 }
 0xc99   : > { %23290 = vmatpush3.bf16.msra.mxu1 %v25110_v44 }
 0xc9a   : > { %23312 = vmatpush3.bf16.msra.mxu0 %v25111_v32  ;;  %23291 = vmatprep.subr.bf16.mxu1 %v25112_v22 }
 0xc9b   : > { %23313 = vmatprep.subr.bf16.mxu0 %v25113_v8 }
 0xc9d   : > { %23292 = vmatpush3.bf16.msra.mxu1 %v25114_v49 }
 0xc9e   : > { %23314 = vmatpush3.bf16.msra.mxu0 %v25115_v40  ;;  %23293 = vmatprep.subr.bf16.mxu1 %v25116_v6 }
 0xc9f   : > { %23315 = vmatprep.subr.bf16.mxu0 %v25117_v47 }
 0xca1   : > { %23294 = vmatpush3.bf16.msra.mxu1 %v25118_v61 }
 0xca2   : > { %23316 = vmatpush3.bf16.msra.mxu0 %v25119_v15  ;;  %23295 = vmatprep.subr.bf16.mxu1 %v25120_v39  ;;  %v29896_v39 = vld [vmem:[#allocation6_spill] sm:$0xff] }
 0xca3   : > { %23317 = vmatprep.subr.bf16.mxu0 %v25121_v19  ;;  %v29358_v19 = vsub.s32 1, %v29896_v39  ;;  %v29363_v55 = vsub.s32 3, %v29896_v39 }
 0xca5   : > { %23296 = vmatpush3.bf16.msra.mxu1 %v25122_v3 }
 0xca6   : > { %23318 = vmatpush3.bf16.msra.mxu0 %v25123_v37  ;;  %23995 = vmatprep.subr.mxu1 %v28899_v5 }
 0xca7   : > { %24000 = vmatprep.subr.mxu0 %v28899_v5 }
 0xca8   : > { %16771 = vmatmul.mubr.bf16.vlgmr.msra.gmra.mrb[16].mxu1 %v16520_v52 }
 0xca9   : > { %16811 = vmatmul.mubr.bf16.vlgmr.msra.gmra.mrb[192].mxu0 %v16534_v2  ;;  %23997 = vmatprep.mubr.msk.f32.mxu1 %vm25273_vm1, %v28899_v5  ;;  %v25126_v2 = vld [vmem:[%s29806_s2 + $0xdc0] sm:$0xff]  }
 0xcaa   : > { %24002 = vmatprep.mubr.msk.f32.mxu0 %vm25273_vm1, %v28899_v5 }
 0xcfa   : > { %v15283_v31 = vpop.f32.mrb[0].mxu1  ;;  %v15355_v35 = vpop.f32.mrb[176].mxu0 }
 0xcfb   : > { %15359 = vst [vmem:[#allocation5 + $0x6] sm:$0x1] %v15283_v31  ;;  %15360 = vst [vmem:[#allocation5 + $0x5] sm:$0x1] %v15355_v35  ;;  %v23989_v34 = vpop.f32.mrb[1].mxu1  ;;  %v23994_v21 = vpop.f32.mrb[177].mxu0 }
 0xcfc   : > { %v25127_v35 = vld [vmem:[%s29806_s2 + $0xd00] sm:$0xff]  }
 0xcfd   : > { %v25128_v34 = vld [vmem:[%s29806_s2 + $0xd80] sm:$0xff]  }
 0xd02   : > { %v29360_v3 = vld [vmem:[#allocation5 + $0x1] ss:$2 sm:$0xf] }
 0xd03   : > { %v17075_v37 = vrot.slane %v29360_v3, %v29358_v19  ;;  %v17083_v52 = vrot.slane %v29360_v3, %v29363_v55 }
 0xd05   : > { %v17089_v21 = vpack.c.bf16 %v17075_v37, %v17075_v37  ;;  %v25171_v37 = vld [vmem:[%s29806_s2 + $0xc18] sm:$0xff]  }
 0xd1b   : > { %v23165_v23 = vpop.f32.mrb[4].mxu1 }
 0xd1c   : > { %v23187_v7 = vpop.f32.mrb[180].mxu0  ;;  %v23166_v36 = vpop.f32.mrb[5].mxu1 }
 0xd1d   : > { %v23167_v46 = vadd.f32 %v23166_v36, %v23165_v23  ;;  %v23188_v24 = vpop.f32.mrb[181].mxu0  ;;  %v23168_v62 = vpop.f32.mrb[6].mxu1  ;;  %v25129_v23 = vld [vmem:[%s29806_s2 + $0xd48] sm:$0xff]   ;;  %v17091_v36 = vpack.c.bf16 %v17083_v52, %v17083_v52  ;;  %v25174_v52 = vld [vmem:[%s29806_s2 + $0xce0] sm:$0xff]  }
 0xd1e   : > { %v23189_v38 = vadd.f32 %v23188_v24, %v23187_v7  ;;  %v23190_v11 = vpop.f32.mrb[182].mxu0  ;;  %v23169_v17 = vpop.f32.mrb[7].mxu1  ;;  %v25130_v7 = vld [vmem:[%s29806_s2 + $0xdc8] sm:$0xff]   ;;  %v25134_v24 = vld [vmem:[%s29806_s2 + $0xdd0] sm:$0xff]  }
 0xd1f   : > { %v23191_v60 = vpop.f32.mrb[183].mxu0  ;;  %v25135_v62 = vld [vmem:[%s29806_s2 + $0xd10] sm:$0xff]   ;;  %v25137_v11 = vld [vmem:[%s29806_s2 + $0xd58] sm:$0xff]  }
 0xd20   : > { %v15812_v28 = vadd.f32 %v23189_v38, %v23167_v46  ;;  %v25133_v46 = vld [vmem:[%s29806_s2 + $0xd50] sm:$0xff]   ;;  %v25138_v17 = vld [vmem:[%s29806_s2 + $0xdd8] sm:$0xff]  }
 0xd21   : > { %v25136_v38 = vld [vmem:[%s29806_s2 + $0xd90] sm:$0xff]   ;;  %v25139_v60 = vld [vmem:[%s29806_s2 + $0xd18] sm:$0xff]  }
 0xd3b   : > { %v23209_v30 = vpop.f32.mrb[8].mxu1 }
 0xd3c   : > { %v23231_v4 = vpop.f32.mrb[184].mxu0  ;;  %v23210_v5 = vpop.f32.mrb[9].mxu1 }
 0xd3d   : > { %v23211_v25 = vadd.f32 %v23210_v5, %v23209_v30  ;;  %v23232_v26 = vpop.f32.mrb[185].mxu0  ;;  %v23212_v18 = vpop.f32.mrb[10].mxu1  ;;  %v25141_v30 = vld [vmem:[%s29806_s2 + $0xd60] sm:$0xff]  }
 0xd3e   : > { %v23233_v9 = vadd.f32 %v23232_v26, %v23231_v4  ;;  %v23234_v0 = vpop.f32.mrb[186].mxu0  ;;  %v23213_v27 = vpop.f32.mrb[11].mxu1  ;;  %v25142_v4 = vld [vmem:[%s29806_s2 + $0xde0] sm:$0xff]   ;;  %v25145_v26 = vld [vmem:[%s29806_s2 + $0xd68] sm:$0xff]  }
 0xd3f   : > { %v16044_v41 = vadd.f32 %v23211_v25, %v15812_v28  ;;  %v23235_v50 = vpop.f32.mrb[187].mxu0  ;;  %v25140_v28 = vld [vmem:[%s29806_s2 + $0xd98] sm:$0xff]   ;;  %v25143_v5 = vld [vmem:[%s29806_s2 + $0xd20] sm:$0xff]   ;;  %v25146_v18 = vld [vmem:[%s29806_s2 + $0xde8] sm:$0xff]  }
 0xd40   : > { %v25144_v25 = vld [vmem:[%s29806_s2 + $0xda0] sm:$0xff]   ;;  %v25148_v0 = vld [vmem:[%s29806_s2 + $0xda8] sm:$0xff]   ;;  %v25149_v27 = vld [vmem:[%s29806_s2 + $0xd70] sm:$0xff]  }
 0xd41   : > { %v16084_v42 = vadd.f32 %v23233_v9, %v16044_v41  ;;  %v25147_v9 = vld [vmem:[%s29806_s2 + $0xd28] sm:$0xff]   ;;  %v25150_v41 = vld [vmem:[%s29806_s2 + $0xdf0] sm:$0xff]  }
 0xd42   : > { %v25151_v50 = vld [vmem:[%s29806_s2 + $0xd30] sm:$0xff]  }
 0xd5b   : > { %v23253_v14 = vpop.f32.mrb[12].mxu1 }
 0xd5c   : > { %v23275_v13 = vpop.f32.mrb[188].mxu0  ;;  %v23254_v63 = vpop.f32.mrb[13].mxu1 }
 0xd5d   : > { %v23255_v57 = vadd.f32 %v23254_v63, %v23253_v14  ;;  %v23276_v20 = vpop.f32.mrb[189].mxu0  ;;  %v23256_v12 = vpop.f32.mrb[14].mxu1  ;;  %v25152_v14 = vld [vmem:[%s29806_s2 + $0xdb0] sm:$0xff]   ;;  %v25154_v63 = vld [vmem:[%s29806_s2 + $0xdf8] sm:$0xff]  }
 0xd5e   : > { %v23277_v29 = vadd.f32 %v23276_v20, %v23275_v13  ;;  %v23257_v1 = vpop.f32.mrb[15].mxu1  ;;  %v23278_v16 = vpop.f32.mrb[190].mxu0  ;;  %v25153_v13 = vld [vmem:[%s29806_s2 + $0xd78] sm:$0xff]   ;;  %v29474_v12 = vld [vmem:[#allocation5] ss:$2 sm:$0xf] }
 0xd5f   : > { %v23279_v59 = vpop.f32.mrb[191].mxu0  ;;  %v25155_v20 = vld [vmem:[%s29806_s2 + $0xd38] sm:$0xff]   ;;  %v25157_v16 = vld [vmem:[%s29806_s2 + $0xc40] sm:$0xff]  }
 0xd60   : > { %v16432_v54 = vadd.f32 %v23277_v29, %v23255_v57  ;;  %v29469_v57 = vsub.s32 2, %v29896_v39  ;;  %v25156_v1 = vld [vmem:[%s29806_s2 + $0xdb8] sm:$0xff]  }
 0xd62   : > { %v16437_v44 = vadd.f32 %v16432_v54, %v16084_v42  ;;  %v29457_v42 = vsub.s32 0, %v29896_v39  ;;  %v17079_v59 = vrot.slane %v29360_v3, %v29469_v57  ;;  %v25158_v54 = vld [vmem:[%s29806_s2 + $0xcc0] sm:$0xff]   ;;  %v25167_v39 = vld [vmem:[%s29806_s2 + $0xc10] sm:$0xff]  }
 0xd64   : > { %v17071_v29 = vrot.slane %v29360_v3, %v29457_v42  ;;  %v25168_v3 = vld [vmem:[%s29806_s2 + $0xc90] sm:$0xff]  }
 0xd7b   : > { %v23297_v32 = vpop.f32.mrb[16].mxu1 }
 0xd7c   : > { %v23319_v22 = vpop.f32.mrb[192].mxu0  ;;  %v23298_v8 = vpop.f32.mrb[17].mxu1 }
 0xd7d   : > { %v23299_v49 = vadd.f32 %v23298_v8, %v23297_v32  ;;  %v23320_v56 = vpop.f32.mrb[193].mxu0  ;;  %v23300_v58 = vpop.f32.mrb[18].mxu1  ;;  %v25159_v32 = vld [vmem:[%s29806_s2 + $0xc00] sm:$0xff]   ;;  %v17088_v8 = vpack.c.bf16 %v17071_v29, %v17071_v29  ;;  %v25204_v29 = vld [vmem:[%s29806_s2 + $0xe98] sm:$0xff]  }
 0xd7e   : > { %v23321_v40 = vadd.f32 %v23320_v56, %v23319_v22  ;;  %v23301_v6 = vpop.f32.mrb[19].mxu1  ;;  %v23322_v47 = vpop.f32.mrb[194].mxu0  ;;  %v16991_v22 = vrot.slane %v29474_v12, %v29363_v55  ;;  %v17090_v56 = vpack.c.bf16 %v17079_v59, %v17079_v59  ;;  %v25161_v58 = vld [vmem:[%s29806_s2 + $0xc48] sm:$0xff]   ;;  %v25207_v59 = vld [vmem:[%s29806_s2 + $0xe20] sm:$0xff]  }
 0xd7f   : > { %v23323_v61 = vpop.f32.mrb[195].mxu0  ;;  %v25162_v6 = vld [vmem:[%s29806_s2 + $0xcc8] sm:$0xff]  }
 0xd80   : > { %v16813_v10 = vadd.f32 %v23321_v40, %v23299_v49  ;;  %v25160_v49 = vld [vmem:[%s29806_s2 + $0xc80] sm:$0xff]   ;;  %v16999_v47 = vpack.c.bf16 %v16991_v22, %v16991_v22  ;;  %v25163_v61 = vld [vmem:[%s29806_s2 + $0xc08] sm:$0xff]  }
 0xd81   : > { %v25211_v22 = vld [vmem:[%s29806_s2 + $0xe28] sm:$0xff]  }
 0xd82   : > { %v16818_v15 = vadd.f32 %v16813_v10, %v16437_v44  ;;  %v16983_v44 = vrot.slane %v29474_v12, %v29358_v19  ;;  %v25164_v10 = vld [vmem:[%s29806_s2 + $0xc88] sm:$0xff]  }
 0xd84   : > { %v16824_v45 = vadd.f32 %v21342_v48, %v16818_v15  ;;  %v16997_v40 = vpack.c.bf16 %v16983_v44, %v16983_v44  ;;  %v25165_v48 = vld [vmem:[%s29806_s2 + $0xc50] sm:$0xff]   ;;  %v25209_v44 = vld [vmem:[%s29806_s2 + $0xe68] sm:$0xff]  }
 0xd85   : > { %v25166_v15 = vld [vmem:[%s29806_s2 + $0xcd0] sm:$0xff]  }
 0xd86   : > { %vm16825_vm1 = vcmp.gt.f32.partialorder %v16824_v45, 0.0  ;;  %v16826_v33 = vmul.f32 0.2, %v16824_v45 }
 0xd88   : > { %v16827_v31 = vsel %vm16825_vm1, %v16824_v45, %v16826_v33  ;;  %v25169_v45 = vld [vmem:[%s29806_s2 + $0xc58] sm:$0xff]  }
 0xd89   : > { %23996 = vmatpush3.msk.msra.mxu1 %vm15213_vm9, %v16827_v31  ;;  %24001 = vmatpush3.msk.msra.mxu0 %vm15213_vm9, %v16827_v31  ;;  %v25170_v33 = vld [vmem:[%s29806_s2 + $0xcd8] sm:$0xff]   ;;  %v25175_v31 = vld [vmem:[%s29806_s2 + $0xc20] sm:$0xff]  }
 0xd8a   : > { %23998 = vmatmul.mubr.msk.f32.vlgmr.msra.gmra.mrb[2].mxu1 %vm15210_vm10, %v29894_v53  ;;  %24003 = vmatmul.mubr.msk.f32.vlgmr.msra.gmra.mrb[178].mxu0 %vm15210_vm10, %v29895_v51  ;;  %v25131_v53 = vld [vmem:[%s29806_s2 + $0xd08] sm:$0xff]  }
 0xd8b   : > { %23329 = vmatprep.subr.bf16.mxu1 %v25125_v43  ;;  %23351 = vmatprep.subr.bf16.mxu0 %v25126_v2  ;;  %v25132_v51 = vld [vmem:[%s29806_s2 + $0xd88] sm:$0xff]   ;;  %v25172_v43 = vld [vmem:[%s29806_s2 + $0xc98] sm:$0xff]   ;;  %v25173_v2 = vld [vmem:[%s29806_s2 + $0xc60] sm:$0xff]  }
 0xd8c   : > { %23330 = vmatpush3.bf16.msra.mxu1 %v25127_v35  ;;  %17381 = vmatprep.mubr.bf16.mxu1 %v17089_v21  ;;  %v25176_v35 = vld [vmem:[%s29806_s2 + $0xca0] sm:$0xff]   ;;  %v25178_v21 = vld [vmem:[%s29806_s2 + $0xce8] sm:$0xff]  }
 0xd8d   : > { %23352 = vmatpush3.bf16.msra.mxu0 %v25128_v34  ;;  %17421 = vmatprep.mubr.bf16.mxu0 %v17091_v36  ;;  %v25177_v34 = vld [vmem:[%s29806_s2 + $0xc68] sm:$0xff]   ;;  %v25181_v36 = vld [vmem:[%s29806_s2 + $0xc70] sm:$0xff]  }
 0xd8e   : > { %23331 = vmatprep.subr.bf16.mxu1 %v25129_v23  ;;  %23353 = vmatprep.subr.bf16.mxu0 %v25130_v7  ;;  %v25179_v23 = vld [vmem:[%s29806_s2 + $0xc28] sm:$0xff]  }
 0xd8f   : > { %v25180_v7 = vld [vmem:[%s29806_s2 + $0xca8] sm:$0xff]  }
 0xd90   : > { %23332 = vmatpush3.bf16.msra.mxu1 %v25131_v53  ;;  %v25182_v53 = vld [vmem:[%s29806_s2 + $0xcf0] sm:$0xff]  }
 0xd91   : > { %23354 = vmatpush3.bf16.msra.mxu0 %v25132_v51  ;;  %23333 = vmatprep.subr.bf16.mxu1 %v25133_v46  ;;  %v25183_v51 = vld [vmem:[%s29806_s2 + $0xc30] sm:$0xff]  }
 0xd92   : > { %23355 = vmatprep.subr.bf16.mxu0 %v25134_v24  ;;  %v25184_v46 = vld [vmem:[%s29806_s2 + $0xcb0] sm:$0xff]   ;;  %v25185_v24 = vld [vmem:[%s29806_s2 + $0xc78] sm:$0xff]  }
 0xd94   : > { %23334 = vmatpush3.bf16.msra.mxu1 %v25135_v62  ;;  %v25186_v62 = vld [vmem:[%s29806_s2 + $0xcf8] sm:$0xff]  }
 0xd95   : > { %23356 = vmatpush3.bf16.msra.mxu0 %v25136_v38  ;;  %23335 = vmatprep.subr.bf16.mxu1 %v25137_v11  ;;  %v25187_v38 = vld [vmem:[%s29806_s2 + $0xc38] sm:$0xff]   ;;  %v16979_v11 = vrot.slane %v29474_v12, %v29457_v42 }
 0xd96   : > { %23357 = vmatprep.subr.bf16.mxu0 %v25138_v17  ;;  %v25188_v17 = vld [vmem:[%s29806_s2 + $0xcb8] sm:$0xff]  }
 0xd98   : > { %23336 = vmatpush3.bf16.msra.mxu1 %v25139_v60  ;;  %v25189_v60 = vld [vmem:[%s29806_s2 + $0xe40] sm:$0xff]  }
 0xd99   : > { %23358 = vmatpush3.bf16.msra.mxu0 %v25140_v28  ;;  %23337 = vmatprep.subr.bf16.mxu1 %v25141_v30  ;;  %v16987_v28 = vrot.slane %v29474_v12, %v29469_v57  ;;  %v25190_v30 = vld [vmem:[%s29806_s2 + $0xec0] sm:$0xff]   ;;  %v25203_v12 = vld [vmem:[%s29806_s2 + $0xe18] sm:$0xff]  }
 0xd9a   : > { %23359 = vmatprep.subr.bf16.mxu0 %v25142_v4  ;;  %v25191_v4 = vld [vmem:[%s29806_s2 + $0xe00] sm:$0xff]  }
 0xd9c   : > { %23338 = vmatpush3.bf16.msra.mxu1 %v25143_v5  ;;  %v16996_v5 = vpack.c.bf16 %v16979_v11, %v16979_v11  ;;  %v25228_v11 = vld [vmem:[%s29806_s2 + $0xf88] sm:$0xff]  }
 0xd9d   : > { %23360 = vmatpush3.bf16.msra.mxu0 %v25144_v25  ;;  %23339 = vmatprep.subr.bf16.mxu1 %v25145_v26  ;;  %v25192_v25 = vld [vmem:[%s29806_s2 + $0xe80] sm:$0xff]   ;;  %v25193_v26 = vld [vmem:[%s29806_s2 + $0xe48] sm:$0xff]  }
 0xd9e   : > { %23361 = vmatprep.subr.bf16.mxu0 %v25146_v18  ;;  %v16998_v18 = vpack.c.bf16 %v16987_v28, %v16987_v28  ;;  %v25231_v28 = vld [vmem:[%s29806_s2 + $0xf10] sm:$0xff]  }
 0xda0   : > { %23340 = vmatpush3.bf16.msra.mxu1 %v25147_v9  ;;  %v25194_v9 = vld [vmem:[%s29806_s2 + $0xec8] sm:$0xff]  }
 0xda1   : > { %23362 = vmatpush3.bf16.msra.mxu0 %v25148_v0  ;;  %23341 = vmatprep.subr.bf16.mxu1 %v25149_v27  ;;  %v25195_v0 = vld [vmem:[%s29806_s2 + $0xe08] sm:$0xff]  }
 0xda2   : > { %23363 = vmatprep.subr.bf16.mxu0 %v25150_v41  ;;  %v25196_v27 = vld [vmem:[%s29806_s2 + $0xe88] sm:$0xff]   ;;  %v25197_v41 = vld [vmem:[%s29806_s2 + $0xe50] sm:$0xff]  }
 0xda4   : > { %23342 = vmatpush3.bf16.msra.mxu1 %v25151_v50  ;;  %v25198_v50 = vld [vmem:[%s29806_s2 + $0xed0] sm:$0xff]  }
 0xda5   : > { %23364 = vmatpush3.bf16.msra.mxu0 %v25152_v14  ;;  %23343 = vmatprep.subr.bf16.mxu1 %v25153_v13  ;;  %v25199_v14 = vld [vmem:[%s29806_s2 + $0xe10] sm:$0xff]  }
 0xda6   : > { %23365 = vmatprep.subr.bf16.mxu0 %v25154_v63  ;;  %v25200_v13 = vld [vmem:[%s29806_s2 + $0xe90] sm:$0xff]   ;;  %v25201_v63 = vld [vmem:[%s29806_s2 + $0xe58] sm:$0xff]  }
 0xda8   : > { %23344 = vmatpush3.bf16.msra.mxu1 %v25155_v20  ;;  %v25202_v20 = vld [vmem:[%s29806_s2 + $0xed8] sm:$0xff]  }
 0xda9   : > { %23366 = vmatpush3.bf16.msra.mxu0 %v25156_v1  ;;  %23373 = vmatprep.subr.bf16.mxu1 %v25157_v16  ;;  %v25205_v1 = vld [vmem:[%s29806_s2 + $0xe60] sm:$0xff]  }
 0xdaa   : > { %23395 = vmatprep.subr.bf16.mxu0 %v25158_v54  ;;  %v25206_v16 = vld [vmem:[%s29806_s2 + $0xee0] sm:$0xff]  }
 0xdab   : > { %17382 = vmatmul.mubr.bf16.vlgmr.msra.gmra.mrb[20].mxu1 %v17088_v8  ;;  %v25208_v54 = vld [vmem:[%s29806_s2 + $0xea0] sm:$0xff]   ;;  %v25212_v8 = vld [vmem:[%s29806_s2 + $0xea8] sm:$0xff]  }
 0xdac   : > { %17422 = vmatmul.mubr.bf16.vlgmr.msra.gmra.mrb[196].mxu0 %v17090_v56  ;;  %23374 = vmatpush3.bf16.msra.mxu1 %v25159_v32  ;;  %v25210_v32 = vld [vmem:[%s29806_s2 + $0xee8] sm:$0xff]   ;;  %v25214_v56 = vld [vmem:[%s29806_s2 + $0xef0] sm:$0xff]  }
 0xdad   : > { %17653 = vmatprep.mubr.bf16.mxu1 %v16997_v40  ;;  %23396 = vmatpush3.bf16.msra.mxu0 %v25160_v49  ;;  %v25213_v49 = vld [vmem:[%s29806_s2 + $0xe70] sm:$0xff]  }
 0xdae   : > { %17693 = vmatprep.mubr.bf16.mxu0 %v16999_v47  ;;  %23375 = vmatprep.subr.bf16.mxu1 %v25161_v58  ;;  %v25215_v58 = vld [vmem:[%s29806_s2 + $0xe30] sm:$0xff]   ;;  %v25218_v47 = vld [vmem:[%s29806_s2 + $0xef8] sm:$0xff]  }
 0xdaf   : > { %23397 = vmatprep.subr.bf16.mxu0 %v25162_v6  ;;  %v25216_v40 = vld [vmem:[%s29806_s2 + $0xeb0] sm:$0xff]   ;;  %v25217_v6 = vld [vmem:[%s29806_s2 + $0xe78] sm:$0xff]  }
 0xdb0   : > { %23376 = vmatpush3.bf16.msra.mxu1 %v25163_v61  ;;  %v25219_v61 = vld [vmem:[%s29806_s2 + $0xe38] sm:$0xff]  }
 0xdb1   : > { %23398 = vmatpush3.bf16.msra.mxu0 %v25164_v10  ;;  %23377 = vmatprep.subr.bf16.mxu1 %v25165_v48  ;;  %v25220_v10 = vld [vmem:[%s29806_s2 + $0xeb8] sm:$0xff]   ;;  %v25221_v48 = vld [vmem:[%s29806_s2 + $0xf40] sm:$0xff]  }
 0xdb2   : > { %23399 = vmatprep.subr.bf16.mxu0 %v25166_v15  ;;  %v25222_v15 = vld [vmem:[%s29806_s2 + $0xfc0] sm:$0xff]  }
 0xdb4   : > { %23378 = vmatpush3.bf16.msra.mxu1 %v25167_v39 }
 0xdb5   : > { %23400 = vmatpush3.bf16.msra.mxu0 %v25168_v3  ;;  %23379 = vmatprep.subr.bf16.mxu1 %v25169_v45 }
 0xdb6   : > { %23401 = vmatprep.subr.bf16.mxu0 %v25170_v33 }
 0xdb8   : > { %23380 = vmatpush3.bf16.msra.mxu1 %v25171_v37 }
 0xdb9   : > { %23402 = vmatpush3.bf16.msra.mxu0 %v25172_v43  ;;  %23381 = vmatprep.subr.bf16.mxu1 %v25173_v2 }
 0xdba   : > { %23403 = vmatprep.subr.bf16.mxu0 %v25174_v52 }
 0xdbc   : > { %23382 = vmatpush3.bf16.msra.mxu1 %v25175_v31 }
 0xdbd   : > { %23404 = vmatpush3.bf16.msra.mxu0 %v25176_v35  ;;  %23383 = vmatprep.subr.bf16.mxu1 %v25177_v34 }
 0xdbe   : > { %23405 = vmatprep.subr.bf16.mxu0 %v25178_v21 }
 0xdc0   : > { %23384 = vmatpush3.bf16.msra.mxu1 %v25179_v23 }
 0xdc1   : > { %23406 = vmatpush3.bf16.msra.mxu0 %v25180_v7  ;;  %23385 = vmatprep.subr.bf16.mxu1 %v25181_v36 }
 0xdc2   : > { %23407 = vmatprep.subr.bf16.mxu0 %v25182_v53 }
 0xdc4   : > { %23386 = vmatpush3.bf16.msra.mxu1 %v25183_v51  ;;  %v25223_v51 = vld [vmem:[%s29806_s2 + $0xf00] sm:$0xff]  }
 0xdc5   : > { %23408 = vmatpush3.bf16.msra.mxu0 %v25184_v46  ;;  %23387 = vmatprep.subr.bf16.mxu1 %v25185_v24  ;;  %v25224_v46 = vld [vmem:[%s29806_s2 + $0xf80] sm:$0xff]   ;;  %v25225_v24 = vld [vmem:[%s29806_s2 + $0xf48] sm:$0xff]  }
 0xdc6   : > { %23409 = vmatprep.subr.bf16.mxu0 %v25186_v62 }
 0xdc8   : > { %23388 = vmatpush3.bf16.msra.mxu1 %v25187_v38  ;;  %v25227_v38 = vld [vmem:[%s29806_s2 + $0xf08] sm:$0xff]  }
 0xdc9   : > { %23410 = vmatpush3.bf16.msra.mxu0 %v25188_v17  ;;  %23417 = vmatprep.subr.bf16.mxu1 %v25189_v60  ;;  %v25229_v17 = vld [vmem:[%s29806_s2 + $0xf50] sm:$0xff]  }
 0xdca   : > { %23439 = vmatprep.subr.bf16.mxu0 %v25190_v30  ;;  %v25230_v60 = vld [vmem:[%s29806_s2 + $0xfd0] sm:$0xff]  }
 0xdcb   : > { %17654 = vmatmul.mubr.bf16.vlgmr.msra.gmra.mrb[24].mxu1 %v16996_v5  ;;  %v25232_v30 = vld [vmem:[%s29806_s2 + $0xf90] sm:$0xff]   ;;  %v25234_v5 = vld [vmem:[%s29806_s2 + $0xfd8] sm:$0xff]  }
 0xdcc   : > { %17694 = vmatmul.mubr.bf16.vlgmr.msra.gmra.mrb[200].mxu0 %v16998_v18  ;;  %23418 = vmatpush3.bf16.msra.mxu1 %v25191_v4  ;;  %v25233_v4 = vld [vmem:[%s29806_s2 + $0xf58] sm:$0xff]   ;;  %v25237_v18 = vld [vmem:[%s29806_s2 + $0xf60] sm:$0xff]  }
 0xdcd   : > { %23440 = vmatpush3.bf16.msra.mxu0 %v25192_v25  ;;  %23419 = vmatprep.subr.bf16.mxu1 %v25193_v26  ;;  %v25235_v25 = vld [vmem:[%s29806_s2 + $0xf18] sm:$0xff]  }
 0xdce   : > { %23441 = vmatprep.subr.bf16.mxu0 %v25194_v9  ;;  %v25236_v26 = vld [vmem:[%s29806_s2 + $0xf98] sm:$0xff]   ;;  %v25238_v9 = vld [vmem:[%s29806_s2 + $0xfe0] sm:$0xff]  }
 0xdd0   : > { %23420 = vmatpush3.bf16.msra.mxu1 %v25195_v0  ;;  %v25239_v0 = vld [vmem:[%s29806_s2 + $0xf20] sm:$0xff]  }
 0xdd1   : > { %23442 = vmatpush3.bf16.msra.mxu0 %v25196_v27  ;;  %23421 = vmatprep.subr.bf16.mxu1 %v25197_v41  ;;  %v25240_v27 = vld [vmem:[%s29806_s2 + $0xfa0] sm:$0xff]   ;;  %v25241_v41 = vld [vmem:[%s29806_s2 + $0xf68] sm:$0xff]  }
 0xdd2   : > { %23443 = vmatprep.subr.bf16.mxu0 %v25198_v50  ;;  %v25242_v50 = vld [vmem:[%s29806_s2 + $0xfe8] sm:$0xff]  }
 0xdd4   : > { %23422 = vmatpush3.bf16.msra.mxu1 %v25199_v14  ;;  %v25243_v14 = vld [vmem:[%s29806_s2 + $0xf28] sm:$0xff]  }
 0xdd5   : > { %23444 = vmatpush3.bf16.msra.mxu0 %v25200_v13  ;;  %23423 = vmatprep.subr.bf16.mxu1 %v25201_v63  ;;  %v25244_v13 = vld [vmem:[%s29806_s2 + $0xfa8] sm:$0xff]   ;;  %v25245_v63 = vld [vmem:[%s29806_s2 + $0xf70] sm:$0xff]  }
 0xdd6   : > { %23445 = vmatprep.subr.bf16.mxu0 %v25202_v20  ;;  %v25246_v20 = vld [vmem:[%s29806_s2 + $0xff0] sm:$0xff]  }
 0xdd8   : > { %23424 = vmatpush3.bf16.msra.mxu1 %v25203_v12 }
 0xdd9   : > { %23446 = vmatpush3.bf16.msra.mxu0 %v25204_v29  ;;  %23425 = vmatprep.subr.bf16.mxu1 %v25205_v1 }
 0xdda   : > { %23447 = vmatprep.subr.bf16.mxu0 %v25206_v16 }
 0xddc   : > { %23426 = vmatpush3.bf16.msra.mxu1 %v25207_v59 }
 0xddd   : > { %23448 = vmatpush3.bf16.msra.mxu0 %v25208_v54  ;;  %23427 = vmatprep.subr.bf16.mxu1 %v25209_v44  ;;  %v25247_v44 = vld [vmem:[%s29806_s2 + $0xf30] sm:$0xff]  }
 0xdde   : > { %23449 = vmatprep.subr.bf16.mxu0 %v25210_v32  ;;  %v25248_v32 = vld [vmem:[%s29806_s2 + $0xfb0] sm:$0xff]  }
 0xde0   : > { %23428 = vmatpush3.bf16.msra.mxu1 %v25211_v22 }
 0xde1   : > { %23450 = vmatpush3.bf16.msra.mxu0 %v25212_v8  ;;  %23429 = vmatprep.subr.bf16.mxu1 %v25213_v49 }
 0xde2   : > { %23451 = vmatprep.subr.bf16.mxu0 %v25214_v56  ;;  %v25249_v56 = vld [vmem:[%s29806_s2 + $0xf78] sm:$0xff]  }
 0xde4   : > { %23430 = vmatpush3.bf16.msra.mxu1 %v25215_v58  ;;  %v25250_v58 = vld [vmem:[%s29806_s2 + $0xff8] sm:$0xff]  }
 0xde5   : > { %23452 = vmatpush3.bf16.msra.mxu0 %v25216_v40  ;;  %23431 = vmatprep.subr.bf16.mxu1 %v25217_v6 }
 0xde6   : > { %23453 = vmatprep.subr.bf16.mxu0 %v25218_v47 }
 0xde8   : > { %23432 = vmatpush3.bf16.msra.mxu1 %v25219_v61 }
 0xde9   : > { %23454 = vmatpush3.bf16.msra.mxu0 %v25220_v10  ;;  %23461 = vmatprep.subr.bf16.mxu1 %v25221_v48  ;;  %v25251_v10 = vld [vmem:[%s29806_s2 + $0xf38] sm:$0xff]  }
 0xdea   : > { %23483 = vmatprep.subr.bf16.mxu0 %v25222_v15  ;;  %v25252_v48 = vld [vmem:[%s29806_s2 + $0xfb8] sm:$0xff]  }
 0xe5d   : > { %v16897_v39 = vpop.f32.mrb[2].mxu1  ;;  %v16967_v3 = vpop.f32.mrb[178].mxu0 }
 0xe5e   : > { %16972 = vst [vmem:[#allocation5 + $0xa] sm:$0x1] %v16897_v39  ;;  %16973 = vst [vmem:[#allocation5 + $0x9] sm:$0x1] %v16967_v3  ;;  %v23999_v45 = vpop.f32.mrb[3].mxu1  ;;  %v24004_v33 = vpop.f32.mrb[179].mxu0 }
 0xe65   : > { %v17701_v37 = vld [vmem:[#allocation5 + $0x8] ss:$2 sm:$0xf]  ;;  %v29689_v43 = vld [vmem:[#allocation5 + $0x9] ss:$2 sm:$0xf] }
 0xe66   : > { %v17706_v2 = vrot.slane %v17701_v37, %v29457_v42  ;;  %v17710_v52 = vrot.slane %v17701_v37, %v29358_v19  ;;  %v17718_v31 = vrot.slane %v17701_v37, %v29363_v55  ;;  %v17714_v35 = vrot.slane %v17701_v37, %v29469_v57 }
 0xe67   : > { %v18075_v34 = vrot.slane %v29689_v43, %v29358_v19  ;;  %v18083_v21 = vrot.slane %v29689_v43, %v29363_v55  ;;  %v25226_v19 = vld [vmem:[%s29806_s2 + $0xfc8] sm:$0xff]   ;;  %v18071_v47 = vrot.slane %v29689_v43, %v29457_v42  ;;  %v18079_v61 = vrot.slane %v29689_v43, %v29469_v57 }
 0xe68   : > { %v17723_v23 = vpack.c.bf16 %v17706_v2, %v17706_v2  ;;  %v17724_v7 = vpack.c.bf16 %v17710_v52, %v17710_v52  ;;  %v17726_v36 = vpack.c.bf16 %v17718_v31, %v17718_v31  ;;  %v17725_v53 = vpack.c.bf16 %v17714_v35, %v17714_v35 }
 0xe69   : > { %v18089_v55 = vpack.c.bf16 %v18075_v34, %v18075_v34  ;;  %v18091_v62 = vpack.c.bf16 %v18083_v21, %v18083_v21  ;;  %v18088_v15 = vpack.c.bf16 %v18071_v47, %v18071_v47  ;;  %v18090_v39 = vpack.c.bf16 %v18079_v61, %v18079_v61 }
 0xe6a   : > { %18016 = vmatprep.mubr.bf16.mxu1 %v17724_v7  ;;  %18056 = vmatprep.mubr.bf16.mxu0 %v17726_v36 }
 0xe6b   : > { %18017 = vmatmul.mubr.bf16.vlgmr.msra.gmra.mrb[28].mxu1 %v17723_v23  ;;  %18057 = vmatmul.mubr.bf16.vlgmr.msra.gmra.mrb[204].mxu0 %v17725_v53 }
 0xe6c   : > { %23462 = vmatpush3.bf16.msra.mxu1 %v25223_v51  ;;  %23484 = vmatpush3.bf16.msra.mxu0 %v25224_v46 }
 0xe6d   : > { %23463 = vmatprep.subr.bf16.mxu1 %v25225_v24  ;;  %23485 = vmatprep.subr.bf16.mxu0 %v25226_v19 }
 0xe6e   : > { %18381 = vmatprep.mubr.bf16.mxu1 %v18089_v55  ;;  %18421 = vmatprep.mubr.bf16.mxu0 %v18091_v62 }
 0xe70   : > { %23464 = vmatpush3.bf16.msra.mxu1 %v25227_v38  ;;  %23486 = vmatpush3.bf16.msra.mxu0 %v25228_v11 }
 0xe71   : > { %23465 = vmatprep.subr.bf16.mxu1 %v25229_v17  ;;  %23487 = vmatprep.subr.bf16.mxu0 %v25230_v60 }
 0xe74   : > { %23466 = vmatpush3.bf16.msra.mxu1 %v25231_v28  ;;  %23488 = vmatpush3.bf16.msra.mxu0 %v25232_v30 }
 0xe75   : > { %23467 = vmatprep.subr.bf16.mxu1 %v25233_v4  ;;  %23489 = vmatprep.subr.bf16.mxu0 %v25234_v5 }
 0xe78   : > { %23468 = vmatpush3.bf16.msra.mxu1 %v25235_v25  ;;  %23490 = vmatpush3.bf16.msra.mxu0 %v25236_v26 }
 0xe79   : > { %23469 = vmatprep.subr.bf16.mxu1 %v25237_v18  ;;  %23491 = vmatprep.subr.bf16.mxu0 %v25238_v9 }
 0xe7c   : > { %23470 = vmatpush3.bf16.msra.mxu1 %v25239_v0  ;;  %23492 = vmatpush3.bf16.msra.mxu0 %v25240_v27  ;;  %v18430_v27 = vld [vmem:[%s29807_s3 + $0x4] sm:$0x1] }
 0xe7d   : > { %23471 = vmatprep.subr.bf16.mxu1 %v25241_v41  ;;  %23493 = vmatprep.subr.bf16.mxu0 %v25242_v50 }
 0xe7e   : > { %v23345_v12 = vpop.f32.mrb[20].mxu1 }
 0xe7f   : > { %v23367_v29 = vpop.f32.mrb[196].mxu0  ;;  %v23346_v1 = vpop.f32.mrb[21].mxu1 }
 0xe80   : > { %v23347_v16 = vadd.f32 %v23346_v1, %v23345_v12  ;;  %v23368_v59 = vpop.f32.mrb[197].mxu0  ;;  %v23348_v54 = vpop.f32.mrb[22].mxu1  ;;  %23472 = vmatpush3.bf16.msra.mxu1 %v25243_v14  ;;  %23494 = vmatpush3.bf16.msra.mxu0 %v25244_v13 }
 0xe81   : > { %v23369_v22 = vadd.f32 %v23368_v59, %v23367_v29  ;;  %v23370_v8 = vpop.f32.mrb[198].mxu0  ;;  %v23349_v49 = vpop.f32.mrb[23].mxu1  ;;  %23473 = vmatprep.subr.bf16.mxu1 %v25245_v63  ;;  %23495 = vmatprep.subr.bf16.mxu0 %v25246_v20 }
 0xe82   : > { %v23371_v40 = vpop.f32.mrb[199].mxu0 }
 0xe83   : > { %v17424_v6 = vadd.f32 %v23369_v22, %v23347_v16 }
 0xe84   : > { %23474 = vmatpush3.bf16.msra.mxu1 %v25247_v44  ;;  %23496 = vmatpush3.bf16.msra.mxu0 %v25248_v32 }
 0xe85   : > { %23475 = vmatprep.subr.bf16.mxu1 %v25249_v56  ;;  %23497 = vmatprep.subr.bf16.mxu0 %v25250_v58 }
 0xe88   : > { %23476 = vmatpush3.bf16.msra.mxu1 %v25251_v10  ;;  %23498 = vmatpush3.bf16.msra.mxu0 %v25252_v48 }
 0xe8b   : > { %18382 = vmatmul.mubr.bf16.vlgmr.msra.gmra.mrb[32].mxu1 %v18088_v15  ;;  %18422 = vmatmul.mubr.bf16.vlgmr.msra.gmra.mrb[208].mxu0 %v18090_v39 }
 0xe9e   : > { %v23389_v3 = vpop.f32.mrb[24].mxu1 }
 0xe9f   : > { %v23411_v57 = vpop.f32.mrb[200].mxu0  ;;  %v23390_v45 = vpop.f32.mrb[25].mxu1 }
 0xea0   : > { %v23391_v33 = vadd.f32 %v23390_v45, %v23389_v3  ;;  %v23412_v37 = vpop.f32.mrb[201].mxu0  ;;  %v23392_v43 = vpop.f32.mrb[26].mxu1 }
 0xea1   : > { %v23413_v2 = vadd.f32 %v23412_v37, %v23411_v57  ;;  %v23414_v52 = vpop.f32.mrb[202].mxu0  ;;  %v23393_v31 = vpop.f32.mrb[27].mxu1 }
 0xea2   : > { %v17656_v35 = vadd.f32 %v23391_v33, %v17424_v6  ;;  %v23415_v34 = vpop.f32.mrb[203].mxu0 }
 0xea4   : > { %v17696_v21 = vadd.f32 %v23413_v2, %v17656_v35 }
 0xf3e   : > { %v23433_v23 = vpop.f32.mrb[28].mxu1  ;;  %v23455_v7 = vpop.f32.mrb[204].mxu0 }
 0xf3f   : > { %v23434_v36 = vpop.f32.mrb[29].mxu1  ;;  %v23456_v53 = vpop.f32.mrb[205].mxu0 }
 0xf40   : > { %v23435_v51 = vadd.f32 %v23434_v36, %v23433_v23  ;;  %v23457_v46 = vadd.f32 %v23456_v53, %v23455_v7  ;;  %v23436_v24 = vpop.f32.mrb[30].mxu1  ;;  %v23458_v19 = vpop.f32.mrb[206].mxu0 }
 0xf41   : > { %v23437_v55 = vpop.f32.mrb[31].mxu1  ;;  %v23459_v62 = vpop.f32.mrb[207].mxu0 }
 0xf42   : > { %v18059_v38 = vadd.f32 %v23457_v46, %v23435_v51 }
 0xf44   : > { %v18064_v11 = vadd.f32 %v18059_v38, %v17696_v21 }
 0xf5e   : > { %v23477_v17 = vpop.f32.mrb[32].mxu1  ;;  %v23499_v60 = vpop.f32.mrb[208].mxu0 }
 0xf5f   : > { %v23478_v28 = vpop.f32.mrb[33].mxu1  ;;  %v23500_v30 = vpop.f32.mrb[209].mxu0 }
 0xf60   : > { %v23479_v4 = vadd.f32 %v23478_v28, %v23477_v17  ;;  %v23501_v5 = vadd.f32 %v23500_v30, %v23499_v60  ;;  %v23480_v25 = vpop.f32.mrb[34].mxu1  ;;  %v23502_v26 = vpop.f32.mrb[210].mxu0 }
 0xf61   : > { %v23481_v18 = vpop.f32.mrb[35].mxu1  ;;  %v23503_v9 = vpop.f32.mrb[211].mxu0 }
 0xf62   : > { %v18424_v0 = vadd.f32 %v23501_v5, %v23479_v4 }
 0xf64   : > { %v18429_v41 = vadd.f32 %v18424_v0, %v18064_v11 }
 0xf66   : > { %v18431_v50 = vadd.f32 %v18430_v27, %v18429_v41 }
 0xf68   : > { %v18432_v14 = vsub.f32 0.0, %v18431_v50 }
 0xf6a   : > { %v18433_v13 = vmul.f32 1.442695, %v18432_v14 }
 0xf6c   : > { %25253 = vpow2.f32 %v18433_v13 }
 0xf76   : > { %v25254_v63 = vpop.eup %25253 }
 0xf77   : > { %v18435_v20 = vadd.f32 1.0, %v25254_v63 }
 0xf79   : > { %25255 = vrcp.f32 %v18435_v20 }
 0xf83   : > { %v25256_v12 = vpop.eup %25255 }
 0xf84   : > { %v18440_v29 = vrot.slane %v25256_v12, %v29457_v42 }
 0xf86   : > { %18441 = vst [vmem:[%s195_s8] sm:$0xff] %v18440_v29 }
 0xf87 PF: > { %s14_s15 = sadd.s32 1, %s25270_s15  }
 0xf88   : > { %p11_p4 = scmp.ge.s32.totalorder %s14_s15, 4  }
 0xf8a   :  { %13 = sbr.rel (!%p11_p4) target bundleno = 1 (0x1), region = 102 }

</bundles_post_ra>
